<compile_context>
chip_gen: v7x
topology: tpu7x:2x2x1
jax: 0.10.0
libtpu: 0.0.40
codegen_flags: <defaults>
</compile_context>

<pallas_src>
import functools

import jax
import jax.numpy as jnp
from jax.experimental import pallas as pl
from jax.experimental.pallas import tpu as pltpu


# ---------------------------------------------------------------------------
# In-kernel helper: 2x2 max pooling over rows of a (H*W, C) tile.
# Rows are ordered (h, w) with w fastest.  `scr` is a ((H//2)*W, C) f32 VMEM
# scratch so the W-direction pooling can use sublane-strided reads (the
# H-direction pooling is a vreg-aligned reshape + elementwise max).
# ---------------------------------------------------------------------------
def _pool2x2_rows(y, out_h, out_w, scr):
    c = y.shape[-1]
    # Pool over H: rows h and h+1 are `out_w` rows apart -> aligned reshape.
    y = y.reshape(out_h // 2, 2, out_w, c)
    y = jnp.maximum(y[:, 0], y[:, 1])                       # (H/2, W, C)
    scr[...] = y.reshape((out_h // 2) * out_w, c)
    # Pool over W: adjacent rows -> strided sublane reads of the scratch.
    n_out = (out_h // 2) * (out_w // 2)
    even = scr[pl.ds(0, n_out, stride=2), :]
    odd = scr[pl.ds(1, n_out, stride=2), :]
    return jnp.maximum(even, odd)                           # (H/2*W/2, C)


# ---------------------------------------------------------------------------
# conv1: (im2col matmul) + bias + ReLU + 2x2 max-pool, fused, one image/step.
# ---------------------------------------------------------------------------
def _conv1_mm_relu_pool_kernel(a_ref, w_ref, b_ref, o_ref, pool_scr, *,
                               out_h, out_w):
    # a_ref: (H*W, 9*Cin) bf16 im2col patches of one image.
    y = jnp.dot(a_ref[...], w_ref[...], preferred_element_type=jnp.float32)
    y = jnp.maximum(y + b_ref[...], 0.0)
    pooled = _pool2x2_rows(y, out_h, out_w, pool_scr)
    o_ref[...] = pooled.astype(o_ref.dtype)


def conv1_relu_pool(x, w, b):
    # x: (N, H, W, 3) f32; w: (Cout, Cin, 3, 3) torch layout; b: (Cout,)
    n, h, wd, cin = x.shape
    cout = w.shape[0]
    assert h % 2 == 0 and wd % 2 == 0
    xp = jnp.pad(x.astype(jnp.bfloat16), ((0, 0), (1, 1), (1, 1), (0, 0)))
    # im2col in JAX (Cin=3 -> tiny); patch feature order is (kh, kw, cin).
    patches = jnp.concatenate(
        [xp[:, dh:dh + h, dw:dw + wd, :] for dh in range(3) for dw in range(3)],
        axis=-1)
    a = patches.reshape(n, h * wd, 9 * cin)
    wm = jnp.transpose(w, (2, 3, 1, 0)).reshape(9 * cin, cout)
    wm = wm.astype(jnp.bfloat16)
    hh, ww = h // 2, wd // 2
    out = pl.pallas_call(
        functools.partial(_conv1_mm_relu_pool_kernel, out_h=h, out_w=wd),
        out_shape=jax.ShapeDtypeStruct((n, hh * ww, cout), jnp.bfloat16),
        grid=(n,),
        in_specs=[
            pl.BlockSpec((None, h * wd, 9 * cin), lambda i: (i, 0, 0)),
            pl.BlockSpec((9 * cin, cout), lambda i: (0, 0)),
            pl.BlockSpec((1, cout), lambda i: (0, 0)),
        ],
        out_specs=pl.BlockSpec((None, hh * ww, cout), lambda i: (i, 0, 0)),
        scratch_shapes=[pltpu.VMEM((hh * wd, cout), jnp.float32)],
        compiler_params=pltpu.CompilerParams(
            dimension_semantics=("parallel",)),
    )(a, wm, b.reshape(1, cout).astype(jnp.float32))
    return out.reshape(n, hh, ww, cout)


# ---------------------------------------------------------------------------
# conv2: in-kernel im2col (9 shifted slices, shift-and-accumulate matmuls)
#        + bias + ReLU + 2x2 max-pool, fused, one image per grid step.
# ---------------------------------------------------------------------------
def _conv2_im2col_relu_pool_kernel(xp_ref, w_ref, b_ref, o_ref, pool_scr, *,
                                   out_h, out_w):
    # xp_ref: (out_h+2, out_w+2, Cin) bf16 padded input of one image.
    cin = xp_ref.shape[-1]
    cout = w_ref.shape[-1]
    acc = jnp.zeros((out_h * out_w, cout), jnp.float32)
    for k in range(9):                                  # unrolled im2col taps
        dh, dw = k // 3, k % 3
        patch = xp_ref[dh:dh + out_h, dw:dw + out_w, :]
        patch = patch.reshape(out_h * out_w, cin)
        acc = acc + jnp.dot(patch, w_ref[k],
                            preferred_element_type=jnp.float32)
    y = jnp.maximum(acc + b_ref[...], 0.0)
    pooled = _pool2x2_rows(y, out_h, out_w, pool_scr)
    o_ref[...] = pooled.astype(o_ref.dtype)


def conv2_relu_pool(x, w, b):
    # x: (N, H2, W2, Cin) bf16; w: (Cout, Cin, 3, 3); b: (Cout,)
    n, h2, w2, cin = x.shape
    cout = w.shape[0]
    assert h2 % 2 == 0 and w2 % 2 == 0
    xp = jnp.pad(x.astype(jnp.bfloat16), ((0, 0), (1, 1), (1, 1), (0, 0)))
    wm = jnp.transpose(w, (2, 3, 1, 0)).reshape(9, cin, cout)
    wm = wm.astype(jnp.bfloat16)
    hh, ww = h2 // 2, w2 // 2
    out = pl.pallas_call(
        functools.partial(_conv2_im2col_relu_pool_kernel, out_h=h2, out_w=w2),
        out_shape=jax.ShapeDtypeStruct((n, hh * ww, cout), jnp.float32),
        grid=(n,),
        in_specs=[
            pl.BlockSpec((None, h2 + 2, w2 + 2, cin), lambda i: (i, 0, 0, 0)),
            pl.BlockSpec((9, cin, cout), lambda i: (0, 0, 0)),
            pl.BlockSpec((1, cout), lambda i: (0, 0)),
        ],
        out_specs=pl.BlockSpec((None, hh * ww, cout), lambda i: (i, 0, 0)),
        scratch_shapes=[pltpu.VMEM((hh * w2, cout), jnp.float32)],
        compiler_params=pltpu.CompilerParams(
            dimension_semantics=("parallel",)),
    )(xp, wm, b.reshape(1, cout).astype(jnp.float32))
    return out.reshape(n, hh, ww, cout)


# ---------------------------------------------------------------------------
# Generic fused matmul + bias (+ optional ReLU) kernel.
# ---------------------------------------------------------------------------
def _mm_bias_act_kernel(x_ref, w_ref, b_ref, o_ref, *, act):
    y = jnp.dot(x_ref[...], w_ref[...], preferred_element_type=jnp.float32)
    y = y + b_ref[...]
    if act == "relu":
        y = jnp.maximum(y, 0.0)
    o_ref[...] = y.astype(o_ref.dtype)


def matmul_bias_act(x, w, b, act="none"):
    m, k = x.shape
    k2, n = w.shape
    assert k == k2
    pad_m = (-m) % 8                       # keep the sublane axis 8-aligned
    if pad_m:
        x = jnp.pad(x, ((0, pad_m), (0, 0)))
    mp = m + pad_m
    tm = mp                                # single big block unless M is huge
    if mp > 2048:
        for cand in (1024, 512, 256):
            if mp % cand == 0:
                tm = cand
                break
    out = pl.pallas_call(
        functools.partial(_mm_bias_act_kernel, act=act),
        out_shape=jax.ShapeDtypeStruct((mp, n), jnp.float32),
        grid=(mp // tm,),
        in_specs=[
            pl.BlockSpec((tm, k), lambda i: (i, 0)),
            pl.BlockSpec((k, n), lambda i: (0, 0)),
            pl.BlockSpec((1, n), lambda i: (0, 0)),
        ],
        out_specs=pl.BlockSpec((tm, n), lambda i: (i, 0)),
        compiler_params=pltpu.CompilerParams(
            dimension_semantics=("parallel",)),
    )(x, w, b.reshape(1, n))
    return out[:m] if pad_m else out


# ---------------------------------------------------------------------------
# Bidirectional GRU layer: one pallas_call, grid=(2,) over direction.
# ---------------------------------------------------------------------------
def _gru_layer_kernel(x_ref, wih_ref, whh_ref, bi_ref, bh_ref, out_ref,
                      gi_scr, h_scr):
    # Grid axis 0 = direction (0 fwd, 1 bwd).  x_ref: (T, B, Din).
    # wih_ref: (Din, 3H), whh_ref: (H, 3H) with gate order [r | z | n].
    # bi_ref = b_ih + [b_hr, b_hz, 0];  bh_ref = [0, 0, b_hn]  (both (1, 3H)).
    t_steps, b, din = x_ref.shape
    h3 = wih_ref.shape[-1]
    hid = h3 // 3
    d = pl.program_id(0)
    last = t_steps - 1

    # Hoisted input projection: ONE (T*B, Din) x (Din, 3H) matmul for all
    # timesteps; only the h-recurrence stays inside the serial loop.
    gi = jnp.dot(x_ref[...].reshape(t_steps * b, din), wih_ref[...],
                 preferred_element_type=jnp.float32) + bi_ref[...]
    gi_scr[...] = gi.reshape(t_steps, b, h3)
    h_scr[...] = jnp.zeros_like(h_scr)

    @pl.loop(0, t_steps)
    def _(step):
        idx = jnp.where(d == 0, step, last - step)      # in-kernel reversal
        g = gi_scr[idx]                                 # (B, 3H)
        h = h_scr[...]
        gh = jnp.dot(h, whh_ref[...],
                     preferred_element_type=jnp.float32) + bh_ref[...]
        r = jax.nn.sigmoid(g[:, :hid] + gh[:, :hid])
        z = jax.nn.sigmoid(g[:, hid:2 * hid] + gh[:, hid:2 * hid])
        n_ = jnp.tanh(g[:, 2 * hid:] + r * gh[:, 2 * hid:])
        h_new = (1.0 - z) * n_ + z * h
        h_scr[...] = h_new
        out_ref[idx] = h_new.astype(out_ref.dtype)


def gru_bidirectional(x_tm, gru_params, hidden=32):
    # x_tm: (T, B, Din) time-major.  Returns (T, B, 2*hidden).
    t, b, _ = x_tm.shape
    out = x_tm
    for lp in gru_params:
        din = out.shape[-1]
        y = pl.pallas_call(
            _gru_layer_kernel,
            out_shape=jax.ShapeDtypeStruct((2, t, b, hidden), jnp.float32),
            grid=(2,),
            in_specs=[
                pl.BlockSpec((t, b, din), lambda d: (0, 0, 0)),
                pl.BlockSpec((None, din, 3 * hidden), lambda d: (d, 0, 0)),
                pl.BlockSpec((None, hidden, 3 * hidden), lambda d: (d, 0, 0)),
                pl.BlockSpec((None, 1, 3 * hidden), lambda d: (d, 0, 0)),
                pl.BlockSpec((None, 1, 3 * hidden), lambda d: (d, 0, 0)),
            ],
            out_specs=pl.BlockSpec((None, t, b, hidden),
                                   lambda d: (d, 0, 0, 0)),
            scratch_shapes=[pltpu.VMEM((t, b, 3 * hidden), jnp.float32),
                            pltpu.VMEM((b, hidden), jnp.float32)],
            compiler_params=pltpu.CompilerParams(
                dimension_semantics=("parallel",)),
        )(out, lp["wih"], lp["whh"], lp["bi"], lp["bh"])
        # (T, B, 2H) slab for the next stage: [forward | backward].
        out = jnp.concatenate([y[0], y[1]], axis=-1)
        # nn.GRU inter-layer dropout (p=0.25) is identity in eval mode.
    return out


# ---------------------------------------------------------------------------
# Deterministic synthetic parameters (PyTorch-style layouts / gate order).
# ---------------------------------------------------------------------------
def init_params(key, num_chars, hidden=32):
    def u(k, shape, fan_in):
        bound = 1.0 / jnp.sqrt(jnp.float32(fan_in))
        return jax.random.uniform(k, shape, jnp.float32, -bound, bound)

    keys = iter(jax.random.split(key, 64))
    p = {}
    p["conv1_w"] = u(next(keys), (128, 3, 3, 3), 3 * 9)     # Conv2d(3, 128)
    p["conv1_b"] = u(next(keys), (128,), 3 * 9)
    p["conv2_w"] = u(next(keys), (64, 128, 3, 3), 128 * 9)  # Conv2d(128, 64)
    p["conv2_b"] = u(next(keys), (64,), 128 * 9)
    p["lin1_w"] = u(next(keys), (1600, 64), 1600)           # Linear(1600, 64)
    p["lin1_b"] = u(next(keys), (64,), 1600)
    gate_mask = jnp.concatenate([jnp.ones((2 * hidden,), jnp.float32),
                                 jnp.zeros((hidden,), jnp.float32)])
    gru = []
    for layer in range(2):
        din = 64 if layer == 0 else 2 * hidden
        wih = u(next(keys), (2, din, 3 * hidden), hidden)
        whh = u(next(keys), (2, hidden, 3 * hidden), hidden)
        bih = u(next(keys), (2, 1, 3 * hidden), hidden)
        bhh = u(next(keys), (2, 1, 3 * hidden), hidden)
        gru.append({
            "wih": wih,
            "whh": whh,
            # Fold r/z biases; the n-gate hidden bias must stay separate
            # because of the r * (W_hn h + b_hn) term.
            "bi": bih + bhh * gate_mask,
            "bh": bhh * (1.0 - gate_mask),
        })
    p["gru"] = gru
    p["out_w"] = u(next(keys), (64, num_chars + 1), 64)     # Linear(64, nc+1)
    p["out_b"] = u(next(keys), (num_chars + 1,), 64)
    return p


# ---------------------------------------------------------------------------
# Full forward pass.
# ---------------------------------------------------------------------------
def captcha_forward(images, lens, params, targets=None):
    del lens  # only needed by the (unimplemented) CTC-loss branch
    bs = images.shape[0]
    x = jnp.transpose(images, (0, 2, 3, 1))                       # NCHW->NHWC
    x = conv1_relu_pool(x, params["conv1_w"], params["conv1_b"])  # (bs,H/2,W/2,128)
    x = conv2_relu_pool(x, params["conv2_w"], params["conv2_b"])  # (bs,H/4,W/4,64)
    # torch: (bs,C,H',W').permute(0,3,1,2) -> (bs,W',C,H') -> view(bs,W',C*H')
    x = jnp.transpose(x, (0, 2, 3, 1))                            # (bs,W',C,H')
    seq = x.shape[1]
    x = x.reshape(bs * seq, -1)                                   # (bs*seq, 1600)
    x = matmul_bias_act(x, params["lin1_w"], params["lin1_b"])    # linear1
    # drop_1 (p=0.2) is identity in eval mode.
    x = x.reshape(bs, seq, -1)
    x = jnp.transpose(x, (1, 0, 2))                               # (seq, bs, 64)
    x = gru_bidirectional(x, params["gru"])                       # (seq, bs, 64)
    # Final Linear with a lane-dense padded N=128 output, sliced outside.
    nc = params["out_b"].shape[0]
    pad_n = (-nc) % 128
    w_out = jnp.pad(params["out_w"], ((0, 0), (0, pad_n)))
    b_out = jnp.pad(params["out_b"], ((0, pad_n),))
    logits = matmul_bias_act(x.reshape(seq * bs, -1), w_out, b_out)
    logits = logits[:, :nc].reshape(seq, bs, nc)                  # (seq,bs,nc+1)
    if targets is not None:
        # TODO(synk): CTC loss branch (log_softmax + nn.CTCLoss) not implemented.
        raise NotImplementedError
    return logits, None


if __name__ == "__main__":
    NUM_CHARS = 19
    # H must be 100 so that 64 * (H // 4) == 1600 matches nn.Linear(1600, 64).
    BS, C, H, W = 2, 3, 100, 16
    k_img, k_par = jax.random.split(jax.random.PRNGKey(0))
    images = jax.random.normal(k_img, (BS, C, H, W), jnp.float32)
    lens = jnp.array([5, 5], jnp.int32)   # unused on the targets=None path
    params = init_params(k_par, NUM_CHARS)

    fwd = jax.jit(lambda imgs: captcha_forward(imgs, lens, params))
    logits, loss = fwd(images)
    jax.block_until_ready(logits)
    assert logits.shape == (W // 4, BS, NUM_CHARS + 1), logits.shape
    assert loss is None
    print("KERNEL_OK")
</pallas_src>

<mosaic_0001>
module attributes {stable_mosaic.version = 11 : i64} {
  func.func @_conv1_mm_relu_pool_kernel(%arg0: i32, %arg1: memref<1x1600x27xbf16, #tpu.memory_space<vmem>>, %arg2: memref<27x128xbf16, #tpu.memory_space<vmem>>, %arg3: memref<1x128xf32, #tpu.memory_space<vmem>>, %arg4: memref<1x400x128xbf16, #tpu.memory_space<vmem>>, %arg5: memref<800x128xf32, #tpu.memory_space<vmem>>) attributes {dimension_semantics = [#tpu.dimension_semantics<parallel>], iteration_bounds = array<i64: 2>, scalar_prefetch = 0 : i64, scratch_operands = 1 : i64, tpu.core_type = #tpu.core_type<tc>, window_params = [{transform_indices = @transform_0, window_bounds = array<i64: 1, 1600, 27>}, {pipeline_mode = #tpu.pipeline_mode<synchronous>, transform_indices = @transform_1, window_bounds = array<i64: 27, 128>}, {pipeline_mode = #tpu.pipeline_mode<synchronous>, transform_indices = @transform_2, window_bounds = array<i64: 1, 128>}, {transform_indices = @transform_3, window_bounds = array<i64: 1, 400, 128>}]} {
    %c0 = arith.constant 0 : index
    %c0_0 = arith.constant 0 : index
    %c0_1 = arith.constant 0 : index
    %0 = vector.load %arg1[%c0, %c0_0, %c0_1] : memref<1x1600x27xbf16, #tpu.memory_space<vmem>>, vector<1x1600x27xbf16>
    %1 = vector.shape_cast %0 : vector<1x1600x27xbf16> to vector<1600x27xbf16>
    %c0_2 = arith.constant 0 : index
    %c0_3 = arith.constant 0 : index
    %2 = vector.load %arg2[%c0_2, %c0_3] : memref<27x128xbf16, #tpu.memory_space<vmem>>, vector<27x128xbf16>
    %cst = arith.constant dense<0.000000e+00> : vector<1600x128xf32>
    %3 = tpu.matmul %1, %2, %cst {dimension_numbers = #tpu.dot_dimension_numbers<[1], [0], [0], [1], [0, 0, 1, 1], [], []>} : vector<1600x27xbf16>, vector<27x128xbf16>, vector<1600x128xf32> -> vector<1600x128xf32>
    %c0_4 = arith.constant 0 : index
    %c0_5 = arith.constant 0 : index
    %4 = vector.load %arg3[%c0_4, %c0_5] : memref<1x128xf32, #tpu.memory_space<vmem>>, vector<1x128xf32>
    %5 = vector.broadcast %4 : vector<1x128xf32> to vector<1600x128xf32>
    %6 = arith.addf %3, %5 : vector<1600x128xf32>
    %cst_6 = arith.constant 0.000000e+00 : f32
    %7 = vector.broadcast %cst_6 : f32 to vector<1600x128xf32>
    %8 = arith.maximumf %6, %7 : vector<1600x128xf32>
    %9 = vector.shape_cast %8 : vector<1600x128xf32> to vector<50x2x16x128xf32>
    %10 = vector.extract_strided_slice %9 {offsets = [0, 0, 0, 0], sizes = [50, 1, 16, 128], strides = [1, 1, 1, 1]} : vector<50x2x16x128xf32> to vector<50x1x16x128xf32>
    %11 = vector.shape_cast %10 : vector<50x1x16x128xf32> to vector<50x16x128xf32>
    %12 = vector.extract_strided_slice %9 {offsets = [0, 1, 0, 0], sizes = [50, 1, 16, 128], strides = [1, 1, 1, 1]} : vector<50x2x16x128xf32> to vector<50x1x16x128xf32>
    %13 = vector.shape_cast %12 : vector<50x1x16x128xf32> to vector<50x16x128xf32>
    %14 = arith.maximumf %11, %13 : vector<50x16x128xf32>
    %15 = vector.shape_cast %14 : vector<50x16x128xf32> to vector<800x128xf32>
    %c0_7 = arith.constant 0 : index
    %c0_8 = arith.constant 0 : index
    %16 = vector.load %arg5[%c0_7, %c0_8] : memref<800x128xf32, #tpu.memory_space<vmem>>, vector<800x128xf32>
    tpu.vector_store %arg5[%c0_7, %c0_8], %15 {strides = array<i32>} : memref<800x128xf32, #tpu.memory_space<vmem>>, vector<800x128xf32>,
    %c0_9 = arith.constant 0 : index
    %c0_10 = arith.constant 0 : index
    %17 = tpu.strided_load %arg5[%c0_9, %c0_10] {strides = array<i32: 2, 1>} : memref<800x128xf32, #tpu.memory_space<vmem>>, vector<400x128xf32>
    %c1 = arith.constant 1 : index
    %c0_11 = arith.constant 0 : index
    %18 = tpu.strided_load %arg5[%c1, %c0_11] {strides = array<i32: 2, 1>} : memref<800x128xf32, #tpu.memory_space<vmem>>, vector<400x128xf32>
    %19 = arith.maximumf %17, %18 : vector<400x128xf32>
    %20 = arith.truncf %19 : vector<400x128xf32> to vector<400x128xbf16>
    %c0_12 = arith.constant 0 : index
    %c0_13 = arith.constant 0 : index
    %c0_14 = arith.constant 0 : index
    %21 = vector.load %arg4[%c0_12, %c0_13, %c0_14] : memref<1x400x128xbf16, #tpu.memory_space<vmem>>, vector<1x400x128xbf16>
    %22 = vector.shape_cast %21 : vector<1x400x128xbf16> to vector<400x128xbf16>
    %23 = vector.shape_cast %20 : vector<400x128xbf16> to vector<1x400x128xbf16>
    tpu.vector_store %arg4[%c0_12, %c0_13, %c0_14], %23 {strides = array<i32>} : memref<1x400x128xbf16, #tpu.memory_space<vmem>>, vector<1x400x128xbf16>,
    return
  }
  func.func @transform_0(%arg0: i32) -> (i32, i32, i32) {
    %c0_i32 = arith.constant 0 : i32
    %c0_i32_0 = arith.constant 0 : i32
    %c0_i32_1 = arith.constant 0 : i32
    return %arg0, %c0_i32, %c0_i32_0 : i32, i32, i32
  }
  func.func @transform_1(%arg0: i32) -> (i32, i32) {
    %c0_i32 = arith.constant 0 : i32
    %c0_i32_0 = arith.constant 0 : i32
    %c0_i32_1 = arith.constant 0 : i32
    return %c0_i32, %c0_i32_0 : i32, i32
  }
  func.func @transform_2(%arg0: i32) -> (i32, i32) {
    %c0_i32 = arith.constant 0 : i32
    %c0_i32_0 = arith.constant 0 : i32
    %c0_i32_1 = arith.constant 0 : i32
    return %c0_i32, %c0_i32_0 : i32, i32
  }
  func.func @transform_3(%arg0: i32) -> (i32, i32, i32) {
    %c0_i32 = arith.constant 0 : i32
    %c0_i32_0 = arith.constant 0 : i32
    %c0_i32_1 = arith.constant 0 : i32
    return %arg0, %c0_i32, %c0_i32_0 : i32, i32, i32
  }
}

module attributes {stable_mosaic.version = 11 : i64} {
  func.func @_conv2_im2col_relu_pool_kernel(%arg0: i32, %arg1: memref<1x52x10x128xbf16, #tpu.memory_space<vmem>>, %arg2: memref<9x128x64xbf16, #tpu.memory_space<vmem>>, %arg3: memref<1x64xf32, #tpu.memory_space<vmem>>, %arg4: memref<1x100x64xf32, #tpu.memory_space<vmem>>, %arg5: memref<200x64xf32, #tpu.memory_space<vmem>>) attributes {dimension_semantics = [#tpu.dimension_semantics<parallel>], iteration_bounds = array<i64: 2>, scalar_prefetch = 0 : i64, scratch_operands = 1 : i64, tpu.core_type = #tpu.core_type<tc>, window_params = [{transform_indices = @transform_0, window_bounds = array<i64: 1, 52, 10, 128>}, {pipeline_mode = #tpu.pipeline_mode<synchronous>, transform_indices = @transform_1, window_bounds = array<i64: 9, 128, 64>}, {pipeline_mode = #tpu.pipeline_mode<synchronous>, transform_indices = @transform_2, window_bounds = array<i64: 1, 64>}, {transform_indices = @transform_3, window_bounds = array<i64: 1, 100, 64>}]} {
    %cst = arith.constant 0.000000e+00 : f32
    %0 = vector.broadcast %cst : f32 to vector<400x64xf32>
    %c0 = arith.constant 0 : index
    %c0_0 = arith.constant 0 : index
    %c0_1 = arith.constant 0 : index
    %c0_2 = arith.constant 0 : index
    %1 = vector.load %arg1[%c0, %c0_0, %c0_1, %c0_2] : memref<1x52x10x128xbf16, #tpu.memory_space<vmem>>, vector<1x50x8x128xbf16>
    %2 = vector.shape_cast %1 : vector<1x50x8x128xbf16> to vector<50x8x128xbf16>
    %3 = vector.shape_cast %2 : vector<50x8x128xbf16> to vector<400x128xbf16>
    %c0_3 = arith.constant 0 : index
    %c0_4 = arith.constant 0 : index
    %c0_5 = arith.constant 0 : index
    %4 = vector.load %arg2[%c0_3, %c0_4, %c0_5] : memref<9x128x64xbf16, #tpu.memory_space<vmem>>, vector<1x128x64xbf16>
    %5 = vector.shape_cast %4 : vector<1x128x64xbf16> to vector<128x64xbf16>
    %cst_6 = arith.constant dense<0.000000e+00> : vector<400x64xf32>
    %6 = tpu.matmul %3, %5, %cst_6 {dimension_numbers = #tpu.dot_dimension_numbers<[1], [0], [0], [1], [0, 0, 1, 1], [], []>} : vector<400x128xbf16>, vector<128x64xbf16>, vector<400x64xf32> -> vector<400x64xf32>
    %7 = arith.addf %0, %6 : vector<400x64xf32>
    %c0_7 = arith.constant 0 : index
    %c0_8 = arith.constant 0 : index
    %c1 = arith.constant 1 : index
    %c0_9 = arith.constant 0 : index
    %8 = vector.load %arg1[%c0_7, %c0_8, %c1, %c0_9] : memref<1x52x10x128xbf16, #tpu.memory_space<vmem>>, vector<1x50x8x128xbf16>
    %9 = vector.shape_cast %8 : vector<1x50x8x128xbf16> to vector<50x8x128xbf16>
    %10 = vector.shape_cast %9 : vector<50x8x128xbf16> to vector<400x128xbf16>
    %c1_10 = arith.constant 1 : index
    %c0_11 = arith.constant 0 : index
    %c0_12 = arith.constant 0 : index
    %11 = vector.load %arg2[%c1_10, %c0_11, %c0_12] : memref<9x128x64xbf16, #tpu.memory_space<vmem>>, vector<1x128x64xbf16>
    %12 = vector.shape_cast %11 : vector<1x128x64xbf16> to vector<128x64xbf16>
    %cst_13 = arith.constant dense<0.000000e+00> : vector<400x64xf32>
    %13 = tpu.matmul %10, %12, %cst_13 {dimension_numbers = #tpu.dot_dimension_numbers<[1], [0], [0], [1], [0, 0, 1, 1], [], []>} : vector<400x128xbf16>, vector<128x64xbf16>, vector<400x64xf32> -> vector<400x64xf32>
    %14 = arith.addf %7, %13 : vector<400x64xf32>
    %c0_14 = arith.constant 0 : index
    %c0_15 = arith.constant 0 : index
    %c2 = arith.constant 2 : index
    %c0_16 = arith.constant 0 : index
    %15 = vector.load %arg1[%c0_14, %c0_15, %c2, %c0_16] : memref<1x52x10x128xbf16, #tpu.memory_space<vmem>>, vector<1x50x8x128xbf16>
    %16 = vector.shape_cast %15 : vector<1x50x8x128xbf16> to vector<50x8x128xbf16>
    %17 = vector.shape_cast %16 : vector<50x8x128xbf16> to vector<400x128xbf16>
    %c2_17 = arith.constant 2 : index
    %c0_18 = arith.constant 0 : index
    %c0_19 = arith.constant 0 : index
    %18 = vector.load %arg2[%c2_17, %c0_18, %c0_19] : memref<9x128x64xbf16, #tpu.memory_space<vmem>>, vector<1x128x64xbf16>
    %19 = vector.shape_cast %18 : vector<1x128x64xbf16> to vector<128x64xbf16>
    %cst_20 = arith.constant dense<0.000000e+00> : vector<400x64xf32>
    %20 = tpu.matmul %17, %19, %cst_20 {dimension_numbers = #tpu.dot_dimension_numbers<[1], [0], [0], [1], [0, 0, 1, 1], [], []>} : vector<400x128xbf16>, vector<128x64xbf16>, vector<400x64xf32> -> vector<400x64xf32>
    %21 = arith.addf %14, %20 : vector<400x64xf32>
    %c0_21 = arith.constant 0 : index
    %c1_22 = arith.constant 1 : index
    %c0_23 = arith.constant 0 : index
    %c0_24 = arith.constant 0 : index
    %22 = vector.load %arg1[%c0_21, %c1_22, %c0_23, %c0_24] : memref<1x52x10x128xbf16, #tpu.memory_space<vmem>>, vector<1x50x8x128xbf16>
    %23 = vector.shape_cast %22 : vector<1x50x8x128xbf16> to vector<50x8x128xbf16>
    %24 = vector.shape_cast %23 : vector<50x8x128xbf16> to vector<400x128xbf16>
    %c3 = arith.constant 3 : index
    %c0_25 = arith.constant 0 : index
    %c0_26 = arith.constant 0 : index
    %25 = vector.load %arg2[%c3, %c0_25, %c0_26] : memref<9x128x64xbf16, #tpu.memory_space<vmem>>, vector<1x128x64xbf16>
    %26 = vector.shape_cast %25 : vector<1x128x64xbf16> to vector<128x64xbf16>
    %cst_27 = arith.constant dense<0.000000e+00> : vector<400x64xf32>
    %27 = tpu.matmul %24, %26, %cst_27 {dimension_numbers = #tpu.dot_dimension_numbers<[1], [0], [0], [1], [0, 0, 1, 1], [], []>} : vector<400x128xbf16>, vector<128x64xbf16>, vector<400x64xf32> -> vector<400x64xf32>
    %28 = arith.addf %21, %27 : vector<400x64xf32>
    %c0_28 = arith.constant 0 : index
    %c1_29 = arith.constant 1 : index
    %c1_30 = arith.constant 1 : index
    %c0_31 = arith.constant 0 : index
    %29 = vector.load %arg1[%c0_28, %c1_29, %c1_30, %c0_31] : memref<1x52x10x128xbf16, #tpu.memory_space<vmem>>, vector<1x50x8x128xbf16>
    %30 = vector.shape_cast %29 : vector<1x50x8x128xbf16> to vector<50x8x128xbf16>
    %31 = vector.shape_cast %30 : vector<50x8x128xbf16> to vector<400x128xbf16>
    %c4 = arith.constant 4 : index
    %c0_32 = arith.constant 0 : index
    %c0_33 = arith.constant 0 : index
    %32 = vector.load %arg2[%c4, %c0_32, %c0_33] : memref<9x128x64xbf16, #tpu.memory_space<vmem>>, vector<1x128x64xbf16>
    %33 = vector.shape_cast %32 : vector<1x128x64xbf16> to vector<128x64xbf16>
    %cst_34 = arith.constant dense<0.000000e+00> : vector<400x64xf32>
    %34 = tpu.matmul %31, %33, %cst_34 {dimension_numbers = #tpu.dot_dimension_numbers<[1], [0], [0], [1], [0, 0, 1, 1], [], []>} : vector<400x128xbf16>, vector<128x64xbf16>, vector<400x64xf32> -> vector<400x64xf32>
    %35 = arith.addf %28, %34 : vector<400x64xf32>
    %c0_35 = arith.constant 0 : index
    %c1_36 = arith.constant 1 : index
    %c2_37 = arith.constant 2 : index
    %c0_38 = arith.constant 0 : index
    %36 = vector.load %arg1[%c0_35, %c1_36, %c2_37, %c0_38] : memref<1x52x10x128xbf16, #tpu.memory_space<vmem>>, vector<1x50x8x128xbf16>
    %37 = vector.shape_cast %36 : vector<1x50x8x128xbf16> to vector<50x8x128xbf16>
    %38 = vector.shape_cast %37 : vector<50x8x128xbf16> to vector<400x128xbf16>
    %c5 = arith.constant 5 : index
    %c0_39 = arith.constant 0 : index
    %c0_40 = arith.constant 0 : index
    %39 = vector.load %arg2[%c5, %c0_39, %c0_40] : memref<9x128x64xbf16, #tpu.memory_space<vmem>>, vector<1x128x64xbf16>
    %40 = vector.shape_cast %39 : vector<1x128x64xbf16> to vector<128x64xbf16>
    %cst_41 = arith.constant dense<0.000000e+00> : vector<400x64xf32>
    %41 = tpu.matmul %38, %40, %cst_41 {dimension_numbers = #tpu.dot_dimension_numbers<[1], [0], [0], [1], [0, 0, 1, 1], [], []>} : vector<400x128xbf16>, vector<128x64xbf16>, vector<400x64xf32> -> vector<400x64xf32>
    %42 = arith.addf %35, %41 : vector<400x64xf32>
    %c0_42 = arith.constant 0 : index
    %c2_43 = arith.constant 2 : index
    %c0_44 = arith.constant 0 : index
    %c0_45 = arith.constant 0 : index
    %43 = vector.load %arg1[%c0_42, %c2_43, %c0_44, %c0_45] : memref<1x52x10x128xbf16, #tpu.memory_space<vmem>>, vector<1x50x8x128xbf16>
    %44 = vector.shape_cast %43 : vector<1x50x8x128xbf16> to vector<50x8x128xbf16>
    %45 = vector.shape_cast %44 : vector<50x8x128xbf16> to vector<400x128xbf16>
    %c6 = arith.constant 6 : index
    %c0_46 = arith.constant 0 : index
    %c0_47 = arith.constant 0 : index
    %46 = vector.load %arg2[%c6, %c0_46, %c0_47] : memref<9x128x64xbf16, #tpu.memory_space<vmem>>, vector<1x128x64xbf16>
    %47 = vector.shape_cast %46 : vector<1x128x64xbf16> to vector<128x64xbf16>
    %cst_48 = arith.constant dense<0.000000e+00> : vector<400x64xf32>
    %48 = tpu.matmul %45, %47, %cst_48 {dimension_numbers = #tpu.dot_dimension_numbers<[1], [0], [0], [1], [0, 0, 1, 1], [], []>} : vector<400x128xbf16>, vector<128x64xbf16>, vector<400x64xf32> -> vector<400x64xf32>
    %49 = arith.addf %42, %48 : vector<400x64xf32>
    %c0_49 = arith.constant 0 : index
    %c2_50 = arith.constant 2 : index
    %c1_51 = arith.constant 1 : index
    %c0_52 = arith.constant 0 : index
    %50 = vector.load %arg1[%c0_49, %c2_50, %c1_51, %c0_52] : memref<1x52x10x128xbf16, #tpu.memory_space<vmem>>, vector<1x50x8x128xbf16>
    %51 = vector.shape_cast %50 : vector<1x50x8x128xbf16> to vector<50x8x128xbf16>
    %52 = vector.shape_cast %51 : vector<50x8x128xbf16> to vector<400x128xbf16>
    %c7 = arith.constant 7 : index
    %c0_53 = arith.constant 0 : index
    %c0_54 = arith.constant 0 : index
    %53 = vector.load %arg2[%c7, %c0_53, %c0_54] : memref<9x128x64xbf16, #tpu.memory_space<vmem>>, vector<1x128x64xbf16>
    %54 = vector.shape_cast %53 : vector<1x128x64xbf16> to vector<128x64xbf16>
    %cst_55 = arith.constant dense<0.000000e+00> : vector<400x64xf32>
    %55 = tpu.matmul %52, %54, %cst_55 {dimension_numbers = #tpu.dot_dimension_numbers<[1], [0], [0], [1], [0, 0, 1, 1], [], []>} : vector<400x128xbf16>, vector<128x64xbf16>, vector<400x64xf32> -> vector<400x64xf32>
    %56 = arith.addf %49, %55 : vector<400x64xf32>
    %c0_56 = arith.constant 0 : index
    %c2_57 = arith.constant 2 : index
    %c2_58 = arith.constant 2 : index
    %c0_59 = arith.constant 0 : index
    %57 = vector.load %arg1[%c0_56, %c2_57, %c2_58, %c0_59] : memref<1x52x10x128xbf16, #tpu.memory_space<vmem>>, vector<1x50x8x128xbf16>
    %58 = vector.shape_cast %57 : vector<1x50x8x128xbf16> to vector<50x8x128xbf16>
    %59 = vector.shape_cast %58 : vector<50x8x128xbf16> to vector<400x128xbf16>
    %c8 = arith.constant 8 : index
    %c0_60 = arith.constant 0 : index
    %c0_61 = arith.constant 0 : index
    %60 = vector.load %arg2[%c8, %c0_60, %c0_61] : memref<9x128x64xbf16, #tpu.memory_space<vmem>>, vector<1x128x64xbf16>
    %61 = vector.shape_cast %60 : vector<1x128x64xbf16> to vector<128x64xbf16>
    %cst_62 = arith.constant dense<0.000000e+00> : vector<400x64xf32>
    %62 = tpu.matmul %59, %61, %cst_62 {dimension_numbers = #tpu.dot_dimension_numbers<[1], [0], [0], [1], [0, 0, 1, 1], [], []>} : vector<400x128xbf16>, vector<128x64xbf16>, vector<400x64xf32> -> vector<400x64xf32>
    %63 = arith.addf %56, %62 : vector<400x64xf32>
    %c0_63 = arith.constant 0 : index
    %c0_64 = arith.constant 0 : index
    %64 = vector.load %arg3[%c0_63, %c0_64] : memref<1x64xf32, #tpu.memory_space<vmem>>, vector<1x64xf32>
    %65 = vector.broadcast %64 : vector<1x64xf32> to vector<400x64xf32>
    %66 = arith.addf %63, %65 : vector<400x64xf32>
    %cst_65 = arith.constant 0.000000e+00 : f32
    %67 = vector.broadcast %cst_65 : f32 to vector<400x64xf32>
    %68 = arith.maximumf %66, %67 : vector<400x64xf32>
    %69 = vector.shape_cast %68 : vector<400x64xf32> to vector<25x2x8x64xf32>
    %70 = vector.extract_strided_slice %69 {offsets = [0, 0, 0, 0], sizes = [25, 1, 8, 64], strides = [1, 1, 1, 1]} : vector<25x2x8x64xf32> to vector<25x1x8x64xf32>
    %71 = vector.shape_cast %70 : vector<25x1x8x64xf32> to vector<25x8x64xf32>
    %72 = vector.extract_strided_slice %69 {offsets = [0, 1, 0, 0], sizes = [25, 1, 8, 64], strides = [1, 1, 1, 1]} : vector<25x2x8x64xf32> to vector<25x1x8x64xf32>
    %73 = vector.shape_cast %72 : vector<25x1x8x64xf32> to vector<25x8x64xf32>
    %74 = arith.maximumf %71, %73 : vector<25x8x64xf32>
    %75 = vector.shape_cast %74 : vector<25x8x64xf32> to vector<200x64xf32>
    %c0_66 = arith.constant 0 : index
    %c0_67 = arith.constant 0 : index
    %76 = vector.load %arg5[%c0_66, %c0_67] : memref<200x64xf32, #tpu.memory_space<vmem>>, vector<200x64xf32>
    tpu.vector_store %arg5[%c0_66, %c0_67], %75 {strides = array<i32>} : memref<200x64xf32, #tpu.memory_space<vmem>>, vector<200x64xf32>,
    %c0_68 = arith.constant 0 : index
    %c0_69 = arith.constant 0 : index
    %77 = tpu.strided_load %arg5[%c0_68, %c0_69] {strides = array<i32: 2, 1>} : memref<200x64xf32, #tpu.memory_space<vmem>>, vector<100x64xf32>
    %c1_70 = arith.constant 1 : index
    %c0_71 = arith.constant 0 : index
    %78 = tpu.strided_load %arg5[%c1_70, %c0_71] {strides = array<i32: 2, 1>} : memref<200x64xf32, #tpu.memory_space<vmem>>, vector<100x64xf32>
    %79 = arith.maximumf %77, %78 : vector<100x64xf32>
    %c0_72 = arith.constant 0 : index
    %c0_73 = arith.constant 0 : index
    %c0_74 = arith.constant 0 : index
    %80 = vector.load %arg4[%c0_72, %c0_73, %c0_74] : memref<1x100x64xf32, #tpu.memory_space<vmem>>, vector<1x100x64xf32>
    %81 = vector.shape_cast %80 : vector<1x100x64xf32> to vector<100x64xf32>
    %82 = vector.shape_cast %79 : vector<100x64xf32> to vector<1x100x64xf32>
    tpu.vector_store %arg4[%c0_72, %c0_73, %c0_74], %82 {strides = array<i32>} : memref<1x100x64xf32, #tpu.memory_space<vmem>>, vector<1x100x64xf32>,
    return
  }
  func.func @transform_0(%arg0: i32) -> (i32, i32, i32, i32) {
    %c0_i32 = arith.constant 0 : i32
    %c0_i32_0 = arith.constant 0 : i32
    %c0_i32_1 = arith.constant 0 : i32
    %c0_i32_2 = arith.constant 0 : i32
    return %arg0, %c0_i32, %c0_i32_0, %c0_i32_1 : i32, i32, i32, i32
  }
  func.func @transform_1(%arg0: i32) -> (i32, i32, i32) {
    %c0_i32 = arith.constant 0 : i32
    %c0_i32_0 = arith.constant 0 : i32
    %c0_i32_1 = arith.constant 0 : i32
    %c0_i32_2 = arith.constant 0 : i32
    return %c0_i32, %c0_i32_0, %c0_i32_1 : i32, i32, i32
  }
  func.func @transform_2(%arg0: i32) -> (i32, i32) {
    %c0_i32 = arith.constant 0 : i32
    %c0_i32_0 = arith.constant 0 : i32
    %c0_i32_1 = arith.constant 0 : i32
    return %c0_i32, %c0_i32_0 : i32, i32
  }
  func.func @transform_3(%arg0: i32) -> (i32, i32, i32) {
    %c0_i32 = arith.constant 0 : i32
    %c0_i32_0 = arith.constant 0 : i32
    %c0_i32_1 = arith.constant 0 : i32
    return %arg0, %c0_i32, %c0_i32_0 : i32, i32, i32
  }
}

module attributes {stable_mosaic.version = 11 : i64} {
  func.func @_mm_bias_act_kernel(%arg0: i32, %arg1: memref<8x1600xf32, #tpu.memory_space<vmem>>, %arg2: memref<1600x64xf32, #tpu.memory_space<vmem>>, %arg3: memref<1x64xf32, #tpu.memory_space<vmem>>, %arg4: memref<8x64xf32, #tpu.memory_space<vmem>>) attributes {dimension_semantics = [#tpu.dimension_semantics<parallel>], iteration_bounds = array<i64: 1>, scalar_prefetch = 0 : i64, scratch_operands = 0 : i64, tpu.core_type = #tpu.core_type<tc>, window_params = [{transform_indices = @transform_0, window_bounds = array<i64: 8, 1600>}, {pipeline_mode = #tpu.pipeline_mode<synchronous>, transform_indices = @transform_1, window_bounds = array<i64: 1600, 64>}, {pipeline_mode = #tpu.pipeline_mode<synchronous>, transform_indices = @transform_2, window_bounds = array<i64: 1, 64>}, {transform_indices = @transform_3, window_bounds = array<i64: 8, 64>}]} {
    %c0 = arith.constant 0 : index
    %c0_0 = arith.constant 0 : index
    %0 = vector.load %arg1[%c0, %c0_0] : memref<8x1600xf32, #tpu.memory_space<vmem>>, vector<8x1600xf32>
    %c0_1 = arith.constant 0 : index
    %c0_2 = arith.constant 0 : index
    %1 = vector.load %arg2[%c0_1, %c0_2] : memref<1600x64xf32, #tpu.memory_space<vmem>>, vector<1600x64xf32>
    %cst = arith.constant dense<0.000000e+00> : vector<8x64xf32>
    %2 = tpu.matmul %0, %1, %cst {dimension_numbers = #tpu.dot_dimension_numbers<[1], [0], [0], [1], [0, 0, 1, 1], [], []>} : vector<8x1600xf32>, vector<1600x64xf32>, vector<8x64xf32> -> vector<8x64xf32>
    %c0_3 = arith.constant 0 : index
    %c0_4 = arith.constant 0 : index
    %3 = vector.load %arg3[%c0_3, %c0_4] : memref<1x64xf32, #tpu.memory_space<vmem>>, vector<1x64xf32>
    %4 = vector.broadcast %3 : vector<1x64xf32> to vector<8x64xf32>
    %5 = arith.addf %2, %4 : vector<8x64xf32>
    %c0_5 = arith.constant 0 : index
    %c0_6 = arith.constant 0 : index
    %6 = vector.load %arg4[%c0_5, %c0_6] : memref<8x64xf32, #tpu.memory_space<vmem>>, vector<8x64xf32>
    tpu.vector_store %arg4[%c0_5, %c0_6], %5 {strides = array<i32>} : memref<8x64xf32, #tpu.memory_space<vmem>>, vector<8x64xf32>,
    return
  }
  func.func @transform_0(%arg0: i32) -> (i32, i32) {
    %c0_i32 = arith.constant 0 : i32
    %c0_i32_0 = arith.constant 0 : i32
    return %arg0, %c0_i32 : i32, i32
  }
  func.func @transform_1(%arg0: i32) -> (i32, i32) {
    %c0_i32 = arith.constant 0 : i32
    %c0_i32_0 = arith.constant 0 : i32
    %c0_i32_1 = arith.constant 0 : i32
    return %c0_i32, %c0_i32_0 : i32, i32
  }
  func.func @transform_2(%arg0: i32) -> (i32, i32) {
    %c0_i32 = arith.constant 0 : i32
    %c0_i32_0 = arith.constant 0 : i32
    %c0_i32_1 = arith.constant 0 : i32
    return %c0_i32, %c0_i32_0 : i32, i32
  }
  func.func @transform_3(%arg0: i32) -> (i32, i32) {
    %c0_i32 = arith.constant 0 : i32
    %c0_i32_0 = arith.constant 0 : i32
    return %arg0, %c0_i32 : i32, i32
  }
}

module attributes {stable_mosaic.version = 11 : i64} {
  func.func @_gru_layer_kernel(%arg0: i32, %arg1: memref<4x2x64xf32, #tpu.memory_space<vmem>>, %arg2: memref<1x64x96xf32, #tpu.memory_space<vmem>>, %arg3: memref<1x32x96xf32, #tpu.memory_space<vmem>>, %arg4: memref<1x1x96xf32, #tpu.memory_space<vmem>>, %arg5: memref<1x1x96xf32, #tpu.memory_space<vmem>>, %arg6: memref<1x4x2x32xf32, #tpu.memory_space<vmem>>, %arg7: memref<4x2x96xf32, #tpu.memory_space<vmem>>, %arg8: memref<2x32xf32, #tpu.memory_space<vmem>>) attributes {dimension_semantics = [#tpu.dimension_semantics<parallel>], iteration_bounds = array<i64: 2>, scalar_prefetch = 0 : i64, scratch_operands = 2 : i64, tpu.core_type = #tpu.core_type<tc>, window_params = [{pipeline_mode = #tpu.pipeline_mode<synchronous>, transform_indices = @transform_0, window_bounds = array<i64: 4, 2, 64>}, {transform_indices = @transform_1, window_bounds = array<i64: 1, 64, 96>}, {transform_indices = @transform_2, window_bounds = array<i64: 1, 32, 96>}, {transform_indices = @transform_3, window_bounds = array<i64: 1, 1, 96>}, {transform_indices = @transform_4, window_bounds = array<i64: 1, 1, 96>}, {transform_indices = @transform_5, window_bounds = array<i64: 1, 4, 2, 32>}]} {
    %c0 = arith.constant 0 : index
    %c0_0 = arith.constant 0 : index
    %c0_1 = arith.constant 0 : index
    %0 = vector.load %arg1[%c0, %c0_0, %c0_1] : memref<4x2x64xf32, #tpu.memory_space<vmem>>, vector<4x2x64xf32>
    %1 = vector.shape_cast %0 : vector<4x2x64xf32> to vector<8x64xf32>
    %c0_2 = arith.constant 0 : index
    %c0_3 = arith.constant 0 : index
    %c0_4 = arith.constant 0 : index
    %2 = vector.load %arg2[%c0_2, %c0_3, %c0_4] : memref<1x64x96xf32, #tpu.memory_space<vmem>>, vector<1x64x96xf32>
    %3 = vector.shape_cast %2 : vector<1x64x96xf32> to vector<64x96xf32>
    %cst = arith.constant dense<0.000000e+00> : vector<8x96xf32>
    %4 = tpu.matmul %1, %3, %cst {dimension_numbers = #tpu.dot_dimension_numbers<[1], [0], [0], [1], [0, 0, 1, 1], [], []>} : vector<8x64xf32>, vector<64x96xf32>, vector<8x96xf32> -> vector<8x96xf32>
    %c0_5 = arith.constant 0 : index
    %c0_6 = arith.constant 0 : index
    %c0_7 = arith.constant 0 : index
    %5 = vector.load %arg4[%c0_5, %c0_6, %c0_7] : memref<1x1x96xf32, #tpu.memory_space<vmem>>, vector<1x1x96xf32>
    %6 = vector.shape_cast %5 : vector<1x1x96xf32> to vector<1x96xf32>
    %7 = vector.broadcast %6 : vector<1x96xf32> to vector<8x96xf32>
    %8 = arith.addf %4, %7 : vector<8x96xf32>
    %9 = vector.shape_cast %8 : vector<8x96xf32> to vector<4x2x96xf32>
    %c0_8 = arith.constant 0 : index
    %c0_9 = arith.constant 0 : index
    %c0_10 = arith.constant 0 : index
    %10 = vector.load %arg7[%c0_8, %c0_9, %c0_10] : memref<4x2x96xf32, #tpu.memory_space<vmem>>, vector<4x2x96xf32>
    tpu.vector_store %arg7[%c0_8, %c0_9, %c0_10], %9 {strides = array<i32>} : memref<4x2x96xf32, #tpu.memory_space<vmem>>, vector<4x2x96xf32>,
    %cst_11 = arith.constant 0.000000e+00 : f32
    %11 = vector.broadcast %cst_11 : f32 to vector<2x32xf32>
    %c0_12 = arith.constant 0 : index
    %c0_13 = arith.constant 0 : index
    %12 = vector.load %arg8[%c0_12, %c0_13] : memref<2x32xf32, #tpu.memory_space<vmem>>, vector<2x32xf32>
    tpu.vector_store %arg8[%c0_12, %c0_13], %11 {strides = array<i32>} : memref<2x32xf32, #tpu.memory_space<vmem>>, vector<2x32xf32>,
    %c0_i32 = arith.constant 0 : i32
    %c4_i32 = arith.constant 4 : i32
    %13 = arith.addi %c0_i32, %c4_i32 : i32
    %c1_i32 = arith.constant 1 : i32
    scf.for %arg9 = %c0_i32 to %13 step %c1_i32  : i32 {
      %c1_i32_15 = arith.constant 1 : i32
      %14 = arith.muli %arg9, %c1_i32_15 : i32
      %c0_i32_16 = arith.constant 0 : i32
      %15 = arith.addi %c0_i32_16, %14 : i32
      %c0_i32_17 = arith.constant 0 : i32
      %16 = arith.cmpi eq, %arg0, %c0_i32_17 : i32
      %c3_i32 = arith.constant 3 : i32
      %17 = arith.subi %c3_i32, %15 : i32
      %18 = arith.select %16, %15, %17 : i32
      %19 = arith.index_cast %18 : i32 to index
      %c0_18 = arith.constant 0 : index
      %c0_19 = arith.constant 0 : index
      %20 = vector.load %arg7[%19, %c0_18, %c0_19] : memref<4x2x96xf32, #tpu.memory_space<vmem>>, vector<1x2x96xf32>
      %21 = vector.shape_cast %20 : vector<1x2x96xf32> to vector<2x96xf32>
      %c0_20 = arith.constant 0 : index
      %c0_21 = arith.constant 0 : index
      %22 = vector.load %arg8[%c0_20, %c0_21] : memref<2x32xf32, #tpu.memory_space<vmem>>, vector<2x32xf32>
      %c0_22 = arith.constant 0 : index
      %c0_23 = arith.constant 0 : index
      %c0_24 = arith.constant 0 : index
      %23 = vector.load %arg3[%c0_22, %c0_23, %c0_24] : memref<1x32x96xf32, #tpu.memory_space<vmem>>, vector<1x32x96xf32>
      %24 = vector.shape_cast %23 : vector<1x32x96xf32> to vector<32x96xf32>
      %cst_25 = arith.constant dense<0.000000e+00> : vector<2x96xf32>
      %25 = tpu.matmul %22, %24, %cst_25 {dimension_numbers = #tpu.dot_dimension_numbers<[1], [0], [0], [1], [0, 0, 1, 1], [], []>} : vector<2x32xf32>, vector<32x96xf32>, vector<2x96xf32> -> vector<2x96xf32>
      %c0_26 = arith.constant 0 : index
      %c0_27 = arith.constant 0 : index
      %c0_28 = arith.constant 0 : index
      %26 = vector.load %arg5[%c0_26, %c0_27, %c0_28] : memref<1x1x96xf32, #tpu.memory_space<vmem>>, vector<1x1x96xf32>
      %27 = vector.shape_cast %26 : vector<1x1x96xf32> to vector<1x96xf32>
      %28 = vector.broadcast %27 : vector<1x96xf32> to vector<2x96xf32>
      %29 = arith.addf %25, %28 : vector<2x96xf32>
      %30 = vector.extract_strided_slice %21 {offsets = [0, 0], sizes = [2, 32], strides = [1, 1]} : vector<2x96xf32> to vector<2x32xf32>
      %31 = vector.extract_strided_slice %29 {offsets = [0, 0], sizes = [2, 32], strides = [1, 1]} : vector<2x96xf32> to vector<2x32xf32>
      %32 = arith.addf %30, %31 : vector<2x32xf32>
      %33 = arith.negf %32 : vector<2x32xf32>
      %34 = math.exp %33 : vector<2x32xf32>
      %cst_29 = arith.constant 1.000000e+00 : f32
      %35 = vector.broadcast %cst_29 : f32 to vector<2x32xf32>
      %36 = arith.addf %35, %34 : vector<2x32xf32>
      %37 = arith.divf %35, %36 : vector<2x32xf32>
      %38 = vector.extract_strided_slice %21 {offsets = [0, 32], sizes = [2, 32], strides = [1, 1]} : vector<2x96xf32> to vector<2x32xf32>
      %39 = vector.extract_strided_slice %29 {offsets = [0, 32], sizes = [2, 32], strides = [1, 1]} : vector<2x96xf32> to vector<2x32xf32>
      %40 = arith.addf %38, %39 : vector<2x32xf32>
      %41 = arith.negf %40 : vector<2x32xf32>
      %42 = math.exp %41 : vector<2x32xf32>
      %cst_30 = arith.constant 1.000000e+00 : f32
      %43 = vector.broadcast %cst_30 : f32 to vector<2x32xf32>
      %44 = arith.addf %43, %42 : vector<2x32xf32>
      %45 = arith.divf %43, %44 : vector<2x32xf32>
      %46 = vector.extract_strided_slice %21 {offsets = [0, 64], sizes = [2, 32], strides = [1, 1]} : vector<2x96xf32> to vector<2x32xf32>
      %47 = vector.extract_strided_slice %29 {offsets = [0, 64], sizes = [2, 32], strides = [1, 1]} : vector<2x96xf32> to vector<2x32xf32>
      %48 = arith.mulf %37, %47 : vector<2x32xf32>
      %49 = arith.addf %46, %48 : vector<2x32xf32>
      %50 = math.tanh %49 : vector<2x32xf32>
      %cst_31 = arith.constant 1.000000e+00 : f32
      %51 = vector.broadcast %cst_31 : f32 to vector<2x32xf32>
      %52 = arith.subf %51, %45 : vector<2x32xf32>
      %53 = arith.mulf %52, %50 : vector<2x32xf32>
      %54 = arith.mulf %45, %22 : vector<2x32xf32>
      %55 = arith.addf %53, %54 : vector<2x32xf32>
      %c0_32 = arith.constant 0 : index
      %c0_33 = arith.constant 0 : index
      %56 = vector.load %arg8[%c0_32, %c0_33] : memref<2x32xf32, #tpu.memory_space<vmem>>, vector<2x32xf32>
      tpu.vector_store %arg8[%c0_32, %c0_33], %55 {strides = array<i32>} : memref<2x32xf32, #tpu.memory_space<vmem>>, vector<2x32xf32>,
      %c0_34 = arith.constant 0 : index
      %57 = arith.index_cast %18 : i32 to index
      %c0_35 = arith.constant 0 : index
      %c0_36 = arith.constant 0 : index
      %58 = vector.load %arg6[%c0_34, %57, %c0_35, %c0_36] : memref<1x4x2x32xf32, #tpu.memory_space<vmem>>, vector<1x1x2x32xf32>
      %59 = vector.shape_cast %58 : vector<1x1x2x32xf32> to vector<2x32xf32>
      %60 = vector.shape_cast %55 : vector<2x32xf32> to vector<1x1x2x32xf32>
      tpu.vector_store %arg6[%c0_34, %57, %c0_35, %c0_36], %60 {strides = array<i32>} : memref<1x4x2x32xf32, #tpu.memory_space<vmem>>, vector<1x1x2x32xf32>,
    }
    %c4_i32_14 = arith.constant 4 : i32
    return
  }
  func.func @transform_0(%arg0: i32) -> (i32, i32, i32) {
    %c0_i32 = arith.constant 0 : i32
    %c0_i32_0 = arith.constant 0 : i32
    %c0_i32_1 = arith.constant 0 : i32
    %c0_i32_2 = arith.constant 0 : i32
    return %c0_i32, %c0_i32_0, %c0_i32_1 : i32, i32, i32
  }
  func.func @transform_1(%arg0: i32) -> (i32, i32, i32) {
    %c0_i32 = arith.constant 0 : i32
    %c0_i32_0 = arith.constant 0 : i32
    %c0_i32_1 = arith.constant 0 : i32
    return %arg0, %c0_i32, %c0_i32_0 : i32, i32, i32
  }
  func.func @transform_2(%arg0: i32) -> (i32, i32, i32) {
    %c0_i32 = arith.constant 0 : i32
    %c0_i32_0 = arith.constant 0 : i32
    %c0_i32_1 = arith.constant 0 : i32
    return %arg0, %c0_i32, %c0_i32_0 : i32, i32, i32
  }
  func.func @transform_3(%arg0: i32) -> (i32, i32, i32) {
    %c0_i32 = arith.constant 0 : i32
    %c0_i32_0 = arith.constant 0 : i32
    %c0_i32_1 = arith.constant 0 : i32
    return %arg0, %c0_i32, %c0_i32_0 : i32, i32, i32
  }
  func.func @transform_4(%arg0: i32) -> (i32, i32, i32) {
    %c0_i32 = arith.constant 0 : i32
    %c0_i32_0 = arith.constant 0 : i32
    %c0_i32_1 = arith.constant 0 : i32
    return %arg0, %c0_i32, %c0_i32_0 : i32, i32, i32
  }
  func.func @transform_5(%arg0: i32) -> (i32, i32, i32, i32) {
    %c0_i32 = arith.constant 0 : i32
    %c0_i32_0 = arith.constant 0 : i32
    %c0_i32_1 = arith.constant 0 : i32
    %c0_i32_2 = arith.constant 0 : i32
    return %arg0, %c0_i32, %c0_i32_0, %c0_i32_1 : i32, i32, i32, i32
  }
}

module attributes {stable_mosaic.version = 11 : i64} {
  func.func @_mm_bias_act_kernel(%arg0: i32, %arg1: memref<8x64xf32, #tpu.memory_space<vmem>>, %arg2: memref<64x128xf32, #tpu.memory_space<vmem>>, %arg3: memref<1x128xf32, #tpu.memory_space<vmem>>, %arg4: memref<8x128xf32, #tpu.memory_space<vmem>>) attributes {dimension_semantics = [#tpu.dimension_semantics<parallel>], iteration_bounds = array<i64: 1>, scalar_prefetch = 0 : i64, scratch_operands = 0 : i64, tpu.core_type = #tpu.core_type<tc>, window_params = [{transform_indices = @transform_0, window_bounds = array<i64: 8, 64>}, {pipeline_mode = #tpu.pipeline_mode<synchronous>, transform_indices = @transform_1, window_bounds = array<i64: 64, 128>}, {pipeline_mode = #tpu.pipeline_mode<synchronous>, transform_indices = @transform_2, window_bounds = array<i64: 1, 128>}, {transform_indices = @transform_3, window_bounds = array<i64: 8, 128>}]} {
    %c0 = arith.constant 0 : index
    %c0_0 = arith.constant 0 : index
    %0 = vector.load %arg1[%c0, %c0_0] : memref<8x64xf32, #tpu.memory_space<vmem>>, vector<8x64xf32>
    %c0_1 = arith.constant 0 : index
    %c0_2 = arith.constant 0 : index
    %1 = vector.load %arg2[%c0_1, %c0_2] : memref<64x128xf32, #tpu.memory_space<vmem>>, vector<64x128xf32>
    %cst = arith.constant dense<0.000000e+00> : vector<8x128xf32>
    %2 = tpu.matmul %0, %1, %cst {dimension_numbers = #tpu.dot_dimension_numbers<[1], [0], [0], [1], [0, 0, 1, 1], [], []>} : vector<8x64xf32>, vector<64x128xf32>, vector<8x128xf32> -> vector<8x128xf32>
    %c0_3 = arith.constant 0 : index
    %c0_4 = arith.constant 0 : index
    %3 = vector.load %arg3[%c0_3, %c0_4] : memref<1x128xf32, #tpu.memory_space<vmem>>, vector<1x128xf32>
    %4 = vector.broadcast %3 : vector<1x128xf32> to vector<8x128xf32>
    %5 = arith.addf %2, %4 : vector<8x128xf32>
    %c0_5 = arith.constant 0 : index
    %c0_6 = arith.constant 0 : index
    %6 = vector.load %arg4[%c0_5, %c0_6] : memref<8x128xf32, #tpu.memory_space<vmem>>, vector<8x128xf32>
    tpu.vector_store %arg4[%c0_5, %c0_6], %5 {strides = array<i32>} : memref<8x128xf32, #tpu.memory_space<vmem>>, vector<8x128xf32>,
    return
  }
  func.func @transform_0(%arg0: i32) -> (i32, i32) {
    %c0_i32 = arith.constant 0 : i32
    %c0_i32_0 = arith.constant 0 : i32
    return %arg0, %c0_i32 : i32, i32
  }
  func.func @transform_1(%arg0: i32) -> (i32, i32) {
    %c0_i32 = arith.constant 0 : i32
    %c0_i32_0 = arith.constant 0 : i32
    %c0_i32_1 = arith.constant 0 : i32
    return %c0_i32, %c0_i32_0 : i32, i32
  }
  func.func @transform_2(%arg0: i32) -> (i32, i32) {
    %c0_i32 = arith.constant 0 : i32
    %c0_i32_0 = arith.constant 0 : i32
    %c0_i32_1 = arith.constant 0 : i32
    return %c0_i32, %c0_i32_0 : i32, i32
  }
  func.func @transform_3(%arg0: i32) -> (i32, i32) {
    %c0_i32 = arith.constant 0 : i32
    %c0_i32_0 = arith.constant 0 : i32
    return %arg0, %c0_i32 : i32, i32
  }
}

</mosaic_0001>

<bundles_post_ra>
// kernel: _lambda_.6
= control target key start
LH: loop header
LB: loop body
LE: loop exit
PB: predicated region body
PF: predicated region fallthrough
CT: control target
= control target key end

     0   :  { %s3903_s12 = smov 0   ;;  %s4369_s0 = inlined_call_operand.vmem [shape: bf16[2,1600,27], index: 0, kind: input, shape index: {}]   ;;  %s4370_s1 = inlined_call_operand.vmem [shape: bf16[27,128], index: 1, kind: input, shape index: {}]   ;;  %s4371_s2 = inlined_call_operand.vmem [shape: f32[1,128], index: 2, kind: input, shape index: {}]   ;;  %s4372_s3 = inlined_call_operand.vmem [shape: bf16[2,400,128], index: 3, kind: output, shape index: {}]  }
   0x1 LB: > { %s2989_s13 = sadd.s32 4294967295, %s3880_s12   ;;  %p2993_p0 = scmp.ge.s32.totalorder %s3880_s12, 1  ;;  %s3880_s12 = sphi %s3903_s12, %s13_s12  }
   0x2   : > { %p137_p1 = scmp.lt.s32.totalorder %s3880_s12, 3 }
   0x4   : > { %p138_p2 = pnand %p2993_p0, %p137_p1 }
   0x5   : > { %v3771_v0 = vld [vmem:[%s4370_s1] sm:$0xff] (!%p138_p2)   ;;  %vm1195_vm0 = vcmask (!%p138_p2), 1044480   ;;  %v3772_v1 = vld [vmem:[%s4370_s1 + $0x8] sm:$0x3f] (!%p138_p2)   ;;  %vm1196_vm1 = vcmask (!%p138_p2), 1045504   ;;  %p161_p3 = scmp.lt.s32.totalorder (!%p138_p2), %s2989_s13, 1 }
   0x6   : > { %141 = sbr.rel (%p138_p2) target bundleno = 446 (0x1be), region = 32  ;;  %3552 = vmatprep.subr.bf16.mxu0 (!%p138_p2), %v3771_v0  ;;  %3756 = vmatprep.subr.bf16.mxu1 (!%p138_p2), %v3771_v0  ;;  %v3882_v2 = vmov (!%p138_p2), 65535   ;;  %vm894_vm2 = vcmask (!%p138_p2), 220160  }
   0x7   : > { %3553 = vmatpush3.bf16.msra.mxu0 (!%p138_p2), %v3771_v0  ;;  %3758 = vmatpush3.bf16.msra.mxu1 (!%p138_p2), %v3771_v0  ;;  %v1197_v3 = vsel (!%p138_p2), %vm1195_vm0, 4294967295, %v3882_v2 }
   0x8   : > { %v1198_v4 = vsel (!%p138_p2), %vm1196_vm1, %v1197_v3, 0 }
   0x9   : > { %v1200_v5 = vand.u32 (!%p138_p2), %v3772_v1, %v1198_v4 }
   0xb   : > { %3554 = vmatprep.subr.bf16.mxu0 (!%p138_p2), %v1200_v5  ;;  %3757 = vmatprep.subr.bf16.mxu1 (!%p138_p2), %v1200_v5 }
   0xc   : > { %3555 = vmatpush3.bf16.msra.mxu0 (!%p138_p2), %v1200_v5  ;;  %3759 = vmatpush3.bf16.msra.mxu1 (!%p138_p2), %v1200_v5 }
   0xd   : > { %s4374_s13 = smov (!%p161_p3, %s2989_s13), 1 }
   0xe   : > { %s3760_s18 = smul.u32 800, %s4374_s13 }
   0xf   : > { %s3761_s24 = smul.u32 200, %s4374_s13 }
  0x10   : > { %s3923_s21 = scalar_lea.vmem %s4369_s0, %s3760_s18 }
  0x11   : > { %v3773_v6 = vld [vmem:[%s3923_s21] sm:$0xff]   ;;  %v3774_v7 = vld [vmem:[%s3923_s21 + $0x190] sm:$0xff]   ;;  %v3775_v8 = vld [vmem:[%s3923_s21 + $0x8] sm:$0xff]   ;;  %s4161_s27 = scalar_lea.vmem %s4372_s3, %s3761_s24 }
  0x12   : > { %3556 = vmatprep.mubr.msk.bf16.mxu0 %vm894_vm2, %v3773_v6  ;;  %3656 = vmatprep.mubr.msk.bf16.mxu1 %vm894_vm2, %v3774_v7  ;;  %v3776_v9 = vld [vmem:[%s3923_s21 + $0x198] sm:$0xff]   ;;  %v3777_v10 = vld [vmem:[%s3923_s21 + $0x10] sm:$0xff]   ;;  %v3778_v11 = vld [vmem:[%s3923_s21 + $0x1a0] sm:$0xff]  }
  0x13   : > { %3557 = vmatmul.mubr.msk.bf16.vlgmr.msra.gmra.mrb[0].mxu0 %vm894_vm2, %v3775_v8  ;;  %3657 = vmatmul.mubr.msk.bf16.vlgmr.msra.gmra.mrb[0].mxu1 %vm894_vm2, %v3776_v9  ;;  %v3779_v12 = vld [vmem:[%s3923_s21 + $0x18] sm:$0xff]   ;;  %v3780_v13 = vld [vmem:[%s3923_s21 + $0x1a8] sm:$0xff]   ;;  %v3781_v14 = vld [vmem:[%s3923_s21 + $0x20] sm:$0xff]  }
  0x14   : > { %3560 = vmatprep.mubr.msk.bf16.mxu0 %vm894_vm2, %v3777_v10  ;;  %3660 = vmatprep.mubr.msk.bf16.mxu1 %vm894_vm2, %v3778_v11  ;;  %v3782_v15 = vld [vmem:[%s3923_s21 + $0x1b0] sm:$0xff]   ;;  %v3783_v16 = vld [vmem:[%s3923_s21 + $0x28] sm:$0xff]   ;;  %v3784_v17 = vld [vmem:[%s3923_s21 + $0x1b8] sm:$0xff]  }
  0x15   : > { %v3785_v18 = vld [vmem:[%s3923_s21 + $0x30] sm:$0xff]   ;;  %v3786_v19 = vld [vmem:[%s3923_s21 + $0x1c0] sm:$0xff]   ;;  %v3787_v20 = vld [vmem:[%s3923_s21 + $0x38] sm:$0xff]  }
  0x16   : > { %v3788_v21 = vld [vmem:[%s3923_s21 + $0x1c8] sm:$0xff]   ;;  %v3789_v22 = vld [vmem:[%s3923_s21 + $0x40] sm:$0xff]   ;;  %v3790_v23 = vld [vmem:[%s3923_s21 + $0x1d0] sm:$0xff]  }
  0x17   : > { %v3791_v24 = vld [vmem:[%s3923_s21 + $0x48] sm:$0xff]   ;;  %v3792_v25 = vld [vmem:[%s3923_s21 + $0x1d8] sm:$0xff]   ;;  %v3793_v26 = vld [vmem:[%s3923_s21 + $0x50] sm:$0xff]  }
  0x18   : > { %v3794_v27 = vld [vmem:[%s3923_s21 + $0x1e0] sm:$0xff]   ;;  %v3795_v28 = vld [vmem:[%s3923_s21 + $0x58] sm:$0xff]   ;;  %v3796_v29 = vld [vmem:[%s3923_s21 + $0x1e8] sm:$0xff]  }
  0x19   : > { %v3797_v30 = vld [vmem:[%s3923_s21 + $0x60] sm:$0xff]   ;;  %v3798_v31 = vld [vmem:[%s3923_s21 + $0x1f0] sm:$0xff]   ;;  %v3799_v32 = vld [vmem:[%s3923_s21 + $0x68] sm:$0xff]  }
  0x1a   : > { %v3800_v33 = vld [vmem:[%s3923_s21 + $0x1f8] sm:$0xff]   ;;  %v3801_v34 = vld [vmem:[%s3923_s21 + $0x70] sm:$0xff]   ;;  %v3802_v35 = vld [vmem:[%s3923_s21 + $0x200] sm:$0xff]  }
  0x1b   : > { %3561 = vmatmul.mubr.msk.bf16.gmra.mrb[4].mxu0 %vm894_vm2, %v3779_v12  ;;  %3661 = vmatmul.mubr.msk.bf16.gmra.mrb[4].mxu1 %vm894_vm2, %v3780_v13  ;;  %v3803_v36 = vld [vmem:[%s3923_s21 + $0x78] sm:$0xff]   ;;  %v3804_v37 = vld [vmem:[%s3923_s21 + $0x208] sm:$0xff]   ;;  %v3805_v38 = vld [vmem:[%s3923_s21 + $0x80] sm:$0xff]  }
  0x1c   : > { %3564 = vmatprep.mubr.msk.bf16.mxu0 %vm894_vm2, %v3781_v14  ;;  %3664 = vmatprep.mubr.msk.bf16.mxu1 %vm894_vm2, %v3782_v15  ;;  %v3806_v39 = vld [vmem:[%s3923_s21 + $0x210] sm:$0xff]   ;;  %v3807_v40 = vld [vmem:[%s3923_s21 + $0x88] sm:$0xff]   ;;  %v3808_v41 = vld [vmem:[%s3923_s21 + $0x218] sm:$0xff]  }
  0x1d   : > { %v3809_v42 = vld [vmem:[%s3923_s21 + $0x90] sm:$0xff]   ;;  %v3810_v43 = vld [vmem:[%s3923_s21 + $0x220] sm:$0xff]   ;;  %v3811_v44 = vld [vmem:[%s3923_s21 + $0x98] sm:$0xff]  }
  0x1e   : > { %v3812_v45 = vld [vmem:[%s3923_s21 + $0x228] sm:$0xff]   ;;  %v3813_v46 = vld [vmem:[%s3923_s21 + $0xa0] sm:$0xff]   ;;  %v3814_v47 = vld [vmem:[%s3923_s21 + $0x230] sm:$0xff]  }
  0x1f   : > { %v3815_v48 = vld [vmem:[%s3923_s21 + $0xa8] sm:$0xff]   ;;  %v3816_v49 = vld [vmem:[%s3923_s21 + $0x238] sm:$0xff]   ;;  %v3817_v50 = vld [vmem:[%s3923_s21 + $0xb0] sm:$0xff]  }
  0x20   : > { %v3818_v51 = vld [vmem:[%s3923_s21 + $0x240] sm:$0xff]   ;;  %v3819_v52 = vld [vmem:[%s3923_s21 + $0xb8] sm:$0xff]   ;;  %v3820_v53 = vld [vmem:[%s3923_s21 + $0x248] sm:$0xff]  }
  0x21   : > { %v3821_v54 = vld [vmem:[%s3923_s21 + $0xc0] sm:$0xff]   ;;  %v3822_v55 = vld [vmem:[%s3923_s21 + $0x250] sm:$0xff]   ;;  %v3823_v56 = vld [vmem:[%s3923_s21 + $0xc8] sm:$0xff]  }
  0x22   : > { %v3824_v57 = vld [vmem:[%s3923_s21 + $0x258] sm:$0xff]   ;;  %v3825_v58 = vld [vmem:[%s3923_s21 + $0xd0] sm:$0xff]   ;;  %v3826_v59 = vld [vmem:[%s3923_s21 + $0x260] sm:$0xff]  }
  0x23   : > { %3565 = vmatmul.mubr.msk.bf16.gmra.mrb[8].mxu0 %vm894_vm2, %v3783_v16  ;;  %3665 = vmatmul.mubr.msk.bf16.gmra.mrb[8].mxu1 %vm894_vm2, %v3784_v17  ;;  %v3827_v60 = vld [vmem:[%s3923_s21 + $0xd8] sm:$0xff]   ;;  %v3828_v61 = vld [vmem:[%s3923_s21 + $0x268] sm:$0xff]   ;;  %v3829_v62 = vld [vmem:[%s3923_s21 + $0xe0] sm:$0xff]  }
  0x24   : > { %3568 = vmatprep.mubr.msk.bf16.mxu0 %vm894_vm2, %v3785_v18  ;;  %3668 = vmatprep.mubr.msk.bf16.mxu1 %vm894_vm2, %v3786_v19  ;;  %v3830_v63 = vld [vmem:[%s3923_s21 + $0x270] sm:$0xff]   ;;  %v3831_v0 = vld [vmem:[%s3923_s21 + $0xe8] sm:$0xff]   ;;  %v3832_v1 = vld [vmem:[%s3923_s21 + $0x278] sm:$0xff]  }
  0x25   : > { %v3833_v2 = vld [vmem:[%s3923_s21 + $0xf0] sm:$0xff]   ;;  %v3834_v3 = vld [vmem:[%s3923_s21 + $0x280] sm:$0xff]   ;;  %v3835_v4 = vld [vmem:[%s3923_s21 + $0xf8] sm:$0xff]  }
  0x26   : > { %v3836_v5 = vld [vmem:[%s3923_s21 + $0x288] sm:$0xff]   ;;  %v3837_v6 = vld [vmem:[%s3923_s21 + $0x100] sm:$0xff]   ;;  %v3838_v7 = vld [vmem:[%s3923_s21 + $0x290] sm:$0xff]  }
  0x27   : > { %v3839_v8 = vld [vmem:[%s3923_s21 + $0x108] sm:$0xff]   ;;  %v3840_v9 = vld [vmem:[%s3923_s21 + $0x298] sm:$0xff]   ;;  %v3841_v10 = vld [vmem:[%s3923_s21 + $0x110] sm:$0xff]  }
  0x28   : > { %v3842_v11 = vld [vmem:[%s3923_s21 + $0x2a0] sm:$0xff]   ;;  %v3843_v12 = vld [vmem:[%s3923_s21 + $0x118] sm:$0xff]   ;;  %v3844_v13 = vld [vmem:[%s3923_s21 + $0x2a8] sm:$0xff]  }
  0x29   : > { %v3845_v14 = vld [vmem:[%s3923_s21 + $0x120] sm:$0xff]   ;;  %v3846_v15 = vld [vmem:[%s3923_s21 + $0x2b0] sm:$0xff]   ;;  %v3847_v16 = vld [vmem:[%s3923_s21 + $0x128] sm:$0xff]  }
  0x2a   : > { %v3848_v17 = vld [vmem:[%s3923_s21 + $0x2b8] sm:$0xff]   ;;  %v3849_v18 = vld [vmem:[%s3923_s21 + $0x130] sm:$0xff]   ;;  %v3850_v19 = vld [vmem:[%s3923_s21 + $0x2c0] sm:$0xff]  }
  0x2b   : > { %3569 = vmatmul.mubr.msk.bf16.gmra.mrb[12].mxu0 %vm894_vm2, %v3787_v20  ;;  %3669 = vmatmul.mubr.msk.bf16.gmra.mrb[12].mxu1 %vm894_vm2, %v3788_v21  ;;  %v3851_v20 = vld [vmem:[%s3923_s21 + $0x138] sm:$0xff]   ;;  %v3852_v21 = vld [vmem:[%s3923_s21 + $0x2c8] sm:$0xff]  }
  0x2c   : > { %3572 = vmatprep.mubr.msk.bf16.mxu0 %vm894_vm2, %v3789_v22  ;;  %3672 = vmatprep.mubr.msk.bf16.mxu1 %vm894_vm2, %v3790_v23  ;;  %v3853_v22 = vld [vmem:[%s3923_s21 + $0x140] sm:$0xff]   ;;  %v3854_v23 = vld [vmem:[%s3923_s21 + $0x2d0] sm:$0xff]  }
  0x33   : > { %3573 = vmatmul.mubr.msk.bf16.gmra.mrb[16].mxu0 %vm894_vm2, %v3791_v24  ;;  %3673 = vmatmul.mubr.msk.bf16.gmra.mrb[16].mxu1 %vm894_vm2, %v3792_v25  ;;  %v3855_v24 = vld [vmem:[%s3923_s21 + $0x148] sm:$0xff]   ;;  %v3856_v25 = vld [vmem:[%s3923_s21 + $0x2d8] sm:$0xff]  }
  0x34   : > { %3576 = vmatprep.mubr.msk.bf16.mxu0 %vm894_vm2, %v3793_v26  ;;  %3676 = vmatprep.mubr.msk.bf16.mxu1 %vm894_vm2, %v3794_v27  ;;  %v3857_v26 = vld [vmem:[%s3923_s21 + $0x150] sm:$0xff]   ;;  %v3858_v27 = vld [vmem:[%s3923_s21 + $0x2e0] sm:$0xff]  }
  0x3b   : > { %3577 = vmatmul.mubr.msk.bf16.gmra.mrb[20].mxu0 %vm894_vm2, %v3795_v28  ;;  %3677 = vmatmul.mubr.msk.bf16.gmra.mrb[20].mxu1 %vm894_vm2, %v3796_v29  ;;  %v3859_v28 = vld [vmem:[%s3923_s21 + $0x158] sm:$0xff]   ;;  %v3860_v29 = vld [vmem:[%s3923_s21 + $0x2e8] sm:$0xff]  }
  0x3c   : > { %3580 = vmatprep.mubr.msk.bf16.mxu0 %vm894_vm2, %v3797_v30  ;;  %3680 = vmatprep.mubr.msk.bf16.mxu1 %vm894_vm2, %v3798_v31  ;;  %v3861_v30 = vld [vmem:[%s3923_s21 + $0x160] sm:$0xff]   ;;  %v3862_v31 = vld [vmem:[%s3923_s21 + $0x2f0] sm:$0xff]  }
  0x43   : > { %3581 = vmatmul.mubr.msk.bf16.gmra.mrb[24].mxu0 %vm894_vm2, %v3799_v32  ;;  %3681 = vmatmul.mubr.msk.bf16.gmra.mrb[24].mxu1 %vm894_vm2, %v3800_v33  ;;  %v3863_v32 = vld [vmem:[%s3923_s21 + $0x168] sm:$0xff]   ;;  %v3864_v33 = vld [vmem:[%s3923_s21 + $0x2f8] sm:$0xff]  }
  0x44   : > { %3584 = vmatprep.mubr.msk.bf16.mxu0 %vm894_vm2, %v3801_v34  ;;  %3684 = vmatprep.mubr.msk.bf16.mxu1 %vm894_vm2, %v3802_v35  ;;  %v3865_v34 = vld [vmem:[%s3923_s21 + $0x170] sm:$0xff]   ;;  %v3866_v35 = vld [vmem:[%s3923_s21 + $0x300] sm:$0xff]  }
  0x4b   : > { %3585 = vmatmul.mubr.msk.bf16.gmra.mrb[28].mxu0 %vm894_vm2, %v3803_v36  ;;  %3685 = vmatmul.mubr.msk.bf16.gmra.mrb[28].mxu1 %vm894_vm2, %v3804_v37  ;;  %v3867_v36 = vld [vmem:[%s3923_s21 + $0x178] sm:$0xff]   ;;  %v3868_v37 = vld [vmem:[%s3923_s21 + $0x308] sm:$0xff]  }
  0x4c   : > { %3588 = vmatprep.mubr.msk.bf16.mxu0 %vm894_vm2, %v3805_v38  ;;  %3688 = vmatprep.mubr.msk.bf16.mxu1 %vm894_vm2, %v3806_v39  ;;  %v3869_v38 = vld [vmem:[%s3923_s21 + $0x180] sm:$0xff]   ;;  %v3870_v39 = vld [vmem:[%s3923_s21 + $0x310] sm:$0xff]  }
  0x53   : > { %3589 = vmatmul.mubr.msk.bf16.gmra.mrb[32].mxu0 %vm894_vm2, %v3807_v40  ;;  %3689 = vmatmul.mubr.msk.bf16.gmra.mrb[32].mxu1 %vm894_vm2, %v3808_v41  ;;  %v3871_v40 = vld [vmem:[%s3923_s21 + $0x188] sm:$0xff]   ;;  %v3872_v41 = vld [vmem:[%s3923_s21 + $0x318] sm:$0xff]  }
  0x54   : > { %3592 = vmatprep.mubr.msk.bf16.mxu0 %vm894_vm2, %v3809_v42  ;;  %3692 = vmatprep.mubr.msk.bf16.mxu1 %vm894_vm2, %v3810_v43  ;;  %v4128_v42 = vld [vmem:[%s4371_s2] ss:$0 sm:$0xff] }
  0x5b   : > { %3593 = vmatmul.mubr.msk.bf16.gmra.mrb[36].mxu0 %vm894_vm2, %v3811_v44  ;;  %3693 = vmatmul.mubr.msk.bf16.gmra.mrb[36].mxu1 %vm894_vm2, %v3812_v45 }
  0x5c   : > { %3596 = vmatprep.mubr.msk.bf16.mxu0 %vm894_vm2, %v3813_v46  ;;  %3696 = vmatprep.mubr.msk.bf16.mxu1 %vm894_vm2, %v3814_v47 }
  0x63   : > { %3597 = vmatmul.mubr.msk.bf16.gmra.mrb[40].mxu0 %vm894_vm2, %v3815_v48  ;;  %3697 = vmatmul.mubr.msk.bf16.gmra.mrb[40].mxu1 %vm894_vm2, %v3816_v49 }
  0x64   : > { %3600 = vmatprep.mubr.msk.bf16.mxu0 %vm894_vm2, %v3817_v50  ;;  %3700 = vmatprep.mubr.msk.bf16.mxu1 %vm894_vm2, %v3818_v51 }
  0x6b   : > { %3601 = vmatmul.mubr.msk.bf16.gmra.mrb[44].mxu0 %vm894_vm2, %v3819_v52  ;;  %3701 = vmatmul.mubr.msk.bf16.gmra.mrb[44].mxu1 %vm894_vm2, %v3820_v53 }
  0x6c   : > { %3604 = vmatprep.mubr.msk.bf16.mxu0 %vm894_vm2, %v3821_v54  ;;  %3704 = vmatprep.mubr.msk.bf16.mxu1 %vm894_vm2, %v3822_v55 }
  0x73   : > { %3605 = vmatmul.mubr.msk.bf16.gmra.mrb[48].mxu0 %vm894_vm2, %v3823_v56  ;;  %3705 = vmatmul.mubr.msk.bf16.gmra.mrb[48].mxu1 %vm894_vm2, %v3824_v57 }
  0x74   : > { %3608 = vmatprep.mubr.msk.bf16.mxu0 %vm894_vm2, %v3825_v58  ;;  %3708 = vmatprep.mubr.msk.bf16.mxu1 %vm894_vm2, %v3826_v59 }
  0x7b   : > { %3609 = vmatmul.mubr.msk.bf16.gmra.mrb[52].mxu0 %vm894_vm2, %v3827_v60  ;;  %3709 = vmatmul.mubr.msk.bf16.gmra.mrb[52].mxu1 %vm894_vm2, %v3828_v61 }
  0x7c   : > { %3612 = vmatprep.mubr.msk.bf16.mxu0 %vm894_vm2, %v3829_v62  ;;  %3712 = vmatprep.mubr.msk.bf16.mxu1 %vm894_vm2, %v3830_v63 }
  0x83   : > { %3613 = vmatmul.mubr.msk.bf16.gmra.mrb[56].mxu0 %vm894_vm2, %v3831_v0  ;;  %3713 = vmatmul.mubr.msk.bf16.gmra.mrb[56].mxu1 %vm894_vm2, %v3832_v1 }
  0x84   : > { %3616 = vmatprep.mubr.msk.bf16.mxu0 %vm894_vm2, %v3833_v2  ;;  %3716 = vmatprep.mubr.msk.bf16.mxu1 %vm894_vm2, %v3834_v3 }
  0x8b   : > { %3617 = vmatmul.mubr.msk.bf16.gmra.mrb[60].mxu0 %vm894_vm2, %v3835_v4  ;;  %3717 = vmatmul.mubr.msk.bf16.gmra.mrb[60].mxu1 %vm894_vm2, %v3836_v5 }
  0x8c   : > { %3620 = vmatprep.mubr.msk.bf16.mxu0 %vm894_vm2, %v3837_v6  ;;  %3720 = vmatprep.mubr.msk.bf16.mxu1 %vm894_vm2, %v3838_v7 }
  0x93   : > { %3621 = vmatmul.mubr.msk.bf16.gmra.mrb[64].mxu0 %vm894_vm2, %v3839_v8  ;;  %3721 = vmatmul.mubr.msk.bf16.gmra.mrb[64].mxu1 %vm894_vm2, %v3840_v9 }
  0x94   : > { %3624 = vmatprep.mubr.msk.bf16.mxu0 %vm894_vm2, %v3841_v10  ;;  %3724 = vmatprep.mubr.msk.bf16.mxu1 %vm894_vm2, %v3842_v11 }
  0x9b   : > { %3625 = vmatmul.mubr.msk.bf16.gmra.mrb[68].mxu0 %vm894_vm2, %v3843_v12  ;;  %3725 = vmatmul.mubr.msk.bf16.gmra.mrb[68].mxu1 %vm894_vm2, %v3844_v13 }
  0x9c   : > { %3628 = vmatprep.mubr.msk.bf16.mxu0 %vm894_vm2, %v3845_v14  ;;  %3728 = vmatprep.mubr.msk.bf16.mxu1 %vm894_vm2, %v3846_v15 }
  0xa3   : > { %3629 = vmatmul.mubr.msk.bf16.gmra.mrb[72].mxu0 %vm894_vm2, %v3847_v16  ;;  %3729 = vmatmul.mubr.msk.bf16.gmra.mrb[72].mxu1 %vm894_vm2, %v3848_v17 }
  0xa4   : > { %3632 = vmatprep.mubr.msk.bf16.mxu0 %vm894_vm2, %v3849_v18  ;;  %3732 = vmatprep.mubr.msk.bf16.mxu1 %vm894_vm2, %v3850_v19 }
  0xab   : > { %3633 = vmatmul.mubr.msk.bf16.gmra.mrb[76].mxu0 %vm894_vm2, %v3851_v20  ;;  %3733 = vmatmul.mubr.msk.bf16.gmra.mrb[76].mxu1 %vm894_vm2, %v3852_v21 }
  0xac   : > { %3636 = vmatprep.mubr.msk.bf16.mxu0 %vm894_vm2, %v3853_v22  ;;  %3736 = vmatprep.mubr.msk.bf16.mxu1 %vm894_vm2, %v3854_v23 }
  0xb3   : > { %3637 = vmatmul.mubr.msk.bf16.gmra.mrb[80].mxu0 %vm894_vm2, %v3855_v24  ;;  %3737 = vmatmul.mubr.msk.bf16.gmra.mrb[80].mxu1 %vm894_vm2, %v3856_v25 }
  0xb4   : > { %3640 = vmatprep.mubr.msk.bf16.mxu0 %vm894_vm2, %v3857_v26  ;;  %3740 = vmatprep.mubr.msk.bf16.mxu1 %vm894_vm2, %v3858_v27 }
  0xbb   : > { %3641 = vmatmul.mubr.msk.bf16.gmra.mrb[84].mxu0 %vm894_vm2, %v3859_v28  ;;  %3741 = vmatmul.mubr.msk.bf16.gmra.mrb[84].mxu1 %vm894_vm2, %v3860_v29 }
  0xbc   : > { %3644 = vmatprep.mubr.msk.bf16.mxu0 %vm894_vm2, %v3861_v30  ;;  %3744 = vmatprep.mubr.msk.bf16.mxu1 %vm894_vm2, %v3862_v31 }
  0xc3   : > { %3645 = vmatmul.mubr.msk.bf16.gmra.mrb[88].mxu0 %vm894_vm2, %v3863_v32  ;;  %3745 = vmatmul.mubr.msk.bf16.gmra.mrb[88].mxu1 %vm894_vm2, %v3864_v33 }
  0xc4   : > { %3648 = vmatprep.mubr.msk.bf16.mxu0 %vm894_vm2, %v3865_v34  ;;  %3748 = vmatprep.mubr.msk.bf16.mxu1 %vm894_vm2, %v3866_v35 }
  0xcb   : > { %3649 = vmatmul.mubr.msk.bf16.gmra.mrb[92].mxu0 %vm894_vm2, %v3867_v36  ;;  %3749 = vmatmul.mubr.msk.bf16.gmra.mrb[92].mxu1 %vm894_vm2, %v3868_v37 }
  0xcc   : > { %3652 = vmatprep.mubr.msk.bf16.mxu0 %vm894_vm2, %v3869_v38  ;;  %3752 = vmatprep.mubr.msk.bf16.mxu1 %vm894_vm2, %v3870_v39 }
  0xd3   : > { %3653 = vmatmul.mubr.msk.bf16.gmra.mrb[96].mxu0 %vm894_vm2, %v3871_v40  ;;  %3753 = vmatmul.mubr.msk.bf16.gmra.mrb[96].mxu1 %vm894_vm2, %v3872_v41 }
  0xe6   : > { %v3558_v43 = vpop.f32.mrb[0].mxu0  ;;  %v3658_v45 = vpop.f32.mrb[0].mxu1 }
  0xe7   : > { %v1245_v44 = vadd.f32 %v3558_v43, %v4128_v42  ;;  %v1236_v46 = vpop.f32.mrb[1].mxu0  ;;  %v1645_v47 = vadd.f32 %v3658_v45, %v4128_v42  ;;  %v1636_v49 = vpop.f32.mrb[1].mxu1 }
  0xe8   : > { %v1237_v48 = vadd.f32 %v4128_v42, %v1236_v46  ;;  %v3559_v50 = vpop.f32.mrb[2].mxu0  ;;  %v1637_v52 = vadd.f32 %v4128_v42, %v1636_v49  ;;  %v3659_v54 = vpop.f32.mrb[2].mxu1 }
  0xe9   : > { %v2037_v51 = vmax.f32 %v1245_v44, 0.0  ;;  %v1248_v53 = vadd.f32 %v3559_v50, %v4128_v42  ;;  %v1239_v55 = vpop.f32.mrb[3].mxu0  ;;  %v2137_v56 = vmax.f32 %v1645_v47, 0.0  ;;  %v1648_v58 = vadd.f32 %v3659_v54, %v4128_v42  ;;  %v1639_v60 = vpop.f32.mrb[3].mxu1 }
  0xea   : > { %v2035_v57 = vmax.f32 %v1237_v48, 0.0  ;;  %v1240_v59 = vadd.f32 %v4128_v42, %v1239_v55  ;;  %v2135_v61 = vmax.f32 %v1637_v52, 0.0  ;;  %v1640_v63 = vadd.f32 %v4128_v42, %v1639_v60 }
  0xeb   : > { %v2038_v62 = vmax.f32 %v1248_v53, 0.0  ;;  %v2138_v1 = vmax.f32 %v1648_v58, 0.0 }
  0xec   : > { %v2235_v0 = vmax.f32 %v2035_v57, %v2037_v51  ;;  %v2036_v2 = vmax.f32 %v1240_v59, 0.0  ;;  %v2285_v3 = vmax.f32 %v2135_v61, %v2137_v56  ;;  %v2136_v4 = vmax.f32 %v1640_v63, 0.0 }
  0xee   : > { %2335 = vst [vmem:[#allocation2] sm:$0xff] %v2235_v0  ;;  %v2236_v5 = vmax.f32 %v2036_v2, %v2038_v62  ;;  %v3562_v6 = vpop.f32.mrb[4].mxu0  ;;  %2385 = vst [vmem:[#allocation2 + $0x190] sm:$0xff] %v2285_v3  ;;  %v2286_v7 = vmax.f32 %v2136_v4, %v2138_v1  ;;  %v3662_v9 = vpop.f32.mrb[4].mxu1 }
  0xef   : > { %v1261_v8 = vadd.f32 %v3562_v6, %v4128_v42  ;;  %v1252_v10 = vpop.f32.mrb[5].mxu0  ;;  %v1661_v11 = vadd.f32 %v3662_v9, %v4128_v42  ;;  %v1652_v13 = vpop.f32.mrb[5].mxu1 }
  0xf0   : > { %2336 = vst [vmem:[#allocation2 + $0x8] sm:$0xff] %v2236_v5  ;;  %v1253_v12 = vadd.f32 %v4128_v42, %v1252_v10  ;;  %v3563_v14 = vpop.f32.mrb[6].mxu0  ;;  %2386 = vst [vmem:[#allocation2 + $0x198] sm:$0xff] %v2286_v7  ;;  %v1653_v16 = vadd.f32 %v4128_v42, %v1652_v13  ;;  %v3663_v18 = vpop.f32.mrb[6].mxu1 }
  0xf1   : > { %v2041_v15 = vmax.f32 %v1261_v8, 0.0  ;;  %v1264_v17 = vadd.f32 %v3563_v14, %v4128_v42  ;;  %v1255_v19 = vpop.f32.mrb[7].mxu0  ;;  %v2141_v20 = vmax.f32 %v1661_v11, 0.0  ;;  %v1664_v22 = vadd.f32 %v3663_v18, %v4128_v42  ;;  %v1655_v24 = vpop.f32.mrb[7].mxu1 }
  0xf2   : > { %v2039_v21 = vmax.f32 %v1253_v12, 0.0  ;;  %v1256_v23 = vadd.f32 %v4128_v42, %v1255_v19  ;;  %v2139_v25 = vmax.f32 %v1653_v16, 0.0  ;;  %v1656_v27 = vadd.f32 %v4128_v42, %v1655_v24 }
  0xf3   : > { %v2042_v26 = vmax.f32 %v1264_v17, 0.0  ;;  %v2142_v29 = vmax.f32 %v1664_v22, 0.0 }
  0xf4   : > { %v2237_v28 = vmax.f32 %v2039_v21, %v2041_v15  ;;  %v2040_v30 = vmax.f32 %v1256_v23, 0.0  ;;  %v2287_v31 = vmax.f32 %v2139_v25, %v2141_v20  ;;  %v2140_v32 = vmax.f32 %v1656_v27, 0.0 }
  0xf6   : > { %2337 = vst [vmem:[#allocation2 + $0x10] sm:$0xff] %v2237_v28  ;;  %v2238_v33 = vmax.f32 %v2040_v30, %v2042_v26  ;;  %v3566_v34 = vpop.f32.mrb[8].mxu0  ;;  %2387 = vst [vmem:[#allocation2 + $0x1a0] sm:$0xff] %v2287_v31  ;;  %v2288_v35 = vmax.f32 %v2140_v32, %v2142_v29  ;;  %v3666_v37 = vpop.f32.mrb[8].mxu1 }
  0xf7   : > { %v1277_v36 = vadd.f32 %v3566_v34, %v4128_v42  ;;  %v1268_v38 = vpop.f32.mrb[9].mxu0  ;;  %v1677_v39 = vadd.f32 %v3666_v37, %v4128_v42  ;;  %v1668_v41 = vpop.f32.mrb[9].mxu1  ;;  %v2435_v60 = vld [vmem:[#allocation2] ss:$2 sm:$0xff]  ;;  %v2535_v61 = vld [vmem:[#allocation2 + $0x1] ss:$2 sm:$0xff] }
  0xf8   : > { %2338 = vst [vmem:[#allocation2 + $0x18] sm:$0xff] %v2238_v33  ;;  %v1269_v40 = vadd.f32 %v4128_v42, %v1268_v38  ;;  %v3567_v43 = vpop.f32.mrb[10].mxu0  ;;  %2388 = vst [vmem:[#allocation2 + $0x1a8] sm:$0xff] %v2288_v35  ;;  %v1669_v45 = vadd.f32 %v4128_v42, %v1668_v41  ;;  %v3667_v47 = vpop.f32.mrb[10].mxu1  ;;  %v2634_v8 = vmax.f32 %v2435_v60, %v2535_v61 }
  0xf9   : > { %v2045_v44 = vmax.f32 %v1277_v36, 0.0  ;;  %v1280_v46 = vadd.f32 %v3567_v43, %v4128_v42  ;;  %v1271_v48 = vpop.f32.mrb[11].mxu0  ;;  %v2145_v49 = vmax.f32 %v1677_v39, 0.0  ;;  %v1680_v51 = vadd.f32 %v3667_v47, %v4128_v42  ;;  %v1671_v53 = vpop.f32.mrb[11].mxu1 }
  0xfa   : > { %v2043_v50 = vmax.f32 %v1269_v40, 0.0  ;;  %v1272_v52 = vadd.f32 %v4128_v42, %v1271_v48  ;;  %v2143_v54 = vmax.f32 %v1669_v45, 0.0  ;;  %v1672_v56 = vadd.f32 %v4128_v42, %v1671_v53 }
  0xfb   : > { %v2046_v55 = vmax.f32 %v1280_v46, 0.0  ;;  %v2146_v58 = vmax.f32 %v1680_v51, 0.0 }
  0xfc   : > { %v2239_v57 = vmax.f32 %v2043_v50, %v2045_v44  ;;  %v2044_v59 = vmax.f32 %v1272_v52, 0.0  ;;  %v2289_v62 = vmax.f32 %v2143_v54, %v2145_v49  ;;  %v2144_v63 = vmax.f32 %v1672_v56, 0.0 }
  0xfe   : > { %2339 = vst [vmem:[#allocation2 + $0x20] sm:$0xff] %v2239_v57  ;;  %v2240_v0 = vmax.f32 %v2044_v59, %v2046_v55  ;;  %v3570_v1 = vpop.f32.mrb[12].mxu0  ;;  %2389 = vst [vmem:[#allocation2 + $0x1b0] sm:$0xff] %v2289_v62  ;;  %v2290_v4 = vmax.f32 %v2144_v63, %v2146_v58  ;;  %v3670_v6 = vpop.f32.mrb[12].mxu1 }
  0xff   : > { %v2437_v2 = vld [vmem:[#allocation2 + $0x10] ss:$2 sm:$0xff]  ;;  %v2537_v3 = vld [vmem:[#allocation2 + $0x11] ss:$2 sm:$0xff]  ;;  %v1293_v5 = vadd.f32 %v3570_v1, %v4128_v42  ;;  %v1284_v7 = vpop.f32.mrb[13].mxu0  ;;  %v1693_v10 = vadd.f32 %v3670_v6, %v4128_v42  ;;  %v1684_v12 = vpop.f32.mrb[13].mxu1 }
 0x100   : > { %v2635_v9 = vmax.f32 %v2437_v2, %v2537_v3  ;;  %2340 = vst [vmem:[#allocation2 + $0x28] sm:$0xff] %v2240_v0  ;;  %v1285_v11 = vadd.f32 %v4128_v42, %v1284_v7  ;;  %v3571_v13 = vpop.f32.mrb[14].mxu0  ;;  %2390 = vst [vmem:[#allocation2 + $0x1b8] sm:$0xff] %v2290_v4  ;;  %v1685_v15 = vadd.f32 %v4128_v42, %v1684_v12  ;;  %v3671_v17 = vpop.f32.mrb[14].mxu1  ;;  %v2487_v30 = vld [vmem:[#allocation2 + $0x1a0] ss:$2 sm:$0xff] }
 0x101   : > { %v2049_v14 = vmax.f32 %v1293_v5, 0.0  ;;  %v1296_v16 = vadd.f32 %v3571_v13, %v4128_v42  ;;  %v1287_v18 = vpop.f32.mrb[15].mxu0  ;;  %v2149_v20 = vmax.f32 %v1693_v10, 0.0  ;;  %v1696_v22 = vadd.f32 %v3671_v17, %v4128_v42  ;;  %v1687_v23 = vpop.f32.mrb[15].mxu1  ;;  %v2587_v31 = vld [vmem:[#allocation2 + $0x1a1] ss:$2 sm:$0xff] }
 0x102   : > { %v3304_v19 = vpack.c.bf16 %v2635_v9, %v2634_v8  ;;  %v2047_v21 = vmax.f32 %v1285_v11, 0.0  ;;  %v2147_v24 = vmax.f32 %v1685_v15, 0.0  ;;  %v1288_v26 = vadd.f32 %v4128_v42, %v1287_v18 }
 0x103   : > { %v2050_v25 = vmax.f32 %v1296_v16, 0.0  ;;  %v1688_v27 = vadd.f32 %v4128_v42, %v1687_v23  ;;  %v2150_v29 = vmax.f32 %v1696_v22, 0.0  ;;  %v2660_v41 = vmax.f32 %v2487_v30, %v2587_v31 }
 0x104   : > { %3305 = vst [vmem:[%s4161_s27] sm:$0xff] %v3304_v19   ;;  %v2241_v28 = vmax.f32 %v2047_v21, %v2049_v14  ;;  %v2291_v32 = vmax.f32 %v2147_v24, %v2149_v20  ;;  %v2048_v33 = vmax.f32 %v1288_v26, 0.0 }
 0x105   : > { %v2148_v34 = vmax.f32 %v1688_v27, 0.0 }
 0x106   : > { %2341 = vst [vmem:[#allocation2 + $0x30] sm:$0xff] %v2241_v28  ;;  %v3574_v35 = vpop.f32.mrb[16].mxu0  ;;  %2391 = vst [vmem:[#allocation2 + $0x1c0] sm:$0xff] %v2291_v32  ;;  %v2242_v36 = vmax.f32 %v2048_v33, %v2050_v25  ;;  %v3674_v39 = vpop.f32.mrb[16].mxu1 }
 0x107   : > { %v2292_v37 = vmax.f32 %v2148_v34, %v2150_v29  ;;  %v1309_v38 = vadd.f32 %v3574_v35, %v4128_v42  ;;  %v1300_v40 = vpop.f32.mrb[17].mxu0  ;;  %v2489_v43 = vld [vmem:[#allocation2 + $0x1b0] ss:$2 sm:$0xff]  ;;  %v2589_v44 = vld [vmem:[#allocation2 + $0x1b1] ss:$2 sm:$0xff]  ;;  %v1709_v45 = vadd.f32 %v3674_v39, %v4128_v42  ;;  %v1700_v47 = vpop.f32.mrb[17].mxu1 }
 0x108   : > { %v1301_v46 = vadd.f32 %v4128_v42, %v1300_v40  ;;  %v3575_v48 = vpop.f32.mrb[18].mxu0  ;;  %v2661_v49 = vmax.f32 %v2489_v43, %v2589_v44  ;;  %2342 = vst [vmem:[#allocation2 + $0x38] sm:$0xff] %v2242_v36  ;;  %v1701_v51 = vadd.f32 %v4128_v42, %v1700_v47  ;;  %v3675_v53 = vpop.f32.mrb[18].mxu1  ;;  %v2439_v5 = vld [vmem:[#allocation2 + $0x20] ss:$2 sm:$0xff] }
 0x109   : > { %2392 = vst [vmem:[#allocation2 + $0x1c8] sm:$0xff] %v2292_v37  ;;  %v2053_v50 = vmax.f32 %v1309_v38, 0.0  ;;  %v1312_v52 = vadd.f32 %v3575_v48, %v4128_v42  ;;  %v1303_v54 = vpop.f32.mrb[19].mxu0  ;;  %v2153_v55 = vmax.f32 %v1709_v45, 0.0  ;;  %v1712_v57 = vadd.f32 %v3675_v53, %v4128_v42  ;;  %v1703_v59 = vpop.f32.mrb[19].mxu1 }
 0x10a   : > { %v2051_v56 = vmax.f32 %v1301_v46, 0.0  ;;  %v1304_v58 = vadd.f32 %v4128_v42, %v1303_v54  ;;  %v3369_v60 = vpack.c.bf16 %v2661_v49, %v2660_v41  ;;  %v2151_v61 = vmax.f32 %v1701_v51, 0.0  ;;  %v2539_v6 = vld [vmem:[#allocation2 + $0x21] ss:$2 sm:$0xff] }
 0x10b   : > { %v2054_v62 = vmax.f32 %v1312_v52, 0.0  ;;  %v1704_v63 = vadd.f32 %v4128_v42, %v1703_v59  ;;  %v2154_v1 = vmax.f32 %v1712_v57, 0.0  ;;  %v2636_v17 = vmax.f32 %v2439_v5, %v2539_v6 }
 0x10c   : > { %v2243_v0 = vmax.f32 %v2051_v56, %v2053_v50  ;;  %v2052_v2 = vmax.f32 %v1304_v58, 0.0  ;;  %3438 = vst [vmem:[%s4161_s27 + $0x68] sm:$0xff] %v3369_v60   ;;  %v2293_v3 = vmax.f32 %v2151_v61, %v2153_v55 }
 0x10d   : > { %v2152_v4 = vmax.f32 %v1704_v63, 0.0 }
 0x10e   : > { %2343 = vst [vmem:[#allocation2 + $0x40] sm:$0xff] %v2243_v0  ;;  %v2244_v7 = vmax.f32 %v2052_v2, %v2054_v62  ;;  %v3578_v8 = vpop.f32.mrb[20].mxu0  ;;  %2393 = vst [vmem:[#allocation2 + $0x1d0] sm:$0xff] %v2293_v3  ;;  %v3678_v11 = vpop.f32.mrb[20].mxu1 }
 0x10f   : > { %v2294_v9 = vmax.f32 %v2152_v4, %v2154_v1  ;;  %v1325_v10 = vadd.f32 %v3578_v8, %v4128_v42  ;;  %v1316_v12 = vpop.f32.mrb[21].mxu0  ;;  %v2441_v13 = vld [vmem:[#allocation2 + $0x30] ss:$2 sm:$0xff]  ;;  %v2541_v14 = vld [vmem:[#allocation2 + $0x31] ss:$2 sm:$0xff]  ;;  %v1725_v15 = vadd.f32 %v3678_v11, %v4128_v42  ;;  %v1716_v20 = vpop.f32.mrb[21].mxu1 }
 0x110   : > { %2344 = vst [vmem:[#allocation2 + $0x48] sm:$0xff] %v2244_v7  ;;  %v1317_v16 = vadd.f32 %v4128_v42, %v1316_v12  ;;  %v2637_v18 = vmax.f32 %v2441_v13, %v2541_v14  ;;  %v3579_v21 = vpop.f32.mrb[22].mxu0  ;;  %v1717_v24 = vadd.f32 %v4128_v42, %v1716_v20  ;;  %v3679_v25 = vpop.f32.mrb[22].mxu1  ;;  %v2491_v32 = vld [vmem:[#allocation2 + $0x1c0] ss:$2 sm:$0xff] }
 0x111   : > { %2394 = vst [vmem:[#allocation2 + $0x1d8] sm:$0xff] %v2294_v9  ;;  %v2057_v19 = vmax.f32 %v1325_v10, 0.0  ;;  %v2157_v22 = vmax.f32 %v1725_v15, 0.0  ;;  %v1319_v26 = vpop.f32.mrb[23].mxu0  ;;  %v1328_v28 = vadd.f32 %v3579_v21, %v4128_v42  ;;  %v1728_v29 = vadd.f32 %v3679_v25, %v4128_v42  ;;  %v1719_v31 = vpop.f32.mrb[23].mxu1 }
 0x112   : > { %v2055_v23 = vmax.f32 %v1317_v16, 0.0  ;;  %v3309_v27 = vpack.c.bf16 %v2637_v18, %v2636_v17  ;;  %v1320_v30 = vadd.f32 %v4128_v42, %v1319_v26  ;;  %v2155_v34 = vmax.f32 %v1717_v24, 0.0  ;;  %v2591_v36 = vld [vmem:[#allocation2 + $0x1c1] ss:$2 sm:$0xff] }
 0x113   : > { %v1720_v35 = vadd.f32 %v4128_v42, %v1719_v31  ;;  %v2058_v37 = vmax.f32 %v1328_v28, 0.0  ;;  %v2158_v38 = vmax.f32 %v1728_v29, 0.0  ;;  %v2662_v48 = vmax.f32 %v2491_v32, %v2591_v36 }
 0x114   : > { %v2245_v33 = vmax.f32 %v2055_v23, %v2057_v19  ;;  %3426 = vst [vmem:[%s4161_s27 + $0x8] sm:$0xff] %v3309_v27   ;;  %v2056_v39 = vmax.f32 %v1320_v30, 0.0  ;;  %v2295_v40 = vmax.f32 %v2155_v34, %v2157_v22 }
 0x115   : > { %v2156_v41 = vmax.f32 %v1720_v35, 0.0 }
 0x116   : > { %2345 = vst [vmem:[#allocation2 + $0x50] sm:$0xff] %v2245_v33  ;;  %v3582_v43 = vpop.f32.mrb[24].mxu0  ;;  %v2246_v44 = vmax.f32 %v2056_v39, %v2058_v37  ;;  %v3682_v46 = vpop.f32.mrb[24].mxu1  ;;  %2395 = vst [vmem:[#allocation2 + $0x1e0] sm:$0xff] %v2295_v40 }
 0x117   : > { %v1341_v45 = vadd.f32 %v3582_v43, %v4128_v42  ;;  %v1332_v47 = vpop.f32.mrb[25].mxu0  ;;  %v2296_v51 = vmax.f32 %v2156_v41, %v2158_v38  ;;  %v1741_v52 = vadd.f32 %v3682_v46, %v4128_v42  ;;  %v1732_v54 = vpop.f32.mrb[25].mxu1  ;;  %v2443_v10 = vld [vmem:[#allocation2 + $0x40] ss:$2 sm:$0xff]  ;;  %v2543_v11 = vld [vmem:[#allocation2 + $0x41] ss:$2 sm:$0xff] }
 0x118   : > { %v2493_v49 = vld [vmem:[#allocation2 + $0x1d0] ss:$2 sm:$0xff]  ;;  %v2593_v50 = vld [vmem:[#allocation2 + $0x1d1] ss:$2 sm:$0xff]  ;;  %v1333_v53 = vadd.f32 %v4128_v42, %v1332_v47  ;;  %v3583_v55 = vpop.f32.mrb[26].mxu0  ;;  %2346 = vst [vmem:[#allocation2 + $0x58] sm:$0xff] %v2246_v44  ;;  %v1733_v58 = vadd.f32 %v4128_v42, %v1732_v54  ;;  %v2638_v20 = vmax.f32 %v2443_v10, %v2543_v11 }
 0x119   : > { %v2663_v56 = vmax.f32 %v2493_v49, %v2593_v50  ;;  %v2061_v57 = vmax.f32 %v1341_v45, 0.0  ;;  %v1344_v59 = vadd.f32 %v3583_v55, %v4128_v42  ;;  %v3683_v60 = vpop.f32.mrb[26].mxu1  ;;  %v1335_v61 = vpop.f32.mrb[27].mxu0  ;;  %2396 = vst [vmem:[#allocation2 + $0x1e8] sm:$0xff] %v2296_v51  ;;  %v2161_v62 = vmax.f32 %v1741_v52, 0.0 }
 0x11a   : > { %v2059_v63 = vmax.f32 %v1333_v53, 0.0  ;;  %v1744_v0 = vadd.f32 %v3683_v60, %v4128_v42  ;;  %v1336_v1 = vadd.f32 %v4128_v42, %v1335_v61  ;;  %v1735_v2 = vpop.f32.mrb[27].mxu1  ;;  %v2159_v4 = vmax.f32 %v1733_v58, 0.0 }
 0x11b   : > { %v3374_v3 = vpack.c.bf16 %v2663_v56, %v2662_v48  ;;  %v2062_v5 = vmax.f32 %v1344_v59, 0.0  ;;  %v1736_v6 = vadd.f32 %v4128_v42, %v1735_v2 }
 0x11c   : > { %v2247_v7 = vmax.f32 %v2059_v63, %v2061_v57  ;;  %v2162_v8 = vmax.f32 %v1744_v0, 0.0  ;;  %v2060_v9 = vmax.f32 %v1336_v1, 0.0  ;;  %v2297_v12 = vmax.f32 %v2159_v4, %v2161_v62 }
 0x11d   : > { %3439 = vst [vmem:[%s4161_s27 + $0x70] sm:$0xff] %v3374_v3   ;;  %v2160_v13 = vmax.f32 %v1736_v6, 0.0 }
 0x11e   : > { %2347 = vst [vmem:[#allocation2 + $0x60] sm:$0xff] %v2247_v7  ;;  %v2248_v14 = vmax.f32 %v2060_v9, %v2062_v5  ;;  %v3586_v15 = vpop.f32.mrb[28].mxu0  ;;  %2397 = vst [vmem:[#allocation2 + $0x1f0] sm:$0xff] %v2297_v12  ;;  %v3686_v18 = vpop.f32.mrb[28].mxu1 }
 0x11f   : > { %v2298_v16 = vmax.f32 %v2160_v13, %v2162_v8  ;;  %v1357_v17 = vadd.f32 %v3586_v15, %v4128_v42  ;;  %v1348_v19 = vpop.f32.mrb[29].mxu0  ;;  %v2445_v21 = vld [vmem:[#allocation2 + $0x50] ss:$2 sm:$0xff]  ;;  %v2545_v22 = vld [vmem:[#allocation2 + $0x51] ss:$2 sm:$0xff]  ;;  %v1757_v23 = vadd.f32 %v3686_v18, %v4128_v42  ;;  %v1748_v25 = vpop.f32.mrb[29].mxu1 }
 0x120   : > { %2348 = vst [vmem:[#allocation2 + $0x68] sm:$0xff] %v2248_v14  ;;  %v1349_v24 = vadd.f32 %v4128_v42, %v1348_v19  ;;  %v3587_v26 = vpop.f32.mrb[30].mxu0  ;;  %v2639_v27 = vmax.f32 %v2445_v21, %v2545_v22  ;;  %v1749_v29 = vadd.f32 %v4128_v42, %v1748_v25  ;;  %v3687_v31 = vpop.f32.mrb[30].mxu1  ;;  %v2495_v45 = vld [vmem:[#allocation2 + $0x1e0] ss:$2 sm:$0xff] }
 0x121   : > { %2398 = vst [vmem:[#allocation2 + $0x1f8] sm:$0xff] %v2298_v16  ;;  %v2065_v28 = vmax.f32 %v1357_v17, 0.0  ;;  %v1360_v30 = vadd.f32 %v3587_v26, %v4128_v42  ;;  %v2165_v32 = vmax.f32 %v1757_v23, 0.0  ;;  %v1760_v34 = vadd.f32 %v3687_v31, %v4128_v42  ;;  %v1351_v35 = vpop.f32.mrb[31].mxu0  ;;  %v1751_v36 = vpop.f32.mrb[31].mxu1 }
 0x122   : > { %v2063_v33 = vmax.f32 %v1349_v24, 0.0  ;;  %v3314_v37 = vpack.c.bf16 %v2639_v27, %v2638_v20  ;;  %v2163_v38 = vmax.f32 %v1749_v29, 0.0  ;;  %v1352_v40 = vadd.f32 %v4128_v42, %v1351_v35  ;;  %v2595_v46 = vld [vmem:[#allocation2 + $0x1e1] ss:$2 sm:$0xff] }
 0x123   : > { %v2066_v39 = vmax.f32 %v1360_v30, 0.0  ;;  %v2166_v43 = vmax.f32 %v1760_v34, 0.0  ;;  %v1752_v44 = vadd.f32 %v4128_v42, %v1751_v36  ;;  %v2664_v55 = vmax.f32 %v2495_v45, %v2595_v46 }
 0x124   : > { %v2249_v41 = vmax.f32 %v2063_v33, %v2065_v28  ;;  %3427 = vst [vmem:[%s4161_s27 + $0x10] sm:$0xff] %v3314_v37   ;;  %v2299_v47 = vmax.f32 %v2163_v38, %v2165_v32  ;;  %v2064_v48 = vmax.f32 %v1352_v40, 0.0 }
 0x125   : > { %v2164_v49 = vmax.f32 %v1752_v44, 0.0 }
 0x126   : > { %2349 = vst [vmem:[#allocation2 + $0x70] sm:$0xff] %v2249_v41  ;;  %v3590_v50 = vpop.f32.mrb[32].mxu0  ;;  %2399 = vst [vmem:[#allocation2 + $0x200] sm:$0xff] %v2299_v47  ;;  %v2250_v51 = vmax.f32 %v2064_v48, %v2066_v39  ;;  %v3690_v53 = vpop.f32.mrb[32].mxu1 }
 0x127   : > { %v1373_v52 = vadd.f32 %v3590_v50, %v4128_v42  ;;  %v1364_v54 = vpop.f32.mrb[33].mxu0  ;;  %v2300_v58 = vmax.f32 %v2164_v49, %v2166_v43  ;;  %v1773_v59 = vadd.f32 %v3690_v53, %v4128_v42  ;;  %v1764_v61 = vpop.f32.mrb[33].mxu1  ;;  %v2447_v17 = vld [vmem:[#allocation2 + $0x60] ss:$2 sm:$0xff]  ;;  %v2547_v18 = vld [vmem:[#allocation2 + $0x61] ss:$2 sm:$0xff] }
 0x128   : > { %v2497_v56 = vld [vmem:[#allocation2 + $0x1f0] ss:$2 sm:$0xff]  ;;  %v2597_v57 = vld [vmem:[#allocation2 + $0x1f1] ss:$2 sm:$0xff]  ;;  %v1365_v60 = vadd.f32 %v4128_v42, %v1364_v54  ;;  %v3591_v62 = vpop.f32.mrb[34].mxu0  ;;  %2350 = vst [vmem:[#allocation2 + $0x78] sm:$0xff] %v2250_v51  ;;  %v1765_v1 = vadd.f32 %v4128_v42, %v1764_v61  ;;  %v2640_v27 = vmax.f32 %v2447_v17, %v2547_v18 }
 0x129   : > { %v2665_v63 = vmax.f32 %v2497_v56, %v2597_v57  ;;  %v2069_v0 = vmax.f32 %v1373_v52, 0.0  ;;  %v1376_v2 = vadd.f32 %v3591_v62, %v4128_v42  ;;  %v3691_v3 = vpop.f32.mrb[34].mxu1  ;;  %v1367_v4 = vpop.f32.mrb[35].mxu0  ;;  %2400 = vst [vmem:[#allocation2 + $0x208] sm:$0xff] %v2300_v58  ;;  %v2169_v5 = vmax.f32 %v1773_v59, 0.0 }
 0x12a   : > { %v2067_v6 = vmax.f32 %v1365_v60, 0.0  ;;  %v1776_v7 = vadd.f32 %v3691_v3, %v4128_v42  ;;  %v1368_v8 = vadd.f32 %v4128_v42, %v1367_v4  ;;  %v1767_v9 = vpop.f32.mrb[35].mxu1  ;;  %v2167_v11 = vmax.f32 %v1765_v1, 0.0 }
 0x12b   : > { %v3379_v10 = vpack.c.bf16 %v2665_v63, %v2664_v55  ;;  %v2070_v12 = vmax.f32 %v1376_v2, 0.0  ;;  %v1768_v13 = vadd.f32 %v4128_v42, %v1767_v9 }
 0x12c   : > { %v2251_v14 = vmax.f32 %v2067_v6, %v2069_v0  ;;  %v2170_v15 = vmax.f32 %v1776_v7, 0.0  ;;  %v2068_v16 = vmax.f32 %v1368_v8, 0.0  ;;  %v2301_v19 = vmax.f32 %v2167_v11, %v2169_v5 }
 0x12d   : > { %3440 = vst [vmem:[%s4161_s27 + $0x78] sm:$0xff] %v3379_v10   ;;  %v2168_v20 = vmax.f32 %v1768_v13, 0.0 }
 0x12e   : > { %2351 = vst [vmem:[#allocation2 + $0x80] sm:$0xff] %v2251_v14  ;;  %v2252_v21 = vmax.f32 %v2068_v16, %v2070_v12  ;;  %v3594_v22 = vpop.f32.mrb[36].mxu0  ;;  %2401 = vst [vmem:[#allocation2 + $0x210] sm:$0xff] %v2301_v19  ;;  %v3694_v25 = vpop.f32.mrb[36].mxu1 }
 0x12f   : > { %v2302_v23 = vmax.f32 %v2168_v20, %v2170_v15  ;;  %v1389_v24 = vadd.f32 %v3594_v22, %v4128_v42  ;;  %v1380_v26 = vpop.f32.mrb[37].mxu0  ;;  %v2449_v28 = vld [vmem:[#allocation2 + $0x70] ss:$2 sm:$0xff]  ;;  %v2549_v29 = vld [vmem:[#allocation2 + $0x71] ss:$2 sm:$0xff]  ;;  %v1789_v30 = vadd.f32 %v3694_v25, %v4128_v42  ;;  %v1780_v32 = vpop.f32.mrb[37].mxu1 }
 0x130   : > { %2352 = vst [vmem:[#allocation2 + $0x88] sm:$0xff] %v2252_v21  ;;  %v1381_v31 = vadd.f32 %v4128_v42, %v1380_v26  ;;  %v3595_v33 = vpop.f32.mrb[38].mxu0  ;;  %v2641_v34 = vmax.f32 %v2449_v28, %v2549_v29  ;;  %v1781_v36 = vadd.f32 %v4128_v42, %v1780_v32  ;;  %v3695_v38 = vpop.f32.mrb[38].mxu1  ;;  %v2499_v52 = vld [vmem:[#allocation2 + $0x200] ss:$2 sm:$0xff] }
 0x131   : > { %2402 = vst [vmem:[#allocation2 + $0x218] sm:$0xff] %v2302_v23  ;;  %v2073_v35 = vmax.f32 %v1389_v24, 0.0  ;;  %v1392_v37 = vadd.f32 %v3595_v33, %v4128_v42  ;;  %v2173_v39 = vmax.f32 %v1789_v30, 0.0  ;;  %v1792_v41 = vadd.f32 %v3695_v38, %v4128_v42  ;;  %v1383_v43 = vpop.f32.mrb[39].mxu0  ;;  %v1783_v44 = vpop.f32.mrb[39].mxu1 }
 0x132   : > { %v2071_v40 = vmax.f32 %v1381_v31, 0.0  ;;  %v3319_v45 = vpack.c.bf16 %v2641_v34, %v2640_v27  ;;  %v2171_v46 = vmax.f32 %v1781_v36, 0.0  ;;  %v1384_v48 = vadd.f32 %v4128_v42, %v1383_v43  ;;  %v2599_v53 = vld [vmem:[#allocation2 + $0x201] ss:$2 sm:$0xff] }
 0x133   : > { %v2074_v47 = vmax.f32 %v1392_v37, 0.0  ;;  %v2174_v50 = vmax.f32 %v1792_v41, 0.0  ;;  %v1784_v51 = vadd.f32 %v4128_v42, %v1783_v44  ;;  %v2666_v62 = vmax.f32 %v2499_v52, %v2599_v53 }
 0x134   : > { %v2253_v49 = vmax.f32 %v2071_v40, %v2073_v35  ;;  %3428 = vst [vmem:[%s4161_s27 + $0x18] sm:$0xff] %v3319_v45   ;;  %v2303_v54 = vmax.f32 %v2171_v46, %v2173_v39  ;;  %v2072_v55 = vmax.f32 %v1384_v48, 0.0 }
 0x135   : > { %v2172_v56 = vmax.f32 %v1784_v51, 0.0 }
 0x136   : > { %2353 = vst [vmem:[#allocation2 + $0x90] sm:$0xff] %v2253_v49  ;;  %v3598_v57 = vpop.f32.mrb[40].mxu0  ;;  %2403 = vst [vmem:[#allocation2 + $0x220] sm:$0xff] %v2303_v54  ;;  %v2254_v58 = vmax.f32 %v2072_v55, %v2074_v47  ;;  %v3698_v60 = vpop.f32.mrb[40].mxu1 }
 0x137   : > { %v1405_v59 = vadd.f32 %v3598_v57, %v4128_v42  ;;  %v1396_v61 = vpop.f32.mrb[41].mxu0  ;;  %v2304_v1 = vmax.f32 %v2172_v56, %v2174_v50  ;;  %v1805_v2 = vadd.f32 %v3698_v60, %v4128_v42  ;;  %v1796_v4 = vpop.f32.mrb[41].mxu1  ;;  %v2451_v24 = vld [vmem:[#allocation2 + $0x80] ss:$2 sm:$0xff]  ;;  %v2551_v25 = vld [vmem:[#allocation2 + $0x81] ss:$2 sm:$0xff] }
 0x138   : > { %v2501_v63 = vld [vmem:[#allocation2 + $0x210] ss:$2 sm:$0xff]  ;;  %v2601_v0 = vld [vmem:[#allocation2 + $0x211] ss:$2 sm:$0xff]  ;;  %v1397_v3 = vadd.f32 %v4128_v42, %v1396_v61  ;;  %v3599_v5 = vpop.f32.mrb[42].mxu0  ;;  %2354 = vst [vmem:[#allocation2 + $0x98] sm:$0xff] %v2254_v58  ;;  %v1797_v8 = vadd.f32 %v4128_v42, %v1796_v4  ;;  %v2642_v34 = vmax.f32 %v2451_v24, %v2551_v25 }
 0x139   : > { %v2667_v6 = vmax.f32 %v2501_v63, %v2601_v0  ;;  %v2077_v7 = vmax.f32 %v1405_v59, 0.0  ;;  %v1408_v9 = vadd.f32 %v3599_v5, %v4128_v42  ;;  %v3699_v10 = vpop.f32.mrb[42].mxu1  ;;  %v1399_v11 = vpop.f32.mrb[43].mxu0  ;;  %2404 = vst [vmem:[#allocation2 + $0x228] sm:$0xff] %v2304_v1  ;;  %v2177_v12 = vmax.f32 %v1805_v2, 0.0 }
 0x13a   : > { %v2075_v13 = vmax.f32 %v1397_v3, 0.0  ;;  %v1808_v14 = vadd.f32 %v3699_v10, %v4128_v42  ;;  %v1400_v15 = vadd.f32 %v4128_v42, %v1399_v11  ;;  %v1799_v16 = vpop.f32.mrb[43].mxu1  ;;  %v2175_v18 = vmax.f32 %v1797_v8, 0.0 }
 0x13b   : > { %v3384_v17 = vpack.c.bf16 %v2667_v6, %v2666_v62  ;;  %v2078_v19 = vmax.f32 %v1408_v9, 0.0  ;;  %v1800_v20 = vadd.f32 %v4128_v42, %v1799_v16 }
 0x13c   : > { %v2255_v21 = vmax.f32 %v2075_v13, %v2077_v7  ;;  %v2178_v22 = vmax.f32 %v1808_v14, 0.0  ;;  %v2076_v23 = vmax.f32 %v1400_v15, 0.0  ;;  %v2305_v26 = vmax.f32 %v2175_v18, %v2177_v12 }
 0x13d   : > { %3441 = vst [vmem:[%s4161_s27 + $0x80] sm:$0xff] %v3384_v17   ;;  %v2176_v27 = vmax.f32 %v1800_v20, 0.0 }
 0x13e   : > { %2355 = vst [vmem:[#allocation2 + $0xa0] sm:$0xff] %v2255_v21  ;;  %v2256_v28 = vmax.f32 %v2076_v23, %v2078_v19  ;;  %v3602_v29 = vpop.f32.mrb[44].mxu0  ;;  %2405 = vst [vmem:[#allocation2 + $0x230] sm:$0xff] %v2305_v26  ;;  %v3702_v32 = vpop.f32.mrb[44].mxu1 }
 0x13f   : > { %v2306_v30 = vmax.f32 %v2176_v27, %v2178_v22  ;;  %v1421_v31 = vadd.f32 %v3602_v29, %v4128_v42  ;;  %v1412_v33 = vpop.f32.mrb[45].mxu0  ;;  %v2453_v35 = vld [vmem:[#allocation2 + $0x90] ss:$2 sm:$0xff]  ;;  %v2553_v36 = vld [vmem:[#allocation2 + $0x91] ss:$2 sm:$0xff]  ;;  %v1821_v37 = vadd.f32 %v3702_v32, %v4128_v42  ;;  %v1812_v39 = vpop.f32.mrb[45].mxu1 }
 0x140   : > { %2356 = vst [vmem:[#allocation2 + $0xa8] sm:$0xff] %v2256_v28  ;;  %v1413_v38 = vadd.f32 %v4128_v42, %v1412_v33  ;;  %v3603_v40 = vpop.f32.mrb[46].mxu0  ;;  %v2643_v41 = vmax.f32 %v2453_v35, %v2553_v36  ;;  %v1813_v44 = vadd.f32 %v4128_v42, %v1812_v39  ;;  %v3703_v46 = vpop.f32.mrb[46].mxu1  ;;  %v2503_v59 = vld [vmem:[#allocation2 + $0x220] ss:$2 sm:$0xff] }
 0x141   : > { %2406 = vst [vmem:[#allocation2 + $0x238] sm:$0xff] %v2306_v30  ;;  %v2081_v43 = vmax.f32 %v1421_v31, 0.0  ;;  %v1424_v45 = vadd.f32 %v3603_v40, %v4128_v42  ;;  %v2181_v47 = vmax.f32 %v1821_v37, 0.0  ;;  %v1824_v49 = vadd.f32 %v3703_v46, %v4128_v42  ;;  %v1415_v50 = vpop.f32.mrb[47].mxu0  ;;  %v1815_v51 = vpop.f32.mrb[47].mxu1 }
 0x142   : > { %v2079_v48 = vmax.f32 %v1413_v38, 0.0  ;;  %v3324_v52 = vpack.c.bf16 %v2643_v41, %v2642_v34  ;;  %v2179_v53 = vmax.f32 %v1813_v44, 0.0  ;;  %v1416_v55 = vadd.f32 %v4128_v42, %v1415_v50  ;;  %v2603_v60 = vld [vmem:[#allocation2 + $0x221] ss:$2 sm:$0xff] }
 0x143   : > { %v2082_v54 = vmax.f32 %v1424_v45, 0.0  ;;  %v2182_v57 = vmax.f32 %v1824_v49, 0.0  ;;  %v1816_v58 = vadd.f32 %v4128_v42, %v1815_v51  ;;  %v2668_v5 = vmax.f32 %v2503_v59, %v2603_v60  ;;  %v4256_v51 = vld [vmem:[%s4371_s2] ss:$0 sm:$0xff] }
 0x144   : > { %v2257_v56 = vmax.f32 %v2079_v48, %v2081_v43  ;;  %3429 = vst [vmem:[%s4161_s27 + $0x20] sm:$0xff] %v3324_v52   ;;  %v2307_v61 = vmax.f32 %v2179_v53, %v2181_v47  ;;  %v2080_v62 = vmax.f32 %v1416_v55, 0.0 }
 0x145   : > { %v2180_v63 = vmax.f32 %v1816_v58, 0.0 }
 0x146   : > { %2357 = vst [vmem:[#allocation2 + $0xb0] sm:$0xff] %v2257_v56  ;;  %v3606_v0 = vpop.f32.mrb[48].mxu0  ;;  %2407 = vst [vmem:[#allocation2 + $0x240] sm:$0xff] %v2307_v61  ;;  %v2258_v1 = vmax.f32 %v2080_v62, %v2082_v54  ;;  %v3706_v3 = vpop.f32.mrb[48].mxu1 }
 0x147   : > { %v1437_v2 = vadd.f32 %v3606_v0, %v4128_v42  ;;  %v1428_v4 = vpop.f32.mrb[49].mxu0  ;;  %v2308_v8 = vmax.f32 %v2180_v63, %v2182_v57  ;;  %v1837_v9 = vadd.f32 %v3706_v3, %v4128_v42  ;;  %v1828_v11 = vpop.f32.mrb[49].mxu1  ;;  %v2455_v31 = vld [vmem:[#allocation2 + $0xa0] ss:$2 sm:$0xff]  ;;  %v2555_v32 = vld [vmem:[#allocation2 + $0xa1] ss:$2 sm:$0xff] }
 0x148   : > { %v2505_v6 = vld [vmem:[#allocation2 + $0x230] ss:$2 sm:$0xff]  ;;  %v2605_v7 = vld [vmem:[#allocation2 + $0x231] ss:$2 sm:$0xff]  ;;  %v1429_v10 = vadd.f32 %v4128_v42, %v1428_v4  ;;  %v3607_v12 = vpop.f32.mrb[50].mxu0  ;;  %2358 = vst [vmem:[#allocation2 + $0xb8] sm:$0xff] %v2258_v1  ;;  %v1829_v15 = vadd.f32 %v4128_v42, %v1828_v11  ;;  %v2644_v41 = vmax.f32 %v2455_v31, %v2555_v32 }
 0x149   : > { %v2669_v13 = vmax.f32 %v2505_v6, %v2605_v7  ;;  %v2085_v14 = vmax.f32 %v1437_v2, 0.0  ;;  %v1440_v16 = vadd.f32 %v3607_v12, %v4128_v42  ;;  %v3707_v17 = vpop.f32.mrb[50].mxu1  ;;  %v1431_v18 = vpop.f32.mrb[51].mxu0  ;;  %2408 = vst [vmem:[#allocation2 + $0x248] sm:$0xff] %v2308_v8  ;;  %v2185_v19 = vmax.f32 %v1837_v9, 0.0 }
 0x14a   : > { %v2083_v20 = vmax.f32 %v1429_v10, 0.0  ;;  %v1840_v21 = vadd.f32 %v3707_v17, %v4128_v42  ;;  %v1432_v22 = vadd.f32 %v4128_v42, %v1431_v18  ;;  %v1831_v23 = vpop.f32.mrb[51].mxu1  ;;  %v2183_v25 = vmax.f32 %v1829_v15, 0.0 }
 0x14b   : > { %v3389_v24 = vpack.c.bf16 %v2669_v13, %v2668_v5  ;;  %v2086_v26 = vmax.f32 %v1440_v16, 0.0  ;;  %v1832_v27 = vadd.f32 %v4128_v42, %v1831_v23 }
 0x14c   : > { %v2259_v28 = vmax.f32 %v2083_v20, %v2085_v14  ;;  %v2186_v29 = vmax.f32 %v1840_v21, 0.0  ;;  %v2084_v30 = vmax.f32 %v1432_v22, 0.0  ;;  %v2309_v33 = vmax.f32 %v2183_v25, %v2185_v19 }
 0x14d   : > { %3442 = vst [vmem:[%s4161_s27 + $0x88] sm:$0xff] %v3389_v24   ;;  %v2184_v34 = vmax.f32 %v1832_v27, 0.0 }
 0x14e   : > { %2359 = vst [vmem:[#allocation2 + $0xc0] sm:$0xff] %v2259_v28  ;;  %v2260_v35 = vmax.f32 %v2084_v30, %v2086_v26  ;;  %v3610_v36 = vpop.f32.mrb[52].mxu0  ;;  %2409 = vst [vmem:[#allocation2 + $0x250] sm:$0xff] %v2309_v33  ;;  %v3710_v39 = vpop.f32.mrb[52].mxu1 }
 0x14f   : > { %v2310_v37 = vmax.f32 %v2184_v34, %v2186_v29  ;;  %v1453_v38 = vadd.f32 %v3610_v36, %v4128_v42  ;;  %v1444_v40 = vpop.f32.mrb[53].mxu0  ;;  %v2457_v43 = vld [vmem:[#allocation2 + $0xb0] ss:$2 sm:$0xff]  ;;  %v2557_v44 = vld [vmem:[#allocation2 + $0xb1] ss:$2 sm:$0xff]  ;;  %v1853_v45 = vadd.f32 %v3710_v39, %v4128_v42  ;;  %v1844_v47 = vpop.f32.mrb[53].mxu1 }
 0x150   : > { %2360 = vst [vmem:[#allocation2 + $0xc8] sm:$0xff] %v2260_v35  ;;  %v1445_v46 = vadd.f32 %v4128_v42, %v1444_v40  ;;  %v3611_v48 = vpop.f32.mrb[54].mxu0  ;;  %v2645_v49 = vmax.f32 %v2457_v43, %v2557_v44  ;;  %v1845_v52 = vadd.f32 %v4256_v51, %v1844_v47  ;;  %v3711_v54 = vpop.f32.mrb[54].mxu1  ;;  %v2507_v2 = vld [vmem:[#allocation2 + $0x240] ss:$2 sm:$0xff] }
 0x151   : > { %2410 = vst [vmem:[#allocation2 + $0x258] sm:$0xff] %v2310_v37  ;;  %v2089_v50 = vmax.f32 %v1453_v38, 0.0  ;;  %v1456_v53 = vadd.f32 %v4256_v51, %v3611_v48  ;;  %v2189_v55 = vmax.f32 %v1853_v45, 0.0  ;;  %v1856_v42 = vadd.f32 %v4256_v51, %v3711_v54  ;;  %v1447_v57 = vpop.f32.mrb[55].mxu0  ;;  %v1847_v58 = vpop.f32.mrb[55].mxu1 }
 0x152   : > { %v2087_v56 = vmax.f32 %v1445_v46, 0.0  ;;  %v3329_v59 = vpack.c.bf16 %v2645_v49, %v2644_v41  ;;  %v2187_v60 = vmax.f32 %v1845_v52, 0.0  ;;  %v1448_v62 = vadd.f32 %v4256_v51, %v1447_v57  ;;  %v2607_v3 = vld [vmem:[#allocation2 + $0x241] ss:$2 sm:$0xff] }
 0x153   : > { %v2090_v61 = vmax.f32 %v1456_v53, 0.0  ;;  %v2190_v0 = vmax.f32 %v1856_v42, 0.0  ;;  %v1848_v1 = vadd.f32 %v4256_v51, %v1847_v58  ;;  %v2670_v12 = vmax.f32 %v2507_v2, %v2607_v3 }
 0x154   : > { %v2261_v63 = vmax.f32 %v2087_v56, %v2089_v50  ;;  %3430 = vst [vmem:[%s4161_s27 + $0x28] sm:$0xff] %v3329_v59   ;;  %v2311_v4 = vmax.f32 %v2187_v60, %v2189_v55  ;;  %v2088_v5 = vmax.f32 %v1448_v62, 0.0 }
 0x155   : > { %v2188_v6 = vmax.f32 %v1848_v1, 0.0 }
 0x156   : > { %2361 = vst [vmem:[#allocation2 + $0xd0] sm:$0xff] %v2261_v63  ;;  %v3614_v7 = vpop.f32.mrb[56].mxu0  ;;  %2411 = vst [vmem:[#allocation2 + $0x260] sm:$0xff] %v2311_v4  ;;  %v2262_v8 = vmax.f32 %v2088_v5, %v2090_v61  ;;  %v3714_v10 = vpop.f32.mrb[56].mxu1 }
 0x157   : > { %v1469_v9 = vadd.f32 %v4256_v51, %v3614_v7  ;;  %v1460_v11 = vpop.f32.mrb[57].mxu0  ;;  %v2312_v15 = vmax.f32 %v2188_v6, %v2190_v0  ;;  %v1869_v16 = vadd.f32 %v4256_v51, %v3714_v10  ;;  %v1860_v18 = vpop.f32.mrb[57].mxu1  ;;  %v2459_v38 = vld [vmem:[#allocation2 + $0xc0] ss:$2 sm:$0xff]  ;;  %v2559_v39 = vld [vmem:[#allocation2 + $0xc1] ss:$2 sm:$0xff] }
 0x158   : > { %v2509_v13 = vld [vmem:[#allocation2 + $0x250] ss:$2 sm:$0xff]  ;;  %v2609_v14 = vld [vmem:[#allocation2 + $0x251] ss:$2 sm:$0xff]  ;;  %v1461_v17 = vadd.f32 %v4256_v51, %v1460_v11  ;;  %v3615_v19 = vpop.f32.mrb[58].mxu0  ;;  %2362 = vst [vmem:[#allocation2 + $0xd8] sm:$0xff] %v2262_v8  ;;  %v1861_v22 = vadd.f32 %v4256_v51, %v1860_v18  ;;  %v2646_v49 = vmax.f32 %v2459_v38, %v2559_v39 }
 0x159   : > { %v2671_v20 = vmax.f32 %v2509_v13, %v2609_v14  ;;  %v2093_v21 = vmax.f32 %v1469_v9, 0.0  ;;  %v1472_v23 = vadd.f32 %v4256_v51, %v3615_v19  ;;  %v3715_v24 = vpop.f32.mrb[58].mxu1  ;;  %v1463_v25 = vpop.f32.mrb[59].mxu0  ;;  %2412 = vst [vmem:[#allocation2 + $0x268] sm:$0xff] %v2312_v15  ;;  %v2193_v26 = vmax.f32 %v1869_v16, 0.0 }
 0x15a   : > { %v2091_v27 = vmax.f32 %v1461_v17, 0.0  ;;  %v1872_v28 = vadd.f32 %v4256_v51, %v3715_v24  ;;  %v1464_v29 = vadd.f32 %v4256_v51, %v1463_v25  ;;  %v1863_v30 = vpop.f32.mrb[59].mxu1  ;;  %v2191_v32 = vmax.f32 %v1861_v22, 0.0 }
 0x15b   : > { %v3394_v31 = vpack.c.bf16 %v2671_v20, %v2670_v12  ;;  %v2094_v33 = vmax.f32 %v1472_v23, 0.0  ;;  %v1864_v34 = vadd.f32 %v4256_v51, %v1863_v30 }
 0x15c   : > { %v2263_v35 = vmax.f32 %v2091_v27, %v2093_v21  ;;  %v2194_v36 = vmax.f32 %v1872_v28, 0.0  ;;  %v2092_v37 = vmax.f32 %v1464_v29, 0.0  ;;  %v2313_v40 = vmax.f32 %v2191_v32, %v2193_v26 }
 0x15d   : > { %3443 = vst [vmem:[%s4161_s27 + $0x90] sm:$0xff] %v3394_v31   ;;  %v2192_v41 = vmax.f32 %v1864_v34, 0.0 }
 0x15e   : > { %2363 = vst [vmem:[#allocation2 + $0xe0] sm:$0xff] %v2263_v35  ;;  %v2264_v43 = vmax.f32 %v2092_v37, %v2094_v33  ;;  %v3618_v44 = vpop.f32.mrb[60].mxu0  ;;  %2413 = vst [vmem:[#allocation2 + $0x270] sm:$0xff] %v2313_v40  ;;  %v3718_v47 = vpop.f32.mrb[60].mxu1 }
 0x15f   : > { %v2314_v45 = vmax.f32 %v2192_v41, %v2194_v36  ;;  %v1485_v46 = vadd.f32 %v4256_v51, %v3618_v44  ;;  %v1476_v48 = vpop.f32.mrb[61].mxu0  ;;  %v2461_v50 = vld [vmem:[#allocation2 + $0xd0] ss:$2 sm:$0xff]  ;;  %v2561_v52 = vld [vmem:[#allocation2 + $0xd1] ss:$2 sm:$0xff]  ;;  %v1885_v53 = vadd.f32 %v4256_v51, %v3718_v47  ;;  %v1876_v55 = vpop.f32.mrb[61].mxu1 }
 0x160   : > { %2364 = vst [vmem:[#allocation2 + $0xe8] sm:$0xff] %v2264_v43  ;;  %v1477_v54 = vadd.f32 %v4256_v51, %v1476_v48  ;;  %v3619_v56 = vpop.f32.mrb[62].mxu0  ;;  %v2647_v42 = vmax.f32 %v2461_v50, %v2561_v52  ;;  %v1877_v58 = vadd.f32 %v4256_v51, %v1876_v55  ;;  %v3719_v60 = vpop.f32.mrb[62].mxu1  ;;  %v2511_v9 = vld [vmem:[#allocation2 + $0x260] ss:$2 sm:$0xff] }
 0x161   : > { %2414 = vst [vmem:[#allocation2 + $0x278] sm:$0xff] %v2314_v45  ;;  %v2097_v57 = vmax.f32 %v1485_v46, 0.0  ;;  %v1488_v59 = vadd.f32 %v4256_v51, %v3619_v56  ;;  %v2197_v61 = vmax.f32 %v1885_v53, 0.0  ;;  %v1888_v63 = vadd.f32 %v4256_v51, %v3719_v60  ;;  %v1479_v0 = vpop.f32.mrb[63].mxu0  ;;  %v1879_v1 = vpop.f32.mrb[63].mxu1 }
 0x162   : > { %v2095_v62 = vmax.f32 %v1477_v54, 0.0  ;;  %v3334_v2 = vpack.c.bf16 %v2647_v42, %v2646_v49  ;;  %v2195_v3 = vmax.f32 %v1877_v58, 0.0  ;;  %v1480_v5 = vadd.f32 %v4256_v51, %v1479_v0  ;;  %v2611_v10 = vld [vmem:[#allocation2 + $0x261] ss:$2 sm:$0xff] }
 0x163   : > { %v2098_v4 = vmax.f32 %v1488_v59, 0.0  ;;  %v2198_v7 = vmax.f32 %v1888_v63, 0.0  ;;  %v1880_v8 = vadd.f32 %v4256_v51, %v1879_v1  ;;  %v2672_v19 = vmax.f32 %v2511_v9, %v2611_v10 }
 0x164   : > { %v2265_v6 = vmax.f32 %v2095_v62, %v2097_v57  ;;  %3431 = vst [vmem:[%s4161_s27 + $0x30] sm:$0xff] %v3334_v2   ;;  %v2315_v11 = vmax.f32 %v2195_v3, %v2197_v61  ;;  %v2096_v12 = vmax.f32 %v1480_v5, 0.0 }
 0x165   : > { %v2196_v13 = vmax.f32 %v1880_v8, 0.0 }
 0x166   : > { %2365 = vst [vmem:[#allocation2 + $0xf0] sm:$0xff] %v2265_v6  ;;  %v3622_v14 = vpop.f32.mrb[64].mxu0  ;;  %2415 = vst [vmem:[#allocation2 + $0x280] sm:$0xff] %v2315_v11  ;;  %v2266_v15 = vmax.f32 %v2096_v12, %v2098_v4  ;;  %v3722_v17 = vpop.f32.mrb[64].mxu1 }
 0x167   : > { %v1501_v16 = vadd.f32 %v4256_v51, %v3622_v14  ;;  %v1492_v18 = vpop.f32.mrb[65].mxu0  ;;  %v2316_v22 = vmax.f32 %v2196_v13, %v2198_v7  ;;  %v1901_v23 = vadd.f32 %v4256_v51, %v3722_v17  ;;  %v1892_v25 = vpop.f32.mrb[65].mxu1  ;;  %v2463_v46 = vld [vmem:[#allocation2 + $0xe0] ss:$2 sm:$0xff]  ;;  %v2563_v47 = vld [vmem:[#allocation2 + $0xe1] ss:$2 sm:$0xff] }
 0x168   : > { %v2513_v20 = vld [vmem:[#allocation2 + $0x270] ss:$2 sm:$0xff]  ;;  %v2613_v21 = vld [vmem:[#allocation2 + $0x271] ss:$2 sm:$0xff]  ;;  %v1493_v24 = vadd.f32 %v4256_v51, %v1492_v18  ;;  %v3623_v26 = vpop.f32.mrb[66].mxu0  ;;  %2366 = vst [vmem:[#allocation2 + $0xf8] sm:$0xff] %v2266_v15  ;;  %v1893_v29 = vadd.f32 %v4256_v51, %v1892_v25  ;;  %v2648_v42 = vmax.f32 %v2463_v46, %v2563_v47 }
 0x169   : > { %v2673_v27 = vmax.f32 %v2513_v20, %v2613_v21  ;;  %v2101_v28 = vmax.f32 %v1501_v16, 0.0  ;;  %v1504_v30 = vadd.f32 %v4256_v51, %v3623_v26  ;;  %v3723_v31 = vpop.f32.mrb[66].mxu1  ;;  %v1495_v32 = vpop.f32.mrb[67].mxu0  ;;  %2416 = vst [vmem:[#allocation2 + $0x288] sm:$0xff] %v2316_v22  ;;  %v2201_v33 = vmax.f32 %v1901_v23, 0.0 }
 0x16a   : > { %v2099_v34 = vmax.f32 %v1493_v24, 0.0  ;;  %v1904_v35 = vadd.f32 %v4256_v51, %v3723_v31  ;;  %v1496_v36 = vadd.f32 %v4256_v51, %v1495_v32  ;;  %v1895_v37 = vpop.f32.mrb[67].mxu1  ;;  %v2199_v39 = vmax.f32 %v1893_v29, 0.0 }
 0x16b   : > { %v3399_v38 = vpack.c.bf16 %v2673_v27, %v2672_v19  ;;  %v2102_v40 = vmax.f32 %v1504_v30, 0.0  ;;  %v1896_v41 = vadd.f32 %v4256_v51, %v1895_v37 }
 0x16c   : > { %v2267_v43 = vmax.f32 %v2099_v34, %v2101_v28  ;;  %v2202_v44 = vmax.f32 %v1904_v35, 0.0  ;;  %v2100_v45 = vmax.f32 %v1496_v36, 0.0  ;;  %v2317_v48 = vmax.f32 %v2199_v39, %v2201_v33 }
 0x16d   : > { %3444 = vst [vmem:[%s4161_s27 + $0x98] sm:$0xff] %v3399_v38   ;;  %v2200_v49 = vmax.f32 %v1896_v41, 0.0 }
 0x16e   : > { %2367 = vst [vmem:[#allocation2 + $0x100] sm:$0xff] %v2267_v43  ;;  %v2268_v50 = vmax.f32 %v2100_v45, %v2102_v40  ;;  %v3626_v52 = vpop.f32.mrb[68].mxu0  ;;  %2417 = vst [vmem:[#allocation2 + $0x290] sm:$0xff] %v2317_v48  ;;  %v3726_v55 = vpop.f32.mrb[68].mxu1 }
 0x16f   : > { %v2318_v53 = vmax.f32 %v2200_v49, %v2202_v44  ;;  %v1517_v54 = vadd.f32 %v4256_v51, %v3626_v52  ;;  %v1508_v56 = vpop.f32.mrb[69].mxu0  ;;  %v2465_v57 = vld [vmem:[#allocation2 + $0xf0] ss:$2 sm:$0xff]  ;;  %v2565_v58 = vld [vmem:[#allocation2 + $0xf1] ss:$2 sm:$0xff]  ;;  %v1917_v59 = vadd.f32 %v4256_v51, %v3726_v55  ;;  %v1908_v61 = vpop.f32.mrb[69].mxu1 }
 0x170   : > { %2368 = vst [vmem:[#allocation2 + $0x108] sm:$0xff] %v2268_v50  ;;  %v1509_v60 = vadd.f32 %v4256_v51, %v1508_v56  ;;  %v3627_v62 = vpop.f32.mrb[70].mxu0  ;;  %v2649_v63 = vmax.f32 %v2465_v57, %v2565_v58  ;;  %v1909_v1 = vadd.f32 %v4256_v51, %v1908_v61  ;;  %v3727_v3 = vpop.f32.mrb[70].mxu1  ;;  %v2515_v16 = vld [vmem:[#allocation2 + $0x280] ss:$2 sm:$0xff] }
 0x171   : > { %2418 = vst [vmem:[#allocation2 + $0x298] sm:$0xff] %v2318_v53  ;;  %v2105_v0 = vmax.f32 %v1517_v54, 0.0  ;;  %v1520_v2 = vadd.f32 %v4256_v51, %v3627_v62  ;;  %v2205_v4 = vmax.f32 %v1917_v59, 0.0  ;;  %v1920_v6 = vadd.f32 %v4256_v51, %v3727_v3  ;;  %v1511_v7 = vpop.f32.mrb[71].mxu0  ;;  %v1911_v8 = vpop.f32.mrb[71].mxu1 }
 0x172   : > { %v2103_v5 = vmax.f32 %v1509_v60, 0.0  ;;  %v3339_v9 = vpack.c.bf16 %v2649_v63, %v2648_v42  ;;  %v2203_v10 = vmax.f32 %v1909_v1, 0.0  ;;  %v1512_v12 = vadd.f32 %v4256_v51, %v1511_v7  ;;  %v2615_v17 = vld [vmem:[#allocation2 + $0x281] ss:$2 sm:$0xff] }
 0x173   : > { %v2106_v11 = vmax.f32 %v1520_v2, 0.0  ;;  %v2206_v14 = vmax.f32 %v1920_v6, 0.0  ;;  %v1912_v15 = vadd.f32 %v4256_v51, %v1911_v8  ;;  %v2674_v26 = vmax.f32 %v2515_v16, %v2615_v17 }
 0x174   : > { %v2269_v13 = vmax.f32 %v2103_v5, %v2105_v0  ;;  %3432 = vst [vmem:[%s4161_s27 + $0x38] sm:$0xff] %v3339_v9   ;;  %v2319_v18 = vmax.f32 %v2203_v10, %v2205_v4  ;;  %v2104_v19 = vmax.f32 %v1512_v12, 0.0 }
 0x175   : > { %v2204_v20 = vmax.f32 %v1912_v15, 0.0 }
 0x176   : > { %2369 = vst [vmem:[#allocation2 + $0x110] sm:$0xff] %v2269_v13  ;;  %v3630_v21 = vpop.f32.mrb[72].mxu0  ;;  %2419 = vst [vmem:[#allocation2 + $0x2a0] sm:$0xff] %v2319_v18  ;;  %v2270_v22 = vmax.f32 %v2104_v19, %v2106_v11  ;;  %v3730_v24 = vpop.f32.mrb[72].mxu1 }
 0x177   : > { %v1533_v23 = vadd.f32 %v4256_v51, %v3630_v21  ;;  %v1524_v25 = vpop.f32.mrb[73].mxu0  ;;  %v2320_v29 = vmax.f32 %v2204_v20, %v2206_v14  ;;  %v1933_v30 = vadd.f32 %v4256_v51, %v3730_v24  ;;  %v1924_v32 = vpop.f32.mrb[73].mxu1  ;;  %v2467_v54 = vld [vmem:[#allocation2 + $0x100] ss:$2 sm:$0xff]  ;;  %v2567_v55 = vld [vmem:[#allocation2 + $0x101] ss:$2 sm:$0xff] }
 0x178   : > { %v2517_v27 = vld [vmem:[#allocation2 + $0x290] ss:$2 sm:$0xff]  ;;  %v2617_v28 = vld [vmem:[#allocation2 + $0x291] ss:$2 sm:$0xff]  ;;  %v1525_v31 = vadd.f32 %v4256_v51, %v1524_v25  ;;  %v3631_v33 = vpop.f32.mrb[74].mxu0  ;;  %2370 = vst [vmem:[#allocation2 + $0x118] sm:$0xff] %v2270_v22  ;;  %v1925_v36 = vadd.f32 %v4256_v51, %v1924_v32  ;;  %v2650_v63 = vmax.f32 %v2467_v54, %v2567_v55 }
 0x179   : > { %v2675_v34 = vmax.f32 %v2517_v27, %v2617_v28  ;;  %v2109_v35 = vmax.f32 %v1533_v23, 0.0  ;;  %v1536_v37 = vadd.f32 %v4256_v51, %v3631_v33  ;;  %v3731_v38 = vpop.f32.mrb[74].mxu1  ;;  %v1527_v39 = vpop.f32.mrb[75].mxu0  ;;  %2420 = vst [vmem:[#allocation2 + $0x2a8] sm:$0xff] %v2320_v29  ;;  %v2209_v40 = vmax.f32 %v1933_v30, 0.0 }
 0x17a   : > { %v2107_v41 = vmax.f32 %v1525_v31, 0.0  ;;  %v1936_v43 = vadd.f32 %v4256_v51, %v3731_v38  ;;  %v1528_v44 = vadd.f32 %v4256_v51, %v1527_v39  ;;  %v1927_v45 = vpop.f32.mrb[75].mxu1  ;;  %v2207_v47 = vmax.f32 %v1925_v36, 0.0 }
 0x17b   : > { %v3404_v46 = vpack.c.bf16 %v2675_v34, %v2674_v26  ;;  %v2110_v48 = vmax.f32 %v1536_v37, 0.0  ;;  %v1928_v49 = vadd.f32 %v4256_v51, %v1927_v45 }
 0x17c   : > { %v2271_v50 = vmax.f32 %v2107_v41, %v2109_v35  ;;  %v2210_v52 = vmax.f32 %v1936_v43, 0.0  ;;  %v2108_v53 = vmax.f32 %v1528_v44, 0.0  ;;  %v2321_v56 = vmax.f32 %v2207_v47, %v2209_v40 }
 0x17d   : > { %3445 = vst [vmem:[%s4161_s27 + $0xa0] sm:$0xff] %v3404_v46   ;;  %v2208_v42 = vmax.f32 %v1928_v49, 0.0 }
 0x17e   : > { %2371 = vst [vmem:[#allocation2 + $0x120] sm:$0xff] %v2271_v50  ;;  %v2272_v57 = vmax.f32 %v2108_v53, %v2110_v48  ;;  %v3634_v58 = vpop.f32.mrb[76].mxu0  ;;  %2421 = vst [vmem:[#allocation2 + $0x2b0] sm:$0xff] %v2321_v56  ;;  %v3734_v61 = vpop.f32.mrb[76].mxu1 }
 0x17f   : > { %v2322_v59 = vmax.f32 %v2208_v42, %v2210_v52  ;;  %v1549_v60 = vadd.f32 %v4256_v51, %v3634_v58  ;;  %v1540_v62 = vpop.f32.mrb[77].mxu0  ;;  %v2469_v0 = vld [vmem:[#allocation2 + $0x110] ss:$2 sm:$0xff]  ;;  %v2569_v1 = vld [vmem:[#allocation2 + $0x111] ss:$2 sm:$0xff]  ;;  %v1949_v2 = vadd.f32 %v4256_v51, %v3734_v61  ;;  %v1940_v4 = vpop.f32.mrb[77].mxu1 }
 0x180   : > { %2372 = vst [vmem:[#allocation2 + $0x128] sm:$0xff] %v2272_v57  ;;  %v1541_v3 = vadd.f32 %v4256_v51, %v1540_v62  ;;  %v3635_v5 = vpop.f32.mrb[78].mxu0  ;;  %v2651_v6 = vmax.f32 %v2469_v0, %v2569_v1  ;;  %v1941_v8 = vadd.f32 %v4256_v51, %v1940_v4  ;;  %v3735_v10 = vpop.f32.mrb[78].mxu1  ;;  %v2519_v23 = vld [vmem:[#allocation2 + $0x2a0] ss:$2 sm:$0xff] }
 0x181   : > { %2422 = vst [vmem:[#allocation2 + $0x2b8] sm:$0xff] %v2322_v59  ;;  %v2113_v7 = vmax.f32 %v1549_v60, 0.0  ;;  %v1552_v9 = vadd.f32 %v4256_v51, %v3635_v5  ;;  %v2213_v11 = vmax.f32 %v1949_v2, 0.0  ;;  %v1952_v13 = vadd.f32 %v4256_v51, %v3735_v10  ;;  %v1543_v14 = vpop.f32.mrb[79].mxu0  ;;  %v1943_v15 = vpop.f32.mrb[79].mxu1 }
 0x182   : > { %v2111_v12 = vmax.f32 %v1541_v3, 0.0  ;;  %v3344_v16 = vpack.c.bf16 %v2651_v6, %v2650_v63  ;;  %v2211_v17 = vmax.f32 %v1941_v8, 0.0  ;;  %v1544_v19 = vadd.f32 %v4256_v51, %v1543_v14  ;;  %v2619_v24 = vld [vmem:[#allocation2 + $0x2a1] ss:$2 sm:$0xff] }
 0x183   : > { %v2114_v18 = vmax.f32 %v1552_v9, 0.0  ;;  %v2214_v21 = vmax.f32 %v1952_v13, 0.0  ;;  %v1944_v22 = vadd.f32 %v4256_v51, %v1943_v15  ;;  %v2676_v33 = vmax.f32 %v2519_v23, %v2619_v24 }
 0x184   : > { %v2273_v20 = vmax.f32 %v2111_v12, %v2113_v7  ;;  %3433 = vst [vmem:[%s4161_s27 + $0x40] sm:$0xff] %v3344_v16   ;;  %v2323_v25 = vmax.f32 %v2211_v17, %v2213_v11  ;;  %v2112_v26 = vmax.f32 %v1544_v19, 0.0 }
 0x185   : > { %v2212_v27 = vmax.f32 %v1944_v22, 0.0 }
 0x186   : > { %2373 = vst [vmem:[#allocation2 + $0x130] sm:$0xff] %v2273_v20  ;;  %v3638_v28 = vpop.f32.mrb[80].mxu0  ;;  %2423 = vst [vmem:[#allocation2 + $0x2c0] sm:$0xff] %v2323_v25  ;;  %v2274_v29 = vmax.f32 %v2112_v26, %v2114_v18  ;;  %v3738_v31 = vpop.f32.mrb[80].mxu1 }
 0x187   : > { %v1565_v30 = vadd.f32 %v4256_v51, %v3638_v28  ;;  %v1556_v32 = vpop.f32.mrb[81].mxu0  ;;  %v2324_v36 = vmax.f32 %v2212_v27, %v2214_v21  ;;  %v1965_v37 = vadd.f32 %v4256_v51, %v3738_v31  ;;  %v1956_v39 = vpop.f32.mrb[81].mxu1  ;;  %v2471_v60 = vld [vmem:[#allocation2 + $0x120] ss:$2 sm:$0xff]  ;;  %v2571_v61 = vld [vmem:[#allocation2 + $0x121] ss:$2 sm:$0xff] }
 0x188   : > { %v2521_v34 = vld [vmem:[#allocation2 + $0x2b0] ss:$2 sm:$0xff]  ;;  %v2621_v35 = vld [vmem:[#allocation2 + $0x2b1] ss:$2 sm:$0xff]  ;;  %v1557_v38 = vadd.f32 %v4256_v51, %v1556_v32  ;;  %v3639_v40 = vpop.f32.mrb[82].mxu0  ;;  %2374 = vst [vmem:[#allocation2 + $0x138] sm:$0xff] %v2274_v29  ;;  %v1957_v44 = vadd.f32 %v4256_v51, %v1956_v39  ;;  %v2652_v6 = vmax.f32 %v2471_v60, %v2571_v61 }
 0x189   : > { %v2677_v41 = vmax.f32 %v2521_v34, %v2621_v35  ;;  %v2117_v43 = vmax.f32 %v1565_v30, 0.0  ;;  %v1568_v45 = vadd.f32 %v4256_v51, %v3639_v40  ;;  %v3739_v46 = vpop.f32.mrb[82].mxu1  ;;  %v1559_v47 = vpop.f32.mrb[83].mxu0  ;;  %2424 = vst [vmem:[#allocation2 + $0x2c8] sm:$0xff] %v2324_v36  ;;  %v2217_v48 = vmax.f32 %v1965_v37, 0.0 }
 0x18a   : > { %v2115_v49 = vmax.f32 %v1557_v38, 0.0  ;;  %v1968_v50 = vadd.f32 %v4256_v51, %v3739_v46  ;;  %v1560_v52 = vadd.f32 %v4256_v51, %v1559_v47  ;;  %v1959_v53 = vpop.f32.mrb[83].mxu1  ;;  %v2215_v55 = vmax.f32 %v1957_v44, 0.0 }
 0x18b   : > { %v3409_v54 = vpack.c.bf16 %v2677_v41, %v2676_v33  ;;  %v2118_v56 = vmax.f32 %v1568_v45, 0.0  ;;  %v1960_v42 = vadd.f32 %v4256_v51, %v1959_v53 }
 0x18c   : > { %v2275_v57 = vmax.f32 %v2115_v49, %v2117_v43  ;;  %v2218_v58 = vmax.f32 %v1968_v50, 0.0  ;;  %v2116_v59 = vmax.f32 %v1560_v52, 0.0  ;;  %v2325_v62 = vmax.f32 %v2215_v55, %v2217_v48 }
 0x18d   : > { %3446 = vst [vmem:[%s4161_s27 + $0xa8] sm:$0xff] %v3409_v54   ;;  %v2216_v63 = vmax.f32 %v1960_v42, 0.0 }
 0x18e   : > { %2375 = vst [vmem:[#allocation2 + $0x140] sm:$0xff] %v2275_v57  ;;  %v2276_v0 = vmax.f32 %v2116_v59, %v2118_v56  ;;  %v3642_v1 = vpop.f32.mrb[84].mxu0  ;;  %2425 = vst [vmem:[#allocation2 + $0x2d0] sm:$0xff] %v2325_v62  ;;  %v3742_v4 = vpop.f32.mrb[84].mxu1 }
 0x18f   : > { %v2326_v2 = vmax.f32 %v2216_v63, %v2218_v58  ;;  %v1581_v3 = vadd.f32 %v4256_v51, %v3642_v1  ;;  %v1572_v5 = vpop.f32.mrb[85].mxu0  ;;  %v2473_v7 = vld [vmem:[#allocation2 + $0x130] ss:$2 sm:$0xff]  ;;  %v2573_v8 = vld [vmem:[#allocation2 + $0x131] ss:$2 sm:$0xff]  ;;  %v1981_v9 = vadd.f32 %v4256_v51, %v3742_v4  ;;  %v1972_v11 = vpop.f32.mrb[85].mxu1 }
 0x190   : > { %2376 = vst [vmem:[#allocation2 + $0x148] sm:$0xff] %v2276_v0  ;;  %v1573_v10 = vadd.f32 %v4256_v51, %v1572_v5  ;;  %v3643_v12 = vpop.f32.mrb[86].mxu0  ;;  %v2653_v13 = vmax.f32 %v2473_v7, %v2573_v8  ;;  %v1973_v15 = vadd.f32 %v4256_v51, %v1972_v11  ;;  %v3743_v17 = vpop.f32.mrb[86].mxu1  ;;  %v2523_v30 = vld [vmem:[#allocation2 + $0x2c0] ss:$2 sm:$0xff] }
 0x191   : > { %2426 = vst [vmem:[#allocation2 + $0x2d8] sm:$0xff] %v2326_v2  ;;  %v2121_v14 = vmax.f32 %v1581_v3, 0.0  ;;  %v1584_v16 = vadd.f32 %v4256_v51, %v3643_v12  ;;  %v2221_v18 = vmax.f32 %v1981_v9, 0.0  ;;  %v1984_v20 = vadd.f32 %v4256_v51, %v3743_v17  ;;  %v1575_v21 = vpop.f32.mrb[87].mxu0  ;;  %v1975_v22 = vpop.f32.mrb[87].mxu1 }
 0x192   : > { %v2119_v19 = vmax.f32 %v1573_v10, 0.0  ;;  %v3349_v23 = vpack.c.bf16 %v2653_v13, %v2652_v6  ;;  %v2219_v24 = vmax.f32 %v1973_v15, 0.0  ;;  %v1576_v26 = vadd.f32 %v4256_v51, %v1575_v21  ;;  %v2623_v31 = vld [vmem:[#allocation2 + $0x2c1] ss:$2 sm:$0xff] }
 0x193   : > { %v2122_v25 = vmax.f32 %v1584_v16, 0.0  ;;  %v2222_v28 = vmax.f32 %v1984_v20, 0.0  ;;  %v1976_v29 = vadd.f32 %v4256_v51, %v1975_v22  ;;  %v2678_v40 = vmax.f32 %v2523_v30, %v2623_v31 }
 0x194   : > { %v2277_v27 = vmax.f32 %v2119_v19, %v2121_v14  ;;  %3434 = vst [vmem:[%s4161_s27 + $0x48] sm:$0xff] %v3349_v23   ;;  %v2327_v32 = vmax.f32 %v2219_v24, %v2221_v18  ;;  %v2120_v33 = vmax.f32 %v1576_v26, 0.0 }
 0x195   : > { %v2220_v34 = vmax.f32 %v1976_v29, 0.0 }
 0x196   : > { %2377 = vst [vmem:[#allocation2 + $0x150] sm:$0xff] %v2277_v27  ;;  %v3646_v35 = vpop.f32.mrb[88].mxu0  ;;  %2427 = vst [vmem:[#allocation2 + $0x2e0] sm:$0xff] %v2327_v32  ;;  %v2278_v36 = vmax.f32 %v2120_v33, %v2122_v25  ;;  %v3746_v38 = vpop.f32.mrb[88].mxu1 }
 0x197   : > { %v1597_v37 = vadd.f32 %v4256_v51, %v3646_v35  ;;  %v1588_v39 = vpop.f32.mrb[89].mxu0  ;;  %v2328_v44 = vmax.f32 %v2220_v34, %v2222_v28  ;;  %v1997_v45 = vadd.f32 %v4256_v51, %v3746_v38  ;;  %v1988_v47 = vpop.f32.mrb[89].mxu1  ;;  %v2475_v3 = vld [vmem:[#allocation2 + $0x140] ss:$2 sm:$0xff]  ;;  %v2575_v4 = vld [vmem:[#allocation2 + $0x141] ss:$2 sm:$0xff] }
 0x198   : > { %v2525_v41 = vld [vmem:[#allocation2 + $0x2d0] ss:$2 sm:$0xff]  ;;  %v2625_v43 = vld [vmem:[#allocation2 + $0x2d1] ss:$2 sm:$0xff]  ;;  %v1589_v46 = vadd.f32 %v4256_v51, %v1588_v39  ;;  %v3647_v48 = vpop.f32.mrb[90].mxu0  ;;  %2378 = vst [vmem:[#allocation2 + $0x158] sm:$0xff] %v2278_v36  ;;  %v1989_v52 = vadd.f32 %v4256_v51, %v1988_v47  ;;  %v2654_v13 = vmax.f32 %v2475_v3, %v2575_v4 }
 0x199   : > { %v2679_v49 = vmax.f32 %v2525_v41, %v2625_v43  ;;  %v2125_v50 = vmax.f32 %v1597_v37, 0.0  ;;  %v1600_v53 = vadd.f32 %v4256_v51, %v3647_v48  ;;  %v3747_v54 = vpop.f32.mrb[90].mxu1  ;;  %v1591_v55 = vpop.f32.mrb[91].mxu0  ;;  %2428 = vst [vmem:[#allocation2 + $0x2e8] sm:$0xff] %v2328_v44  ;;  %v2225_v56 = vmax.f32 %v1997_v45, 0.0 }
 0x19a   : > { %v2123_v42 = vmax.f32 %v1589_v46, 0.0  ;;  %v2000_v57 = vadd.f32 %v4256_v51, %v3747_v54  ;;  %v1592_v58 = vadd.f32 %v4256_v51, %v1591_v55  ;;  %v1991_v59 = vpop.f32.mrb[91].mxu1  ;;  %v2223_v61 = vmax.f32 %v1989_v52, 0.0 }
 0x19b   : > { %v3414_v60 = vpack.c.bf16 %v2679_v49, %v2678_v40  ;;  %v2126_v62 = vmax.f32 %v1600_v53, 0.0  ;;  %v1992_v63 = vadd.f32 %v4256_v51, %v1991_v59 }
 0x19c   : > { %v2279_v0 = vmax.f32 %v2123_v42, %v2125_v50  ;;  %v2226_v1 = vmax.f32 %v2000_v57, 0.0  ;;  %v2124_v2 = vmax.f32 %v1592_v58, 0.0  ;;  %v2329_v5 = vmax.f32 %v2223_v61, %v2225_v56 }
 0x19d   : > { %3447 = vst [vmem:[%s4161_s27 + $0xb0] sm:$0xff] %v3414_v60   ;;  %v2224_v6 = vmax.f32 %v1992_v63, 0.0 }
 0x19e   : > { %2379 = vst [vmem:[#allocation2 + $0x160] sm:$0xff] %v2279_v0  ;;  %v2280_v7 = vmax.f32 %v2124_v2, %v2126_v62  ;;  %v3650_v8 = vpop.f32.mrb[92].mxu0  ;;  %2429 = vst [vmem:[#allocation2 + $0x2f0] sm:$0xff] %v2329_v5  ;;  %v3750_v11 = vpop.f32.mrb[92].mxu1 }
 0x19f   : > { %v2330_v9 = vmax.f32 %v2224_v6, %v2226_v1  ;;  %v1613_v10 = vadd.f32 %v4256_v51, %v3650_v8  ;;  %v1604_v12 = vpop.f32.mrb[93].mxu0  ;;  %v2477_v14 = vld [vmem:[#allocation2 + $0x150] ss:$2 sm:$0xff]  ;;  %v2577_v15 = vld [vmem:[#allocation2 + $0x151] ss:$2 sm:$0xff]  ;;  %v2013_v16 = vadd.f32 %v4256_v51, %v3750_v11  ;;  %v2004_v18 = vpop.f32.mrb[93].mxu1 }
 0x1a0   : > { %2380 = vst [vmem:[#allocation2 + $0x168] sm:$0xff] %v2280_v7  ;;  %v1605_v17 = vadd.f32 %v4256_v51, %v1604_v12  ;;  %v3651_v19 = vpop.f32.mrb[94].mxu0  ;;  %v2655_v20 = vmax.f32 %v2477_v14, %v2577_v15  ;;  %v2005_v22 = vadd.f32 %v4256_v51, %v2004_v18  ;;  %v3751_v24 = vpop.f32.mrb[94].mxu1  ;;  %v2527_v37 = vld [vmem:[#allocation2 + $0x2e0] ss:$2 sm:$0xff] }
 0x1a1   : > { %2430 = vst [vmem:[#allocation2 + $0x2f8] sm:$0xff] %v2330_v9  ;;  %v2129_v21 = vmax.f32 %v1613_v10, 0.0  ;;  %v1616_v23 = vadd.f32 %v4256_v51, %v3651_v19  ;;  %v2229_v25 = vmax.f32 %v2013_v16, 0.0  ;;  %v2016_v27 = vadd.f32 %v4256_v51, %v3751_v24  ;;  %v1607_v28 = vpop.f32.mrb[95].mxu0  ;;  %v2007_v29 = vpop.f32.mrb[95].mxu1 }
 0x1a2   : > { %v2127_v26 = vmax.f32 %v1605_v17, 0.0  ;;  %v3354_v30 = vpack.c.bf16 %v2655_v20, %v2654_v13  ;;  %v2227_v31 = vmax.f32 %v2005_v22, 0.0  ;;  %v1608_v33 = vadd.f32 %v4256_v51, %v1607_v28  ;;  %v2627_v38 = vld [vmem:[#allocation2 + $0x2e1] ss:$2 sm:$0xff]  ;;  %v2485_v20 = vld [vmem:[#allocation2 + $0x190] ss:$2 sm:$0xff] }
 0x1a3   : > { %v2130_v32 = vmax.f32 %v1616_v23, 0.0  ;;  %v2230_v35 = vmax.f32 %v2016_v27, 0.0  ;;  %v2008_v36 = vadd.f32 %v4256_v51, %v2007_v29  ;;  %v2680_v48 = vmax.f32 %v2527_v37, %v2627_v38 }
 0x1a4   : > { %v2281_v34 = vmax.f32 %v2127_v26, %v2129_v21  ;;  %3435 = vst [vmem:[%s4161_s27 + $0x50] sm:$0xff] %v3354_v30   ;;  %v2331_v39 = vmax.f32 %v2227_v31, %v2229_v25  ;;  %v2128_v40 = vmax.f32 %v1608_v33, 0.0  ;;  %v2585_v21 = vld [vmem:[#allocation2 + $0x191] ss:$2 sm:$0xff] }
 0x1a5   : > { %v2228_v41 = vmax.f32 %v2008_v36, 0.0  ;;  %v2659_v26 = vmax.f32 %v2485_v20, %v2585_v21 }
 0x1a6   : > { %2381 = vst [vmem:[#allocation2 + $0x170] sm:$0xff] %v2281_v34  ;;  %v3654_v43 = vpop.f32.mrb[96].mxu0  ;;  %2431 = vst [vmem:[#allocation2 + $0x300] sm:$0xff] %v2331_v39  ;;  %v2282_v44 = vmax.f32 %v2128_v40, %v2130_v32  ;;  %v3754_v46 = vpop.f32.mrb[96].mxu1 }
 0x1a7   : > { %v1629_v45 = vadd.f32 %v4256_v51, %v3654_v43  ;;  %v1620_v47 = vpop.f32.mrb[97].mxu0  ;;  %v2332_v52 = vmax.f32 %v2228_v41, %v2230_v35  ;;  %v2029_v53 = vadd.f32 %v4256_v51, %v3754_v46  ;;  %v2020_v55 = vpop.f32.mrb[97].mxu1  ;;  %v2479_v12 = vld [vmem:[#allocation2 + $0x160] ss:$2 sm:$0xff]  ;;  %v2579_v13 = vld [vmem:[#allocation2 + $0x161] ss:$2 sm:$0xff] }
 0x1a8   : > { %v2529_v49 = vld [vmem:[#allocation2 + $0x2f0] ss:$2 sm:$0xff]  ;;  %v2629_v50 = vld [vmem:[#allocation2 + $0x2f1] ss:$2 sm:$0xff]  ;;  %v1621_v54 = vadd.f32 %v4256_v51, %v1620_v47  ;;  %v3655_v56 = vpop.f32.mrb[98].mxu0  ;;  %2382 = vst [vmem:[#allocation2 + $0x178] sm:$0xff] %v2282_v44  ;;  %v2021_v58 = vadd.f32 %v4256_v51, %v2020_v55  ;;  %v2656_v18 = vmax.f32 %v2479_v12, %v2579_v13 }
 0x1a9   : > { %v2681_v42 = vmax.f32 %v2529_v49, %v2629_v50  ;;  %v2133_v57 = vmax.f32 %v1629_v45, 0.0  ;;  %v1632_v59 = vadd.f32 %v4256_v51, %v3655_v56  ;;  %v3755_v60 = vpop.f32.mrb[98].mxu1  ;;  %v1623_v61 = vpop.f32.mrb[99].mxu0  ;;  %2432 = vst [vmem:[#allocation2 + $0x308] sm:$0xff] %v2332_v52  ;;  %v2233_v62 = vmax.f32 %v2029_v53, 0.0 }
 0x1aa   : > { %v2131_v63 = vmax.f32 %v1621_v54, 0.0  ;;  %v2032_v0 = vadd.f32 %v4256_v51, %v3755_v60  ;;  %v1624_v1 = vadd.f32 %v4256_v51, %v1623_v61  ;;  %v2023_v2 = vpop.f32.mrb[99].mxu1  ;;  %v2231_v4 = vmax.f32 %v2021_v58, 0.0 }
 0x1ab   : > { %v3419_v3 = vpack.c.bf16 %v2681_v42, %v2680_v48  ;;  %v2134_v5 = vmax.f32 %v1632_v59, 0.0  ;;  %v2024_v6 = vadd.f32 %v4256_v51, %v2023_v2 }
 0x1ac   : > { %v2283_v7 = vmax.f32 %v2131_v63, %v2133_v57  ;;  %v2234_v8 = vmax.f32 %v2032_v0, 0.0  ;;  %v2132_v9 = vmax.f32 %v1624_v1, 0.0  ;;  %v2333_v10 = vmax.f32 %v2231_v4, %v2233_v62 }
 0x1ad   : > { %3448 = vst [vmem:[%s4161_s27 + $0xb8] sm:$0xff] %v3419_v3   ;;  %v2232_v11 = vmax.f32 %v2024_v6, 0.0 }
 0x1ae   : > { %2383 = vst [vmem:[#allocation2 + $0x180] sm:$0xff] %v2283_v7  ;;  %v2284_v14 = vmax.f32 %v2132_v9, %v2134_v5  ;;  %2433 = vst [vmem:[#allocation2 + $0x310] sm:$0xff] %v2333_v10 }
 0x1af   : > { %v2334_v15 = vmax.f32 %v2232_v11, %v2234_v8  ;;  %v2481_v16 = vld [vmem:[#allocation2 + $0x170] ss:$2 sm:$0xff]  ;;  %v2581_v17 = vld [vmem:[#allocation2 + $0x171] ss:$2 sm:$0xff] }
 0x1b0   : > { %2384 = vst [vmem:[#allocation2 + $0x188] sm:$0xff] %v2284_v14  ;;  %v2657_v19 = vmax.f32 %v2481_v16, %v2581_v17  ;;  %v2531_v22 = vld [vmem:[#allocation2 + $0x300] ss:$2 sm:$0xff]  ;;  %v2631_v23 = vld [vmem:[#allocation2 + $0x301] ss:$2 sm:$0xff] }
 0x1b1   : > { %2434 = vst [vmem:[#allocation2 + $0x318] sm:$0xff] %v2334_v15  ;;  %v2682_v30 = vmax.f32 %v2531_v22, %v2631_v23 }
 0x1b2   : > { %v3359_v51 = vpack.c.bf16 %v2657_v19, %v2656_v18 }
 0x1b4   : > { %3436 = vst [vmem:[%s4161_s27 + $0x58] sm:$0xff] %v3359_v51  }
 0x1b7   : > { %v2483_v24 = vld [vmem:[#allocation2 + $0x180] ss:$2 sm:$0xff]  ;;  %v2583_v25 = vld [vmem:[#allocation2 + $0x181] ss:$2 sm:$0xff] }
 0x1b8   : > { %v2658_v27 = vmax.f32 %v2483_v24, %v2583_v25  ;;  %v2533_v28 = vld [vmem:[#allocation2 + $0x310] ss:$2 sm:$0xff]  ;;  %v2633_v29 = vld [vmem:[#allocation2 + $0x311] ss:$2 sm:$0xff] }
 0x1b9   : > { %v2683_v31 = vmax.f32 %v2533_v28, %v2633_v29 }
 0x1ba   : > { %v3364_v32 = vpack.c.bf16 %v2659_v26, %v2658_v27 }
 0x1bb   : > { %v3424_v33 = vpack.c.bf16 %v2683_v31, %v2682_v30 }
 0x1bc   : > { %3437 = vst [vmem:[%s4161_s27 + $0x60] sm:$0xff] %v3364_v32  }
 0x1bd   : > { %3449 = vst [vmem:[%s4161_s27 + $0xc0] sm:$0xff] %v3424_v33  }
 0x1be PF: > { %s13_s12 = sadd.s32 1, %s3880_s12  }
 0x1bf   : > { %p10_p4 = scmp.ge.s32.totalorder %s13_s12, 4  }
 0x1c1   :  { %12 = sbr.rel (!%p10_p4) target bundleno = 1 (0x1), region = 161 }

// kernel: _lambda_.8
= control target key start
LH: loop header
LB: loop body
LE: loop exit
PB: predicated region body
PF: predicated region fallthrough
CT: control target
= control target key end

     0   :  { %vm1181_vm0 = vmmov 0   ;;  %vm234_vm1 = vcmask 523264   ;;  %s1850_s1 = inlined_call_operand.vmem [shape: f32[1600,64], index: 1, kind: input, shape index: {}]   ;;  %s1851_s0 = inlined_call_operand.vmem [shape: f32[8,1600], index: 0, kind: input, shape index: {}]   ;;  %s1852_s2 = inlined_call_operand.vmem [shape: f32[1,64], index: 2, kind: input, shape index: {}]   ;;  %s1853_s3 = inlined_call_operand.vmem [shape: f32[8,64], index: 3, kind: output, shape index: {}]  }
   0x1   :  { %v43_v0 = vld [vmem:[%s1850_s1 + $0x80] sm:$0xff]  ;;  %v44_v1 = vld [vmem:[%s1850_s1 + $0x88] sm:$0xff]  ;;  %v45_v11 = vld [vmem:[%s1850_s1 + $0x90] sm:$0xff] }
   0x2   :  { %v27_v2 = vld [vmem:[%s1850_s1] sm:$0xff]  ;;  %v973_v3 = vpack.c.bf16 %v44_v1, %v43_v0  ;;  %v28_v4 = vld [vmem:[%s1850_s1 + $0x8] sm:$0xff]  ;;  %v46_v13 = vld [vmem:[%s1850_s1 + $0x98] sm:$0xff] }
   0x3   :  { %v75_v5 = vld [vmem:[%s1850_s1 + $0x180] sm:$0xff]  ;;  %v76_v6 = vld [vmem:[%s1850_s1 + $0x188] sm:$0xff]  ;;  %v975_v7 = vpack.c.bf16 %v28_v4, %v27_v2  ;;  %v29_v14 = vld [vmem:[%s1850_s1 + $0x10] sm:$0xff]  ;;  %v977_v16 = vpack.c.bf16 %v46_v13, %v45_v11 }
   0x4   :  { %v1005_v8 = vpack.c.bf16 %v76_v6, %v75_v5  ;;  %v59_v9 = vld [vmem:[%s1850_s1 + $0x100] sm:$0xff]  ;;  %v60_v10 = vld [vmem:[%s1850_s1 + $0x108] sm:$0xff]  ;;  %974 = vmatprep.subr.bf16.mxu0 %v973_v3  ;;  %v30_v15 = vld [vmem:[%s1850_s1 + $0x18] sm:$0xff] }
   0x5   :  { %v1007_v12 = vpack.c.bf16 %v60_v10, %v59_v9  ;;  %976 = vmatpush3.bf16.msra.mxu0 %v975_v7  ;;  %v979_v17 = vpack.c.bf16 %v30_v15, %v29_v14  ;;  %v77_v18 = vld [vmem:[%s1850_s1 + $0x190] sm:$0xff]  ;;  %v78_v19 = vld [vmem:[%s1850_s1 + $0x198] sm:$0xff]  ;;  %v47_v23 = vld [vmem:[%s1850_s1 + $0xa0] sm:$0xff] }
   0x6   :  { %1006 = vmatprep.subr.bf16.mxu1 %v1005_v8  ;;  %v61_v20 = vld [vmem:[%s1850_s1 + $0x110] sm:$0xff]  ;;  %v1009_v21 = vpack.c.bf16 %v78_v19, %v77_v18  ;;  %v62_v22 = vld [vmem:[%s1850_s1 + $0x118] sm:$0xff]  ;;  %v48_v24 = vld [vmem:[%s1850_s1 + $0xa8] sm:$0xff]  ;;  %978 = vmatprep.subr.bf16.mxu0 %v977_v16 }
   0x7   :  { %1008 = vmatpush3.bf16.msra.mxu1 %v1007_v12  ;;  %v1011_v25 = vpack.c.bf16 %v62_v22, %v61_v20  ;;  %v981_v26 = vpack.c.bf16 %v48_v24, %v47_v23  ;;  %v31_v27 = vld [vmem:[%s1850_s1 + $0x20] sm:$0xff]  ;;  %v32_v28 = vld [vmem:[%s1850_s1 + $0x28] sm:$0xff]  ;;  %v49_v35 = vld [vmem:[%s1850_s1 + $0xb0] sm:$0xff] }
   0x8   :  { %v79_v29 = vld [vmem:[%s1850_s1 + $0x1a0] sm:$0xff]  ;;  %1010 = vmatprep.subr.bf16.mxu1 %v1009_v21  ;;  %v80_v30 = vld [vmem:[%s1850_s1 + $0x1a8] sm:$0xff]  ;;  %v983_v33 = vpack.c.bf16 %v32_v28, %v31_v27  ;;  %v50_v36 = vld [vmem:[%s1850_s1 + $0xb8] sm:$0xff] }
   0x9   :  { %v63_v31 = vld [vmem:[%s1850_s1 + $0x120] sm:$0xff]  ;;  %v64_v32 = vld [vmem:[%s1850_s1 + $0x128] sm:$0xff]  ;;  %980 = vmatpush3.bf16.msra.mxu0 %v979_v17  ;;  %v1013_v34 = vpack.c.bf16 %v80_v30, %v79_v29  ;;  %v33_v37 = vld [vmem:[%s1850_s1 + $0x30] sm:$0xff]  ;;  %v985_v39 = vpack.c.bf16 %v50_v36, %v49_v35 }
   0xa   :  { %982 = vmatprep.subr.bf16.mxu0 %v981_v26  ;;  %v1015_v38 = vpack.c.bf16 %v64_v32, %v63_v31  ;;  %v34_v40 = vld [vmem:[%s1850_s1 + $0x38] sm:$0xff]  ;;  %v81_v41 = vld [vmem:[%s1850_s1 + $0x1b0] sm:$0xff]  ;;  %v51_v46 = vld [vmem:[%s1850_s1 + $0xc0] sm:$0xff] }
   0xb   :  { %1012 = vmatpush3.bf16.msra.mxu1 %v1011_v25  ;;  %v82_v42 = vld [vmem:[%s1850_s1 + $0x1b8] sm:$0xff]  ;;  %v65_v44 = vld [vmem:[%s1850_s1 + $0x130] sm:$0xff]  ;;  %v52_v47 = vld [vmem:[%s1850_s1 + $0xc8] sm:$0xff]  ;;  %v987_v48 = vpack.c.bf16 %v34_v40, %v33_v37 }
   0xc   :  { %1014 = vmatprep.subr.bf16.mxu1 %v1013_v34  ;;  %v1017_v43 = vpack.c.bf16 %v82_v42, %v81_v41  ;;  %v66_v45 = vld [vmem:[%s1850_s1 + $0x138] sm:$0xff]  ;;  %v83_v49 = vld [vmem:[%s1850_s1 + $0x1c0] sm:$0xff]  ;;  %v84_v50 = vld [vmem:[%s1850_s1 + $0x1c8] sm:$0xff]  ;;  %v989_v52 = vpack.c.bf16 %v52_v47, %v51_v46 }
   0xd   :  { %984 = vmatpush3.bf16.msra.mxu0 %v983_v33  ;;  %v1019_v51 = vpack.c.bf16 %v66_v45, %v65_v44  ;;  %v35_v53 = vld [vmem:[%s1850_s1 + $0x40] sm:$0xff]  ;;  %v36_v54 = vld [vmem:[%s1850_s1 + $0x48] sm:$0xff]  ;;  %v1021_v56 = vpack.c.bf16 %v84_v50, %v83_v49  ;;  %v53_v58 = vld [vmem:[%s1850_s1 + $0xd0] sm:$0xff] }
   0xe   :  { %986 = vmatprep.subr.bf16.mxu0 %v985_v39  ;;  %v67_v55 = vld [vmem:[%s1850_s1 + $0x140] sm:$0xff]  ;;  %v68_v57 = vld [vmem:[%s1850_s1 + $0x148] sm:$0xff]  ;;  %v54_v59 = vld [vmem:[%s1850_s1 + $0xd8] sm:$0xff]  ;;  %v991_v62 = vpack.c.bf16 %v36_v54, %v35_v53 }
   0xf   :  { %1016 = vmatpush3.bf16.msra.mxu1 %v1015_v38  ;;  %v85_v60 = vld [vmem:[%s1850_s1 + $0x1d0] sm:$0xff]  ;;  %v86_v61 = vld [vmem:[%s1850_s1 + $0x1d8] sm:$0xff]  ;;  %v1023_v63 = vpack.c.bf16 %v68_v57, %v67_v55  ;;  %v993_v0 = vpack.c.bf16 %v54_v59, %v53_v58  ;;  %v55_v6 = vld [vmem:[%s1850_s1 + $0xe0] sm:$0xff] }
  0x10   :  { %1018 = vmatprep.subr.bf16.mxu1 %v1017_v43  ;;  %v37_v1 = vld [vmem:[%s1850_s1 + $0x50] sm:$0xff]  ;;  %v38_v2 = vld [vmem:[%s1850_s1 + $0x58] sm:$0xff]  ;;  %v1025_v4 = vpack.c.bf16 %v86_v61, %v85_v60  ;;  %v56_v7 = vld [vmem:[%s1850_s1 + $0xe8] sm:$0xff] }
  0x11   :  { %988 = vmatpush3.bf16.msra.mxu0 %v987_v48  ;;  %v69_v3 = vld [vmem:[%s1850_s1 + $0x150] sm:$0xff]  ;;  %v70_v5 = vld [vmem:[%s1850_s1 + $0x158] sm:$0xff]  ;;  %v87_v8 = vld [vmem:[%s1850_s1 + $0x1e0] sm:$0xff]  ;;  %v995_v10 = vpack.c.bf16 %v38_v2, %v37_v1  ;;  %v997_v14 = vpack.c.bf16 %v56_v7, %v55_v6 }
  0x12   :  { %990 = vmatprep.subr.bf16.mxu0 %v989_v52  ;;  %v88_v9 = vld [vmem:[%s1850_s1 + $0x1e8] sm:$0xff]  ;;  %v39_v11 = vld [vmem:[%s1850_s1 + $0x60] sm:$0xff]  ;;  %v1027_v13 = vpack.c.bf16 %v70_v5, %v69_v3  ;;  %v57_v19 = vld [vmem:[%s1850_s1 + $0xf0] sm:$0xff] }
  0x13   :  { %1020 = vmatpush3.bf16.msra.mxu1 %v1019_v51  ;;  %v15_v12 = vld [vmem:[%s1851_s0 + $0x8] sm:$0xff]  ;;  %v71_v16 = vld [vmem:[%s1850_s1 + $0x160] sm:$0xff]  ;;  %v1029_v18 = vpack.c.bf16 %v88_v9, %v87_v8  ;;  %v58_v20 = vld [vmem:[%s1850_s1 + $0xf8] sm:$0xff] }
  0x14   :  { %1022 = vmatprep.subr.bf16.mxu1 %v1021_v56  ;;  %v40_v15 = vld [vmem:[%s1850_s1 + $0x68] sm:$0xff]  ;;  %302 = vmatprep.mubr.f32.mxu0 %v15_v12  ;;  %v17_v21 = vld [vmem:[%s1851_s0 + $0x18] sm:$0xff]  ;;  %v89_v22 = vld [vmem:[%s1850_s1 + $0x1f0] sm:$0xff]  ;;  %v1001_v26 = vpack.c.bf16 %v58_v20, %v57_v19 }
  0x15   :  { %992 = vmatpush3.bf16.msra.mxu0 %v991_v62  ;;  %v72_v17 = vld [vmem:[%s1850_s1 + $0x168] sm:$0xff]  ;;  %v90_v23 = vld [vmem:[%s1850_s1 + $0x1f8] sm:$0xff]  ;;  %372 = vmatprep.mubr.f32.mxu1 %v17_v21  ;;  %v999_v24 = vpack.c.bf16 %v40_v15, %v39_v11  ;;  %v41_v27 = vld [vmem:[%s1850_s1 + $0x70] sm:$0xff] }
  0x16   :  { %994 = vmatprep.subr.bf16.mxu0 %v993_v0  ;;  %v1031_v25 = vpack.c.bf16 %v72_v17, %v71_v16  ;;  %v42_v28 = vld [vmem:[%s1850_s1 + $0x78] sm:$0xff]  ;;  %v73_v29 = vld [vmem:[%s1850_s1 + $0x170] sm:$0xff]  ;;  %v1033_v30 = vpack.c.bf16 %v90_v23, %v89_v22  ;;  %v107_v32 = vld [vmem:[%s1850_s1 + $0x280] sm:$0xff] }
  0x17   :  { %1024 = vmatpush3.bf16.msra.mxu1 %v1023_v63  ;;  %v74_v31 = vld [vmem:[%s1850_s1 + $0x178] sm:$0xff]  ;;  %v108_v33 = vld [vmem:[%s1850_s1 + $0x288] sm:$0xff]  ;;  %v139_v34 = vld [vmem:[%s1850_s1 + $0x380] sm:$0xff]  ;;  %v1003_v36 = vpack.c.bf16 %v42_v28, %v41_v27 }
  0x18   :  { %1026 = vmatprep.subr.bf16.mxu1 %v1025_v4  ;;  %v140_v35 = vld [vmem:[%s1850_s1 + $0x388] sm:$0xff]  ;;  %v1035_v37 = vpack.c.bf16 %v74_v31, %v73_v29  ;;  %v1037_v38 = vpack.c.bf16 %v108_v33, %v107_v32  ;;  %v91_v39 = vld [vmem:[%s1850_s1 + $0x200] sm:$0xff]  ;;  %v109_v44 = vld [vmem:[%s1850_s1 + $0x290] sm:$0xff] }
  0x19   :  { %996 = vmatpush3.bf16.msra.mxu0 %v995_v10  ;;  %v92_v40 = vld [vmem:[%s1850_s1 + $0x208] sm:$0xff]  ;;  %v123_v41 = vld [vmem:[%s1850_s1 + $0x300] sm:$0xff]  ;;  %v1069_v42 = vpack.c.bf16 %v140_v35, %v139_v34  ;;  %v110_v45 = vld [vmem:[%s1850_s1 + $0x298] sm:$0xff] }
  0x1a   :  { %998 = vmatprep.subr.bf16.mxu0 %v997_v14  ;;  %v124_v43 = vld [vmem:[%s1850_s1 + $0x308] sm:$0xff]  ;;  %v141_v46 = vld [vmem:[%s1850_s1 + $0x390] sm:$0xff]  ;;  %v142_v47 = vld [vmem:[%s1850_s1 + $0x398] sm:$0xff]  ;;  %v1039_v49 = vpack.c.bf16 %v92_v40, %v91_v39  ;;  %v1041_v52 = vpack.c.bf16 %v110_v45, %v109_v44 }
  0x1b   :  { %1028 = vmatpush3.bf16.msra.mxu1 %v1027_v13  ;;  %v14_v48 = vld [vmem:[%s1851_s0] sm:$0xff]  ;;  %v16_v50 = vld [vmem:[%s1851_s0 + $0x10] sm:$0xff]  ;;  %v1071_v51 = vpack.c.bf16 %v124_v43, %v123_v41  ;;  %v94_v54 = vld [vmem:[%s1850_s1 + $0x218] sm:$0xff]  ;;  %v1073_v56 = vpack.c.bf16 %v142_v47, %v141_v46 }
  0x1c   :  { %1030 = vmatprep.subr.bf16.mxu1 %v1029_v18  ;;  %v93_v53 = vld [vmem:[%s1850_s1 + $0x210] sm:$0xff]  ;;  %v126_v57 = vld [vmem:[%s1850_s1 + $0x318] sm:$0xff]  ;;  %v111_v58 = vld [vmem:[%s1850_s1 + $0x2a0] sm:$0xff] }
  0x1d   :  { %1000 = vmatpush3.bf16.msra.mxu0 %v999_v24  ;;  %v125_v55 = vld [vmem:[%s1850_s1 + $0x310] sm:$0xff]  ;;  %v112_v59 = vld [vmem:[%s1850_s1 + $0x2a8] sm:$0xff]  ;;  %v143_v60 = vld [vmem:[%s1850_s1 + $0x3a0] sm:$0xff]  ;;  %v1043_v62 = vpack.c.bf16 %v94_v54, %v93_v53 }
  0x1e   :  { %1002 = vmatprep.subr.bf16.mxu0 %v1001_v26  ;;  %v144_v61 = vld [vmem:[%s1850_s1 + $0x3a8] sm:$0xff]  ;;  %v1075_v63 = vpack.c.bf16 %v126_v57, %v125_v55  ;;  %v1045_v0 = vpack.c.bf16 %v112_v59, %v111_v58  ;;  %v95_v1 = vld [vmem:[%s1850_s1 + $0x220] sm:$0xff]  ;;  %v113_v6 = vld [vmem:[%s1850_s1 + $0x2b0] sm:$0xff] }
  0x1f   :  { %1032 = vmatpush3.bf16.msra.mxu1 %v1031_v25  ;;  %v96_v2 = vld [vmem:[%s1850_s1 + $0x228] sm:$0xff]  ;;  %v127_v3 = vld [vmem:[%s1850_s1 + $0x320] sm:$0xff]  ;;  %v1077_v4 = vpack.c.bf16 %v144_v61, %v143_v60  ;;  %v114_v7 = vld [vmem:[%s1850_s1 + $0x2b8] sm:$0xff] }
  0x20   :  { %1034 = vmatprep.subr.bf16.mxu1 %v1033_v30  ;;  %v128_v5 = vld [vmem:[%s1850_s1 + $0x328] sm:$0xff]  ;;  %v145_v8 = vld [vmem:[%s1850_s1 + $0x3b0] sm:$0xff]  ;;  %v146_v9 = vld [vmem:[%s1850_s1 + $0x3b8] sm:$0xff]  ;;  %v1047_v10 = vpack.c.bf16 %v96_v2, %v95_v1  ;;  %v1049_v12 = vpack.c.bf16 %v114_v7, %v113_v6 }
  0x21   :  { %1004 = vmatpush3.bf16.msra.mxu0 %v1003_v36  ;;  %v1079_v11 = vpack.c.bf16 %v128_v5, %v127_v3  ;;  %v97_v13 = vld [vmem:[%s1850_s1 + $0x230] sm:$0xff]  ;;  %v98_v14 = vld [vmem:[%s1850_s1 + $0x238] sm:$0xff]  ;;  %v1081_v16 = vpack.c.bf16 %v146_v9, %v145_v8  ;;  %v115_v18 = vld [vmem:[%s1850_s1 + $0x2c0] sm:$0xff] }
  0x22   :  { %1038 = vmatprep.subr.bf16.mxu0 %v1037_v38  ;;  %v129_v15 = vld [vmem:[%s1850_s1 + $0x330] sm:$0xff]  ;;  %v130_v17 = vld [vmem:[%s1850_s1 + $0x338] sm:$0xff]  ;;  %v116_v19 = vld [vmem:[%s1850_s1 + $0x2c8] sm:$0xff]  ;;  %v1051_v23 = vpack.c.bf16 %v98_v14, %v97_v13 }
  0x23   :  { %1036 = vmatpush3.bf16.msra.mxu1 %v1035_v37  ;;  %v147_v20 = vld [vmem:[%s1850_s1 + $0x3c0] sm:$0xff]  ;;  %v148_v21 = vld [vmem:[%s1850_s1 + $0x3c8] sm:$0xff]  ;;  %v1083_v25 = vpack.c.bf16 %v130_v17, %v129_v15  ;;  %v1053_v26 = vpack.c.bf16 %v116_v19, %v115_v18  ;;  %v21_v29 = vld [vmem:[%s1851_s0 + $0x38] sm:$0xff] }
  0x24   :  { %1070 = vmatprep.subr.bf16.mxu1 %v1069_v42  ;;  %303 = vmatmul.mubr.f32.vlgmr.msra.gmra.mrb[0].mxu0 %v14_v48  ;;  %v19_v22 = vld [vmem:[%s1851_s0 + $0x28] sm:$0xff]  ;;  %v99_v24 = vld [vmem:[%s1850_s1 + $0x240] sm:$0xff]  ;;  %v1085_v30 = vpack.c.bf16 %v148_v21, %v147_v20  ;;  %v117_v32 = vld [vmem:[%s1850_s1 + $0x2d0] sm:$0xff] }
  0x25   :  { %1040 = vmatpush3.bf16.msra.mxu0 %v1039_v49  ;;  %442 = vmatprep.mubr.f32.mxu0 %v19_v22  ;;  %v100_v27 = vld [vmem:[%s1850_s1 + $0x248] sm:$0xff]  ;;  %v131_v28 = vld [vmem:[%s1850_s1 + $0x340] sm:$0xff]  ;;  %v118_v33 = vld [vmem:[%s1850_s1 + $0x2d8] sm:$0xff] }
  0x26   :  { %373 = vmatmul.mubr.f32.vlgmr.msra.gmra.mrb[0].mxu1 %v16_v50  ;;  %1042 = vmatprep.subr.bf16.mxu0 %v1041_v52  ;;  %v132_v31 = vld [vmem:[%s1850_s1 + $0x348] sm:$0xff]  ;;  %v149_v34 = vld [vmem:[%s1850_s1 + $0x3d0] sm:$0xff]  ;;  %v150_v35 = vld [vmem:[%s1850_s1 + $0x3d8] sm:$0xff]  ;;  %v1055_v36 = vpack.c.bf16 %v100_v27, %v99_v24  ;;  %v1057_v38 = vpack.c.bf16 %v118_v33, %v117_v32 }
  0x27   :  { %1072 = vmatpush3.bf16.msra.mxu1 %v1071_v51  ;;  %512 = vmatprep.mubr.f32.mxu1 %v21_v29  ;;  %v1087_v37 = vpack.c.bf16 %v132_v31, %v131_v28  ;;  %v101_v39 = vld [vmem:[%s1850_s1 + $0x250] sm:$0xff]  ;;  %v102_v40 = vld [vmem:[%s1850_s1 + $0x258] sm:$0xff]  ;;  %v1089_v42 = vpack.c.bf16 %v150_v35, %v149_v34  ;;  %v119_v44 = vld [vmem:[%s1850_s1 + $0x2e0] sm:$0xff] }
  0x28   :  { %1074 = vmatprep.subr.bf16.mxu1 %v1073_v56  ;;  %v133_v41 = vld [vmem:[%s1850_s1 + $0x350] sm:$0xff]  ;;  %v134_v43 = vld [vmem:[%s1850_s1 + $0x358] sm:$0xff]  ;;  %v120_v45 = vld [vmem:[%s1850_s1 + $0x2e8] sm:$0xff]  ;;  %v1059_v48 = vpack.c.bf16 %v102_v40, %v101_v39 }
  0x29   :  { %1044 = vmatpush3.bf16.msra.mxu0 %v1043_v62  ;;  %v151_v46 = vld [vmem:[%s1850_s1 + $0x3e0] sm:$0xff]  ;;  %v152_v47 = vld [vmem:[%s1850_s1 + $0x3e8] sm:$0xff]  ;;  %v1091_v49 = vpack.c.bf16 %v134_v43, %v133_v41  ;;  %v1061_v50 = vpack.c.bf16 %v120_v45, %v119_v44  ;;  %v121_v56 = vld [vmem:[%s1850_s1 + $0x2f0] sm:$0xff] }
  0x2a   :  { %1046 = vmatprep.subr.bf16.mxu0 %v1045_v0  ;;  %v103_v51 = vld [vmem:[%s1850_s1 + $0x260] sm:$0xff]  ;;  %v104_v52 = vld [vmem:[%s1850_s1 + $0x268] sm:$0xff]  ;;  %v1093_v54 = vpack.c.bf16 %v152_v47, %v151_v46  ;;  %v122_v57 = vld [vmem:[%s1850_s1 + $0x2f8] sm:$0xff] }
  0x2b   :  { %1076 = vmatpush3.bf16.msra.mxu1 %v1075_v63  ;;  %v135_v53 = vld [vmem:[%s1850_s1 + $0x360] sm:$0xff]  ;;  %v136_v55 = vld [vmem:[%s1850_s1 + $0x368] sm:$0xff]  ;;  %v153_v58 = vld [vmem:[%s1850_s1 + $0x3f0] sm:$0xff]  ;;  %v1063_v60 = vpack.c.bf16 %v104_v52, %v103_v51  ;;  %v1065_v62 = vpack.c.bf16 %v122_v57, %v121_v56 }
  0x2c   :  { %1078 = vmatprep.subr.bf16.mxu1 %v1077_v4  ;;  %v154_v59 = vld [vmem:[%s1850_s1 + $0x3f8] sm:$0xff]  ;;  %v1095_v61 = vpack.c.bf16 %v136_v55, %v135_v53  ;;  %v105_v63 = vld [vmem:[%s1850_s1 + $0x270] sm:$0xff]  ;;  %v171_v4 = vld [vmem:[%s1850_s1 + $0x480] sm:$0xff] }
  0x2d   :  { %1048 = vmatpush3.bf16.msra.mxu0 %v1047_v10  ;;  %v106_v0 = vld [vmem:[%s1850_s1 + $0x278] sm:$0xff]  ;;  %v137_v1 = vld [vmem:[%s1850_s1 + $0x370] sm:$0xff]  ;;  %v1097_v2 = vpack.c.bf16 %v154_v59, %v153_v58  ;;  %v172_v5 = vld [vmem:[%s1850_s1 + $0x488] sm:$0xff] }
  0x2e   :  { %1050 = vmatprep.subr.bf16.mxu0 %v1049_v12  ;;  %v138_v3 = vld [vmem:[%s1850_s1 + $0x378] sm:$0xff]  ;;  %v203_v6 = vld [vmem:[%s1850_s1 + $0x580] sm:$0xff]  ;;  %v204_v7 = vld [vmem:[%s1850_s1 + $0x588] sm:$0xff]  ;;  %v1067_v8 = vpack.c.bf16 %v106_v0, %v105_v63  ;;  %v1101_v10 = vpack.c.bf16 %v172_v5, %v171_v4 }
  0x2f   :  { %1080 = vmatpush3.bf16.msra.mxu1 %v1079_v11  ;;  %v1099_v9 = vpack.c.bf16 %v138_v3, %v137_v1  ;;  %v155_v11 = vld [vmem:[%s1850_s1 + $0x400] sm:$0xff]  ;;  %v156_v12 = vld [vmem:[%s1850_s1 + $0x408] sm:$0xff]  ;;  %v1133_v14 = vpack.c.bf16 %v204_v7, %v203_v6  ;;  %v174_v17 = vld [vmem:[%s1850_s1 + $0x498] sm:$0xff] }
  0x30   :  { %1082 = vmatprep.subr.bf16.mxu1 %v1081_v16  ;;  %v187_v13 = vld [vmem:[%s1850_s1 + $0x500] sm:$0xff]  ;;  %v188_v15 = vld [vmem:[%s1850_s1 + $0x508] sm:$0xff]  ;;  %v173_v16 = vld [vmem:[%s1850_s1 + $0x490] sm:$0xff]  ;;  %v1103_v21 = vpack.c.bf16 %v156_v12, %v155_v11 }
  0x31   :  { %1052 = vmatpush3.bf16.msra.mxu0 %v1051_v23  ;;  %v205_v18 = vld [vmem:[%s1850_s1 + $0x590] sm:$0xff]  ;;  %v206_v19 = vld [vmem:[%s1850_s1 + $0x598] sm:$0xff]  ;;  %v18_v20 = vld [vmem:[%s1851_s0 + $0x20] sm:$0xff]  ;;  %v1135_v23 = vpack.c.bf16 %v188_v15, %v187_v13  ;;  %v1105_v24 = vpack.c.bf16 %v174_v17, %v173_v16 }
  0x32   :  { %1054 = vmatprep.subr.bf16.mxu0 %v1053_v26  ;;  %v20_v22 = vld [vmem:[%s1851_s0 + $0x30] sm:$0xff]  ;;  %v158_v26 = vld [vmem:[%s1850_s1 + $0x418] sm:$0xff]  ;;  %v1137_v28 = vpack.c.bf16 %v206_v19, %v205_v18  ;;  %v176_v31 = vld [vmem:[%s1850_s1 + $0x4a8] sm:$0xff] }
  0x33   :  { %1084 = vmatpush3.bf16.msra.mxu1 %v1083_v25  ;;  %v157_v25 = vld [vmem:[%s1850_s1 + $0x410] sm:$0xff]  ;;  %v190_v29 = vld [vmem:[%s1850_s1 + $0x518] sm:$0xff]  ;;  %v207_v32 = vld [vmem:[%s1850_s1 + $0x5a0] sm:$0xff] }
  0x34   :  { %1086 = vmatprep.subr.bf16.mxu1 %v1085_v30  ;;  %v189_v27 = vld [vmem:[%s1850_s1 + $0x510] sm:$0xff]  ;;  %v175_v30 = vld [vmem:[%s1850_s1 + $0x4a0] sm:$0xff]  ;;  %v208_v33 = vld [vmem:[%s1850_s1 + $0x5a8] sm:$0xff]  ;;  %v1107_v35 = vpack.c.bf16 %v158_v26, %v157_v25 }
  0x35   :  { %1056 = vmatpush3.bf16.msra.mxu0 %v1055_v36  ;;  %v23_v34 = vld [vmem:[%s1851_s0 + $0x48] sm:$0xff]  ;;  %v25_v36 = vld [vmem:[%s1851_s0 + $0x58] sm:$0xff]  ;;  %v159_v39 = vld [vmem:[%s1850_s1 + $0x420] sm:$0xff] }
  0x36   :  { %1058 = vmatprep.subr.bf16.mxu0 %v1057_v38  ;;  %v1109_v38 = vpack.c.bf16 %v176_v31, %v175_v30  ;;  %v160_v40 = vld [vmem:[%s1850_s1 + $0x428] sm:$0xff]  ;;  %v191_v41 = vld [vmem:[%s1850_s1 + $0x520] sm:$0xff]  ;;  %v177_v44 = vld [vmem:[%s1850_s1 + $0x4b0] sm:$0xff] }
  0x37   :  { %1088 = vmatpush3.bf16.msra.mxu1 %v1087_v37  ;;  %v1139_v37 = vpack.c.bf16 %v190_v29, %v189_v27  ;;  %v192_v43 = vld [vmem:[%s1850_s1 + $0x528] sm:$0xff]  ;;  %v178_v45 = vld [vmem:[%s1850_s1 + $0x4b8] sm:$0xff]  ;;  %v209_v46 = vld [vmem:[%s1850_s1 + $0x5b0] sm:$0xff] }
  0x38   :  { %1090 = vmatprep.subr.bf16.mxu1 %v1089_v42  ;;  %v1141_v42 = vpack.c.bf16 %v208_v33, %v207_v32  ;;  %v210_v47 = vld [vmem:[%s1850_s1 + $0x5b8] sm:$0xff]  ;;  %v161_v51 = vld [vmem:[%s1850_s1 + $0x430] sm:$0xff]  ;;  %v179_v56 = vld [vmem:[%s1850_s1 + $0x4c0] sm:$0xff] }
  0x39   :  { %1060 = vmatpush3.bf16.msra.mxu0 %v1059_v48  ;;  %v1111_v48 = vpack.c.bf16 %v160_v40, %v159_v39  ;;  %v162_v52 = vld [vmem:[%s1850_s1 + $0x438] sm:$0xff]  ;;  %v193_v53 = vld [vmem:[%s1850_s1 + $0x530] sm:$0xff]  ;;  %v180_v57 = vld [vmem:[%s1850_s1 + $0x4c8] sm:$0xff] }
  0x3a   :  { %1062 = vmatprep.subr.bf16.mxu0 %v1061_v50  ;;  %v1113_v50 = vpack.c.bf16 %v178_v45, %v177_v44  ;;  %v194_v55 = vld [vmem:[%s1850_s1 + $0x538] sm:$0xff]  ;;  %v211_v58 = vld [vmem:[%s1850_s1 + $0x5c0] sm:$0xff]  ;;  %v212_v59 = vld [vmem:[%s1850_s1 + $0x5c8] sm:$0xff] }
  0x3b   :  { %1092 = vmatpush3.bf16.msra.mxu1 %v1091_v49  ;;  %v1143_v49 = vpack.c.bf16 %v192_v43, %v191_v41  ;;  %v163_v63 = vld [vmem:[%s1850_s1 + $0x440] sm:$0xff]  ;;  %v164_v0 = vld [vmem:[%s1850_s1 + $0x448] sm:$0xff]  ;;  %v181_v4 = vld [vmem:[%s1850_s1 + $0x4d0] sm:$0xff] }
  0x3c   :  { %1094 = vmatprep.subr.bf16.mxu1 %v1093_v54  ;;  %v1145_v54 = vpack.c.bf16 %v210_v47, %v209_v46  ;;  %v195_v1 = vld [vmem:[%s1850_s1 + $0x540] sm:$0xff]  ;;  %v196_v3 = vld [vmem:[%s1850_s1 + $0x548] sm:$0xff]  ;;  %v182_v5 = vld [vmem:[%s1850_s1 + $0x4d8] sm:$0xff]  ;;  %v1180_v46 = vmov 0.0|0.0  }
  0x3d   :  { %1064 = vmatpush3.bf16.msra.mxu0 %v1063_v60  ;;  %v1115_v60 = vpack.c.bf16 %v162_v52, %v161_v51  ;;  %v213_v6 = vld [vmem:[%s1850_s1 + $0x5d0] sm:$0xff]  ;;  %v214_v7 = vld [vmem:[%s1850_s1 + $0x5d8] sm:$0xff]  ;;  %v183_v16 = vld [vmem:[%s1850_s1 + $0x4e0] sm:$0xff] }
  0x3e   :  { %1066 = vmatprep.subr.bf16.mxu0 %v1065_v62  ;;  %v1117_v62 = vpack.c.bf16 %v180_v57, %v179_v56  ;;  %v165_v11 = vld [vmem:[%s1850_s1 + $0x450] sm:$0xff]  ;;  %v166_v12 = vld [vmem:[%s1850_s1 + $0x458] sm:$0xff]  ;;  %v184_v17 = vld [vmem:[%s1850_s1 + $0x4e8] sm:$0xff] }
  0x3f   :  { %1096 = vmatpush3.bf16.msra.mxu1 %v1095_v61  ;;  %v1147_v61 = vpack.c.bf16 %v194_v55, %v193_v53  ;;  %v197_v13 = vld [vmem:[%s1850_s1 + $0x550] sm:$0xff]  ;;  %v198_v15 = vld [vmem:[%s1850_s1 + $0x558] sm:$0xff]  ;;  %v215_v18 = vld [vmem:[%s1850_s1 + $0x5e0] sm:$0xff]  ;;  %v1182_v53 = vmov 0.0  }
  0x40   :  { %1098 = vmatprep.subr.bf16.mxu1 %v1097_v2  ;;  %v1149_v2 = vpack.c.bf16 %v212_v59, %v211_v58  ;;  %v216_v19 = vld [vmem:[%s1850_s1 + $0x5e8] sm:$0xff]  ;;  %v199_v25 = vld [vmem:[%s1850_s1 + $0x560] sm:$0xff]  ;;  %v186_v29 = vld [vmem:[%s1850_s1 + $0x4f8] sm:$0xff] }
  0x41   :  { %1068 = vmatpush3.bf16.msra.mxu0 %v1067_v8  ;;  %v1119_v8 = vpack.c.bf16 %v164_v0, %v163_v63  ;;  %v1157_v26 = vpack.c.bf16 %v216_v19, %v215_v18  ;;  %v200_v27 = vld [vmem:[%s1850_s1 + $0x568] sm:$0xff]  ;;  %v217_v30 = vld [vmem:[%s1850_s1 + $0x5f0] sm:$0xff]  ;;  %v218_v31 = vld [vmem:[%s1850_s1 + $0x5f8] sm:$0xff] }
  0x42   :  { %1102 = vmatprep.subr.bf16.mxu0 %v1101_v10  ;;  %v1121_v10 = vpack.c.bf16 %v182_v5, %v181_v4  ;;  %v1159_v33 = vpack.c.bf16 %v200_v27, %v199_v25  ;;  %v202_v39 = vld [vmem:[%s1850_s1 + $0x578] sm:$0xff]  ;;  %v220_v43 = vld [vmem:[%s1850_s1 + $0x608] sm:$0xff]  ;;  %v22_v44 = vld [vmem:[%s1851_s0 + $0x40] sm:$0xff] }
  0x43   :  { %1100 = vmatpush3.bf16.msra.mxu1 %v1099_v9  ;;  %v1151_v9 = vpack.c.bf16 %v196_v3, %v195_v1  ;;  %v24_v47 = vld [vmem:[%s1851_s0 + $0x50] sm:$0xff]  ;;  %v223_v51 = vld [vmem:[%s1850_s1 + $0x620] sm:$0xff]  ;;  %v224_v52 = vld [vmem:[%s1850_s1 + $0x628] sm:$0xff] }
  0x44   :  { %1134 = vmatprep.subr.bf16.mxu1 %v1133_v14  ;;  %443 = vmatmul.mubr.f32.vlgmr.msra.gmra.mrb[2].mxu0 %v18_v20  ;;  %v1153_v14 = vpack.c.bf16 %v214_v7, %v213_v6  ;;  %v1123_v20 = vpack.c.bf16 %v166_v12, %v165_v11  ;;  %v225_v55 = vld [vmem:[%s1850_s1 + $0x630] sm:$0xff]  ;;  %v226_v56 = vld [vmem:[%s1850_s1 + $0x638] sm:$0xff]  ;;  %v26_v58 = vld [vmem:[%s1851_s0 + $0x60] sm:$0xff] }
  0x45   :  { %1104 = vmatpush3.bf16.msra.mxu0 %v1103_v21  ;;  %582 = vmatprep.mubr.f32.mxu0 %v23_v34  ;;  %v1155_v21 = vpack.c.bf16 %v198_v15, %v197_v13  ;;  %v1175_v57 = vpack.c.bf16 %v226_v56, %v225_v55 }
  0x46   :  { %513 = vmatmul.mubr.f32.vlgmr.msra.gmra.mrb[2].mxu1 %v20_v22  ;;  %1106 = vmatprep.subr.bf16.mxu0 %v1105_v24  ;;  %v1125_v22 = vpack.c.bf16 %v184_v17, %v183_v16  ;;  %v168_v24 = vld [vmem:[%s1850_s1 + $0x468] sm:$0xff] }
  0x47   :  { %1136 = vmatpush3.bf16.msra.mxu1 %v1135_v23  ;;  %652 = vmatprep.mubr.f32.mxu1 %v25_v36  ;;  %v167_v23 = vld [vmem:[%s1850_s1 + $0x460] sm:$0xff]  ;;  %v170_v36 = vld [vmem:[%s1850_s1 + $0x478] sm:$0xff] }
  0x48   :  { %1138 = vmatprep.subr.bf16.mxu1 %v1137_v28  ;;  %v185_v28 = vld [vmem:[%s1850_s1 + $0x4f0] sm:$0xff]  ;;  %v1127_v32 = vpack.c.bf16 %v168_v24, %v167_v23 }
  0x49   :  { %1108 = vmatpush3.bf16.msra.mxu0 %v1107_v35  ;;  %v1129_v34 = vpack.c.bf16 %v186_v29, %v185_v28  ;;  %v169_v35 = vld [vmem:[%s1850_s1 + $0x470] sm:$0xff] }
  0x4a   :  { %1110 = vmatprep.subr.bf16.mxu0 %v1109_v38  ;;  %v201_v38 = vld [vmem:[%s1850_s1 + $0x570] sm:$0xff]  ;;  %v1131_v40 = vpack.c.bf16 %v170_v36, %v169_v35 }
  0x4b   :  { %1140 = vmatpush3.bf16.msra.mxu1 %v1139_v37  ;;  %v1161_v37 = vpack.c.bf16 %v218_v31, %v217_v30  ;;  %v1163_v41 = vpack.c.bf16 %v202_v39, %v201_v38 }
  0x4c   :  { %1142 = vmatprep.subr.bf16.mxu1 %v1141_v42  ;;  %v219_v42 = vld [vmem:[%s1850_s1 + $0x600] sm:$0xff] }
  0x4d   :  { %1112 = vmatpush3.bf16.msra.mxu0 %v1111_v48  ;;  %v1166_v45 = vpack.c.bf16 %v220_v43, %v219_v42  ;;  %v221_v48 = vld [vmem:[%s1850_s1 + $0x610] sm:$0xff] }
  0x4e   :  { %1114 = vmatprep.subr.bf16.mxu0 %v1113_v50 }
  0x4f   :  { %1144 = vmatpush3.bf16.msra.mxu1 %v1143_v49  ;;  %v222_v49 = vld [vmem:[%s1850_s1 + $0x618] sm:$0xff] }
  0x50   :  { %1146 = vmatprep.subr.bf16.mxu1 %v1145_v54  ;;  %v1169_v50 = vpack.c.bf16 %v222_v49, %v221_v48  ;;  %v1172_v54 = vpack.c.bf16 %v224_v52, %v223_v51 }
  0x51   :  { %1116 = vmatpush3.bf16.msra.mxu0 %v1115_v60  ;;  %v733_v60 = vld [vmem:[%s1852_s2] ss:$0 sm:$0xff] }
  0x52   :  { %1118 = vmatprep.subr.bf16.mxu0 %v1117_v62 }
  0x53   :  { %1148 = vmatpush3.bf16.msra.mxu1 %v1147_v61 }
  0x54   :  { %1150 = vmatprep.subr.bf16.mxu1 %v1149_v2 }
  0x55   :  { %1120 = vmatpush3.bf16.msra.mxu0 %v1119_v8 }
  0x56   :  { %1122 = vmatprep.subr.bf16.mxu0 %v1121_v10 }
  0x57   :  { %1152 = vmatpush3.bf16.msra.mxu1 %v1151_v9 }
  0x58   :  { %1154 = vmatprep.subr.bf16.mxu1 %v1153_v14 }
  0x59   :  { %1124 = vmatpush3.bf16.msra.mxu0 %v1123_v20 }
  0x5a   :  { %1126 = vmatprep.subr.bf16.mxu0 %v1125_v22 }
  0x5b   :  { %1156 = vmatpush3.bf16.msra.mxu1 %v1155_v21 }
  0x5c   :  { %1158 = vmatprep.subr.bf16.mxu1 %v1157_v26 }
  0x5d   :  { %1128 = vmatpush3.bf16.msra.mxu0 %v1127_v32 }
  0x5e   :  { %1130 = vmatprep.subr.bf16.mxu0 %v1129_v34 }
  0x5f   :  { %1160 = vmatpush3.bf16.msra.mxu1 %v1159_v33 }
  0x60   :  { %1162 = vmatprep.subr.bf16.mxu1 %v1161_v37 }
  0x61   :  { %1132 = vmatpush3.bf16.msra.mxu0 %v1131_v40 }
  0x62   :  { %1165 = vmatprep.subr.bf16.mxu0 %v1180_v46 }
  0x63   :  { %1164 = vmatpush3.bf16.msra.mxu1 %v1163_v41 }
  0x64   :  { %583 = vmatmul.mubr.f32.vlgmr.msra.gmra.mrb[4].mxu0 %v22_v44 }
  0x65   :  { %1167 = vmatpush3.bf16.msra.mxu0 %v1166_v45  ;;  %970 = vmatprep.mubr.msk.f32.mxu0 %vm1181_vm0, %v1182_v53 }
  0x66   :  { %653 = vmatmul.mubr.f32.vlgmr.msra.gmra.mrb[4].mxu1 %v24_v47  ;;  %1168 = vmatprep.subr.bf16.mxu0 %v1180_v46 }
  0x69   :  { %1170 = vmatpush3.bf16.msra.mxu0 %v1169_v50 }
  0x6a   :  { %1171 = vmatprep.subr.bf16.mxu0 %v1180_v46 }
  0x6d   :  { %1173 = vmatpush3.bf16.msra.mxu0 %v1172_v54 }
  0x6e   :  { %1174 = vmatprep.subr.bf16.mxu0 %v1180_v46 }
  0x71   :  { %1176 = vmatpush3.bf16.msra.mxu0 %v1175_v57 }
  0x74   :  { %971 = vmatmul.mubr.msk.f32.vlgmr.msra.gmra.mrb[6].mxu0 %vm234_vm1, %v26_v58 }
  0xf7   :  { %v767_v59 = vpop.f32.mrb[0].mxu0 }
  0xf8   :  { %v768_v61 = vpop.f32.mrb[1].mxu0 }
  0xf9   :  { %v802_v62 = vpop.f32.mrb[0].mxu1  ;;  %v769_v63 = vadd.f32 %v768_v61, %v767_v59 }
  0xfa   :  { %v803_v0 = vpop.f32.mrb[1].mxu1 }
  0xfb   :  { %v804_v1 = vadd.f32 %v803_v0, %v802_v62  ;;  %v305_v2 = vadd.f32 %v769_v63, %v733_v60 }
  0xfd   :  { %v375_v3 = vadd.f32 %v804_v1, %v305_v2 }
 0x117   :  { %v837_v4 = vpop.f32.mrb[2].mxu0 }
 0x118   :  { %v838_v5 = vpop.f32.mrb[3].mxu0 }
 0x119   :  { %v872_v6 = vpop.f32.mrb[2].mxu1  ;;  %v839_v7 = vadd.f32 %v838_v5, %v837_v4 }
 0x11a   :  { %v873_v8 = vpop.f32.mrb[3].mxu1 }
 0x11b   :  { %v874_v9 = vadd.f32 %v873_v8, %v872_v6  ;;  %v445_v10 = vadd.f32 %v839_v7, %v375_v3 }
 0x11d   :  { %v515_v11 = vadd.f32 %v874_v9, %v445_v10 }
 0x137   :  { %v907_v12 = vpop.f32.mrb[4].mxu0 }
 0x138   :  { %v908_v13 = vpop.f32.mrb[5].mxu0 }
 0x139   :  { %v942_v14 = vpop.f32.mrb[4].mxu1  ;;  %v909_v15 = vadd.f32 %v908_v13, %v907_v12 }
 0x13a   :  { %v943_v16 = vpop.f32.mrb[5].mxu1 }
 0x13b   :  { %v944_v17 = vadd.f32 %v943_v16, %v942_v14  ;;  %v585_v18 = vadd.f32 %v909_v15, %v515_v11 }
 0x13d   :  { %v655_v19 = vadd.f32 %v944_v17, %v585_v18 }
 0x147   :  { %v724_v20 = vpop.f32.mrb[6].mxu0 }
 0x148   :  { %v725_v21 = vadd.f32 %v724_v20, %v655_v19  ;;  %v972_v22 = vpop.f32.mrb[7].mxu0 }
 0x14a   :  { %728 = vst.msk [vmem:[%s1853_s3] sm:$0xff] %vm234_vm1, %v725_v21 }

// kernel: _lambda_.9
= control target key start
LH: loop header
LB: loop body
LE: loop exit
PB: predicated region body
PF: predicated region fallthrough
CT: control target
= control target key end

     0   :  { %s815_s18 = smov 0   ;;  %s895_s0 = inlined_call_operand.vmem [shape: f32[4,2,64], index: 0, kind: input, shape index: {}]   ;;  %s896_s1 = inlined_call_operand.vmem [shape: f32[2,64,96], index: 1, kind: input, shape index: {}]   ;;  %s897_s2 = inlined_call_operand.vmem [shape: f32[2,32,96], index: 2, kind: input, shape index: {}]   ;;  %s898_s3 = inlined_call_operand.vmem [shape: f32[2,1,96], index: 3, kind: input, shape index: {}]   ;;  %s899_s4 = inlined_call_operand.vmem [shape: f32[2,1,96], index: 4, kind: input, shape index: {}]   ;;  %s900_s5 = inlined_call_operand.vmem [shape: f32[2,4,2,32], index: 5, kind: output, shape index: {}]  }
   0x1 LB: > { %s821_s19 = sadd.s32 4294967295, %s769_s18   ;;  %p647_p0 = scmp.ge.s32.totalorder %s769_s18, 1  ;;  %s769_s18 = sphi %s815_s18, %s15_s18  }
   0x2   : > { %p213_p1 = scmp.lt.s32.totalorder %s769_s18, 3 }
   0x4   : > { %p214_p2 = pnand %p647_p0, %p213_p1 }
   0x5   : > { %p252_p3 = scmp.lt.s32.totalorder (!%p214_p2), %s821_s19, 1  ;;  %vm413_vm0 = vcmask (!%p214_p2), 254976   ;;  %v775_v0 = vmov (!%p214_p2), 0.0|0.0   ;;  %vm776_vm1 = vmmov (!%p214_p2), 0   ;;  %v777_v1 = vmov (!%p214_p2), 0.0  }
   0x6   : > { %217 = sbr.rel (%p214_p2) target bundleno = 964 (0x3c4), region = 40  ;;  %709 = vmatprep.subr.bf16.mxu0 (!%p214_p2), %v775_v0  ;;  %695 = vmatprep.mubr.msk.f32.mxu0 (!%p214_p2), %vm776_vm1, %v777_v1  ;;  %414 = vst.msk [vmem:[#allocation3] sm:$0x3] (!%p214_p2), %vm413_vm0, %v777_v1  ;;  %v778_v2 = vmov (!%p214_p2), 1983009808   ;;  %v301_v4 = vlaneseq (!%p214_p2)  ;;  %vm313_vm2 = vcmask (!%p214_p2), 523264  }
   0x7   : > { %v299_v3 = vunpack.c.l.s4 (!%p214_p2), %v778_v2  ;;  %v273_v10 = vld [vmem:[%s895_s0] sm:$0x3] (!%p214_p2)  ;;  %v274_v14 = vld [vmem:[%s895_s0 + $0x2] sm:$0x3] (!%p214_p2)  ;;  %v275_v15 = vld [vmem:[%s895_s0 + $0x4] sm:$0x3] (!%p214_p2) }
   0x8   : > { %v302_v12 = vshrl.u32 (!%p214_p2), %v301_v4, 7  ;;  %v276_v16 = vld [vmem:[%s895_s0 + $0x6] sm:$0x3] (!%p214_p2)  ;;  %v296_v19 = vcombine.low (!%p214_p2), %v273_v10, %v274_v14  ;;  %vm408_vm3 = vcmask (!%p214_p2), 779264  }
   0x9   : > { %v300_v11 = vunpack.c.0.s8 (!%p214_p2), %v299_v3  ;;  %v297_v20 = vcombine.low (!%p214_p2), %v275_v15, %v276_v16 }
   0xb   : > { %v303_v21 = vsub.s32 (!%p214_p2), %v300_v11, %v302_v12 }
   0xd   : > { %s828_s20 = scalar_select %p252_p3, %s821_s19, 1  ;;  %v304_v25 = vrot.slane %v296_v19, %v303_v21  ;;  %v311_v26 = vrot.slane %v297_v20, %v303_v21 }
   0xf   : > { %s662_s21 = sshll.u32 %s828_s20, 6  ;;  %s663_s22 = sshll.u32 %s828_s20, 5  ;;  %v312_v28 = vcombine.low %v304_v25, %v311_v26 }
  0x10   : > { %s256_s25 = scalar_lea.vmem %s896_s1, %s662_s21  ;;  %s838_s28 = scalar_lea.vmem %s897_s2, %s663_s22 }
  0x11   : > { %s267_s6 = scalar_lea.vmem %s899_s4, %s828_s20  ;;  %s664_s7 = sshll.u32 %s828_s20, 3  ;;  %v277_v5 = vld [vmem:[%s256_s25] sm:$0xff]  ;;  %v278_v6 = vld [vmem:[%s256_s25 + $0x8] sm:$0xff]  ;;  %v279_v7 = vld [vmem:[%s256_s25 + $0x10] sm:$0xff] }
  0x12   : > { %s848_s10 = scalar_lea.vmem %s900_s5, %s664_s7  ;;  %v710_v8 = vpack.c.bf16 %v278_v6, %v277_v5  ;;  %v280_v9 = vld [vmem:[%s256_s25 + $0x18] sm:$0xff]  ;;  %v281_v17 = vld [vmem:[%s256_s25 + $0x20] sm:$0xff]  ;;  %v282_v18 = vld [vmem:[%s256_s25 + $0x28] sm:$0xff]  ;;  %s264_s24 = scalar_lea.vmem %s898_s3, %s828_s20 }
  0x13   : > { %v713_v13 = vpack.c.bf16 %v280_v9, %v279_v7  ;;  %v716_v22 = vpack.c.bf16 %v282_v18, %v281_v17  ;;  %v283_v23 = vld [vmem:[%s256_s25 + $0x30] sm:$0xff]  ;;  %v284_v24 = vld [vmem:[%s256_s25 + $0x38] sm:$0xff]  ;;  %v654_v29 = vld [vmem:[%s264_s24] ss:$0 sm:$0xff]  ;;  %s866_s25 = smov 0  }
  0x14   : > { %711 = vmatpush3.bf16.msra.mxu0 %v710_v8  ;;  %v719_v27 = vpack.c.bf16 %v284_v24, %v283_v23 }
  0x15   : > { %712 = vmatprep.subr.bf16.mxu0 %v775_v0 }
  0x18   : > { %714 = vmatpush3.bf16.msra.mxu0 %v713_v13 }
  0x19   : > { %715 = vmatprep.subr.bf16.mxu0 %v775_v0 }
  0x1c   : > { %717 = vmatpush3.bf16.msra.mxu0 %v716_v22 }
  0x1d   : > { %718 = vmatprep.subr.bf16.mxu0 %v775_v0 }
  0x20   : > { %720 = vmatpush3.bf16.msra.mxu0 %v719_v27 }
  0x23   : > { %696 = vmatmul.mubr.msk.f32.vlgmr.msra.gmra.mrb[0].mxu0 %vm313_vm2, %v312_v28 }
  0xf6   : > { %v382_v30 = vpop.f32.mrb[0].mxu0 }
  0xf7   : > { %v383_v31 = vadd.f32 %v654_v29, %v382_v30  ;;  %v697_v32 = vpop.f32.mrb[1].mxu0 }
  0xf9   : > { %v387_v33 = vcombine.high %v383_v31, %v383_v31  ;;  %v394_v34 = vrot.slane %v383_v31, %v303_v21 }
  0xfb   : > { %v401_v35 = vrot.slane %v387_v33, %v303_v21  ;;  %v402_v36 = vcombine.high %v394_v34, %v394_v34  ;;  %409 = vst.msk [vmem:[#allocation2] sm:$0x3] %vm408_vm3, %v394_v34 }
  0xfd   : > { %v403_v37 = vcombine.high %v401_v35, %v401_v35  ;;  %410 = vst.msk [vmem:[#allocation2 + $0x2] sm:$0x3] %vm408_vm3, %v402_v36  ;;  %411 = vst.msk [vmem:[#allocation2 + $0x4] sm:$0x3] %vm408_vm3, %v401_v35 }
  0xff   : > { %412 = vst.msk [vmem:[#allocation2 + $0x6] sm:$0x3] %vm408_vm3, %v403_v37 }
 0x100 LB: >> { %v428_v38 = vld [vmem:[%s838_s28] sm:$0xff]  ;;  %v429_v39 = vld [vmem:[%s838_s28 + $0x8] sm:$0xff]  ;;  %v430_v40 = vld [vmem:[%s838_s28 + $0x10] sm:$0xff]  ;;  %v779_v41 = vmov 0.0|0.0   ;;  %vm780_vm4 = vmmov 0   ;;  %v781_v44 = vmov 0.0   ;;  %s773_s25 = sphi %s866_s25, %s420_s25  }
 0x101   : >> { %721 = vmatprep.subr.bf16.mxu0 %v779_v41  ;;  %v722_v42 = vpack.c.bf16 %v429_v39, %v428_v38  ;;  %v431_v43 = vld [vmem:[%s838_s28 + $0x18] sm:$0xff]  ;;  %706 = vmatprep.mubr.msk.f32.mxu0 %vm780_vm4, %v781_v44  ;;  %v427_v46 = vld [vmem:[#allocation3] sm:$0x3]  ;;  %vm439_vm5 = vcmask 261120   ;;  %v657_v47 = vld [vmem:[%s267_s6] ss:$0 sm:$0xff] }
 0x102   : >> { %v725_v45 = vpack.c.bf16 %v431_v43, %v430_v40  ;;  %s782_s29 = smov 64   ;;  %p421_p4 = scmp.eq.s32.totalorder %s821_s19, 0 }
 0x103   : >> { %723 = vmatpush3.bf16.msra.mxu0 %v722_v42  ;;  %s422_s30 = ssub.s32 3, %s773_s25  ;;  %s783_s11 = smov 96  }
 0x104   : >> { %724 = vmatprep.subr.bf16.mxu0 %v779_v41  ;;  %s883_s7 = scalar_select %p421_p4, %s773_s25, %s422_s30 }
 0x105   : >> { %s784_s12 = smov 32   ;;  %s420_s25 = sadd.s32 1, %s773_s25  }
 0x106   : >> { %s656_s8 = sshll.u32 %s883_s7, 1  ;;  %p417_p5 = scmp.ge.s32.totalorder %s420_s25, 4  }
 0x107   : >> { %726 = vmatpush3.bf16.msra.mxu0 %v725_v45  ;;  %s425_s9 = scalar_lea.vmem [#allocation2], %s656_s8  ;;  %s547_s13 = scalar_lea.vmem %s848_s10, %s656_s8 }
 0x108   : >> { %v426_v51 = vld [vmem:[%s425_s9] sm:$0x3] }
 0x10a   : >> { %707 = vmatmul.mubr.msk.f32.vlgmr.msra.gmra.mrb[0].mxu0 %vm439_vm5, %v427_v46 }
 0x1dd   : >> { %v509_v48 = vpop.f32.mrb[0].mxu0 }
 0x1de   : >> { %v510_v49 = vadd.f32 %v657_v47, %v509_v48  ;;  %v708_v50 = vpop.f32.mrb[1].mxu0 }
 0x1e0   : >> { %521 = vrot.lane.b32.xlu0 %v510_v49, %s782_s29  ;;  %v513_v52 = vadd.f32 %v510_v49, %v426_v51 }
 0x1e2   : >> { %v659_v53 = vmul.f32 -1.442695, %v513_v52 }
 0x1e4   : >> { %753 = vpow2.f32 %v659_v53 }
 0x1ee   : >> { %v754_v54 = vpop.eup %753 }
 0x1ef   : >> { %v517_v55 = vadd.f32 1.0, %v754_v54 }
 0x1f1   : >> { %755 = vrcp.f32 %v517_v55 }
 0x1fb   : >> { %v756_v56 = vpop.eup %755 }
 0x1fc   : >> { %v531_v63 = vsub.f32 1.0, %v756_v56 }
 0x252   : >> { %v522_v57 = vpop.permute.xlu0 %521 }
 0x253   : >> { %v524_v58 = vmul.f32 %v756_v56, %v522_v57 }
 0x255   : >> { %526 = vrot.lane.b32.xlu0 %v524_v58, %s782_s29 }
 0x2c7   : >> { %v527_v59 = vpop.permute.xlu0 %526 }
 0x2c8   : >> { %v529_v60 = vadd.f32 %v527_v59, %v426_v51 }
 0x2ca   : >> { %757 = vtanh.f32 %v529_v60 }
 0x2d4   : >> { %v758_v61 = vpop.eup %757 }
 0x2d5   : >> { %533 = vrot.lane.b32.xlu1 %v758_v61, %s783_s11 }
 0x2d9   : >> { %537 = vrot.lane.b32.xlu1 %v427_v46, %s784_s12 }
 0x347   : >> { %v534_v62 = vpop.permute.xlu1 %533 }
 0x348   : >> { %v536_v1 = vmul.f32 %v534_v62, %v531_v63 }
 0x34b   : >> { %v538_v0 = vpop.permute.xlu1 %537 }
 0x34c   : >> { %v540_v2 = vmul.f32 %v756_v56, %v538_v0 }
 0x34e   : >> { %v541_v3 = vadd.f32 %v540_v2, %v536_v1 }
 0x350   : >> { %543 = vrot.lane.b32.xlu0 %v541_v3, %s783_s11 }
 0x3bd   : > { %419 = sbr.rel (!%p417_p5) target bundleno = 256 (0x100), region = 88 }
 0x3c2   : >> { %v544_v4 = vpop.permute.xlu0 %543 }
 0x3c3   : >> { %546 = vst.msk [vmem:[#allocation3] sm:$0x3] %vm413_vm0, %v544_v4  ;;  %548 = vst.msk [vmem:[%s547_s13] sm:$0x3] %vm413_vm0, %v544_v4 }
 0x3c4 PF: > { %s15_s18 = sadd.s32 1, %s769_s18  }
 0x3c5   : > { %p12_p6 = scmp.ge.s32.totalorder %s15_s18, 4  }
 0x3c7   :  { %14 = sbr.rel (!%p12_p6) target bundleno = 1 (0x1), region = 99 }

// kernel: _lambda_.11
= control target key start
LH: loop header
LB: loop body
LE: loop exit
PB: predicated region body
PF: predicated region fallthrough
CT: control target
= control target key end

     0   :  { %v190_v3 = vmov 0.0|0.0   ;;  %vm191_vm0 = vmmov 0   ;;  %v192_v6 = vmov 0.0   ;;  %s256_s0 = inlined_call_operand.vmem [shape: f32[8,64], index: 0, kind: input, shape index: {}]   ;;  %s257_s1 = inlined_call_operand.vmem [shape: f32[64,128], index: 1, kind: input, shape index: {}]   ;;  %s258_s2 = inlined_call_operand.vmem [shape: f32[1,128], index: 2, kind: input, shape index: {}]   ;;  %s259_s3 = inlined_call_operand.hbm [shape: f32[8,128], index: 3, kind: output, shape index: {}]  }
   0x1   :  { %v16_v0 = vld [vmem:[%s257_s1] sm:$0xff]  ;;  %v17_v1 = vld [vmem:[%s257_s1 + $0x8] sm:$0xff]  ;;  %v18_v2 = vld [vmem:[%s257_s1 + $0x10] sm:$0xff]  ;;  %150 = vmatprep.subr.bf16.mxu0 %v190_v3  ;;  %147 = vmatprep.mubr.msk.f32.mxu0 %vm191_vm0, %v192_v6 }
   0x2   :  { %v151_v4 = vpack.c.bf16 %v17_v1, %v16_v0  ;;  %v19_v5 = vld [vmem:[%s257_s1 + $0x18] sm:$0xff] }
   0x3   :  { %v154_v7 = vpack.c.bf16 %v19_v5, %v18_v2 }
   0x4   :  { %152 = vmatpush3.bf16.msra.mxu0 %v151_v4 }
   0x5   :  { %8 = vsyncpa [#allocation3], 0  ;;  %153 = vmatprep.subr.bf16.mxu0 %v190_v3  ;;  %v20_v8 = vld [vmem:[%s257_s1 + $0x20] sm:$0xff]  ;;  %v21_v9 = vld [vmem:[%s257_s1 + $0x28] sm:$0xff]  ;;  %vm31_vm1 = vcmask 523264   ;;  %s193_s5 = smov [#allocation2]  }
   0x6   :  { %v157_v10 = vpack.c.bf16 %v21_v9, %v20_v8  ;;  %v22_v11 = vld [vmem:[%s257_s1 + $0x30] sm:$0xff]  ;;  %v23_v12 = vld [vmem:[%s257_s1 + $0x38] sm:$0xff]  ;;  %v15_v14 = vld [vmem:[%s256_s0] sm:$0xff]  ;;  %s112_s6 = sshll.u32 %s193_s5, 4  ;;  %s113_s6 = int_to_ptr.vmem [resolvable:$true] %s112_s6 }
   0x7   :  { %v160_v13 = vpack.c.bf16 %v23_v12, %v22_v11  ;;  %v120_v15 = vld [vmem:[%s258_s2] ss:$0 sm:$0xff]  ;;  %s166_s1 = scalar_lea.vmem %s113_s6, 128  ;;  %p171_p1 = scmp.lt.s32.totalorder %s113_s6, %s113_s6 }
   0x8   :  { %155 = vmatpush3.bf16.msra.mxu0 %v154_v7  ;;  %p167_p0 = scmp.ne.s32.totalorder %s113_s6, %s166_s1  ;;  %p172_p2 = scmp.lt.s32.totalorder %s166_s1, %s166_s1 }
   0x9   :  { %156 = vmatprep.subr.bf16.mxu0 %v190_v3 }
   0xa   :  { %p173_p3 = por %p172_p2, %p171_p1 }
   0xc   :  { %158 = vmatpush3.bf16.msra.mxu0 %v157_v10  ;;  %p174_p4 = pnand %p173_p3, %p167_p0 }
   0xd   :  { %159 = vmatprep.subr.bf16.mxu0 %v190_v3 }
  0x10   :  { %161 = vmatpush3.bf16.msra.mxu0 %v160_v13 }
  0x13   :  { %148 = vmatmul.mubr.msk.f32.vlgmr.msra.gmra.mrb[0].mxu0 %vm31_vm1, %v15_v14 }
  0xe6   :  { %v101_v16 = vpop.f32.mrb[0].mxu0 }
  0xe7   :  { %v102_v17 = vadd.f32 %v120_v15, %v101_v16  ;;  %v149_v18 = vpop.f32.mrb[1].mxu0 }
  0xe9   :  { %105 = vst [vmem:[#allocation2] sm:$0xff] %v102_v17 }
  0xea   :  { %177 = shalt.err (!%p174_p4)
}
  0xeb   :  { %s178_s8 = scalar_lea.hbm %s259_s3, 128 }
  0xec   :  { %p179_p5 = scmp.ne.s32.totalorder %s259_s3, %s178_s8  ;;  %p182_p6 = scmp.lt.u32.totalorder %s178_s8, %s259_s3 }
  0xee   :  { %p184_p7 = pnand %p182_p6, %p179_p5 }
  0xf0   :  { %187 = shalt.err (!%p184_p7)
}
  0xf1   :  { %115 = dma.vmem_to_hbm [thread:$0]  %s113_s6, 128, %s259_s3, [#allocation3]  }
  0xf2   :  { %188 = dma.done.wait [#allocation3], 128  }
  0xf3   :  { %189 = vsyncadd [#allocation3], 4294967168 }
  0xf4   :  { %119 = vsyncpa [#allocation3], 1 }

// kernel: _lambda_.7
= control target key start
LH: loop header
LB: loop body
LE: loop exit
PB: predicated region body
PF: predicated region fallthrough
CT: control target
= control target key end

     0   :  { %s10755_s12 = smov 0   ;;  %s14402_s0 = inlined_call_operand.vmem [shape: bf16[2,52,10,128], index: 0, kind: input, shape index: {}]   ;;  %s14403_s1 = inlined_call_operand.vmem [shape: bf16[9,128,64], index: 1, kind: input, shape index: {}]   ;;  %s14404_s2 = inlined_call_operand.vmem [shape: f32[1,64], index: 2, kind: input, shape index: {}]   ;;  %s14405_s3 = inlined_call_operand.vmem [shape: f32[2,100,64], index: 3, kind: output, shape index: {}]  }
   0x1 LB: > { %s8102_s13 = sadd.s32 4294967295, %s10731_s12   ;;  %p8106_p0 = scmp.ge.s32.totalorder %s10731_s12, 1  ;;  %s10731_s12 = sphi %s10755_s12, %s13_s12  }
   0x2   : > { %p137_p1 = scmp.lt.s32.totalorder %s10731_s12, 3 }
   0x4   : > { %p138_p2 = pnand %p8106_p0, %p137_p1 }
   0x6   : > { %141 = sbr.rel (%p138_p2) target bundleno = 1180 (0x49c), region = 32 }
   0xd   : > { %v10456_v0 = vld [vmem:[%s14403_s1 + $0x40] sm:$0xff]   ;;  %v14406_v1 = vmov 0.0   ;;  %v10457_v2 = vld [vmem:[%s14403_s1 + $0x48] sm:$0xff]   ;;  %p161_p3 = scmp.lt.s32.totalorder %s8102_s13, 1  ;;  %vm10734_vm0 = vmmov 0   ;;  %v10458_v3 = vld [vmem:[%s14403_s1 + $0x50] sm:$0xff]  }
   0xe   : > { %9384 = vmatprep.subr.bf16.mxu0 %v14406_v1  ;;  %10428 = vmatprep.subr.bf16.mxu1 %v14406_v1  ;;  %v10459_v4 = vld [vmem:[%s14403_s1 + $0x58] sm:$0xff]   ;;  %vm288_vm1 = vsmask.f32 3328  ;;  %vm289_vm2 = vsmask.f32 7440  ;;  %v10460_v26 = vld [vmem:[%s14403_s1 + $0x60] sm:$0xff]  }
   0xf   : > { %9385 = vmatpush3.bf16.msra.mxu0 %v10456_v0  ;;  %10436 = vmatpush3.bf16.msra.mxu1 %v10456_v0  ;;  %s14719_s13 = smov (!%p161_p3, %s8102_s13), 1  ;;  %vm10823_vm3 = vmor %vm288_vm1, %vm289_vm2  ;;  %v10461_v36 = vld [vmem:[%s14403_s1 + $0x68] sm:$0xff]   ;;  %vm1970_vm4 = vcmask 1042432   ;;  %vm1971_vm5 = vcmask 1046532   ;;  %vm7943_vm7 = vcmask 523264   ;;  %vm8045_vm8 = vcmask 519168  }
  0x10   : > { %9386 = vmatprep.subr.bf16.mxu0 %v14406_v1  ;;  %10429 = vmatprep.subr.bf16.mxu1 %v14406_v1  ;;  %s10444_s20 = smul.u32 416, %s14719_s13  ;;  %vm11239_vm6 = vmor %vm1970_vm4, %vm1971_vm5 }
  0x11   : > { %9400 = vmatprep.mubr.msk.bf16.mxu0 %vm10734_vm0, %v14406_v1  ;;  %9452 = vmatprep.mubr.msk.bf16.mxu1 %vm10734_vm0, %v14406_v1  ;;  %s10445_s18 = smul.u32 104, %s14719_s13 }
  0x12   : > { %s10791_s25 = scalar_lea.vmem %s14402_s0, %s10444_s20 }
  0x13   : > { %9387 = vmatpush3.bf16.msra.mxu0 %v10457_v2  ;;  %10437 = vmatpush3.bf16.msra.mxu1 %v10457_v2  ;;  %v10794_v5 = vld [vmem:[%s10791_s25] sm:$0xf]  ;;  %v10797_v6 = vld [vmem:[%s10791_s25 + $0x8] sm:$0xf]  ;;  %v10800_v7 = vld [vmem:[%s10791_s25 + $0x4] sm:$0x1]  ;;  %s14263_s21 = scalar_lea.vmem %s14405_s3, %s10445_s18 }
  0x14   : > { %9388 = vmatprep.subr.bf16.mxu0 %v14406_v1  ;;  %10430 = vmatprep.subr.bf16.mxu1 %v14406_v1  ;;  %v239_v8 = vld [vmem:[%s10791_s25 + $0xc] sm:$0x1]  ;;  %v292_v9 = vshrl.u32 %v10794_v5, 16  ;;  %v295_v10 = vshll.u32 %v10794_v5, 16  ;;  %v301_v11 = vshll.u32 %v10800_v7, 16  ;;  %v306_v12 = vshrl.u32 %v10797_v6, 16 }
  0x15   : > { %v309_v13 = vshll.u32 %v10797_v6, 16  ;;  %v315_v14 = vshll.u32 %v239_v8, 16  ;;  %v198_v15 = vld [vmem:[%s10791_s25 + $0xd0] sm:$0xf]  ;;  %v199_v20 = vld [vmem:[%s10791_s25 + $0xd8] sm:$0xf]  ;;  %v8158_v25 = vcombine.low %v10794_v5, %v10797_v6 }
  0x16   : > { %v294_v16 = vrot.slane %v292_v9, 4  ;;  %v297_v17 = vrot.slane %v295_v10, 5  ;;  %v303_v18 = vrot.slane %v301_v11, 5  ;;  %v308_v19 = vrot.slane %v306_v12, 4  ;;  %v264_v23 = vld [vmem:[%s10791_s25 + $0xd4] sm:$0x1] }
  0x17   : > { %9389 = vmatpush3.bf16.msra.mxu0 %v10458_v3  ;;  %10438 = vmatpush3.bf16.msra.mxu1 %v10458_v3  ;;  %v311_v21 = vrot.slane %v309_v13, 5  ;;  %v317_v22 = vrot.slane %v315_v14, 5  ;;  %v265_v24 = vld [vmem:[%s10791_s25 + $0xdc] sm:$0x1]  ;;  %v656_v28 = vshrl.u32 %v198_v15, 16  ;;  %v659_v29 = vshll.u32 %v198_v15, 16 }
  0x18   : > { %9390 = vmatprep.subr.bf16.mxu0 %v14406_v1  ;;  %10431 = vmatprep.subr.bf16.mxu1 %v14406_v1  ;;  %v298_v27 = vor.u32 %v297_v17, %v294_v16  ;;  %v665_v30 = vshll.u32 %v264_v23, 16  ;;  %v670_v33 = vshrl.u32 %v199_v20, 16  ;;  %v673_v34 = vshll.u32 %v199_v20, 16  ;;  %v174_v44 = vld [vmem:[%s10791_s25 + $0x10] sm:$0xf] }
  0x19   : > { %v312_v32 = vor.u32 %v311_v21, %v308_v19  ;;  %v679_v35 = vshll.u32 %v265_v24, 16  ;;  %v658_v38 = vrot.slane %v656_v28, 4  ;;  %v661_v39 = vrot.slane %v659_v29, 5  ;;  %v175_v49 = vld [vmem:[%s10791_s25 + $0x18] sm:$0xf] }
  0x1a   : > { %v299_v37 = vrot.slane %v298_v27, 4  ;;  %v1975_v41 = vrot.slane %v10800_v7, 5  ;;  %v672_v42 = vrot.slane %v670_v33, 4  ;;  %v675_v43 = vrot.slane %v673_v34, 5  ;;  %v240_v50 = vld [vmem:[%s10791_s25 + $0x14] sm:$0x1] }
  0x1b   : > { %9391 = vmatpush3.bf16.msra.mxu0 %v10459_v4  ;;  %10439 = vmatpush3.bf16.msra.mxu1 %v10459_v4  ;;  %v313_v40 = vrot.slane %v312_v32, 4  ;;  %v662_v46 = vor.u32 %v661_v39, %v658_v38  ;;  %v667_v47 = vrot.slane %v665_v30, 5  ;;  %v681_v48 = vrot.slane %v679_v35, 5  ;;  %v241_v53 = vld [vmem:[%s10791_s25 + $0x1c] sm:$0x1]  ;;  %v10462_v4 = vld [vmem:[%s14403_s1 + $0x70] sm:$0xff]  }
  0x1c   : > { %9392 = vmatprep.subr.bf16.mxu0 %v14406_v1  ;;  %10432 = vmatprep.subr.bf16.mxu1 %v14406_v1  ;;  %v304_v45 = vsel %vm10823_vm3, %v299_v37, %v303_v18  ;;  %v676_v52 = vor.u32 %v675_v43, %v672_v42  ;;  %v320_v54 = vshrl.u32 %v174_v44, 16  ;;  %v323_v55 = vshll.u32 %v174_v44, 16  ;;  %v200_v56 = vld [vmem:[%s10791_s25 + $0xe0] sm:$0xf]  ;;  %v201_v61 = vld [vmem:[%s10791_s25 + $0xe8] sm:$0xf] }
  0x1d   : > { %v318_v51 = vsel %vm10823_vm3, %v313_v40, %v317_v22  ;;  %v663_v58 = vrot.slane %v662_v46, 4  ;;  %v329_v59 = vshll.u32 %v240_v50, 16  ;;  %v334_v60 = vshrl.u32 %v175_v49, 16  ;;  %v266_v3 = vld [vmem:[%s10791_s25 + $0xe4] sm:$0x1]  ;;  %v10463_v22 = vld [vmem:[%s14403_s1 + $0x78] sm:$0xff]  }
  0x1e   : > { %v10842_v57 = vcombine.low %v304_v45, %v318_v51  ;;  %v677_v62 = vrot.slane %v676_v52, 4  ;;  %v322_v63 = vrot.slane %v320_v54, 4  ;;  %v325_v0 = vrot.slane %v323_v55, 5  ;;  %v267_v15 = vld [vmem:[%s10791_s25 + $0xec] sm:$0x1]  ;;  %v10464_v40 = vld [vmem:[%s14403_s1 + $0x80] sm:$0xff]  }
  0x1f   : > { %9393 = vmatpush3.bf16.msra.mxu0 %v10460_v26  ;;  %10440 = vmatpush3.bf16.msra.mxu1 %v10460_v26  ;;  %v337_v2 = vshll.u32 %v175_v49, 16  ;;  %v668_v8 = vsel %vm10823_vm3, %v663_v58, %v667_v47  ;;  %v331_v9 = vrot.slane %v329_v59, 5  ;;  %v336_v10 = vrot.slane %v334_v60, 4  ;;  %v176_v21 = vld [vmem:[%s10791_s25 + $0x20] sm:$0xf] }
  0x20   : > { %9394 = vmatprep.subr.bf16.mxu0 %v14406_v1  ;;  %10433 = vmatprep.subr.bf16.mxu1 %v14406_v1  ;;  %v343_v11 = vshll.u32 %v241_v53, 16  ;;  %v682_v12 = vsel %vm10823_vm3, %v677_v62, %v681_v48  ;;  %v326_v13 = vor.u32 %v325_v0, %v322_v63  ;;  %v684_v16 = vshrl.u32 %v200_v56, 16  ;;  %v177_v28 = vld [vmem:[%s10791_s25 + $0x28] sm:$0xf]  ;;  %v242_v34 = vld [vmem:[%s10791_s25 + $0x24] sm:$0x1] }
  0x21   : > { %v339_v14 = vrot.slane %v337_v2, 5  ;;  %v8138_v17 = vcombine.low %v668_v8, %v682_v12  ;;  %v687_v19 = vshll.u32 %v200_v56, 16  ;;  %v693_v20 = vshll.u32 %v266_v3, 16  ;;  %v243_v38 = vld [vmem:[%s10791_s25 + $0x2c] sm:$0x1]  ;;  %v10465_v47 = vld [vmem:[%s14403_s1] sm:$0xff]  }
  0x22   : > { %v345_v18 = vrot.slane %v343_v11, 5  ;;  %v327_v23 = vrot.slane %v326_v13, 4  ;;  %v686_v26 = vrot.slane %v684_v16, 4  ;;  %v698_v27 = vshrl.u32 %v201_v61, 16  ;;  %v202_v46 = vld [vmem:[%s10791_s25 + $0xf0] sm:$0xf] }
  0x23   : > { %9395 = vmatpush3.bf16.msra.mxu0 %v10461_v36  ;;  %10441 = vmatpush3.bf16.msra.mxu1 %v10461_v36  ;;  %v340_v24 = vor.u32 %v339_v14, %v336_v10  ;;  %v689_v29 = vrot.slane %v687_v19, 5  ;;  %v695_v30 = vrot.slane %v693_v20, 5  ;;  %v701_v32 = vshll.u32 %v201_v61, 16  ;;  %v203_v52 = vld [vmem:[%s10791_s25 + $0xf8] sm:$0xf]  ;;  %v10466_v2 = vld [vmem:[%s14403_s1 + $0x88] sm:$0xff]  }
  0x24   : > { %9396 = vmatprep.subr.bf16.mxu0 %v14406_v1  ;;  %10434 = vmatprep.subr.bf16.mxu1 %v14406_v1  ;;  %v707_v33 = vshll.u32 %v267_v15, 16  ;;  %v332_v35 = vsel %vm10823_vm3, %v327_v23, %v331_v9  ;;  %v700_v37 = vrot.slane %v698_v27, 4  ;;  %v348_v39 = vshrl.u32 %v176_v21, 16  ;;  %v268_v58 = vld [vmem:[%s10791_s25 + $0xf4] sm:$0x1] }
  0x25   : > { %v341_v36 = vrot.slane %v340_v24, 4  ;;  %v690_v42 = vor.u32 %v689_v29, %v686_v26  ;;  %v703_v43 = vrot.slane %v701_v32, 5  ;;  %v351_v45 = vshll.u32 %v176_v21, 16  ;;  %v269_v10 = vld [vmem:[%s10791_s25 + $0xfc] sm:$0x1] }
  0x26   : > { %v709_v44 = vrot.slane %v707_v33, 5  ;;  %v350_v49 = vrot.slane %v348_v39, 4  ;;  %v357_v50 = vshll.u32 %v242_v34, 16  ;;  %v362_v51 = vshrl.u32 %v177_v28, 16  ;;  %v244_v23 = vld [vmem:[%s10791_s25 + $0x34] sm:$0x1] }
  0x27   : > { %9397 = vmatpush3.bf16.msra.mxu0 %v10462_v4  ;;  %10442 = vmatpush3.bf16.msra.mxu1 %v10462_v4  ;;  %v346_v48 = vsel %vm10823_vm3, %v341_v36, %v345_v18  ;;  %v691_v54 = vrot.slane %v690_v42, 4  ;;  %v704_v55 = vor.u32 %v703_v43, %v700_v37  ;;  %v353_v56 = vrot.slane %v351_v45, 5  ;;  %v245_v29 = vld [vmem:[%s10791_s25 + $0x3c] sm:$0x1]  ;;  %v270_v36 = vld [vmem:[%s10791_s25 + $0x104] sm:$0x1] }
  0x28   : > { %9398 = vmatprep.subr.bf16.mxu0 %v14406_v1  ;;  %10435 = vmatprep.subr.bf16.mxu1 %v14406_v1  ;;  %v10877_v53 = vcombine.low %v332_v35, %v346_v48  ;;  %v359_v59 = vrot.slane %v357_v50, 5  ;;  %v364_v60 = vrot.slane %v362_v51, 4  ;;  %v365_v61 = vshll.u32 %v177_v28, 16  ;;  %v204_v35 = vld [vmem:[%s10791_s25 + $0x100] sm:$0xf]  ;;  %v10468_v37 = vld [vmem:[%s14403_s1 + $0x90] sm:$0xff]  }
  0x29   : > { %v371_v62 = vshll.u32 %v243_v38, 16  ;;  %v696_v63 = vsel %vm10823_vm3, %v691_v54, %v695_v30  ;;  %v705_v0 = vrot.slane %v704_v55, 4  ;;  %v354_v3 = vor.u32 %v353_v56, %v350_v49  ;;  %v205_v43 = vld [vmem:[%s10791_s25 + $0x108] sm:$0xf]  ;;  %v10469_v48 = vld [vmem:[%s14403_s1 + $0x10] sm:$0xff]  }
  0x2a   : > { %v712_v4 = vshrl.u32 %v202_v46, 16  ;;  %v367_v8 = vrot.slane %v365_v61, 5  ;;  %v715_v11 = vshll.u32 %v202_v46, 16  ;;  %v721_v12 = vshll.u32 %v268_v58, 16  ;;  %v10471_v61 = vld [vmem:[%s14403_s1 + $0x18] sm:$0xff]  }
  0x2b   : > { %9399 = vmatpush3.bf16.msra.mxu0 %v10463_v22  ;;  %10443 = vmatpush3.bf16.msra.mxu1 %v10463_v22  ;;  %v373_v9 = vrot.slane %v371_v62, 5  ;;  %v710_v13 = vsel %vm10823_vm3, %v705_v0, %v709_v44  ;;  %v355_v14 = vrot.slane %v354_v3, 4  ;;  %v726_v16 = vshrl.u32 %v203_v52, 16  ;;  %v179_v22 = vld [vmem:[%s10791_s25 + $0x38] sm:$0xf] }
  0x2c   : > { %9616 = vmatprep.subr.bf16.mxu0 %v14406_v1  ;;  %9500 = vmatprep.subr.bf16.mxu1 %v14406_v1  ;;  %v714_v15 = vrot.slane %v712_v4, 4  ;;  %v8139_v18 = vcombine.low %v696_v63, %v710_v13  ;;  %v368_v19 = vor.u32 %v367_v8, %v364_v60  ;;  %v717_v20 = vrot.slane %v715_v11, 5  ;;  %v10470_v60 = vld [vmem:[%s14403_s1 + $0x98] sm:$0xff]   ;;  %v10606_v6 = vld [vmem:[%s10791_s25 + $0x24] sm:$0x1] }
  0x2d   : > { %v10899_v21 = vrot.slane %v721_v12, 5  ;;  %v360_v24 = vsel %vm10823_vm3, %v355_v14, %v359_v59  ;;  %v728_v26 = vrot.slane %v726_v16, 4  ;;  %v729_v27 = vshll.u32 %v203_v52, 16  ;;  %v271_v59 = vld [vmem:[%s10791_s25 + $0x10c] sm:$0x1] }
  0x2e   : > { %9401 = vmatmul.mubr.bf16.vlgmr.msra.gmra.mrb[0].mxu0 %v10842_v57  ;;  %9453 = vmatmul.mubr.bf16.vlgmr.msra.gmra.mrb[0].mxu1 %v8138_v17  ;;  %v10467_v57 = vld [vmem:[%s14403_s1 + $0x8] sm:$0xff]   ;;  %v178_v17 = vld [vmem:[%s10791_s25 + $0x30] sm:$0xf]  ;;  %v735_v28 = vshll.u32 %v269_v10, 16  ;;  %v369_v30 = vrot.slane %v368_v19, 4  ;;  %v718_v32 = vor.u32 %v717_v20, %v714_v15  ;;  %v390_v42 = vshrl.u32 %v179_v22, 16 }
  0x2f   : > { %9617 = vmatpush3.bf16.msra.mxu0 %v10464_v40  ;;  %9404 = vmatprep.mubr.msk.bf16.mxu0 %vm10734_vm0, %v14406_v1  ;;  %v376_v33 = vshrl.u32 %v178_v17, 16  ;;  %v379_v34 = vshll.u32 %v178_v17, 16  ;;  %v731_v38 = vrot.slane %v729_v27, 5  ;;  %v385_v40 = vshll.u32 %v244_v23, 16  ;;  %v181_v10 = vld [vmem:[%s10791_s25 + $0x48] sm:$0xf] }
  0x30   : > { %9456 = vmatprep.mubr.msk.bf16.mxu1 %vm10734_vm0, %v14406_v1  ;;  %9501 = vmatpush3.bf16.msra.mxu1 %v10465_v47  ;;  %v737_v39 = vrot.slane %v735_v28, 5  ;;  %v374_v44 = vsel %vm10823_vm3, %v369_v30, %v373_v9  ;;  %v719_v45 = vrot.slane %v718_v32, 4  ;;  %v392_v52 = vrot.slane %v390_v42, 4  ;;  %v246_v15 = vld [vmem:[%s10791_s25 + $0x44] sm:$0x1] }
  0x31   : > { %9618 = vmatprep.subr.bf16.mxu0 %v14406_v1  ;;  %9502 = vmatprep.subr.bf16.mxu1 %v14406_v1  ;;  %v378_v46 = vrot.slane %v376_v33, 4  ;;  %v381_v47 = vrot.slane %v379_v34, 5  ;;  %v8127_v49 = vcombine.low %v360_v24, %v374_v44  ;;  %v732_v50 = vor.u32 %v731_v38, %v728_v26  ;;  %v10472_v19 = vld [vmem:[%s14403_s1 + $0xa0] sm:$0xff]   ;;  %v247_v23 = vld [vmem:[%s10791_s25 + $0x4c] sm:$0x1] }
  0x32   : > { %v10920_v51 = vrot.slane %v385_v40, 5  ;;  %v724_v54 = vsel %vm10823_vm3, %v719_v45, %v10899_v21  ;;  %v393_v56 = vshll.u32 %v179_v22, 16  ;;  %v399_v58 = vshll.u32 %v245_v29, 16  ;;  %v10473_v26 = vld [vmem:[%s14403_s1 + $0x20] sm:$0xff]   ;;  %v206_v32 = vld [vmem:[%s10791_s25 + $0x110] sm:$0xf] }
  0x33   : > { %9619 = vmatpush3.bf16.msra.mxu0 %v10466_v2  ;;  %v382_v55 = vor.u32 %v381_v47, %v378_v46  ;;  %v740_v62 = vshrl.u32 %v204_v35, 16  ;;  %v743_v63 = vshll.u32 %v204_v35, 16  ;;  %v749_v0 = vshll.u32 %v270_v36, 16  ;;  %v180_v2 = vld [vmem:[%s10791_s25 + $0x40] sm:$0xf] }
  0x34   : > { %9503 = vmatpush3.bf16.msra.mxu1 %v10467_v57  ;;  %9620 = vmatprep.subr.bf16.mxu0 %v14406_v1  ;;  %v395_v4 = vrot.slane %v393_v56, 5  ;;  %v401_v8 = vrot.slane %v399_v58, 5  ;;  %v754_v9 = vshrl.u32 %v205_v43, 16  ;;  %v757_v21 = vshll.u32 %v205_v43, 16  ;;  %v272_v43 = vld [vmem:[%s10791_s25 + $0x114] sm:$0x1] }
  0x35   : > { %9504 = vmatprep.subr.bf16.mxu1 %v14406_v1  ;;  %v383_v3 = vrot.slane %v382_v55, 4  ;;  %v742_v12 = vrot.slane %v740_v62, 4  ;;  %v745_v13 = vrot.slane %v743_v63, 5  ;;  %v10942_v14 = vrot.slane %v749_v0, 5  ;;  %v182_v55 = vld [vmem:[%s10791_s25 + $0x50] sm:$0xf] }
  0x36   : > { %9405 = vmatmul.mubr.bf16.gmra.mrb[4].mxu0 %v10877_v53  ;;  %9457 = vmatmul.mubr.bf16.gmra.mrb[4].mxu1 %v8139_v18  ;;  %v733_v53 = vrot.slane %v732_v50, 4  ;;  %v396_v17 = vor.u32 %v395_v4, %v392_v52  ;;  %v756_v18 = vrot.slane %v754_v9, 4  ;;  %v763_v22 = vshll.u32 %v271_v59, 16  ;;  %v10475_v56 = vld [vmem:[%s14403_s1 + $0x28] sm:$0xff]   ;;  %v10476_v4 = vld [vmem:[%s14403_s1 + $0x30] sm:$0xff]  }
  0x37   : > { %9408 = vmatprep.mubr.msk.bf16.mxu0 %vm10734_vm0, %v14406_v1  ;;  %9460 = vmatprep.mubr.msk.bf16.mxu1 %vm10734_vm0, %v14406_v1  ;;  %v388_v57 = vsel %vm10823_vm3, %v383_v3, %v10920_v51  ;;  %v746_v20 = vor.u32 %v745_v13, %v742_v12  ;;  %v404_v24 = vshrl.u32 %v180_v2, 16  ;;  %v407_v28 = vshll.u32 %v180_v2, 16  ;;  %v273_v51 = vld [vmem:[%s10791_s25 + $0x11c] sm:$0x1]  ;;  %v248_v3 = vld [vmem:[%s10791_s25 + $0x54] sm:$0x1] }
  0x38   : > { %9621 = vmatpush3.bf16.msra.mxu0 %v10468_v37  ;;  %9505 = vmatpush3.bf16.msra.mxu1 %v10469_v48  ;;  %v738_v11 = vsel %vm10823_vm3, %v733_v53, %v737_v39  ;;  %v397_v27 = vrot.slane %v396_v17, 4  ;;  %v413_v29 = vshll.u32 %v246_v15, 16  ;;  %v418_v30 = vshrl.u32 %v181_v10, 16  ;;  %v207_v37 = vld [vmem:[%s10791_s25 + $0x118] sm:$0xf]  ;;  %v10474_v48 = vld [vmem:[%s14403_s1 + $0xa8] sm:$0xff]  }
  0x39   : > { %9622 = vmatprep.subr.bf16.mxu0 %v14406_v1  ;;  %9506 = vmatprep.subr.bf16.mxu1 %v14406_v1  ;;  %v8140_v16 = vcombine.low %v724_v54, %v738_v11  ;;  %v747_v33 = vrot.slane %v746_v20, 4  ;;  %v759_v34 = vrot.slane %v757_v21, 5  ;;  %v765_v35 = vrot.slane %v763_v22, 5  ;;  %v10982_v53 = vld [vmem:[%s10791_s25 + $0x58] sm:$0xf] }
  0x3a   : > { %v406_v36 = vrot.slane %v404_v24, 4  ;;  %v402_v38 = vsel %vm10823_vm3, %v397_v27, %v401_v8  ;;  %v409_v39 = vrot.slane %v407_v28, 5  ;;  %v10963_v40 = vrot.slane %v413_v29, 5 }
  0x3b   : > { %v420_v42 = vrot.slane %v418_v30, 4  ;;  %v8128_v44 = vcombine.low %v388_v57, %v402_v38  ;;  %v752_v45 = vsel %vm10823_vm3, %v747_v33, %v10942_v14  ;;  %v760_v46 = vor.u32 %v759_v34, %v756_v18  ;;  %v249_v18 = vld [vmem:[%s10791_s25 + $0x5c] sm:$0x1] }
  0x3c   : > { %9623 = vmatpush3.bf16.msra.mxu0 %v10470_v60  ;;  %9507 = vmatpush3.bf16.msra.mxu1 %v10471_v61  ;;  %v421_v47 = vshll.u32 %v181_v10, 16  ;;  %v427_v50 = vshll.u32 %v247_v23, 16  ;;  %v768_v52 = vshrl.u32 %v206_v32, 16  ;;  %v771_v54 = vshll.u32 %v206_v32, 16  ;;  %v274_v32 = vld [vmem:[%s10791_s25 + $0x124] sm:$0x1] }
  0x3d   : > { %9624 = vmatprep.subr.bf16.mxu0 %v14406_v1  ;;  %9508 = vmatprep.subr.bf16.mxu1 %v14406_v1  ;;  %v761_v58 = vrot.slane %v760_v46, 4  ;;  %v777_v60 = vshll.u32 %v272_v43, 16  ;;  %v782_v61 = vshrl.u32 %v207_v37, 16  ;;  %v785_v15 = vshll.u32 %v207_v37, 16  ;;  %v209_v37 = vld [vmem:[%s10791_s25 + $0x128] sm:$0xf] }
  0x3e   : > { %9409 = vmatmul.mubr.bf16.gmra.mrb[8].mxu0 %v8127_v49  ;;  %9461 = vmatmul.mubr.bf16.gmra.mrb[8].mxu1 %v8140_v16  ;;  %v410_v49 = vor.u32 %v409_v39, %v406_v36  ;;  %v423_v59 = vrot.slane %v421_v47, 5  ;;  %v429_v63 = vrot.slane %v427_v50, 5  ;;  %v770_v0 = vrot.slane %v768_v52, 4  ;;  %v10477_v16 = vld [vmem:[%s14403_s1 + $0xb0] sm:$0xff]   ;;  %v10478_v38 = vld [vmem:[%s14403_s1 + $0x38] sm:$0xff]  }
  0x3f   : > { %9412 = vmatprep.mubr.msk.bf16.mxu0 %vm10734_vm0, %v14406_v1  ;;  %9464 = vmatprep.mubr.msk.bf16.mxu1 %vm10734_vm0, %v14406_v1  ;;  %v773_v2 = vrot.slane %v771_v54, 5  ;;  %v766_v8 = vsel %vm10823_vm3, %v761_v58, %v765_v35  ;;  %v10992_v10 = vrot.slane %v777_v60, 5  ;;  %v784_v11 = vrot.slane %v782_v61, 4  ;;  %v10479_v39 = vld [vmem:[%s14403_s1 + $0xb8] sm:$0xff]   ;;  %v184_v46 = vld [vmem:[%s10791_s25 + $0x60] sm:$0xf] }
  0x40   : > { %9625 = vmatpush3.bf16.msra.mxu0 %v10472_v19  ;;  %9509 = vmatpush3.bf16.msra.mxu1 %v10473_v26  ;;  %v411_v62 = vrot.slane %v410_v49, 4  ;;  %v424_v9 = vor.u32 %v423_v59, %v420_v42  ;;  %v8141_v12 = vcombine.low %v752_v45, %v766_v8  ;;  %v791_v17 = vshll.u32 %v273_v51, 16  ;;  %v208_v26 = vld [vmem:[%s10791_s25 + $0x120] sm:$0xf]  ;;  %v275_v45 = vld [vmem:[%s10791_s25 + $0x12c] sm:$0x1] }
  0x41   : > { %9626 = vmatprep.subr.bf16.mxu0 %v14406_v1  ;;  %9510 = vmatprep.subr.bf16.mxu1 %v14406_v1  ;;  %v774_v14 = vor.u32 %v773_v2, %v770_v0  ;;  %v432_v19 = vshrl.u32 %v182_v55, 16  ;;  %v435_v20 = vshll.u32 %v182_v55, 16  ;;  %v787_v22 = vrot.slane %v785_v15, 5  ;;  %v185_v51 = vld [vmem:[%s10791_s25 + $0x68] sm:$0xf] }
  0x42   : > { %v416_v13 = vsel %vm10823_vm3, %v411_v62, %v10963_v40  ;;  %v425_v57 = vrot.slane %v424_v9, 4  ;;  %v441_v23 = vshll.u32 %v248_v3, 16  ;;  %v446_v24 = vshrl.u32 %v10982_v53, 16  ;;  %v250_v58 = vld [vmem:[%s10791_s25 + $0x64] sm:$0x1] }
  0x43   : > { %v775_v21 = vrot.slane %v774_v14, 4  ;;  %v793_v28 = vrot.slane %v791_v17, 5  ;;  %v434_v29 = vrot.slane %v432_v19, 4  ;;  %v437_v30 = vrot.slane %v435_v20, 5  ;;  %v251_v9 = vld [vmem:[%s10791_s25 + $0x6c] sm:$0x1] }
  0x44   : > { %9627 = vmatpush3.bf16.msra.mxu0 %v10474_v48  ;;  %9511 = vmatpush3.bf16.msra.mxu1 %v10475_v56  ;;  %v430_v27 = vsel %vm10823_vm3, %v425_v57, %v429_v63  ;;  %v788_v35 = vor.u32 %v787_v22, %v784_v11  ;;  %v443_v36 = vrot.slane %v441_v23, 5  ;;  %v448_v42 = vrot.slane %v446_v24, 4  ;;  %v210_v15 = vld [vmem:[%s10791_s25 + $0x130] sm:$0xf]  ;;  %v211_v19 = vld [vmem:[%s10791_s25 + $0x138] sm:$0xf] }
  0x45   : > { %9512 = vmatprep.subr.bf16.mxu1 %v14406_v1  ;;  %9628 = vmatprep.subr.bf16.mxu0 %v14406_v1  ;;  %v8129_v33 = vcombine.low %v416_v13, %v430_v27  ;;  %v780_v34 = vsel %vm10823_vm3, %v775_v21, %v10992_v10  ;;  %v438_v40 = vor.u32 %v437_v30, %v434_v29  ;;  %v449_v43 = vshll.u32 %v10982_v53, 16  ;;  %v276_v24 = vld [vmem:[%s10791_s25 + $0x134] sm:$0x1] }
  0x46   : > { %9413 = vmatmul.mubr.bf16.gmra.mrb[12].mxu0 %v8128_v44  ;;  %9465 = vmatmul.mubr.bf16.gmra.mrb[12].mxu1 %v8141_v12  ;;  %v455_v44 = vshll.u32 %v249_v18, 16  ;;  %v789_v47 = vrot.slane %v788_v35, 4  ;;  %v796_v48 = vshrl.u32 %v208_v26, 16  ;;  %v799_v49 = vshll.u32 %v208_v26, 16 }
  0x47   : > { %9416 = vmatprep.mubr.msk.bf16.mxu0 %vm10734_vm0, %v14406_v1  ;;  %9468 = vmatprep.mubr.msk.bf16.mxu1 %vm10734_vm0, %v14406_v1  ;;  %v805_v50 = vshll.u32 %v274_v32, 16  ;;  %v439_v52 = vrot.slane %v438_v40, 4  ;;  %v451_v54 = vrot.slane %v449_v43, 5  ;;  %v810_v56 = vshrl.u32 %v209_v37, 16 }
  0x48   : > { %9513 = vmatpush3.bf16.msra.mxu1 %v10476_v4  ;;  %9629 = vmatpush3.bf16.msra.mxu0 %v10477_v16  ;;  %v457_v55 = vrot.slane %v455_v44, 5  ;;  %v794_v59 = vsel %vm10823_vm3, %v789_v47, %v793_v28  ;;  %v798_v60 = vrot.slane %v796_v48, 4  ;;  %v801_v61 = vrot.slane %v799_v49, 5 }
  0x49   : > { %9514 = vmatprep.subr.bf16.mxu1 %v14406_v1  ;;  %9630 = vmatprep.subr.bf16.mxu0 %v14406_v1  ;;  %v807_v53 = vrot.slane %v805_v50, 5  ;;  %v8142_v62 = vcombine.low %v780_v34, %v794_v59  ;;  %v444_v63 = vsel %vm10823_vm3, %v439_v52, %v443_v36  ;;  %v452_v0 = vor.u32 %v451_v54, %v448_v42  ;;  %v187_v50 = vld [vmem:[%s10791_s25 + $0x78] sm:$0xf] }
  0x4a   : > { %v812_v2 = vrot.slane %v810_v56, 4  ;;  %v802_v3 = vor.u32 %v801_v61, %v798_v60  ;;  %v813_v4 = vshll.u32 %v209_v37, 16  ;;  %v819_v8 = vshll.u32 %v275_v45, 16  ;;  %v277_v37 = vld [vmem:[%s10791_s25 + $0x13c] sm:$0x1] }
  0x4b   : > { %v460_v10 = vshrl.u32 %v184_v46, 16  ;;  %v453_v11 = vrot.slane %v452_v0, 4  ;;  %v463_v12 = vshll.u32 %v184_v46, 16  ;;  %v469_v13 = vshll.u32 %v250_v58, 16  ;;  %v186_v45 = vld [vmem:[%s10791_s25 + $0x70] sm:$0xf] }
  0x4c   : > { %9515 = vmatpush3.bf16.msra.mxu1 %v10478_v38  ;;  %9631 = vmatpush3.bf16.msra.mxu0 %v10479_v39  ;;  %v474_v14 = vshrl.u32 %v185_v51, 16  ;;  %v803_v16 = vrot.slane %v802_v3, 4  ;;  %v815_v57 = vrot.slane %v813_v4, 5  ;;  %v821_v17 = vrot.slane %v819_v8, 5  ;;  %v253_v60 = vld [vmem:[%s10791_s25 + $0x7c] sm:$0x1] }
  0x4d   : > { %9732 = vmatprep.subr.bf16.mxu1 %v14406_v1  ;;  %9848 = vmatprep.subr.bf16.mxu0 %v14406_v1  ;;  %v462_v18 = vrot.slane %v460_v10, 4  ;;  %v458_v20 = vsel %vm10823_vm3, %v453_v11, %v457_v55  ;;  %v465_v21 = vrot.slane %v463_v12, 5  ;;  %v471_v22 = vrot.slane %v469_v13, 5  ;;  %v212_v3 = vld [vmem:[%s10791_s25 + $0x140] sm:$0xf] }
  0x4e   : > { %9417 = vmatmul.mubr.bf16.gmra.mrb[16].mxu0 %v8129_v33  ;;  %9469 = vmatmul.mubr.bf16.gmra.mrb[16].mxu1 %v8142_v62  ;;  %v476_v23 = vrot.slane %v474_v14, 4  ;;  %v8130_v26 = vcombine.low %v444_v63, %v458_v20  ;;  %v808_v27 = vsel %vm10823_vm3, %v803_v16, %v807_v53  ;;  %v816_v28 = vor.u32 %v815_v57, %v812_v2  ;;  %v278_v11 = vld [vmem:[%s10791_s25 + $0x144] sm:$0x1]  ;;  %v213_v16 = vld [vmem:[%s10791_s25 + $0x148] sm:$0xf] }
  0x4f   : > { %9420 = vmatprep.mubr.msk.bf16.mxu0 %vm10734_vm0, %v14406_v1  ;;  %9472 = vmatprep.mubr.msk.bf16.mxu1 %vm10734_vm0, %v14406_v1  ;;  %v477_v29 = vshll.u32 %v185_v51, 16  ;;  %v466_v30 = vor.u32 %v465_v21, %v462_v18  ;;  %v483_v32 = vshll.u32 %v251_v9, 16  ;;  %v824_v33 = vshrl.u32 %v210_v15, 16  ;;  %v252_v51 = vld [vmem:[%s10791_s25 + $0x74] sm:$0x1] }
  0x50   : > { %v827_v34 = vshll.u32 %v210_v15, 16  ;;  %v817_v35 = vrot.slane %v816_v28, 4  ;;  %v833_v38 = vshll.u32 %v276_v24, 16  ;;  %v838_v39 = vshrl.u32 %v211_v19, 16  ;;  %v279_v20 = vld [vmem:[%s10791_s25 + $0x14c] sm:$0x1] }
  0x51   : > { %v479_v36 = vrot.slane %v477_v29, 5  ;;  %v467_v40 = vrot.slane %v466_v30, 4  ;;  %v485_v42 = vrot.slane %v483_v32, 5  ;;  %v826_v43 = vrot.slane %v824_v33, 4  ;;  %v11069_v21 = vld [vmem:[%s10791_s25 + $0x80] sm:$0xf] }
  0x52   : > { %v829_v44 = vrot.slane %v827_v34, 5  ;;  %v822_v46 = vsel %vm10823_vm3, %v817_v35, %v821_v17  ;;  %v835_v48 = vrot.slane %v833_v38, 5  ;;  %v840_v49 = vrot.slane %v838_v39, 4 }
  0x53   : > { %v480_v47 = vor.u32 %v479_v36, %v476_v23  ;;  %v8143_v52 = vcombine.low %v808_v27, %v822_v46  ;;  %v472_v54 = vsel %vm10823_vm3, %v467_v40, %v471_v22  ;;  %v841_v56 = vshll.u32 %v211_v19, 16  ;;  %v11072_v27 = vld [vmem:[%s10791_s25 + $0x88] sm:$0xf]  ;;  %v11084_v46 = vld [vmem:[%s10791_s25 + $0x8c] sm:$0x1] }
  0x54   : > { %v830_v55 = vor.u32 %v829_v44, %v826_v43  ;;  %v847_v59 = vshll.u32 %v277_v37, 16  ;;  %v488_v61 = vshrl.u32 %v186_v45, 16  ;;  %v491_v53 = vshll.u32 %v186_v45, 16  ;;  %v11079_v37 = vld [vmem:[%s10791_s25 + $0x84] sm:$0x1] }
  0x55   : > { %v481_v58 = vrot.slane %v480_v47, 4  ;;  %v843_v63 = vrot.slane %v841_v56, 5  ;;  %v497_v0 = vshll.u32 %v252_v51, 16  ;;  %v502_v2 = vshrl.u32 %v187_v50, 16 }
  0x56   : > { %9421 = vmatmul.mubr.bf16.gmra.mrb[20].mxu0 %v8130_v26  ;;  %9473 = vmatmul.mubr.bf16.gmra.mrb[20].mxu1 %v8143_v52  ;;  %v831_v62 = vrot.slane %v830_v55, 4  ;;  %v849_v8 = vrot.slane %v847_v59, 5  ;;  %v490_v9 = vrot.slane %v488_v61, 4  ;;  %v493_v10 = vrot.slane %v491_v53, 5  ;;  %v214_v52 = vld [vmem:[%s10791_s25 + $0x150] sm:$0xf] }
  0x57   : > { %9424 = vmatprep.mubr.msk.bf16.mxu0 %vm10734_vm0, %v14406_v1  ;;  %9476 = vmatprep.mubr.msk.bf16.mxu1 %vm10734_vm0, %v14406_v1  ;;  %v486_v4 = vsel %vm10823_vm3, %v481_v58, %v485_v42  ;;  %v844_v14 = vor.u32 %v843_v63, %v840_v49  ;;  %v499_v15 = vrot.slane %v497_v0, 5  ;;  %v504_v17 = vrot.slane %v502_v2, 4  ;;  %v215_v59 = vld [vmem:[%s10791_s25 + $0x158] sm:$0xf]  ;;  %v280_v63 = vld [vmem:[%s10791_s25 + $0x154] sm:$0x1] }
  0x58   : > { %v8131_v12 = vcombine.low %v472_v54, %v486_v4  ;;  %v836_v13 = vsel %vm10823_vm3, %v831_v62, %v835_v48  ;;  %v494_v57 = vor.u32 %v493_v10, %v490_v9  ;;  %v505_v18 = vshll.u32 %v187_v50, 16  ;;  %v281_v10 = vld [vmem:[%s10791_s25 + $0x15c] sm:$0x1] }
  0x59   : > { %v511_v19 = vshll.u32 %v253_v60, 16  ;;  %v845_v22 = vrot.slane %v844_v14, 4  ;;  %v852_v23 = vshrl.u32 %v212_v3, 16  ;;  %v855_v24 = vshll.u32 %v212_v3, 16 }
  0x5a   : > { %v861_v26 = vshll.u32 %v278_v11, 16  ;;  %v495_v28 = vrot.slane %v494_v57, 4  ;;  %v507_v29 = vrot.slane %v505_v18, 5  ;;  %v866_v32 = vshrl.u32 %v213_v16, 16 }
  0x5b   : > { %v513_v30 = vrot.slane %v511_v19, 5  ;;  %v850_v33 = vsel %vm10823_vm3, %v845_v22, %v849_v8  ;;  %v854_v34 = vrot.slane %v852_v23, 4  ;;  %v857_v35 = vrot.slane %v855_v24, 5 }
  0x5c   : > { %v863_v36 = vrot.slane %v861_v26, 5  ;;  %v8144_v38 = vcombine.low %v836_v13, %v850_v33  ;;  %v500_v39 = vsel %vm10823_vm3, %v495_v28, %v499_v15  ;;  %v508_v40 = vor.u32 %v507_v29, %v504_v17  ;;  %v11103_v13 = vld [vmem:[%s10791_s25 + $0x90] sm:$0xf]  ;;  %v11110_v28 = vld [vmem:[%s10791_s25 + $0x98] sm:$0xf] }
  0x5d   : > { %v868_v42 = vrot.slane %v866_v32, 4  ;;  %v858_v43 = vor.u32 %v857_v35, %v854_v34  ;;  %v869_v44 = vshll.u32 %v213_v16, 16  ;;  %v875_v45 = vshll.u32 %v279_v20, 16  ;;  %v11113_v29 = vld [vmem:[%s10791_s25 + $0x94] sm:$0x1] }
  0x5e   : > { %9425 = vmatmul.mubr.bf16.gmra.mrb[24].mxu0 %v8131_v12  ;;  %v516_v47 = vshrl.u32 %v11069_v21, 16  ;;  %9477 = vmatmul.mubr.bf16.gmra.mrb[24].mxu1 %v8144_v38  ;;  %v509_v48 = vrot.slane %v508_v40, 4  ;;  %v519_v49 = vshll.u32 %v11069_v21, 16  ;;  %v525_v50 = vshll.u32 %v11079_v37, 16  ;;  %v11118_v38 = vld [vmem:[%s10791_s25 + $0x9c] sm:$0x1] }
  0x5f   : > { %9428 = vmatprep.mubr.msk.bf16.mxu0 %vm10734_vm0, %v14406_v1  ;;  %v530_v51 = vshrl.u32 %v11072_v27, 16  ;;  %9480 = vmatprep.mubr.msk.bf16.mxu1 %vm10734_vm0, %v14406_v1  ;;  %v859_v54 = vrot.slane %v858_v43, 4  ;;  %v871_v55 = vrot.slane %v869_v44, 5  ;;  %v877_v56 = vrot.slane %v875_v45, 5 }
  0x60   : > { %v518_v58 = vrot.slane %v516_v47, 4  ;;  %v514_v60 = vsel %vm10823_vm3, %v509_v48, %v513_v30  ;;  %v521_v61 = vrot.slane %v519_v49, 5  ;;  %v527_v53 = vrot.slane %v525_v50, 5  ;;  %v216_v47 = vld [vmem:[%s10791_s25 + $0x160] sm:$0xf] }
  0x61   : > { %v532_v62 = vrot.slane %v530_v51, 4  ;;  %v8132_v0 = vcombine.low %v500_v39, %v514_v60  ;;  %v864_v2 = vsel %vm10823_vm3, %v859_v54, %v863_v36  ;;  %v872_v3 = vor.u32 %v871_v55, %v868_v42 }
  0x62   : > { %v533_v4 = vshll.u32 %v11072_v27, 16  ;;  %v522_v8 = vor.u32 %v521_v61, %v518_v58  ;;  %v539_v9 = vshll.u32 %v11084_v46, 16  ;;  %v880_v11 = vshrl.u32 %v214_v52, 16 }
  0x63   : > { %v883_v12 = vshll.u32 %v214_v52, 16  ;;  %v873_v14 = vrot.slane %v872_v3, 4  ;;  %v889_v16 = vshll.u32 %v280_v63, 16  ;;  %v894_v57 = vshrl.u32 %v215_v59, 16  ;;  %v282_v52 = vld [vmem:[%s10791_s25 + $0x164] sm:$0x1] }
  0x64   : > { %v535_v15 = vrot.slane %v533_v4, 5  ;;  %v523_v17 = vrot.slane %v522_v8, 4  ;;  %v541_v18 = vrot.slane %v539_v9, 5  ;;  %v882_v19 = vrot.slane %v880_v11, 4  ;;  %v283_v63 = vld [vmem:[%s10791_s25 + $0x16c] sm:$0x1] }
  0x65   : > { %v885_v20 = vrot.slane %v883_v12, 5  ;;  %v878_v22 = vsel %vm10823_vm3, %v873_v14, %v877_v56  ;;  %v891_v24 = vrot.slane %v889_v16, 5  ;;  %v896_v26 = vrot.slane %v894_v57, 4  ;;  %v11137_v8 = vld [vmem:[%s10791_s25 + $0xa0] sm:$0xf] }
  0x66   : > { %9429 = vmatmul.mubr.bf16.gmra.mrb[28].mxu0 %v8132_v0  ;;  %v536_v23 = vor.u32 %v535_v15, %v532_v62  ;;  %v8145_v30 = vcombine.low %v864_v2, %v878_v22  ;;  %v528_v32 = vsel %vm10823_vm3, %v523_v17, %v527_v53  ;;  %v897_v34 = vshll.u32 %v215_v59, 16  ;;  %v217_v59 = vld [vmem:[%s10791_s25 + $0x168] sm:$0xf] }
  0x67   : > { %9432 = vmatprep.mubr.msk.bf16.mxu0 %vm10734_vm0, %v14406_v1  ;;  %v886_v33 = vor.u32 %v885_v20, %v882_v19  ;;  %v903_v36 = vshll.u32 %v281_v10, 16  ;;  %v544_v39 = vshrl.u32 %v11103_v13, 16  ;;  %v547_v40 = vshll.u32 %v11103_v13, 16  ;;  %v11142_v14 = vld [vmem:[%s10791_s25 + $0xa8] sm:$0xf] }
  0x68   : > { %v537_v35 = vrot.slane %v536_v23, 4  ;;  %9481 = vmatmul.mubr.bf16.gmra.mrb[28].mxu1 %v8145_v30  ;;  %v899_v43 = vrot.slane %v897_v34, 5  ;;  %v553_v44 = vshll.u32 %v11113_v29, 16  ;;  %v558_v45 = vshrl.u32 %v11110_v28, 16  ;;  %v218_v34 = vld [vmem:[%s10791_s25 + $0x170] sm:$0xf] }
  0x69   : > { %v887_v42 = vrot.slane %v886_v33, 4  ;;  %9484 = vmatprep.mubr.msk.bf16.mxu1 %vm10734_vm0, %v14406_v1  ;;  %v905_v49 = vrot.slane %v903_v36, 5  ;;  %v546_v50 = vrot.slane %v544_v39, 4  ;;  %v549_v51 = vrot.slane %v547_v40, 5 }
  0x6a   : > { %v542_v48 = vsel %vm10823_vm3, %v537_v35, %v541_v18  ;;  %v900_v56 = vor.u32 %v899_v43, %v896_v26  ;;  %v555_v58 = vrot.slane %v553_v44, 5  ;;  %v560_v61 = vrot.slane %v558_v45, 4  ;;  %v11147_v18 = vld [vmem:[%s10791_s25 + $0xa4] sm:$0x1]  ;;  %v284_v43 = vld [vmem:[%s10791_s25 + $0x174] sm:$0x1] }
  0x6b   : > { %v8133_v54 = vcombine.low %v528_v32, %v542_v48  ;;  %v892_v55 = vsel %vm10823_vm3, %v887_v42, %v891_v24  ;;  %v550_v60 = vor.u32 %v549_v51, %v546_v50  ;;  %v561_v53 = vshll.u32 %v11110_v28, 16  ;;  %v11152_v32 = vld [vmem:[%s10791_s25 + $0xac] sm:$0x1]  ;;  %v219_v42 = vld [vmem:[%s10791_s25 + $0x178] sm:$0xf] }
  0x6c   : > { %v567_v62 = vshll.u32 %v11118_v38, 16  ;;  %v901_v0 = vrot.slane %v900_v56, 4  ;;  %v908_v2 = vshrl.u32 %v216_v47, 16  ;;  %v911_v3 = vshll.u32 %v216_v47, 16 }
  0x6d   : > { %v917_v4 = vshll.u32 %v282_v52, 16  ;;  %v551_v9 = vrot.slane %v550_v60, 4  ;;  %v563_v10 = vrot.slane %v561_v53, 5  ;;  %v922_v12 = vshrl.u32 %v217_v59, 16 }
  0x6e   : > { %9433 = vmatmul.mubr.bf16.gmra.mrb[32].mxu0 %v8133_v54  ;;  %v569_v11 = vrot.slane %v567_v62, 5  ;;  %v906_v15 = vsel %vm10823_vm3, %v901_v0, %v905_v49  ;;  %v910_v16 = vrot.slane %v908_v2, 4  ;;  %v913_v57 = vrot.slane %v911_v3, 5 }
  0x6f   : > { %9436 = vmatprep.mubr.msk.bf16.mxu0 %vm10734_vm0, %v14406_v1  ;;  %v919_v17 = vrot.slane %v917_v4, 5  ;;  %v8146_v19 = vcombine.low %v892_v55, %v906_v15  ;;  %v556_v20 = vsel %vm10823_vm3, %v551_v9, %v555_v58  ;;  %v564_v22 = vor.u32 %v563_v10, %v560_v61  ;;  %v285_v61 = vld [vmem:[%s10791_s25 + $0x17c] sm:$0x1]  ;;  %v11174_v9 = vld [vmem:[%s10791_s25 + $0xb8] sm:$0xf] }
  0x70   : > { %v924_v23 = vrot.slane %v922_v12, 4  ;;  %v914_v24 = vor.u32 %v913_v57, %v910_v16  ;;  %v925_v26 = vshll.u32 %v217_v59, 16  ;;  %v931_v30 = vshll.u32 %v283_v63, 16  ;;  %v11171_v63 = vld [vmem:[%s10791_s25 + $0xb0] sm:$0xf] }
  0x71   : > { %v572_v33 = vshrl.u32 %v11137_v8, 16  ;;  %9485 = vmatmul.mubr.bf16.gmra.mrb[32].mxu1 %v8146_v19  ;;  %v565_v35 = vrot.slane %v564_v22, 4  ;;  %v575_v36 = vshll.u32 %v11137_v8, 16  ;;  %v581_v39 = vshll.u32 %v11147_v18, 16  ;;  %v11179_v16 = vld [vmem:[%s10791_s25 + $0xb4] sm:$0x1] }
  0x72   : > { %v586_v40 = vshrl.u32 %v11142_v14, 16  ;;  %9488 = vmatprep.mubr.msk.bf16.mxu1 %vm10734_vm0, %v14406_v1  ;;  %v915_v44 = vrot.slane %v914_v24, 4  ;;  %v927_v45 = vrot.slane %v925_v26, 5  ;;  %v933_v47 = vrot.slane %v931_v30, 5  ;;  %v11186_v30 = vld [vmem:[%s10791_s25 + $0xbc] sm:$0x1] }
  0x73   : > { %v574_v48 = vrot.slane %v572_v33, 4  ;;  %v570_v49 = vsel %vm10823_vm3, %v565_v35, %v569_v11  ;;  %v577_v50 = vrot.slane %v575_v36, 5  ;;  %v583_v51 = vrot.slane %v581_v39, 5  ;;  %v220_v39 = vld [vmem:[%s10791_s25 + $0x180] sm:$0xf] }
  0x74   : > { %v588_v52 = vrot.slane %v586_v40, 4  ;;  %v8134_v54 = vcombine.low %v556_v20, %v570_v49  ;;  %v920_v55 = vsel %vm10823_vm3, %v915_v44, %v919_v17  ;;  %v928_v56 = vor.u32 %v927_v45, %v924_v23 }
  0x75   : > { %v589_v58 = vshll.u32 %v11142_v14, 16  ;;  %v578_v59 = vor.u32 %v577_v50, %v574_v48  ;;  %v595_v60 = vshll.u32 %v11152_v32, 16  ;;  %v936_v53 = vshrl.u32 %v218_v34, 16  ;;  %v286_v50 = vld [vmem:[%s10791_s25 + $0x184] sm:$0x1] }
  0x76   : > { %v939_v62 = vshll.u32 %v218_v34, 16  ;;  %9437 = vmatmul.mubr.bf16.gmra.mrb[36].mxu0 %v8134_v54  ;;  %v929_v0 = vrot.slane %v928_v56, 4  ;;  %v945_v3 = vshll.u32 %v284_v43, 16  ;;  %v950_v4 = vshrl.u32 %v219_v42, 16  ;;  %v221_v56 = vld [vmem:[%s10791_s25 + $0x188] sm:$0xf] }
  0x77   : > { %v591_v2 = vrot.slane %v589_v58, 5  ;;  %9440 = vmatprep.mubr.msk.bf16.mxu0 %vm10734_vm0, %v14406_v1  ;;  %v579_v10 = vrot.slane %v578_v59, 4  ;;  %v597_v11 = vrot.slane %v595_v60, 5  ;;  %v938_v12 = vrot.slane %v936_v53, 4  ;;  %v287_v53 = vld [vmem:[%s10791_s25 + $0x18c] sm:$0x1] }
  0x78   : > { %v941_v15 = vrot.slane %v939_v62, 5  ;;  %v934_v57 = vsel %vm10823_vm3, %v929_v0, %v933_v47  ;;  %v947_v19 = vrot.slane %v945_v3, 5  ;;  %v952_v20 = vrot.slane %v950_v4, 4  ;;  %v11205_v62 = vld [vmem:[%s10791_s25 + $0xc0] sm:$0xf] }
  0x79   : > { %v592_v17 = vor.u32 %v591_v2, %v588_v52  ;;  %v8147_v22 = vcombine.low %v920_v55, %v934_v57  ;;  %v584_v23 = vsel %vm10823_vm3, %v579_v10, %v583_v51  ;;  %v953_v26 = vshll.u32 %v219_v42, 16  ;;  %v11208_v10 = vld [vmem:[%s10791_s25 + $0xc8] sm:$0xf] }
  0x7a   : > { %v942_v24 = vor.u32 %v941_v15, %v938_v12  ;;  %v959_v34 = vshll.u32 %v285_v61, 16  ;;  %v600_v35 = vshrl.u32 %v11171_v63, 16  ;;  %v603_v36 = vshll.u32 %v11171_v63, 16 }
  0x7b   : > { %v593_v33 = vrot.slane %v592_v17, 4  ;;  %9489 = vmatmul.mubr.bf16.gmra.mrb[36].mxu1 %v8147_v22  ;;  %v955_v43 = vrot.slane %v953_v26, 5  ;;  %v609_v44 = vshll.u32 %v11179_v16, 16  ;;  %v614_v45 = vshrl.u32 %v11174_v9, 16  ;;  %v11213_v17 = vld [vmem:[%s10791_s25 + $0xc4] sm:$0x1] }
  0x7c   : > { %v943_v40 = vrot.slane %v942_v24, 4  ;;  %9492 = vmatprep.mubr.msk.bf16.mxu1 %vm10734_vm0, %v14406_v1  ;;  %v961_v47 = vrot.slane %v959_v34, 5  ;;  %v602_v48 = vrot.slane %v600_v35, 4  ;;  %v605_v49 = vrot.slane %v603_v36, 5 }
  0x7d   : > { %v598_v42 = vsel %vm10823_vm3, %v593_v33, %v597_v11  ;;  %v956_v54 = vor.u32 %v955_v43, %v952_v20  ;;  %v611_v55 = vrot.slane %v609_v44, 5  ;;  %v616_v59 = vrot.slane %v614_v45, 4 }
  0x7e   : > { %v8135_v51 = vcombine.low %v584_v23, %v598_v42  ;;  %v948_v52 = vsel %vm10823_vm3, %v943_v40, %v947_v19  ;;  %v606_v58 = vor.u32 %v605_v49, %v602_v48  ;;  %v617_v60 = vshll.u32 %v11174_v9, 16 }
  0x7f   : > { %v623_v61 = vshll.u32 %v11186_v30, 16  ;;  %v957_v0 = vrot.slane %v956_v54, 4  ;;  %v964_v2 = vshrl.u32 %v220_v39, 16  ;;  %v967_v3 = vshll.u32 %v220_v39, 16 }
  0x80   : > { %9441 = vmatmul.mubr.bf16.gmra.mrb[40].mxu0 %v8135_v51  ;;  %v973_v4 = vshll.u32 %v286_v50, 16  ;;  %v607_v11 = vrot.slane %v606_v58, 4  ;;  %v619_v12 = vrot.slane %v617_v60, 5  ;;  %v978_v57 = vshrl.u32 %v221_v56, 16  ;;  %v11227_v51 = vld [vmem:[%s10791_s25 + $0xcc] sm:$0x1] }
  0x81   : > { %9444 = vmatprep.mubr.msk.bf16.mxu0 %vm10734_vm0, %v14406_v1  ;;  %v625_v15 = vrot.slane %v623_v61, 5  ;;  %v962_v19 = vsel %vm10823_vm3, %v957_v0, %v961_v47  ;;  %v966_v20 = vrot.slane %v964_v2, 4  ;;  %v969_v22 = vrot.slane %v967_v3, 5  ;;  %v10603_v47 = vld [vmem:[%s10791_s25 + $0xc] sm:$0x1] }
  0x82   : > { %v975_v23 = vrot.slane %v973_v4, 5  ;;  %v8148_v24 = vcombine.low %v948_v52, %v962_v19  ;;  %v612_v26 = vsel %vm10823_vm3, %v607_v11, %v611_v55  ;;  %v620_v33 = vor.u32 %v619_v12, %v616_v59  ;;  %v1820_v59 = vld [vmem:[%s10791_s25] sm:$0xe]  ;;  %v1821_v2 = vld [vmem:[%s10791_s25 + $0x8] sm:$0xe] }
  0x83   : > { %v980_v34 = vrot.slane %v978_v57, 4  ;;  %v970_v35 = vor.u32 %v969_v22, %v966_v20  ;;  %v981_v36 = vshll.u32 %v221_v56, 16  ;;  %v987_v39 = vshll.u32 %v287_v53, 16 }
  0x84   : > { %v628_v40 = vshrl.u32 %v11205_v62, 16  ;;  %9493 = vmatmul.mubr.bf16.gmra.mrb[40].mxu1 %v8148_v24  ;;  %v621_v43 = vrot.slane %v620_v33, 4  ;;  %v631_v44 = vshll.u32 %v11205_v62, 16  ;;  %v637_v45 = vshll.u32 %v11213_v17, 16 }
  0x85   : > { %v642_v42 = vshrl.u32 %v11208_v10, 16  ;;  %v1979_v48 = vrot.slane %v10603_v47, 5  ;;  %9496 = vmatprep.mubr.msk.bf16.mxu1 %vm10734_vm0, %v14406_v1  ;;  %v971_v49 = vrot.slane %v970_v35, 4  ;;  %v983_v50 = vrot.slane %v981_v36, 5  ;;  %v10604_v47 = vld [vmem:[%s10791_s25 + $0x14] sm:$0x1] }
  0x86   : > { %v630_v52 = vrot.slane %v628_v40, 4  ;;  %v626_v54 = vsel %vm10823_vm3, %v621_v43, %v625_v15  ;;  %v989_v55 = vrot.slane %v987_v39, 5  ;;  %v633_v56 = vrot.slane %v631_v44, 5  ;;  %v1822_v43 = vld [vmem:[%s10791_s25 + $0x10] sm:$0xe] }
  0x87   : > { %v639_v58 = vrot.slane %v637_v45, 5  ;;  %v8136_v60 = vcombine.low %v612_v26, %v626_v54  ;;  %v984_v61 = vor.u32 %v983_v50, %v980_v34  ;;  %v644_v53 = vrot.slane %v642_v42, 4  ;;  %v1823_v44 = vld [vmem:[%s10791_s25 + $0x18] sm:$0xe]  ;;  %v10481_v45 = vld [vmem:[%s14403_s1 + $0xc0] sm:$0xff]  }
  0x88   : > { %v645_v0 = vshll.u32 %v11208_v10, 16  ;;  %v976_v3 = vsel %vm10823_vm3, %v971_v49, %v975_v23  ;;  %v634_v4 = vor.u32 %v633_v56, %v630_v52  ;;  %v651_v11 = vshll.u32 %v11227_v51, 16  ;;  %v1824_v49 = vld [vmem:[%s10791_s25 + $0x20] sm:$0xe]  ;;  %v10605_v52 = vld [vmem:[%s10791_s25 + $0x1c] sm:$0x1] }
  0x89   : > { %9445 = vmatmul.mubr.bf16.gmra.mrb[44].mxu0 %v8136_v60  ;;  %v985_v12 = vrot.slane %v984_v61, 4  ;;  %v8191_v57 = vrot.slane %v1820_v59, 9  ;;  %v8192_v22 = vrot.slane %v1821_v2, 9  ;;  %v8193_v42 = vrot.slane %v1822_v43, 9  ;;  %v10483_v56 = vld [vmem:[%s14403_s1 + $0x100] sm:$0xff]  }
  0x8a   : > { %v647_v15 = vrot.slane %v645_v0, 5  ;;  %9448 = vmatprep.mubr.msk.bf16.mxu0 %vm10734_vm0, %v14406_v1  ;;  %v635_v19 = vrot.slane %v634_v4, 4  ;;  %v653_v26 = vrot.slane %v651_v11, 5  ;;  %v8194_v50 = vrot.slane %v1823_v44, 9  ;;  %v1836_v60 = vld [vmem:[%s10791_s25 + $0x80] sm:$0xe] }
  0x8b   : > { %v990_v23 = vsel %vm10823_vm3, %v985_v12, %v989_v55  ;;  %v1976_v33 = vsel %vm11239_vm6, %v8191_v57, %v1975_v41  ;;  %v1980_v35 = vsel %vm11239_vm6, %v8192_v22, %v1979_v48  ;;  %v1983_v48 = vrot.slane %v10604_v47, 5  ;;  %v11271_v55 = vld [vmem:[%s10791_s25 + $0x28] sm:$0xe]  ;;  %v1838_v12 = vld [vmem:[%s10791_s25 + $0x90] sm:$0xe] }
  0x8c   : > { %v648_v24 = vor.u32 %v647_v15, %v644_v53  ;;  %v8149_v34 = vcombine.low %v976_v3, %v990_v23  ;;  %v640_v36 = vsel %vm10823_vm3, %v635_v19, %v639_v58  ;;  %v8257_v40 = vcombine.low %v1976_v33, %v1980_v35  ;;  %v10487_v58 = vld [vmem:[%s14403_s1 + $0xc8] sm:$0xff]   ;;  %v1839_v15 = vld [vmem:[%s10791_s25 + $0x98] sm:$0xe]  ;;  %v10608_v57 = vld [vmem:[%s10791_s25 + $0x10] sm:$0xf] }
  0x8d   : > { %v1987_v54 = vrot.slane %v10605_v52, 5  ;;  %v8195_v5 = vrot.slane %v1824_v49, 9  ;;  %v8166_v59 = vcombine.low %v11069_v21, %v11072_v27  ;;  %v1837_v61 = vld [vmem:[%s10791_s25 + $0x88] sm:$0xe]  ;;  %v11289_v53 = vsel %vm11239_vm6, %v8193_v42, %v1983_v48  ;;  %v11297_v3 = vld [vmem:[%s10791_s25 + $0x2c] sm:$0x1] }
  0x8e   : > { %v649_v39 = vrot.slane %v648_v24, 4  ;;  %9497 = vmatmul.mubr.bf16.gmra.mrb[44].mxu1 %v8149_v34  ;;  %v8196_v2 = vrot.slane %v11271_v55, 9  ;;  %v1995_v4 = vrot.slane %v11297_v3, 5  ;;  %v10488_v11 = vld [vmem:[%s14403_s1 + $0x108] sm:$0xff]   ;;  %v10609_v19 = vld [vmem:[%s10791_s25 + $0x18] sm:$0xf]  ;;  %v8167_v34 = vcombine.low %v11103_v13, %v11110_v28 }
  0x8f   : > { %9516 = vmatprep.mubr.msk.bf16.mxu1 %vm10734_vm0, %v14406_v1  ;;  %v11293_v0 = vsel %vm11239_vm6, %v8194_v50, %v1987_v54  ;;  %v8159_v22 = vcombine.low %v10608_v57, %v10609_v19  ;;  %v11308_v23 = vld [vmem:[%s10791_s25 + $0x20] sm:$0xf]  ;;  %v11311_v24 = vld [vmem:[%s10791_s25 + $0x28] sm:$0xf]  ;;  %v10492_v33 = vld [vmem:[%s14403_s1 + $0xd0] sm:$0xff]   ;;  %v8168_v44 = vcombine.low %v11137_v8, %v11142_v14  ;;  %v2047_v42 = vrot.slane %v11113_v29, 5 }
  0x90   : > { %v654_v7 = vsel %vm10823_vm3, %v649_v39, %v653_v26  ;;  %v8160_v26 = vcombine.low %v11308_v23, %v11311_v24  ;;  %v1840_v35 = vld [vmem:[%s10791_s25 + $0xa0] sm:$0xe]  ;;  %v8207_v39 = vrot.slane %v1836_v60, 9  ;;  %v8258_v43 = vcombine.low %v11289_v53, %v11293_v0  ;;  %v1842_v47 = vld [vmem:[%s10791_s25 + $0xb0] sm:$0xe] }
  0x91   : > { %v8137_v41 = vcombine.low %v640_v36, %v654_v7  ;;  %v1841_v36 = vld [vmem:[%s10791_s25 + $0xa8] sm:$0xe]  ;;  %v8208_v7 = vrot.slane %v1837_v61, 9  ;;  %v8210_v29 = vrot.slane %v1839_v15, 9  ;;  %v1843_v50 = vld [vmem:[%s10791_s25 + $0xb8] sm:$0xe]  ;;  %v8170_v53 = vcombine.low %v11205_v62, %v11208_v10 }
  0x92   : > { %v8212_v60 = vrot.slane %v1841_v36, 9  ;;  %v2059_v61 = vrot.slane %v11152_v32, 5  ;;  %v8213_v0 = vrot.slane %v1842_v47, 9  ;;  %v1845_v15 = vld [vmem:[%s10791_s25 + $0xc8] sm:$0xe]  ;;  %v10498_v32 = vld [vmem:[%s14403_s1 + $0x118] sm:$0xff]  }
  0x93   : > { %9449 = vmatmul.mubr.bf16.gmra.mrb[48].mxu0 %v8137_v41  ;;  %v2043_v41 = vrot.slane %v11084_v46, 5  ;;  %v10493_v46 = vld [vmem:[%s14403_s1 + $0x110] sm:$0xff]   ;;  %v8216_v3 = vrot.slane %v1845_v15, 9  ;;  %v10613_v24 = vld [vmem:[%s10791_s25 + $0x3c] sm:$0x1] }
  0x94   : > { %9632 = vmatprep.mubr.msk.bf16.mxu0 %vm10734_vm0, %v14406_v1  ;;  %v11388_v19 = vsel %vm11239_vm6, %v8212_v60, %v2059_v61  ;;  %v1828_v60 = vld [vmem:[%s10791_s25 + $0x40] sm:$0xe]  ;;  %v10508_v61 = vld [vmem:[%s14403_s1 + $0x128] sm:$0xff]   ;;  %v1846_v21 = vld [vmem:[%s10791_s25 + $0xd0] sm:$0xe] }
  0x95   : > { %v11347_v49 = vsel %vm11239_vm6, %v8208_v7, %v2043_v41  ;;  %v1827_v7 = vld [vmem:[%s10791_s25 + $0x38] sm:$0xe]  ;;  %v8217_v13 = vrot.slane %v1846_v21, 9  ;;  %v10632_v28 = vld [vmem:[%s10791_s25 + $0xd4] sm:$0x1] }
  0x96   : > { %9517 = vmatmul.mubr.bf16.vlgmr.msra.gmra.mrb[48].mxu1 %v8158_v25  ;;  %v1991_v25 = vrot.slane %v10606_v6, 5  ;;  %v8211_v6 = vrot.slane %v1840_v35, 9  ;;  %v8198_v23 = vrot.slane %v1827_v7, 9  ;;  %v1847_v27 = vld [vmem:[%s10791_s25 + $0xd8] sm:$0xe]  ;;  %v2079_v8 = vrot.slane %v10632_v28, 5 }
  0x97   : > { %9520 = vmatprep.mubr.msk.bf16.mxu1 %vm10734_vm0, %v14406_v1  ;;  %9733 = vmatpush3.bf16.msra.mxu1 %v10481_v45  ;;  %v8209_v45 = vrot.slane %v1838_v12, 9  ;;  %v1844_v12 = vld [vmem:[%s10791_s25 + $0xc0] sm:$0xe]  ;;  %v11580_v14 = vld [vmem:[%s10791_s25 + $0x2c] sm:$0x1] }
  0x98   : > { %9734 = vmatprep.subr.bf16.mxu1 %v14406_v1  ;;  %v8215_v55 = vrot.slane %v1844_v12, 9  ;;  %v1831_v12 = vld [vmem:[%s10791_s25 + $0x58] sm:$0xe]  ;;  %v1849_v62 = vld [vmem:[%s10791_s25 + $0xe8] sm:$0xe] }
  0x99   : > { %v11354_v54 = vsel %vm11239_vm6, %v8209_v45, %v2047_v42  ;;  %v10503_v42 = vld [vmem:[%s14403_s1 + $0x120] sm:$0xff]  }
  0x9b   : > { %9633 = vmatmul.mubr.bf16.vlgmr.msra.gmra.mrb[52].mxu0 %v8257_v40  ;;  %v2039_v40 = vrot.slane %v11079_v37, 5  ;;  %9735 = vmatpush3.bf16.msra.mxu1 %v10487_v58  ;;  %v11335_v37 = vsel %vm11239_vm6, %v8195_v5, %v1991_v25  ;;  %v10497_v58 = vld [vmem:[%s14403_s1 + $0xd8] sm:$0xff]   ;;  %v8169_v5 = vcombine.low %v11171_v63, %v11174_v9  ;;  %v2055_v25 = vrot.slane %v11147_v18, 5  ;;  %v11583_v63 = vld [vmem:[%s10791_s25 + $0x34] sm:$0x1] }
  0x9c   : > { %9849 = vmatpush3.bf16.msra.mxu0 %v10483_v56  ;;  %9636 = vmatprep.mubr.msk.bf16.mxu0 %vm10734_vm0, %v14406_v1  ;;  %v2051_v56 = vrot.slane %v11118_v38, 5  ;;  %v8542_v9 = vld [vmem:[%s10791_s25 + $0x28] sm:$0xe] }
  0x9d   : > { %9850 = vmatprep.subr.bf16.mxu0 %v14406_v1  ;;  %9736 = vmatprep.subr.bf16.mxu1 %v14406_v1  ;;  %v11343_v48 = vsel %vm11239_vm6, %v8207_v39, %v2039_v40  ;;  %v11384_v57 = vsel %vm11239_vm6, %v8211_v6, %v2055_v25  ;;  %v2067_v39 = vrot.slane %v11186_v30, 5  ;;  %v10502_v40 = vld [vmem:[%s14403_s1 + $0xe0] sm:$0xff]  }
  0x9e   : > { %9521 = vmatmul.mubr.bf16.gmra.mrb[52].mxu1 %v8159_v22  ;;  %v8265_v52 = vcombine.low %v11343_v48, %v11347_v49  ;;  %v11369_v38 = vsel %vm11239_vm6, %v8210_v29, %v2051_v56  ;;  %v1996_v22 = vsel %vm11239_vm6, %v8196_v2, %v1995_v4  ;;  %v8267_v35 = vcombine.low %v11384_v57, %v11388_v19  ;;  %v10615_v56 = vld [vmem:[%s10791_s25 + $0x38] sm:$0xf]  ;;  %v10633_v49 = vld [vmem:[%s10791_s25 + $0xdc] sm:$0x1] }
  0x9f   : > { %9524 = vmatprep.mubr.msk.bf16.mxu1 %vm10734_vm0, %v14406_v1  ;;  %9737 = vmatpush3.bf16.msra.mxu1 %v10492_v33  ;;  %v8266_v18 = vcombine.low %v11354_v54, %v11369_v38  ;;  %v1826_v33 = vld [vmem:[%s10791_s25 + $0x30] sm:$0xe]  ;;  %v2071_v2 = vrot.slane %v11213_v17, 5  ;;  %v2075_v4 = vrot.slane %v11227_v51, 5  ;;  %v8259_v51 = vcombine.low %v11335_v37, %v1996_v22  ;;  %v10507_v37 = vld [vmem:[%s14403_s1 + $0xe8] sm:$0xff]  }
  0xa0   : > { %9851 = vmatpush3.bf16.msra.mxu0 %v10488_v11  ;;  %v2063_v11 = vrot.slane %v11179_v16, 5  ;;  %9738 = vmatprep.subr.bf16.mxu1 %v14406_v1  ;;  %v8214_v16 = vrot.slane %v1843_v50, 9  ;;  %v8197_v47 = vrot.slane %v1826_v33, 9  ;;  %v10614_v50 = vld [vmem:[%s10791_s25 + $0x30] sm:$0xf]  ;;  %v8218_v48 = vrot.slane %v1847_v27, 9 }
  0xa1   : > { %9852 = vmatprep.subr.bf16.mxu0 %v14406_v1  ;;  %v11425_v17 = vsel %vm11239_vm6, %v8216_v3, %v2075_v4  ;;  %v10616_v22 = vld [vmem:[%s10791_s25 + $0x44] sm:$0x1]  ;;  %v10618_v3 = vld [vmem:[%s10791_s25 + $0x40] sm:$0xf]  ;;  %v10619_v4 = vld [vmem:[%s10791_s25 + $0x48] sm:$0xf] }
  0xa2   : > { %v11401_v36 = vsel %vm11239_vm6, %v8213_v0, %v2063_v11  ;;  %v11415_v30 = vsel %vm11239_vm6, %v8214_v16, %v2067_v39  ;;  %v1829_v0 = vld [vmem:[%s10791_s25 + $0x48] sm:$0xe]  ;;  %v1830_v11 = vld [vmem:[%s10791_s25 + $0x50] sm:$0xe]  ;;  %v8199_v16 = vrot.slane %v1828_v60, 9  ;;  %v2007_v33 = vrot.slane %v10616_v22, 5 }
  0xa3   : > { %9637 = vmatmul.mubr.bf16.gmra.mrb[56].mxu0 %v8258_v43  ;;  %9739 = vmatpush3.bf16.msra.mxu1 %v10497_v58  ;;  %v8268_v41 = vcombine.low %v11401_v36, %v11415_v30  ;;  %v11421_v43 = vsel %vm11239_vm6, %v8215_v55, %v2071_v2  ;;  %v8161_v58 = vcombine.low %v10614_v50, %v10615_v56  ;;  %v8200_v39 = vrot.slane %v1829_v0, 9  ;;  %v10513_v2 = vld [vmem:[%s14403_s1 + $0x130] sm:$0xff]   ;;  %v1833_v50 = vld [vmem:[%s10791_s25 + $0x68] sm:$0xe]  ;;  %v1848_v38 = vld [vmem:[%s10791_s25 + $0xe0] sm:$0xe] }
  0xa4   : > { %9640 = vmatprep.mubr.msk.bf16.mxu0 %vm10734_vm0, %v14406_v1  ;;  %9853 = vmatpush3.bf16.msra.mxu0 %v10493_v46  ;;  %v8269_v45 = vcombine.low %v11421_v43, %v11425_v17  ;;  %v10612_v46 = vld [vmem:[%s10791_s25 + $0x34] sm:$0x1]  ;;  %v8162_v7 = vcombine.low %v10618_v3, %v10619_v4  ;;  %v8204_v60 = vrot.slane %v1833_v50, 9  ;;  %v1834_v22 = vld [vmem:[%s10791_s25 + $0x70] sm:$0xe]  ;;  %v8592_v54 = vrot.slane %v8542_v9, 9 }
  0xa5   : > { %9854 = vmatprep.subr.bf16.mxu0 %v14406_v1  ;;  %9740 = vmatprep.subr.bf16.mxu1 %v14406_v1  ;;  %v1999_v29 = vrot.slane %v10612_v46, 5  ;;  %v8202_v46 = vrot.slane %v1831_v12, 9  ;;  %v10625_v12 = vld [vmem:[%s10791_s25 + $0x58] sm:$0xf]  ;;  %v10627_v4 = vld [vmem:[%s10791_s25 + $0x60] sm:$0xf]  ;;  %v2080_v36 = vsel %vm11239_vm6, %v8217_v13, %v2079_v8 }
  0xa6   : > { %9525 = vmatmul.mubr.bf16.gmra.mrb[56].mxu1 %v8160_v26  ;;  %v2003_v26 = vrot.slane %v10613_v24, 5  ;;  %v2008_v24 = vsel %vm11239_vm6, %v8199_v16, %v2007_v33  ;;  %v1835_v33 = vld [vmem:[%s10791_s25 + $0x78] sm:$0xe]  ;;  %v8220_v43 = vrot.slane %v1849_v62, 9  ;;  %v11662_v13 = vld [vmem:[%s10791_s25 + $0x4c] sm:$0x1] }
  0xa7   : > { %9528 = vmatprep.mubr.msk.bf16.mxu1 %vm10734_vm0, %v14406_v1  ;;  %9741 = vmatpush3.bf16.msra.mxu1 %v10502_v40  ;;  %v2000_v6 = vsel %vm11239_vm6, %v8197_v47, %v1999_v29  ;;  %v10617_v40 = vld [vmem:[%s10791_s25 + $0x4c] sm:$0x1]  ;;  %v10621_v29 = vld [vmem:[%s10791_s25 + $0x5c] sm:$0x1]  ;;  %v8206_v3 = vrot.slane %v1835_v33, 9 }
  0xa8   : > { %9855 = vmatpush3.bf16.msra.mxu0 %v10498_v32  ;;  %9742 = vmatprep.subr.bf16.mxu1 %v14406_v1  ;;  %v2004_v25 = vsel %vm11239_vm6, %v8198_v23, %v2003_v26  ;;  %v10512_v32 = vld [vmem:[%s14403_s1 + $0xf0] sm:$0xff]   ;;  %v2011_v55 = vrot.slane %v10617_v40, 5  ;;  %v2019_v23 = vrot.slane %v10621_v29, 5  ;;  %v8205_v40 = vrot.slane %v1834_v22, 9  ;;  %v10629_v29 = vld [vmem:[%s10791_s25 + $0x7c] sm:$0x1] }
  0xa9   : > { %9856 = vmatprep.subr.bf16.mxu0 %v14406_v1  ;;  %v8260_v15 = vcombine.low %v2000_v6, %v2004_v25  ;;  %v10622_v6 = vld [vmem:[%s10791_s25 + $0x64] sm:$0x1]  ;;  %v10635_v57 = vld [vmem:[%s10791_s25 + $0xd8] sm:$0xf]  ;;  %v8545_v22 = vld [vmem:[%s10791_s25 + $0x40] sm:$0xe] }
  0xaa   : > { %v2012_v26 = vsel %vm11239_vm6, %v8200_v39, %v2011_v55  ;;  %v2023_v25 = vrot.slane %v10622_v6, 5  ;;  %v2020_v16 = vsel %vm11239_vm6, %v8202_v46, %v2019_v23  ;;  %v10626_v55 = vld [vmem:[%s10791_s25 + $0x74] sm:$0x1]  ;;  %v2035_v23 = vrot.slane %v10629_v29, 5 }
  0xab   : > { %9641 = vmatmul.mubr.bf16.gmra.mrb[60].mxu0 %v8259_v51  ;;  %9743 = vmatpush3.bf16.msra.mxu1 %v10507_v37  ;;  %v8201_v51 = vrot.slane %v1830_v11, 9  ;;  %v1832_v37 = vld [vmem:[%s10791_s25 + $0x60] sm:$0xe]  ;;  %v8261_v56 = vcombine.low %v2008_v24, %v2012_v26  ;;  %v10624_v11 = vld [vmem:[%s10791_s25 + $0x50] sm:$0xf]  ;;  %v10517_v24 = vld [vmem:[%s14403_s1 + $0xf8] sm:$0xff]  }
  0xac   : > { %9644 = vmatprep.mubr.msk.bf16.mxu0 %vm10734_vm0, %v14406_v1  ;;  %9857 = vmatpush3.bf16.msra.mxu0 %v10503_v42  ;;  %v10620_v42 = vld [vmem:[%s10791_s25 + $0x54] sm:$0x1]  ;;  %v10630_v26 = vld [vmem:[%s10791_s25 + $0x70] sm:$0xf] }
  0xad   : > { %9858 = vmatprep.subr.bf16.mxu0 %v14406_v1  ;;  %9744 = vmatprep.subr.bf16.mxu1 %v14406_v1  ;;  %v2015_v47 = vrot.slane %v10620_v42, 5  ;;  %v8408_v9 = vld [vmem:[%s10791_s25 + $0x54] sm:$0x1] }
  0xae   : > { %9529 = vmatmul.mubr.bf16.gmra.mrb[60].mxu1 %v8161_v58  ;;  %v8203_v58 = vrot.slane %v1832_v37, 9  ;;  %v10631_v37 = vld [vmem:[%s10791_s25 + $0x78] sm:$0xf] }
  0xaf   : > { %9532 = vmatprep.mubr.msk.bf16.mxu1 %vm10734_vm0, %v14406_v1  ;;  %9745 = vmatpush3.bf16.msra.mxu1 %v10512_v32  ;;  %v2016_v32 = vsel %vm11239_vm6, %v8201_v51, %v2015_v47  ;;  %v8165_v50 = vcombine.low %v10630_v26, %v10631_v37 }
  0xb0   : > { %9859 = vmatpush3.bf16.msra.mxu0 %v10508_v61  ;;  %9746 = vmatprep.subr.bf16.mxu1 %v14406_v1  ;;  %v10623_v61 = vld [vmem:[%s10791_s25 + $0x6c] sm:$0x1]  ;;  %v8262_v39 = vcombine.low %v2016_v32, %v2020_v16  ;;  %v2024_v42 = vsel %vm11239_vm6, %v8203_v58, %v2023_v25  ;;  %v2036_v58 = vsel %vm11239_vm6, %v8206_v3, %v2035_v23  ;;  %v10519_v25 = vld [vmem:[%s14403_s1 + $0x138] sm:$0xff]   ;;  %v10638_v23 = vld [vmem:[%s10791_s25 + $0xe0] sm:$0xf] }
  0xb1   : > { %9860 = vmatprep.subr.bf16.mxu0 %v14406_v1  ;;  %v2027_v0 = vrot.slane %v10623_v61, 5  ;;  %v8544_v16 = vld [vmem:[%s10791_s25 + $0x38] sm:$0xe] }
  0xb3   : > { %9645 = vmatmul.mubr.bf16.gmra.mrb[64].mxu0 %v8260_v15  ;;  %v8163_v15 = vcombine.low %v10624_v11, %v10625_v12  ;;  %v2028_v47 = vsel %vm11239_vm6, %v8204_v60, %v2027_v0  ;;  %9747 = vmatpush3.bf16.msra.mxu1 %v10517_v24  ;;  %v10636_v60 = vld [vmem:[%s10791_s25 + $0xe4] sm:$0x1]  ;;  %v11624_v0 = vld [vmem:[%s10791_s25 + $0x3c] sm:$0x1]  ;;  %v10639_v24 = vld [vmem:[%s10791_s25 + $0xe8] sm:$0xf] }
  0xb4   : > { %9648 = vmatprep.mubr.msk.bf16.mxu0 %vm10734_vm0, %v14406_v1  ;;  %9861 = vmatpush3.bf16.msra.mxu0 %v10513_v2  ;;  %v2031_v2 = vrot.slane %v10626_v55, 5  ;;  %v8263_v46 = vcombine.low %v2024_v42, %v2028_v47  ;;  %v2087_v61 = vrot.slane %v10636_v60, 5  ;;  %v11627_v11 = vld [vmem:[%s10791_s25 + $0x44] sm:$0x1]  ;;  %v4594_v3 = vrot.slane %v11624_v0, 5 }
  0xb5   : > { %9862 = vmatprep.subr.bf16.mxu0 %v14406_v1  ;;  %9964 = vmatprep.subr.bf16.mxu1 %v14406_v1  ;;  %v4598_v42 = vrot.slane %v11627_v11, 5  ;;  %v1850_v47 = vld [vmem:[%s10791_s25 + $0xf0] sm:$0xe]  ;;  %v8172_v26 = vcombine.low %v10638_v23, %v10639_v24  ;;  %v1853_v60 = vld [vmem:[%s10791_s25 + $0x108] sm:$0xe] }
  0xb6   : > { %9533 = vmatmul.mubr.bf16.gmra.mrb[64].mxu1 %v8162_v7  ;;  %v10628_v7 = vld [vmem:[%s10791_s25 + $0x68] sm:$0xf] }
  0xb7   : > { %9536 = vmatprep.mubr.msk.bf16.mxu1 %vm10734_vm0, %v14406_v1  ;;  %v8164_v51 = vcombine.low %v10627_v4, %v10628_v7  ;;  %v8595_v4 = vrot.slane %v8545_v22, 9 }
  0xb8   : > { %9863 = vmatpush3.bf16.msra.mxu0 %v10519_v25  ;;  %v10640_v25 = vld [vmem:[%s10791_s25 + $0xf4] sm:$0x1] }
  0xb9   : > { %10080 = vmatprep.subr.bf16.mxu0 %v14406_v1  ;;  %v11650_v37 = vsel %vm11239_vm6, %v8595_v4, %v4598_v42  ;;  %v2095_v21 = vrot.slane %v10640_v25, 5  ;;  %v8224_v4 = vrot.slane %v1853_v60, 9  ;;  %v8410_v42 = vld [vmem:[%s10791_s25 + $0x5c] sm:$0x1] }
  0xba   : > { %14461 = vst [vmem:[#allocation6_spill] sm:$0xff] %v11650_v37 }
  0xbb   : > { %9649 = vmatmul.mubr.bf16.gmra.mrb[68].mxu0 %v8261_v56  ;;  %v2032_v56 = vsel %vm11239_vm6, %v8205_v40, %v2031_v2  ;;  %v8594_v2 = vrot.slane %v8544_v16, 9 }
  0xbc   : > { %9652 = vmatprep.mubr.msk.bf16.mxu0 %vm10734_vm0, %v14406_v1  ;;  %v8264_v6 = vcombine.low %v2032_v56, %v2036_v58  ;;  %v8426_v58 = vld [vmem:[%s10791_s25 + $0x9c] sm:$0x1] }
  0xbd   : > { %v11644_v29 = vsel %vm11239_vm6, %v8594_v2, %v4594_v3  ;;  %v10644_v2 = vld [vmem:[%s10791_s25 + $0x104] sm:$0x1] }
  0xbe   : > { %9537 = vmatmul.mubr.bf16.gmra.mrb[68].mxu1 %v8163_v15  ;;  %14460 = vst [vmem:[#allocation5_spill] sm:$0xff] %v11644_v29  ;;  %v2103_v3 = vrot.slane %v10644_v2, 5  ;;  %v8414_v2 = vld [vmem:[%s10791_s25 + $0x6c] sm:$0x1] }
  0xbf   : > { %9540 = vmatprep.mubr.msk.bf16.mxu1 %vm10734_vm0, %v14406_v1 }
  0xc3   : > { %9653 = vmatmul.mubr.bf16.gmra.mrb[72].mxu0 %v8262_v39  ;;  %v10637_v39 = vld [vmem:[%s10791_s25 + $0xec] sm:$0x1] }
  0xc4   : > { %9656 = vmatprep.mubr.msk.bf16.mxu0 %vm10734_vm0, %v14406_v1  ;;  %v2091_v40 = vrot.slane %v10637_v39, 5  ;;  %v10658_v39 = vld [vmem:[%s10791_s25 + $0x130] sm:$0xf] }
  0xc6   : > { %9541 = vmatmul.mubr.bf16.gmra.mrb[72].mxu1 %v8164_v51  ;;  %v2092_v56 = vsel %vm11239_vm6, %v8220_v43, %v2091_v40  ;;  %v10642_v43 = vld [vmem:[%s10791_s25 + $0xf0] sm:$0xf] }
  0xc7   : > { %9544 = vmatprep.mubr.msk.bf16.mxu1 %vm10734_vm0, %v14406_v1 }
  0xcb   : > { %9657 = vmatmul.mubr.bf16.gmra.mrb[76].mxu0 %v8263_v46  ;;  %v1851_v46 = vld [vmem:[%s10791_s25 + $0xf8] sm:$0xe] }
  0xcc   : > { %9660 = vmatprep.mubr.msk.bf16.mxu0 %vm10734_vm0, %v14406_v1  ;;  %v8222_v27 = vrot.slane %v1851_v46, 9 }
  0xce   : > { %9545 = vmatmul.mubr.bf16.gmra.mrb[76].mxu1 %v8165_v50 }
  0xcf   : > { %9548 = vmatprep.mubr.msk.bf16.mxu1 %vm10734_vm0, %v14406_v1 }
  0xd3   : > { %9661 = vmatmul.mubr.bf16.gmra.mrb[80].mxu0 %v8264_v6  ;;  %v8221_v6 = vrot.slane %v1850_v47, 9  ;;  %v8412_v47 = vld [vmem:[%s10791_s25 + $0x64] sm:$0x1] }
  0xd4   : > { %9664 = vmatprep.mubr.msk.bf16.mxu0 %vm10734_vm0, %v14406_v1 }
  0xd5   : > { %v2096_v16 = vsel %vm11239_vm6, %v8221_v6, %v2095_v21  ;;  %v10645_v6 = vld [vmem:[%s10791_s25 + $0x10c] sm:$0x1] }
  0xd6   : > { %9549 = vmatmul.mubr.bf16.gmra.mrb[80].mxu1 %v8166_v59  ;;  %v8543_v59 = vld [vmem:[%s10791_s25 + $0x30] sm:$0xe]  ;;  %v2107_v25 = vrot.slane %v10645_v6, 5 }
  0xd7   : > { %9552 = vmatprep.mubr.msk.bf16.mxu1 %vm10734_vm0, %v14406_v1 }
  0xdb   : > { %9665 = vmatmul.mubr.bf16.gmra.mrb[84].mxu0 %v8265_v52  ;;  %v2083_v52 = vrot.slane %v10633_v49, 5  ;;  %v8547_v49 = vld [vmem:[%s10791_s25 + $0x50] sm:$0xe] }
  0xdc   : > { %9668 = vmatprep.mubr.msk.bf16.mxu0 %vm10734_vm0, %v14406_v1 }
  0xdd   : > { %v2084_v30 = vsel %vm11239_vm6, %v8218_v48, %v2083_v52  ;;  %v8546_v48 = vld [vmem:[%s10791_s25 + $0x48] sm:$0xe] }
  0xde   : > { %9553 = vmatmul.mubr.bf16.gmra.mrb[84].mxu1 %v8167_v34  ;;  %v4586_v34 = vrot.slane %v11580_v14, 5  ;;  %v8270_v12 = vcombine.low %v2080_v36, %v2084_v30  ;;  %v8596_v62 = vrot.slane %v8546_v48, 9  ;;  %v4606_v30 = vrot.slane %v8408_v9, 5 }
  0xdf   : > { %9556 = vmatprep.mubr.msk.bf16.mxu1 %vm10734_vm0, %v14406_v1  ;;  %v4610_v9 = vrot.slane %v8410_v42, 5  ;;  %v4614_v48 = vrot.slane %v8412_v47, 5  ;;  %v8416_v42 = vld [vmem:[%s10791_s25 + $0x74] sm:$0x1] }
  0xe0   : > { %v11599_v10 = vsel %vm11239_vm6, %v8592_v54, %v4586_v34  ;;  %v10641_v54 = vld [vmem:[%s10791_s25 + $0xfc] sm:$0x1] }
  0xe1   : > { %14458 = vst [vmem:[#allocation3_spill] sm:$0xff] %v11599_v10 }
  0xe3   : > { %9669 = vmatmul.mubr.bf16.gmra.mrb[88].mxu0 %v8266_v18  ;;  %v10634_v18 = vld [vmem:[%s10791_s25 + $0xd0] sm:$0xf] }
  0xe4   : > { %9672 = vmatprep.mubr.msk.bf16.mxu0 %vm10734_vm0, %v14406_v1  ;;  %v8171_v19 = vcombine.low %v10634_v18, %v10635_v57  ;;  %v4602_v18 = vrot.slane %v11662_v13, 5  ;;  %v8597_v57 = vrot.slane %v8547_v49, 9  ;;  %v1854_v49 = vld [vmem:[%s10791_s25 + $0x110] sm:$0xe] }
  0xe5   : > { %v8225_v60 = vrot.slane %v1854_v49, 9  ;;  %v10650_v49 = vld [vmem:[%s10791_s25 + $0x110] sm:$0xf] }
  0xe6   : > { %9557 = vmatmul.mubr.bf16.gmra.mrb[88].mxu1 %v8168_v44  ;;  %v4590_v44 = vrot.slane %v11583_v63, 5 }
  0xe7   : > { %9560 = vmatprep.mubr.msk.bf16.mxu1 %vm10734_vm0, %v14406_v1 }
  0xeb   : > { %9673 = vmatmul.mubr.bf16.gmra.mrb[92].mxu0 %v8267_v35 }
  0xec   : > { %9676 = vmatprep.mubr.msk.bf16.mxu0 %vm10734_vm0, %v14406_v1 }
  0xee   : > { %9561 = vmatmul.mubr.bf16.gmra.mrb[92].mxu1 %v8169_v5  ;;  %v8593_v5 = vrot.slane %v8543_v59, 9 }
  0xef   : > { %9564 = vmatprep.mubr.msk.bf16.mxu1 %vm10734_vm0, %v14406_v1 }
  0xf3   : > { %9677 = vmatmul.mubr.bf16.gmra.mrb[96].mxu0 %v8268_v41  ;;  %v8219_v41 = vrot.slane %v1848_v38, 9 }
  0xf4   : > { %9680 = vmatprep.mubr.msk.bf16.mxu0 %vm10734_vm0, %v14406_v1 }
  0xf5   : > { %v2088_v50 = vsel %vm11239_vm6, %v8219_v41, %v2087_v61  ;;  %v1852_v41 = vld [vmem:[%s10791_s25 + $0x100] sm:$0xe]  ;;  %v11683_v61 = vsel %vm11239_vm6, %v8596_v62, %v4602_v18  ;;  %v10647_v18 = vld [vmem:[%s10791_s25 + $0x108] sm:$0xf] }
  0xf6   : > { %9565 = vmatmul.mubr.bf16.gmra.mrb[96].mxu1 %v8170_v53  ;;  %v11603_v53 = vsel %vm11239_vm6, %v8593_v5, %v4590_v44  ;;  %v8271_v59 = vcombine.low %v2088_v50, %v2092_v56  ;;  %v2099_v5 = vrot.slane %v10641_v54, 5  ;;  %14464 = vst [vmem:[#allocation9_spill] sm:$0xff] %v11683_v61  ;;  %v8223_v40 = vrot.slane %v1852_v41, 9  ;;  %v8549_v50 = vld [vmem:[%s10791_s25 + $0x60] sm:$0xe] }
  0xf7   : > { %9568 = vmatprep.mubr.msk.bf16.mxu1 %vm10734_vm0, %v14406_v1  ;;  %14459 = vst [vmem:[#allocation4_spill] sm:$0xff] %v11603_v53  ;;  %v1855_v54 = vld [vmem:[%s10791_s25 + $0x118] sm:$0xe]  ;;  %v10646_v62 = vld [vmem:[%s10791_s25 + $0x100] sm:$0xf] }
  0xf8   : > { %v2100_v22 = vsel %vm11239_vm6, %v8222_v27, %v2099_v5  ;;  %v8389_v61 = vld [vmem:[%s10791_s25 + $0x8] sm:$0xf] }
  0xf9   : > { %v8272_v46 = vcombine.low %v2096_v16, %v2100_v22 }
  0xfb   : > { %9681 = vmatmul.mubr.bf16.gmra.mrb[100].mxu0 %v8269_v45 }
  0xfc   : > { %9684 = vmatprep.mubr.msk.bf16.mxu0 %vm10734_vm0, %v14406_v1 }
  0xfe   : > { %9569 = vmatmul.mubr.bf16.gmra.mrb[100].mxu1 %v8171_v19 }
  0xff   : > { %9572 = vmatprep.mubr.msk.bf16.mxu1 %vm10734_vm0, %v14406_v1 }
 0x101   : > { %v11619_v17 = vpop.f32.mrb[0].mxu0  ;;  %v11621_v45 = vpop.f32.mrb[0].mxu1 }
 0x102   : > { %v9402_v15 = vpop.f32.mrb[1].mxu0  ;;  %v9454_v32 = vpop.f32.mrb[1].mxu1 }
 0x103   : > { %v11633_v33 = vpop.f32.mrb[2].mxu0  ;;  %v11636_v55 = vpop.f32.mrb[2].mxu1  ;;  %9685 = vmatmul.mubr.bf16.gmra.mrb[104].mxu0 %v8270_v12  ;;  %v10643_v12 = vld [vmem:[%s10791_s25 + $0xf8] sm:$0xf]  ;;  %v11689_v32 = vsel %vm11239_vm6, %v8597_v57, %v4606_v30  ;;  %v8174_v57 = vcombine.low %v10646_v62, %v10647_v18  ;;  %v2108_v30 = vsel %vm11239_vm6, %v8224_v4, %v2107_v25  ;;  %v8550_v4 = vld [vmem:[%s10791_s25 + $0x68] sm:$0xe] }
 0x104   : > { %v9403_v7 = vpop.f32.mrb[3].mxu0  ;;  %v9455_v51 = vpop.f32.mrb[3].mxu1  ;;  %9688 = vmatprep.mubr.msk.bf16.mxu0 %vm10734_vm0, %v14406_v1  ;;  %v8173_v15 = vcombine.low %v10642_v43, %v10643_v12  ;;  %14465 = vst [vmem:[#allocation10_spill] sm:$0xff] %v11689_v32  ;;  %v10648_v43 = vld [vmem:[%s10791_s25 + $0x114] sm:$0x1]  ;;  %v8600_v6 = vrot.slane %v8550_v4, 9 }
 0x105   : > { %v2111_v12 = vrot.slane %v10648_v43, 5  ;;  %v4618_v25 = vrot.slane %v8414_v2, 5  ;;  %v1857_v18 = vld [vmem:[%s10791_s25 + $0x128] sm:$0xe]  ;;  %v8418_v4 = vld [vmem:[%s10791_s25 + $0x7c] sm:$0x1] }
 0x106   : > { %9573 = vmatmul.mubr.bf16.gmra.mrb[104].mxu1 %v8172_v26  ;;  %v8548_v26 = vld [vmem:[%s10791_s25 + $0x58] sm:$0xe] }
 0x107   : > { %9576 = vmatprep.mubr.msk.bf16.mxu1 %vm10734_vm0, %v14406_v1  ;;  %v8598_v27 = vrot.slane %v8548_v26, 9 }
 0x109   : > { %v11664_v28 = vpop.f32.mrb[4].mxu0  ;;  %v11666_v8 = vpop.f32.mrb[4].mxu1  ;;  %v11719_v5 = vsel %vm11239_vm6, %v8598_v27, %v4610_v9 }
 0x10a   : > { %14462 = vst [vmem:[#allocation7_spill] sm:$0xff] %v11666_v8  ;;  %v9406_v34 = vpop.f32.mrb[5].mxu0  ;;  %v9458_v44 = vpop.f32.mrb[5].mxu1  ;;  %14468 = vst [vmem:[#allocation13_spill] sm:$0xff] %v11719_v5  ;;  %v8397_v8 = vld [vmem:[%s10791_s25 + $0x28] sm:$0xf] }
 0x10b   : > { %v11673_v52 = vpop.f32.mrb[6].mxu0  ;;  %v11676_v38 = vpop.f32.mrb[6].mxu1  ;;  %9689 = vmatmul.mubr.bf16.gmra.mrb[108].mxu0 %v8271_v59  ;;  %v8599_v59 = vrot.slane %v8549_v50, 9 }
 0x10c   : > { %14463 = vst [vmem:[#allocation8_spill] sm:$0xff] %v11676_v38  ;;  %v9407_v19 = vpop.f32.mrb[7].mxu0  ;;  %v9459_v36 = vpop.f32.mrb[7].mxu1  ;;  %9692 = vmatprep.mubr.msk.bf16.mxu0 %vm10734_vm0, %v14406_v1  ;;  %v8396_v38 = vld [vmem:[%s10791_s25 + $0x24] sm:$0x1] }
 0x10d   : > { %v11725_v19 = vsel %vm11239_vm6, %v8599_v59, %v4614_v48  ;;  %v2104_v36 = vsel %vm11239_vm6, %v8223_v40, %v2103_v3  ;;  %v11754_v48 = vsel %vm11239_vm6, %v8600_v6, %v4618_v25 }
 0x10e   : > { %9577 = vmatmul.mubr.bf16.gmra.mrb[108].mxu1 %v8173_v15  ;;  %14469 = vst [vmem:[#allocation14_spill] sm:$0xff] %v11725_v19  ;;  %v8226_v15 = vrot.slane %v1855_v54, 9  ;;  %v8273_v40 = vcombine.low %v2104_v36, %v2108_v30  ;;  %14472 = vst [vmem:[#allocation17_spill] sm:$0xff] %v11754_v48  ;;  %v10651_v54 = vld [vmem:[%s10791_s25 + $0x118] sm:$0xf]  ;;  %v2112_v36 = vsel %vm11239_vm6, %v8225_v60, %v2111_v12 }
 0x10f   : > { %9580 = vmatprep.mubr.msk.bf16.mxu1 %vm10734_vm0, %v14406_v1  ;;  %v8175_v62 = vcombine.low %v10650_v49, %v10651_v54  ;;  %v8552_v12 = vld [vmem:[%s10791_s25 + $0x78] sm:$0xe]  ;;  %v10666_v19 = vld [vmem:[%s10791_s25 + $0x150] sm:$0xf] }
 0x111   : > { %v11700_v7 = vpop.f32.mrb[8].mxu0  ;;  %v11702_v51 = vpop.f32.mrb[8].mxu1 }
 0x112   : > { %14466 = vst [vmem:[#allocation11_spill] sm:$0xff] %v11702_v51  ;;  %v9410_v23 = vpop.f32.mrb[9].mxu0  ;;  %v9462_v24 = vpop.f32.mrb[9].mxu1 }
 0x113   : > { %v11710_v56 = vpop.f32.mrb[10].mxu0  ;;  %v11713_v21 = vpop.f32.mrb[10].mxu1  ;;  %9693 = vmatmul.mubr.bf16.gmra.mrb[112].mxu0 %v8272_v46  ;;  %v8551_v46 = vld [vmem:[%s10791_s25 + $0x70] sm:$0xe]  ;;  %v10649_v24 = vld [vmem:[%s10791_s25 + $0x11c] sm:$0x1] }
 0x114   : > { %14467 = vst [vmem:[#allocation12_spill] sm:$0xff] %v11713_v21  ;;  %v9411_v34 = vpop.f32.mrb[11].mxu0  ;;  %v9463_v44 = vpop.f32.mrb[11].mxu1  ;;  %9696 = vmatprep.mubr.msk.bf16.mxu0 %vm10734_vm0, %v14406_v1  ;;  %v2115_v26 = vrot.slane %v10649_v24, 5  ;;  %v8601_v27 = vrot.slane %v8551_v46, 9 }
 0x115   : > { %v4622_v34 = vrot.slane %v8416_v42, 5  ;;  %v1856_v44 = vld [vmem:[%s10791_s25 + $0x120] sm:$0xe]  ;;  %v10652_v42 = vld [vmem:[%s10791_s25 + $0x124] sm:$0x1] }
 0x116   : > { %9581 = vmatmul.mubr.bf16.gmra.mrb[112].mxu1 %v8174_v57  ;;  %v2116_v30 = vsel %vm11239_vm6, %v8226_v15, %v2115_v26  ;;  %v8227_v2 = vrot.slane %v1856_v44, 9  ;;  %v8420_v46 = vld [vmem:[%s10791_s25 + $0x84] sm:$0x1]  ;;  %v8553_v15 = vld [vmem:[%s10791_s25 + $0x80] sm:$0xe] }
 0x117   : > { %9584 = vmatprep.mubr.msk.bf16.mxu1 %vm10734_vm0, %v14406_v1  ;;  %v11761_v57 = vsel %vm11239_vm6, %v8601_v27, %v4622_v34  ;;  %v8274_v24 = vcombine.low %v2112_v36, %v2116_v30  ;;  %v10653_v27 = vld [vmem:[%s10791_s25 + $0x12c] sm:$0x1]  ;;  %v4626_v34 = vrot.slane %v8418_v4, 5  ;;  %v8603_v44 = vrot.slane %v8553_v15, 9  ;;  %v1858_v36 = vld [vmem:[%s10791_s25 + $0x130] sm:$0xe] }
 0x118   : > { %14473 = vst [vmem:[#allocation18_spill] sm:$0xff] %v11761_v57 }
 0x119   : > { %v11736_v16 = vpop.f32.mrb[12].mxu0  ;;  %v11738_v22 = vpop.f32.mrb[12].mxu1 }
 0x11a   : > { %14470 = vst [vmem:[#allocation15_spill] sm:$0xff] %v11738_v22  ;;  %v9414_v3 = vpop.f32.mrb[13].mxu0  ;;  %v9466_v47 = vpop.f32.mrb[13].mxu1 }
 0x11b   : > { %v11746_v23 = vpop.f32.mrb[14].mxu0  ;;  %v11749_v50 = vpop.f32.mrb[14].mxu1  ;;  %9697 = vmatmul.mubr.bf16.gmra.mrb[116].mxu0 %v8273_v40  ;;  %v2119_v40 = vrot.slane %v10652_v42, 5  ;;  %v8228_v47 = vrot.slane %v1857_v18, 9  ;;  %v10654_v42 = vld [vmem:[%s10791_s25 + $0x120] sm:$0xf] }
 0x11c   : > { %14471 = vst [vmem:[#allocation16_spill] sm:$0xff] %v11749_v50  ;;  %v9415_v9 = vpop.f32.mrb[15].mxu0  ;;  %v9467_v59 = vpop.f32.mrb[15].mxu1  ;;  %9700 = vmatprep.mubr.msk.bf16.mxu0 %vm10734_vm0, %v14406_v1 }
 0x11d   : > { %v2123_v9 = vrot.slane %v10653_v27, 5  ;;  %v8602_v59 = vrot.slane %v8552_v12, 9  ;;  %v1859_v12 = vld [vmem:[%s10791_s25 + $0x138] sm:$0xe] }
 0x11e   : > { %9585 = vmatmul.mubr.bf16.gmra.mrb[116].mxu1 %v8175_v62  ;;  %v4630_v62 = vrot.slane %v8420_v46, 5  ;;  %v2120_v46 = vsel %vm11239_vm6, %v8227_v2, %v2119_v40  ;;  %v8554_v2 = vld [vmem:[%s10791_s25 + $0x88] sm:$0xe]  ;;  %v8555_v40 = vld [vmem:[%s10791_s25 + $0x90] sm:$0xe] }
 0x11f   : > { %9588 = vmatprep.mubr.msk.bf16.mxu1 %vm10734_vm0, %v14406_v1  ;;  %v11790_v30 = vsel %vm11239_vm6, %v8602_v59, %v4626_v34  ;;  %v2124_v15 = vsel %vm11239_vm6, %v8228_v47, %v2123_v9  ;;  %v10656_v59 = vld [vmem:[%s10791_s25 + $0x134] sm:$0x1]  ;;  %v8605_v27 = vrot.slane %v8555_v40, 9  ;;  %v1861_v40 = vld [vmem:[%s10791_s25 + $0x148] sm:$0xe] }
 0x120   : > { %14476 = vst [vmem:[#allocation21_spill] sm:$0xff] %v11790_v30  ;;  %v11797_v4 = vsel %vm11239_vm6, %v8603_v44, %v4630_v62  ;;  %v2127_v34 = vrot.slane %v10656_v59, 5  ;;  %v8230_v44 = vrot.slane %v1859_v12, 9  ;;  %v8422_v62 = vld [vmem:[%s10791_s25 + $0x8c] sm:$0x1]  ;;  %v8604_v12 = vrot.slane %v8554_v2, 9 }
 0x121   : > { %v11772_v3 = vpop.f32.mrb[16].mxu0  ;;  %v11776_v60 = vpop.f32.mrb[16].mxu1  ;;  %14477 = vst [vmem:[#allocation22_spill] sm:$0xff] %v11797_v4  ;;  %v4634_v47 = vrot.slane %v8422_v62, 5  ;;  %v10663_v30 = vld [vmem:[%s10791_s25 + $0x148] sm:$0xf] }
 0x122   : > { %v9418_v6 = vpop.f32.mrb[17].mxu0  ;;  %14474 = vst [vmem:[#allocation19_spill] sm:$0xff] %v11776_v60  ;;  %v9470_v25 = vpop.f32.mrb[17].mxu1  ;;  %v8444_v60 = vld [vmem:[%s10791_s25 + $0xe4] sm:$0x1] }
 0x123   : > { %v11782_v26 = vpop.f32.mrb[18].mxu0  ;;  %v11785_v54 = vpop.f32.mrb[18].mxu1  ;;  %v10655_v6 = vld [vmem:[%s10791_s25 + $0x128] sm:$0xf]  ;;  %9701 = vmatmul.mubr.bf16.gmra.mrb[120].mxu0 %v8274_v24  ;;  %v8229_v24 = vrot.slane %v1858_v36, 9  ;;  %v11824_v62 = vsel %vm11239_vm6, %v8604_v12, %v4634_v47  ;;  %v4678_v22 = vrot.slane %v8444_v60, 5 }
 0x124   : > { %v9419_v49 = vpop.f32.mrb[19].mxu0  ;;  %14475 = vst [vmem:[#allocation20_spill] sm:$0xff] %v11785_v54  ;;  %v9471_v18 = vpop.f32.mrb[19].mxu1  ;;  %v8176_v25 = vcombine.low %v10654_v42, %v10655_v6  ;;  %9704 = vmatprep.mubr.msk.bf16.mxu0 %vm10734_vm0, %v14406_v1  ;;  %v8275_v42 = vcombine.low %v2120_v46, %v2124_v15  ;;  %v10657_v36 = vld [vmem:[%s10791_s25 + $0x13c] sm:$0x1]  ;;  %14479 = vst [vmem:[#allocation24_spill] sm:$0xff] %v11824_v62 }
 0x125   : > { %v8424_v18 = vld [vmem:[%s10791_s25 + $0x94] sm:$0x1]  ;;  %v2131_v59 = vrot.slane %v10657_v36, 5  ;;  %v1860_v15 = vld [vmem:[%s10791_s25 + $0x140] sm:$0xe] }
 0x126   : > { %9589 = vmatmul.mubr.bf16.gmra.mrb[120].mxu1 %v8176_v25  ;;  %v4638_v43 = vrot.slane %v8424_v18, 5  ;;  %v10659_v36 = vld [vmem:[%s10791_s25 + $0x138] sm:$0xf] }
 0x127   : > { %9592 = vmatprep.mubr.msk.bf16.mxu1 %vm10734_vm0, %v14406_v1  ;;  %v8177_v2 = vcombine.low %v10658_v39, %v10659_v36  ;;  %v8231_v39 = vrot.slane %v1860_v15, 9  ;;  %v8232_v36 = vrot.slane %v1861_v40, 9  ;;  %v10661_v15 = vld [vmem:[%s10791_s25 + $0x14c] sm:$0x1] }
 0x129   : > { %v11808_v49 = vpop.f32.mrb[20].mxu0  ;;  %v11819_v41 = vpop.f32.mrb[20].mxu1 }
 0x12a   : > { %v9422_v6 = vpop.f32.mrb[21].mxu0  ;;  %14478 = vst [vmem:[#allocation23_spill] sm:$0xff] %v11819_v41  ;;  %v9474_v46 = vpop.f32.mrb[21].mxu1 }
 0x12b   : > { %v11816_v9 = vpop.f32.mrb[22].mxu0  ;;  %v11828_v6 = vsel %vm11239_vm6, %v8605_v27, %v4638_v43  ;;  %9705 = vmatmul.mubr.bf16.gmra.mrb[124].mxu0 %v8275_v42  ;;  %v11832_v18 = vpop.f32.mrb[22].mxu1  ;;  %v2128_v43 = vsel %vm11239_vm6, %v8229_v24, %v2127_v34  ;;  %v2132_v27 = vsel %vm11239_vm6, %v8230_v44, %v2131_v59  ;;  %v10660_v42 = vld [vmem:[%s10791_s25 + $0x144] sm:$0x1]  ;;  %v8557_v24 = vld [vmem:[%s10791_s25 + $0xa0] sm:$0xe] }
 0x12c   : > { %v9423_v25 = vpop.f32.mrb[23].mxu0  ;;  %14480 = vst [vmem:[#allocation25_spill] sm:$0xff] %v11828_v6  ;;  %14481 = vst [vmem:[#allocation26_spill] sm:$0xff] %v11832_v18  ;;  %9708 = vmatprep.mubr.msk.bf16.mxu0 %vm10734_vm0, %v14406_v1  ;;  %v9475_v47 = vpop.f32.mrb[23].mxu1  ;;  %v2135_v12 = vrot.slane %v10660_v42, 5  ;;  %v8276_v35 = vcombine.low %v2128_v43, %v2132_v27  ;;  %v4642_v34 = vrot.slane %v8426_v58, 5 }
 0x12d   : > { %v8428_v25 = vld [vmem:[%s10791_s25 + $0xa4] sm:$0x1]  ;;  %v8556_v6 = vld [vmem:[%s10791_s25 + $0x98] sm:$0xe]  ;;  %v14482_v44 = vmov 0.0   ;;  %v2139_v47 = vrot.slane %v10661_v15, 5 }
 0x12e   : > { %9593 = vmatmul.mubr.bf16.gmra.mrb[124].mxu1 %v8177_v2  ;;  %v8606_v40 = vrot.slane %v8556_v6, 9  ;;  %v8607_v42 = vrot.slane %v8557_v24, 9  ;;  %v4646_v62 = vrot.slane %v8428_v25, 5  ;;  %v10662_v27 = vld [vmem:[%s10791_s25 + $0x140] sm:$0xf] }
 0x12f   : > { %9596 = vmatprep.mubr.msk.bf16.mxu1 %vm10734_vm0, %v14482_v44  ;;  %v8178_v6 = vcombine.low %v10662_v27, %v10663_v30  ;;  %v8432_v24 = vld [vmem:[%s10791_s25 + $0xb4] sm:$0x1] }
 0x130   : > { %v11860_v43 = vsel %vm11239_vm6, %v8606_v40, %v4642_v34  ;;  %v11864_v58 = vsel %vm11239_vm6, %v8607_v42, %v4646_v62  ;;  %v2136_v62 = vsel %vm11239_vm6, %v8231_v39, %v2135_v12  ;;  %v2140_v34 = vsel %vm11239_vm6, %v8232_v36, %v2139_v47  ;;  %v10664_v40 = vld [vmem:[%s10791_s25 + $0x154] sm:$0x1]  ;;  %v8558_v39 = vld [vmem:[%s10791_s25 + $0xa8] sm:$0xe]  ;;  %v8559_v12 = vld [vmem:[%s10791_s25 + $0xb0] sm:$0xe] }
 0x131   : > { %v11844_v46 = vpop.f32.mrb[24].mxu0  ;;  %v11855_v2 = vpop.f32.mrb[24].mxu1  ;;  %14484 = vst [vmem:[#allocation28_spill] sm:$0xff] %v11860_v43  ;;  %14485 = vst [vmem:[#allocation29_spill] sm:$0xff] %v11864_v58  ;;  %v2143_v42 = vrot.slane %v10664_v40, 5  ;;  %v8277_v58 = vcombine.low %v2136_v62, %v2140_v34  ;;  %v8609_v40 = vrot.slane %v8559_v12, 9 }
 0x132   : > { %v9426_v1 = vpop.f32.mrb[25].mxu0  ;;  %14483 = vst [vmem:[#allocation27_spill] sm:$0xff] %v11855_v2  ;;  %v9478_v25 = vpop.f32.mrb[25].mxu1  ;;  %v4654_v57 = vrot.slane %v8432_v24, 5  ;;  %v1864_v62 = vld [vmem:[%s10791_s25 + $0x160] sm:$0xe] }
 0x133   : > { %v11852_v59 = vpop.f32.mrb[26].mxu0  ;;  %v1862_v1 = vld [vmem:[%s10791_s25 + $0x150] sm:$0xe]  ;;  %9709 = vmatmul.mubr.bf16.gmra.mrb[128].mxu0 %v8276_v35  ;;  %v11877_v15 = vpop.f32.mrb[26].mxu1  ;;  %v8430_v25 = vld [vmem:[%s10791_s25 + $0xac] sm:$0x1] }
 0x134   : > { %v9427_v4 = vpop.f32.mrb[27].mxu0  ;;  %9712 = vmatprep.mubr.msk.bf16.mxu0 %vm10734_vm0, %v14482_v44  ;;  %14486 = vst [vmem:[#allocation30_spill] sm:$0xff] %v11877_v15  ;;  %v9479_v35 = vpop.f32.mrb[27].mxu1  ;;  %v8233_v30 = vrot.slane %v1862_v1, 9  ;;  %v4650_v36 = vrot.slane %v8430_v25, 5  ;;  %v11898_v25 = vsel %vm11239_vm6, %v8609_v40, %v4654_v57 }
 0x135   : > { %v1863_v4 = vld [vmem:[%s10791_s25 + $0x158] sm:$0xe]  ;;  %v10665_v1 = vld [vmem:[%s10791_s25 + $0x15c] sm:$0x1]  ;;  %14488 = vst [vmem:[#allocation32_spill] sm:$0xff] %v11898_v25 }
 0x136   : > { %v8234_v27 = vrot.slane %v1863_v4, 9  ;;  %9597 = vmatmul.mubr.bf16.gmra.mrb[128].mxu1 %v8178_v6  ;;  %v2147_v35 = vrot.slane %v10665_v1, 5  ;;  %v8608_v4 = vrot.slane %v8558_v39, 9  ;;  %v1865_v24 = vld [vmem:[%s10791_s25 + $0x168] sm:$0xe]  ;;  %v2144_v57 = vsel %vm11239_vm6, %v8233_v30, %v2143_v42 }
 0x137   : > { %9600 = vmatprep.mubr.msk.bf16.mxu1 %vm10734_vm0, %v14482_v44  ;;  %v8434_v12 = vld [vmem:[%s10791_s25 + $0xbc] sm:$0x1]  ;;  %v8436_v25 = vld [vmem:[%s10791_s25 + $0xc4] sm:$0x1]  ;;  %v8560_v30 = vld [vmem:[%s10791_s25 + $0xb8] sm:$0xe] }
 0x138   : > { %v11894_v34 = vsel %vm11239_vm6, %v8608_v4, %v4650_v36  ;;  %v2148_v36 = vsel %vm11239_vm6, %v8234_v27, %v2147_v35  ;;  %v8561_v42 = vld [vmem:[%s10791_s25 + $0xc0] sm:$0xe]  ;;  %v4658_v27 = vrot.slane %v8434_v12, 5  ;;  %v11970_v15 = vld [vmem:[%s10791_s25 + $0xc] sm:$0x1] }
 0x139   : > { %v11882_v43 = vpop.f32.mrb[28].mxu0  ;;  %14487 = vst [vmem:[#allocation31_spill] sm:$0xff] %v11894_v34  ;;  %v8278_v34 = vcombine.low %v2144_v57, %v2148_v36  ;;  %v1866_v57 = vld [vmem:[%s10791_s25 + $0x170] sm:$0xe]  ;;  %v8393_v2 = vld [vmem:[%s10791_s25 + $0x18] sm:$0xf] }
 0x13a   : > { %v9430_v47 = vpop.f32.mrb[29].mxu0 }
 0x13b   : > { %v11889_v48 = vpop.f32.mrb[30].mxu0  ;;  %v10667_v47 = vld [vmem:[%s10791_s25 + $0x158] sm:$0xf]  ;;  %9713 = vmatmul.mubr.bf16.gmra.mrb[132].mxu0 %v8277_v58  ;;  %v11905_v1 = vpop.f32.mrb[28].mxu1  ;;  %v10668_v58 = vld [vmem:[%s10791_s25 + $0x164] sm:$0x1] }
 0x13c   : > { %v9431_v6 = vpop.f32.mrb[31].mxu0  ;;  %v8179_v39 = vcombine.low %v10666_v19, %v10667_v47  ;;  %14489 = vst [vmem:[#allocation33_spill] sm:$0xff] %v11905_v1  ;;  %9716 = vmatprep.mubr.msk.bf16.mxu0 %vm10734_vm0, %v14482_v44  ;;  %v9482_v4 = vpop.f32.mrb[29].mxu1  ;;  %v8235_v19 = vrot.slane %v1864_v62, 9  ;;  %v2151_v40 = vrot.slane %v10668_v58, 5  ;;  %v8236_v47 = vrot.slane %v1865_v24, 9 }
 0x13d   : > { %v11914_v6 = vpop.f32.mrb[30].mxu1  ;;  %v10669_v62 = vld [vmem:[%s10791_s25 + $0x16c] sm:$0x1]  ;;  %v8610_v4 = vrot.slane %v8560_v30, 9  ;;  %v8611_v58 = vrot.slane %v8561_v42, 9 }
 0x13e   : > { %14490 = vst [vmem:[#allocation34_spill] sm:$0xff] %v11914_v6  ;;  %9601 = vmatmul.mubr.bf16.gmra.mrb[132].mxu1 %v8179_v39  ;;  %v9483_v5 = vpop.f32.mrb[31].mxu1  ;;  %v2155_v24 = vrot.slane %v10669_v62, 5  ;;  %v4662_v39 = vrot.slane %v8436_v25, 5  ;;  %v10670_v62 = vld [vmem:[%s10791_s25 + $0x160] sm:$0xf] }
 0x13f   : > { %9604 = vmatprep.mubr.msk.bf16.mxu1 %vm10734_vm0, %v14482_v44  ;;  %v1867_v5 = vld [vmem:[%s10791_s25 + $0x178] sm:$0xe]  ;;  %v11932_v12 = vsel %vm11239_vm6, %v8610_v4, %v4658_v27  ;;  %v10671_v30 = vld [vmem:[%s10791_s25 + $0x168] sm:$0xf]  ;;  %v8391_v25 = vld [vmem:[%s10791_s25 + $0x10] sm:$0xf]  ;;  %v2152_v27 = vsel %vm11239_vm6, %v8235_v19, %v2151_v40 }
 0x140   : > { %14491 = vst [vmem:[#allocation35_spill] sm:$0xff] %v11932_v12  ;;  %v11936_v37 = vsel %vm11239_vm6, %v8611_v58, %v4662_v39  ;;  %v8180_v42 = vcombine.low %v10670_v62, %v10671_v30  ;;  %v2156_v4 = vsel %vm11239_vm6, %v8236_v47, %v2155_v24  ;;  %v8237_v58 = vrot.slane %v1866_v57, 9  ;;  %v10672_v39 = vld [vmem:[%s10791_s25 + $0x174] sm:$0x1]  ;;  %v8438_v19 = vld [vmem:[%s10791_s25 + $0xcc] sm:$0x1] }
 0x141   : > { %v11922_v35 = vpop.f32.mrb[32].mxu0  ;;  %14492 = vst [vmem:[#allocation36_spill] sm:$0xff] %v11936_v37  ;;  %v8238_v30 = vrot.slane %v1867_v5, 9  ;;  %v3271_v37 = vshrl.u32 %v8389_v61, 16  ;;  %v3274_v12 = vshll.u32 %v8389_v61, 16  ;;  %v3285_v10 = vshrl.u32 %v8391_v25, 16 }
 0x142   : > { %v9434_v32 = vpop.f32.mrb[33].mxu0  ;;  %v8440_v40 = vld [vmem:[%s10791_s25 + $0xd4] sm:$0x1]  ;;  %v8279_v47 = vcombine.low %v2152_v27, %v2156_v4  ;;  %v8562_v57 = vld [vmem:[%s10791_s25 + $0xc8] sm:$0xe]  ;;  %v4666_v5 = vrot.slane %v8438_v19, 5 }
 0x143   : > { %v11926_v36 = vpop.f32.mrb[34].mxu0  ;;  %9717 = vmatmul.mubr.bf16.gmra.mrb[136].mxu0 %v8278_v34  ;;  %v2159_v34 = vrot.slane %v10672_v39, 5  ;;  %v8563_v39 = vld [vmem:[%s10791_s25 + $0xd0] sm:$0xe]  ;;  %v3288_v61 = vshll.u32 %v8391_v25, 16  ;;  %v3273_v41 = vrot.slane %v3271_v37, 4 }
 0x144   : > { %v9435_v32 = vpop.f32.mrb[35].mxu0  ;;  %9720 = vmatprep.mubr.msk.bf16.mxu0 %vm10734_vm0, %v14482_v44  ;;  %v11950_v62 = vpop.f32.mrb[32].mxu1  ;;  %v10674_v6 = vld [vmem:[%s10791_s25 + $0x170] sm:$0xf]  ;;  %v10675_v27 = vld [vmem:[%s10791_s25 + $0x178] sm:$0xf] }
 0x145   : > { %14493 = vst [vmem:[#allocation37_spill] sm:$0xff] %v11950_v62  ;;  %v10673_v32 = vld [vmem:[%s10791_s25 + $0x17c] sm:$0x1]  ;;  %v9486_v53 = vpop.f32.mrb[33].mxu1  ;;  %v8613_v62 = vrot.slane %v8563_v39, 9  ;;  %v8181_v4 = vcombine.low %v10674_v6, %v10675_v27  ;;  %v3276_v54 = vrot.slane %v3274_v12, 5 }
 0x146   : > { %v2163_v29 = vrot.slane %v10673_v32, 5  ;;  %9605 = vmatmul.mubr.bf16.gmra.mrb[136].mxu1 %v8180_v42  ;;  %v11955_v24 = vpop.f32.mrb[34].mxu1  ;;  %v8612_v32 = vrot.slane %v8562_v57, 9  ;;  %v4670_v42 = vrot.slane %v8440_v40, 5  ;;  %v1868_v1 = vld [vmem:[%s10791_s25 + $0x180] sm:$0xe] }
 0x147   : > { %14494 = vst [vmem:[#allocation38_spill] sm:$0xff] %v11955_v24  ;;  %9608 = vmatprep.mubr.msk.bf16.mxu1 %vm10734_vm0, %v14482_v44  ;;  %v9487_v53 = vpop.f32.mrb[35].mxu1  ;;  %v2160_v24 = vsel %vm11239_vm6, %v8237_v58, %v2159_v34  ;;  %v11967_v19 = vld [vmem:[%s10791_s25 + $0x188] sm:$0xe]  ;;  %v10676_v57 = vld [vmem:[%s10791_s25 + $0x184] sm:$0x1] }
 0x148   : > { %v2164_v25 = vsel %vm11239_vm6, %v8238_v30, %v2163_v29  ;;  %v2167_v40 = vrot.slane %v10676_v57, 5  ;;  %v11978_v39 = vld [vmem:[%s10791_s25 + $0x14] sm:$0x1]  ;;  %v11983_v6 = vsel %vm11239_vm6, %v8612_v32, %v4666_v5  ;;  %v11987_v58 = vsel %vm11239_vm6, %v8613_v62, %v4670_v42  ;;  %v10677_v27 = vld [vmem:[%s10791_s25 + $0x18c] sm:$0x1] }
 0x149   : > { %v11972_v53 = vpop.f32.mrb[36].mxu0  ;;  %14495 = vst [vmem:[#allocation39_spill] sm:$0xff] %v11983_v6  ;;  %14496 = vst [vmem:[#allocation40_spill] sm:$0xff] %v11987_v58  ;;  %v2171_v18 = vrot.slane %v10677_v27, 5  ;;  %v8395_v29 = vld [vmem:[%s10791_s25 + $0x20] sm:$0xf] }
 0x14a   : > { %v9438_v34 = vpop.f32.mrb[37].mxu0  ;;  %v8239_v5 = vrot.slane %v1868_v1, 9  ;;  %v8240_v62 = vrot.slane %v11967_v19, 9  ;;  %v3290_v32 = vrot.slane %v3288_v61, 5  ;;  %v3280_v12 = vshll.u32 %v11970_v15, 16 }
 0x14b   : > { %9721 = vmatmul.mubr.bf16.gmra.mrb[140].mxu0 %v8279_v47  ;;  %v11993_v57 = vpop.f32.mrb[38].mxu0  ;;  %v3287_v47 = vrot.slane %v3285_v10, 4  ;;  %v3294_v42 = vshll.u32 %v11978_v39, 16  ;;  %v3299_v34 = vshrl.u32 %v8393_v2, 16  ;;  %v3302_v27 = vshll.u32 %v8393_v2, 16 }
 0x14c   : > { %9724 = vmatprep.mubr.msk.bf16.mxu0 %vm10734_vm0, %v14482_v44  ;;  %v9439_v37 = vpop.f32.mrb[39].mxu0  ;;  %v3313_v30 = vshrl.u32 %v8395_v29, 16  ;;  %v3316_v58 = vshll.u32 %v8395_v29, 16  ;;  %v8442_v6 = vld [vmem:[%s10791_s25 + $0xdc] sm:$0x1]  ;;  %v8280_v19 = vcombine.low %v2160_v24, %v2164_v25  ;;  %v3277_v10 = vor.u32 %v3276_v54, %v3273_v41 }
 0x14d   : > { %v8564_v61 = vld [vmem:[%s10791_s25 + $0xd8] sm:$0xe]  ;;  %v8565_v37 = vld [vmem:[%s10791_s25 + $0xe0] sm:$0xe]  ;;  %v4674_v50 = vrot.slane %v8442_v6, 5  ;;  %v3291_v15 = vor.u32 %v3290_v32, %v3287_v47  ;;  %v3301_v21 = vrot.slane %v3299_v34, 4  ;;  %v2168_v6 = vsel %vm11239_vm6, %v8239_v5, %v2167_v40 }
 0x14e   : > { %9609 = vmatmul.mubr.bf16.gmra.mrb[140].mxu1 %v8181_v4  ;;  %v12002_v1 = vpop.f32.mrb[36].mxu1  ;;  %v8614_v39 = vrot.slane %v8564_v61, 9  ;;  %v8615_v29 = vrot.slane %v8565_v37, 9  ;;  %v3304_v24 = vrot.slane %v3302_v27, 5  ;;  %v10678_v25 = vld [vmem:[%s10791_s25 + $0x180] sm:$0xf] }
 0x14f   : > { %14497 = vst [vmem:[#allocation41_spill] sm:$0xff] %v12002_v1  ;;  %9612 = vmatprep.mubr.msk.bf16.mxu1 %vm10734_vm0, %v14482_v44  ;;  %v9490_v2 = vpop.f32.mrb[37].mxu1  ;;  %v8394_v1 = vld [vmem:[%s10791_s25 + $0x1c] sm:$0x1]  ;;  %v10679_v41 = vld [vmem:[%s10791_s25 + $0x188] sm:$0xf] }
 0x150   : > { %v12008_v4 = vpop.f32.mrb[38].mxu1  ;;  %v8182_v54 = vcombine.low %v10678_v25, %v10679_v41  ;;  %v12019_v47 = vsel %vm11239_vm6, %v8614_v39, %v4674_v50  ;;  %v12023_v60 = vsel %vm11239_vm6, %v8615_v29, %v4678_v22  ;;  %v3315_v34 = vrot.slane %v3313_v30, 4  ;;  %v8446_v25 = vld [vmem:[%s10791_s25 + $0xec] sm:$0x1]  ;;  %v8448_v41 = vld [vmem:[%s10791_s25 + $0xf4] sm:$0x1] }
 0x151   : > { %v9491_v51 = vpop.f32.mrb[39].mxu1  ;;  %14498 = vst [vmem:[#allocation42_spill] sm:$0xff] %v12019_v47  ;;  %14499 = vst [vmem:[#allocation43_spill] sm:$0xff] %v12023_v60  ;;  %v3318_v27 = vrot.slane %v3316_v58, 5  ;;  %v12033_v22 = vrot.slane %v3277_v10, 4  ;;  %v3282_v5 = vrot.slane %v3280_v12, 5 }
 0x152   : > { %v2172_v51 = vsel %vm11239_vm6, %v8240_v62, %v2171_v18  ;;  %v3296_v61 = vrot.slane %v3294_v42, 5  ;;  %v3305_v18 = vor.u32 %v3304_v24, %v3301_v21  ;;  %v3308_v58 = vshll.u32 %v8394_v1, 16  ;;  %v8399_v62 = vld [vmem:[%s10791_s25 + $0x30] sm:$0xf]  ;;  %v8566_v40 = vld [vmem:[%s10791_s25 + $0xe8] sm:$0xe] }
 0x153   : > { %9725 = vmatmul.mubr.bf16.gmra.mrb[144].mxu0 %v8280_v19  ;;  %v12025_v32 = vpop.f32.mrb[40].mxu0  ;;  %v3292_v19 = vrot.slane %v3291_v15, 4  ;;  %v3322_v30 = vshll.u32 %v8396_v38, 16  ;;  %v3327_v2 = vshrl.u32 %v8397_v8, 16  ;;  %v3330_v29 = vshll.u32 %v8397_v8, 16 }
 0x154   : > { %v9442_v50 = vpop.f32.mrb[41].mxu0  ;;  %9728 = vmatprep.mubr.msk.bf16.mxu0 %vm10734_vm0, %v14482_v44  ;;  %v3319_v10 = vor.u32 %v3318_v27, %v3315_v34  ;;  %v8567_v12 = vld [vmem:[%s10791_s25 + $0xf0] sm:$0xe]  ;;  %v4682_v15 = vrot.slane %v8446_v25, 5  ;;  %v4686_v42 = vrot.slane %v8448_v41, 5  ;;  %v3341_v38 = vshrl.u32 %v8399_v62, 16 }
 0x155   : > { %v12035_v37 = vpop.f32.mrb[42].mxu0  ;;  %v8281_v50 = vcombine.low %v2168_v6, %v2172_v51  ;;  %v3344_v21 = vshll.u32 %v8399_v62, 16  ;;  %v8616_v8 = vrot.slane %v8566_v40, 9  ;;  %v8617_v1 = vrot.slane %v8567_v12, 9  ;;  %v8401_v25 = vld [vmem:[%s10791_s25 + $0x38] sm:$0xf] }
 0x156   : > { %v9443_v39 = vpop.f32.mrb[43].mxu0  ;;  %9613 = vmatmul.mubr.bf16.gmra.mrb[144].mxu1 %v8182_v54  ;;  %v3283_v54 = vsel %vm10823_vm3, %v12033_v22, %v3282_v5  ;;  %v12049_v6 = vrot.slane %v3305_v18, 4  ;;  %v12051_v51 = vrot.slane %v3308_v58, 5  ;;  %v3297_v27 = vsel %vm10823_vm3, %v3292_v19, %v3296_v61  ;;  %v8403_v62 = vld [vmem:[%s10791_s25 + $0x40] sm:$0xf] }
 0x157   : > { %v12042_v60 = vpop.f32.mrb[40].mxu1  ;;  %9748 = vmatprep.mubr.msk.bf16.mxu1 %vm10734_vm0, %v14482_v44  ;;  %v12057_v39 = vrot.slane %v3322_v30, 5  ;;  %v12063_v40 = vsel %vm11239_vm6, %v8616_v8, %v4682_v15  ;;  %v12067_v22 = vsel %vm11239_vm6, %v8617_v1, %v4686_v42  ;;  %v10521_v5 = vld [vmem:[%s10791_s25 + $0x8] ss:$8 sps:$4 sm:$0xff]   ;;  %v12070_v58 = vrot.slane %v3319_v10, 4  ;;  %v10522_v30 = vld [vmem:[%s14403_s1 + $0x140] sm:$0xff]  }
 0x158   : > { %14500 = vst [vmem:[#allocation44_spill] sm:$0xff] %v12042_v60  ;;  %v9494_v24 = vpop.f32.mrb[41].mxu1  ;;  %14502 = vst [vmem:[#allocation46_spill] sm:$0xff] %v12063_v40  ;;  %v3329_v41 = vrot.slane %v3327_v2, 4  ;;  %v3332_v19 = vrot.slane %v3330_v29, 5  ;;  %v3343_v12 = vrot.slane %v3341_v38, 4 }
 0x159   : > { %v12053_v34 = vpop.f32.mrb[42].mxu1  ;;  %14503 = vst [vmem:[#allocation47_spill] sm:$0xff] %v12067_v22  ;;  %v3346_v10 = vrot.slane %v3344_v21, 5  ;;  %v3350_v2 = vshll.u32 %v11583_v63, 16  ;;  %v3355_v15 = vshrl.u32 %v8401_v25, 16  ;;  %v3358_v42 = vshll.u32 %v8401_v25, 16 }
 0x15a   : > { %14501 = vst [vmem:[#allocation45_spill] sm:$0xff] %v12053_v34  ;;  %v9495_v18 = vpop.f32.mrb[43].mxu1  ;;  %v3369_v8 = vshrl.u32 %v8403_v62, 16  ;;  %v12084_v1 = vld [vmem:[%s10791_s25 + $0x48] sm:$0xf]  ;;  %v3333_v38 = vor.u32 %v3332_v19, %v3329_v41  ;;  %v10524_v25 = vld [vmem:[%s14403_s1 + $0x180] sm:$0xff]  }
 0x15b   : > { %9729 = vmatmul.mubr.bf16.gmra.mrb[148].mxu0 %v8281_v50  ;;  %v3336_v50 = vshll.u32 %v11580_v14, 16  ;;  %v3372_v18 = vshll.u32 %v8403_v62, 16  ;;  %v8450_v61 = vld [vmem:[%s10791_s25 + $0xfc] sm:$0x1]  ;;  %v8452_v22 = vld [vmem:[%s10791_s25 + $0x104] sm:$0x1]  ;;  %v8505_v14 = vcombine.low %v3283_v54, %v3297_v27  ;;  %v3347_v62 = vor.u32 %v3346_v10, %v3343_v12 }
 0x15c   : > { %9864 = vmatprep.mubr.msk.bf16.mxu0 %vm10734_vm0, %v14482_v44  ;;  %v12081_v29 = vpop.f32.mrb[44].mxu0  ;;  %v8568_v21 = vld [vmem:[%s10791_s25 + $0xf8] sm:$0xe]  ;;  %v8569_v47 = vld [vmem:[%s10791_s25 + $0x100] sm:$0xe]  ;;  %v4690_v34 = vrot.slane %v8450_v61, 5  ;;  %v3311_v54 = vsel %vm10823_vm3, %v12049_v6, %v12051_v51  ;;  %v3325_v27 = vsel %vm10823_vm3, %v12070_v58, %v12057_v39 }
 0x15d   : > { %v9446_v24 = vpop.f32.mrb[45].mxu0  ;;  %v4694_v60 = vrot.slane %v8452_v22, 5  ;;  %v3357_v41 = vrot.slane %v3355_v15, 4  ;;  %v10528_v19 = vld [vmem:[%s14403_s1 + $0x148] sm:$0xff]   ;;  %v8407_v22 = vld [vmem:[%s10791_s25 + $0x50] sm:$0xf] }
 0x15e   : > { %9749 = vmatmul.mubr.bf16.vlgmr.msra.gmra.mrb[148].mxu1 %v10521_v5  ;;  %v12088_v40 = vpop.f32.mrb[46].mxu0  ;;  %v8618_v5 = vrot.slane %v8568_v21, 9  ;;  %v8619_v24 = vrot.slane %v8569_v47, 9  ;;  %v3360_v47 = vrot.slane %v3358_v42, 5  ;;  %v10523_v58 = vld [vmem:[%s10791_s25 + $0x18] ss:$8 sps:$4 sm:$0xff]  }
 0x15f   : > { %v9447_v63 = vpop.f32.mrb[47].mxu0  ;;  %9752 = vmatprep.mubr.msk.bf16.mxu1 %vm10734_vm0, %v14482_v44  ;;  %9965 = vmatpush3.bf16.msra.mxu1 %v10522_v30  ;;  %v3383_v30 = vshrl.u32 %v12084_v1, 16  ;;  %v12122_v12 = vrot.slane %v3333_v38, 4  ;;  %v3371_v10 = vrot.slane %v3369_v8, 4  ;;  %v3374_v15 = vrot.slane %v3372_v18, 5  ;;  %v10529_v8 = vld [vmem:[%s14403_s1 + $0x188] sm:$0xff]  }
 0x160   : > { %9966 = vmatprep.subr.bf16.mxu1 %v14482_v44  ;;  %v12115_v6 = vsel %vm11239_vm6, %v8618_v5, %v4690_v34  ;;  %v12119_v51 = vsel %vm11239_vm6, %v8619_v24, %v4694_v60  ;;  %v12130_v34 = vrot.slane %v3336_v50, 5  ;;  %v12132_v60 = vrot.slane %v3347_v62, 4  ;;  %v10533_v62 = vld [vmem:[%s14403_s1 + $0x150] sm:$0xff]   ;;  %v8570_v42 = vld [vmem:[%s10791_s25 + $0x108] sm:$0xe] }
 0x161   : > { %v12109_v61 = vpop.f32.mrb[44].mxu1  ;;  %14504 = vst [vmem:[#allocation48_spill] sm:$0xff] %v12115_v6  ;;  %14505 = vst [vmem:[#allocation49_spill] sm:$0xff] %v12119_v51  ;;  %v12134_v63 = vrot.slane %v3350_v2, 5  ;;  %v3386_v18 = vshll.u32 %v12084_v1, 16  ;;  %v3364_v38 = vshll.u32 %v11624_v0, 16  ;;  %v3361_v24 = vor.u32 %v3360_v47, %v3357_v41 }
 0x162   : > { %v9498_v39 = vpop.f32.mrb[45].mxu1  ;;  %v3397_v50 = vshrl.u32 %v8407_v22, 16  ;;  %v3400_v2 = vshll.u32 %v8407_v22, 16  ;;  %v12148_v1 = vrot.slane %v3383_v30, 4  ;;  %v8454_v0 = vld [vmem:[%s10791_s25 + $0x10c] sm:$0x1] }
 0x163   : > { %9865 = vmatmul.mubr.bf16.vlgmr.msra.gmra.mrb[152].mxu0 %v8505_v14  ;;  %v12126_v21 = vpop.f32.mrb[46].mxu1  ;;  %9967 = vmatpush3.bf16.msra.mxu1 %v10528_v19  ;;  %v8506_v39 = vcombine.low %v3311_v54, %v3325_v27  ;;  %v8571_v22 = vld [vmem:[%s10791_s25 + $0x110] sm:$0xe]  ;;  %v4698_v51 = vrot.slane %v8454_v0, 5  ;;  %v12159_v41 = vrot.slane %v3386_v18, 5  ;;  %v8620_v30 = vrot.slane %v8570_v42, 9 }
 0x164   : > { %10081 = vmatpush3.bf16.msra.mxu0 %v10524_v25  ;;  %9868 = vmatprep.mubr.msk.bf16.mxu0 %vm10734_vm0, %v14482_v44  ;;  %v9499_v14 = vpop.f32.mrb[47].mxu1  ;;  %v3378_v25 = vshll.u32 %v11627_v11, 16  ;;  %v8456_v11 = vld [vmem:[%s10791_s25 + $0x114] sm:$0x1]  ;;  %v8621_v54 = vrot.slane %v8571_v22, 9  ;;  %v3402_v18 = vrot.slane %v3400_v2, 5 }
 0x165   : > { %10082 = vmatprep.subr.bf16.mxu0 %v14482_v44  ;;  %9968 = vmatprep.subr.bf16.mxu1 %v14482_v44  ;;  %v3375_v14 = vor.u32 %v3374_v15, %v3371_v10  ;;  %v10534_v47 = vld [vmem:[%s14403_s1 + $0x190] sm:$0xff]   ;;  %v4702_v27 = vrot.slane %v8456_v11, 5  ;;  %v3339_v10 = vsel %vm10823_vm3, %v12122_v12, %v12130_v34  ;;  %v3353_v15 = vsel %vm10823_vm3, %v12132_v60, %v12134_v63  ;;  %v12173_v0 = vld [vmem:[%s10791_s25 + $0x58] sm:$0xf]  ;;  %v12184_v34 = vld [vmem:[%s10791_s25 + $0x60] sm:$0xf] }
 0x166   : > { %v12146_v5 = vpop.f32.mrb[48].mxu0  ;;  %9753 = vmatmul.mubr.bf16.gmra.mrb[152].mxu1 %v10523_v58  ;;  %v10538_v42 = vld [vmem:[%s14403_s1 + $0x158] sm:$0xff]   ;;  %v12181_v12 = vrot.slane %v3364_v38, 5  ;;  %v12189_v60 = vsel %vm11239_vm6, %v8620_v30, %v4698_v51  ;;  %v3389_v51 = vor.u32 %v12159_v41, %v12148_v1  ;;  %v3411_v30 = vshrl.u32 %v12173_v0, 16  ;;  %v12216_v1 = vld [vmem:[%s10791_s25 + $0x68] sm:$0xf] }
 0x167   : > { %v9450_v19 = vpop.f32.mrb[49].mxu0  ;;  %9756 = vmatprep.mubr.msk.bf16.mxu1 %vm10734_vm0, %v14482_v44  ;;  %9969 = vmatpush3.bf16.msra.mxu1 %v10533_v62  ;;  %14506 = vst [vmem:[#allocation50_spill] sm:$0xff] %v12189_v60  ;;  %v12193_v63 = vsel %vm11239_vm6, %v8621_v54, %v4702_v27  ;;  %v10525_v62 = vld [vmem:[%s10791_s25 + $0x28] ss:$8 sps:$4 sm:$0xff]   ;;  %v12197_v38 = vrot.slane %v3375_v14, 4  ;;  %v3414_v27 = vshll.u32 %v12173_v0, 16 }
 0x168   : > { %v12155_v6 = vpop.f32.mrb[50].mxu0  ;;  %10083 = vmatpush3.bf16.msra.mxu0 %v10529_v8  ;;  %v3399_v8 = vrot.slane %v3397_v50, 4  ;;  %v12179_v19 = vrot.slane %v3361_v24, 4  ;;  %9970 = vmatprep.subr.bf16.mxu1 %v14482_v44  ;;  %14507 = vst [vmem:[#allocation51_spill] sm:$0xff] %v12193_v63  ;;  %v12199_v24 = vrot.slane %v3378_v25, 5  ;;  %v10539_v25 = vld [vmem:[%s14403_s1 + $0x198] sm:$0xff]  }
 0x169   : > { %v9451_v58 = vpop.f32.mrb[51].mxu0  ;;  %10084 = vmatprep.subr.bf16.mxu0 %v14482_v44  ;;  %v1621_v11 = vpop.f32.mrb[48].mxu1  ;;  %v12250_v63 = vrot.slane %v3411_v30, 4 }
 0x16a   : > { %v1622_v50 = vadd.f32 %v1621_v11, %v11619_v17  ;;  %v9518_v2 = vpop.f32.mrb[49].mxu1  ;;  %v3392_v17 = vshll.u32 %v11662_v13, 16  ;;  %v3403_v54 = vor.u32 %v3402_v18, %v3399_v8  ;;  %v3425_v11 = vshrl.u32 %v12184_v34, 16  ;;  %v10543_v13 = vld [vmem:[%s14403_s1 + $0x160] sm:$0xff]   ;;  %v8458_v8 = vld [vmem:[%s10791_s25 + $0x11c] sm:$0x1] }
 0x16b   : > { %9869 = vmatmul.mubr.bf16.gmra.mrb[156].mxu0 %v8506_v39  ;;  %v1624_v58 = vpop.f32.mrb[50].mxu1  ;;  %9971 = vmatpush3.bf16.msra.mxu1 %v10538_v42  ;;  %v8460_v18 = vld [vmem:[%s10791_s25 + $0x124] sm:$0x1]  ;;  %v3367_v42 = vsel %vm10823_vm3, %v12179_v19, %v12181_v12 }
 0x16c   : > { %9872 = vmatprep.mubr.msk.bf16.mxu0 %vm10734_vm0, %v14482_v44  ;;  %10085 = vmatpush3.bf16.msra.mxu0 %v10534_v47  ;;  %v1625_v39 = vadd.f32 %v1624_v58, %v11633_v33  ;;  %v9519_v14 = vpop.f32.mrb[51].mxu1  ;;  %v8507_v33 = vcombine.low %v3339_v10, %v3353_v15  ;;  %v3428_v47 = vshll.u32 %v12184_v34, 16  ;;  %v3381_v10 = vsel %vm10823_vm3, %v12197_v38, %v12199_v24  ;;  %v8572_v15 = vld [vmem:[%s10791_s25 + $0x118] sm:$0xe]  ;;  %v8573_v34 = vld [vmem:[%s10791_s25 + $0x120] sm:$0xe] }
 0x16d   : > { %10086 = vmatprep.subr.bf16.mxu0 %v14482_v44  ;;  %9972 = vmatprep.subr.bf16.mxu1 %v14482_v44  ;;  %v4706_v58 = vrot.slane %v8458_v8, 5  ;;  %v10544_v19 = vld [vmem:[%s14403_s1 + $0x1a0] sm:$0xff]   ;;  %v8622_v12 = vrot.slane %v8572_v15, 9  ;;  %v12246_v24 = vrot.slane %v3389_v51, 4  ;;  %v12248_v8 = vrot.slane %v3403_v54, 4 }
 0x16e   : > { %v2372_v41 = vpop.f32.mrb[52].mxu0  ;;  %9757 = vmatmul.mubr.bf16.gmra.mrb[156].mxu1 %v10525_v62 }
 0x16f   : > { %v12226_v0 = vadd.f32 %v2372_v41, %v1622_v50  ;;  %v9634_v2 = vpop.f32.mrb[53].mxu0  ;;  %9760 = vmatprep.mubr.msk.bf16.mxu1 %vm10734_vm0, %v14482_v44  ;;  %v10680_v50 = vld [vmem:[%s10791_s25 + $0x54] sm:$0x1]  ;;  %v8623_v41 = vrot.slane %v8573_v34, 9  ;;  %9973 = vmatpush3.bf16.msra.mxu1 %v10543_v13  ;;  %v3416_v34 = vrot.slane %v3414_v27, 5  ;;  %v12263_v51 = vsel %vm11239_vm6, %v8622_v12, %v4706_v58 }
 0x170   : > { %v2375_v14 = vpop.f32.mrb[54].mxu0  ;;  %v3406_v62 = vshll.u32 %v10680_v50, 16  ;;  %10087 = vmatpush3.bf16.msra.mxu0 %v10539_v25  ;;  %v4710_v2 = vrot.slane %v8460_v18, 5  ;;  %v10548_v25 = vld [vmem:[%s14403_s1 + $0x168] sm:$0xff]   ;;  %v12257_v18 = vld [vmem:[%s10791_s25 + $0x70] sm:$0xf]  ;;  %9974 = vmatprep.subr.bf16.mxu1 %v14482_v44 }
 0x171   : > { %v12244_v22 = vadd.f32 %v2375_v14, %v1625_v39  ;;  %v9635_v38 = vpop.f32.mrb[55].mxu0  ;;  %10088 = vmatprep.subr.bf16.mxu0 %v14482_v44  ;;  %v1629_v15 = vpop.f32.mrb[52].mxu1  ;;  %v3439_v39 = vshrl.u32 %v12216_v1, 16  ;;  %14509 = vst [vmem:[#allocation53_spill] sm:$0xff] %v12263_v51  ;;  %v10526_v14 = vld [vmem:[%s10791_s25 + $0x38] ss:$8 sps:$4 sm:$0xff]  }
 0x172   : > { %v12267_v30 = vsel %vm11239_vm6, %v8623_v41, %v4710_v2  ;;  %v1630_v54 = vadd.f32 %v1629_v15, %v11664_v28  ;;  %v9522_v13 = vpop.f32.mrb[53].mxu1  ;;  %v3427_v27 = vrot.slane %v3425_v11, 4  ;;  %v3430_v50 = vrot.slane %v3428_v47, 5  ;;  %v10681_v41 = vld [vmem:[%s10791_s25 + $0x5c] sm:$0x1]  ;;  %v10549_v11 = vld [vmem:[%s14403_s1 + $0x1a8] sm:$0xff]  }
 0x173   : > { %14508 = vst [vmem:[#allocation52_spill] sm:$0xff] %v12244_v22  ;;  %14510 = vst [vmem:[#allocation54_spill] sm:$0xff] %v12267_v30  ;;  %9873 = vmatmul.mubr.bf16.gmra.mrb[160].mxu0 %v8507_v33  ;;  %v1632_v60 = vpop.f32.mrb[54].mxu1  ;;  %v12275_v58 = vrot.slane %v3392_v17, 5  ;;  %v12277_v12 = vrot.slane %v3406_v62, 5  ;;  %v3420_v28 = vshll.u32 %v10681_v41, 16  ;;  %9975 = vmatpush3.bf16.msra.mxu1 %v10548_v25 }
 0x174   : > { %9876 = vmatprep.mubr.msk.bf16.mxu0 %vm10734_vm0, %v14482_v44  ;;  %v3442_v2 = vshll.u32 %v12216_v1, 16  ;;  %10089 = vmatpush3.bf16.msra.mxu0 %v10544_v19  ;;  %v1633_v33 = vadd.f32 %v1632_v60, %v11673_v52  ;;  %v9523_v47 = vpop.f32.mrb[55].mxu1  ;;  %v10682_v15 = vld [vmem:[%s10791_s25 + $0x64] sm:$0x1]  ;;  %v3453_v17 = vshrl.u32 %v12257_v18, 16  ;;  %v3456_v62 = vshll.u32 %v12257_v18, 16 }
 0x175   : > { %v3434_v13 = vshll.u32 %v10682_v15, 16  ;;  %10090 = vmatprep.subr.bf16.mxu0 %v14482_v44  ;;  %v3417_v19 = vor.u32 %v3416_v34, %v12250_v63  ;;  %v12290_v41 = vrot.slane %v3439_v39, 4  ;;  %v8462_v38 = vld [vmem:[%s10791_s25 + $0x12c] sm:$0x1]  ;;  %v8464_v30 = vld [vmem:[%s10791_s25 + $0x134] sm:$0x1]  ;;  %9976 = vmatprep.subr.bf16.mxu1 %v14482_v44  ;;  %v8508_v47 = vcombine.low %v3367_v42, %v3381_v10 }
 0x176   : > { %v2380_v1 = vpop.f32.mrb[56].mxu0  ;;  %9761 = vmatmul.mubr.bf16.gmra.mrb[160].mxu1 %v10526_v14  ;;  %v3431_v15 = vor.u32 %v3430_v50, %v3427_v27  ;;  %v8574_v18 = vld [vmem:[%s10791_s25 + $0x128] sm:$0xe]  ;;  %v8575_v25 = vld [vmem:[%s10791_s25 + $0x130] sm:$0xe]  ;;  %v4714_v51 = vrot.slane %v8462_v38, 5  ;;  %v3395_v10 = vsel %vm10823_vm3, %v12246_v24, %v12275_v58  ;;  %v3409_v27 = vsel %vm10823_vm3, %v12248_v8, %v12277_v12 }
 0x177   : > { %v12295_v52 = vadd.f32 %v2380_v1, %v1630_v54  ;;  %v9638_v60 = vpop.f32.mrb[57].mxu0  ;;  %9764 = vmatprep.mubr.msk.bf16.mxu1 %vm10734_vm0, %v14482_v44  ;;  %v12301_v63 = vrot.slane %v3442_v2, 5  ;;  %v8624_v34 = vrot.slane %v8574_v18, 9  ;;  %v8625_v39 = vrot.slane %v8575_v25, 9  ;;  %v10527_v42 = vld [vmem:[%s10791_s25 + $0x48] ss:$8 sps:$4 sm:$0xff]  }
 0x178   : > { %v2383_v22 = vpop.f32.mrb[58].mxu0  ;;  %10091 = vmatpush3.bf16.msra.mxu0 %v10549_v11  ;;  %v4718_v14 = vrot.slane %v8464_v30, 5  ;;  %v12315_v38 = vrot.slane %v3417_v19, 4  ;;  %v12320_v30 = vld [vmem:[%s10791_s25 + $0x78] sm:$0xf]  ;;  %v3455_v12 = vrot.slane %v3453_v17, 4 }
 0x179   : > { %v12303_v54 = vadd.f32 %v2383_v22, %v1633_v33  ;;  %v9639_v1 = vpop.f32.mrb[59].mxu0  ;;  %10092 = vmatprep.subr.bf16.mxu0 %v14482_v44  ;;  %v1637_v50 = vpop.f32.mrb[56].mxu1  ;;  %v12317_v22 = vrot.slane %v3420_v28, 5  ;;  %v12324_v2 = vsel %vm11239_vm6, %v8624_v34, %v4714_v51  ;;  %v3458_v11 = vrot.slane %v3456_v62, 5  ;;  %v12332_v28 = vld [vmem:[%s10791_s25 + $0x80] sm:$0xf] }
 0x17a   : > { %14511 = vst [vmem:[#allocation55_spill] sm:$0xff] %v12324_v2  ;;  %v12328_v24 = vsel %vm11239_vm6, %v8625_v39, %v4718_v14  ;;  %v1638_v8 = vadd.f32 %v1637_v50, %v11700_v7  ;;  %v9526_v58 = vpop.f32.mrb[57].mxu1  ;;  %v12338_v51 = vrot.slane %v3431_v15, 4  ;;  %v12340_v60 = vrot.slane %v3434_v13, 5  ;;  %v10683_v17 = vld [vmem:[%s10791_s25 + $0x6c] sm:$0x1] }
 0x17b   : > { %14512 = vst [vmem:[#allocation56_spill] sm:$0xff] %v12328_v24  ;;  %9877 = vmatmul.mubr.bf16.gmra.mrb[164].mxu0 %v8508_v47  ;;  %v1640_v19 = vpop.f32.mrb[58].mxu1  ;;  %v3445_v7 = vor.u32 %v12301_v63, %v12290_v41  ;;  %v3448_v62 = vshll.u32 %v10683_v17, 16  ;;  %v10684_v25 = vld [vmem:[%s10791_s25 + $0x74] sm:$0x1]  ;;  %v3467_v39 = vshrl.u32 %v12320_v30, 16  ;;  %v3459_v17 = vor.u32 %v3458_v11, %v3455_v12 }
 0x17c   : > { %9880 = vmatprep.mubr.msk.bf16.mxu0 %vm10734_vm0, %v14482_v44  ;;  %v1641_v47 = vadd.f32 %v1640_v19, %v11710_v56  ;;  %v9527_v18 = vpop.f32.mrb[59].mxu1  ;;  %v3462_v34 = vshll.u32 %v10684_v25, 16  ;;  %v3470_v15 = vshll.u32 %v12320_v30, 16  ;;  %v10553_v13 = vld [vmem:[%s14403_s1 + $0x170] sm:$0xff]   ;;  %v3481_v56 = vshrl.u32 %v12332_v28, 16 }
 0x17d   : > { %v10554_v41 = vld [vmem:[%s14403_s1 + $0x1b0] sm:$0xff]   ;;  %v8466_v14 = vld [vmem:[%s10791_s25 + $0x13c] sm:$0x1]  ;;  %v8468_v1 = vld [vmem:[%s10791_s25 + $0x144] sm:$0x1]  ;;  %v8509_v19 = vcombine.low %v3395_v10, %v3409_v27  ;;  %v3484_v24 = vshll.u32 %v12332_v28, 16  ;;  %9977 = vmatpush3.bf16.msra.mxu1 %v10553_v13  ;;  %v3423_v27 = vsel %vm10823_vm3, %v12315_v38, %v12317_v22 }
 0x17e   : > { %v2388_v63 = vpop.f32.mrb[60].mxu0  ;;  %9765 = vmatmul.mubr.bf16.gmra.mrb[164].mxu1 %v10527_v42  ;;  %10093 = vmatpush3.bf16.msra.mxu0 %v10554_v41  ;;  %v8576_v30 = vld [vmem:[%s10791_s25 + $0x138] sm:$0xe]  ;;  %v8577_v18 = vld [vmem:[%s10791_s25 + $0x140] sm:$0xe]  ;;  %v4722_v25 = vrot.slane %v8466_v14, 5 }
 0x17f   : > { %v12358_v50 = vadd.f32 %v2388_v63, %v1638_v8  ;;  %v9642_v58 = vpop.f32.mrb[61].mxu0  ;;  %9768 = vmatprep.mubr.msk.bf16.mxu1 %vm10734_vm0, %v14482_v44  ;;  %v8626_v2 = vrot.slane %v8576_v30, 9  ;;  %v8627_v42 = vrot.slane %v8577_v18, 9  ;;  %v4726_v8 = vrot.slane %v8468_v1, 5  ;;  %9978 = vmatprep.subr.bf16.mxu1 %v14482_v44  ;;  %v8421_v13 = vld [vmem:[%s10791_s25 + $0x88] sm:$0xf] }
 0x180   : > { %v2391_v33 = vpop.f32.mrb[62].mxu0  ;;  %v12371_v12 = vrot.slane %v3445_v7, 4  ;;  %v12373_v11 = vrot.slane %v3448_v62, 5  ;;  %10094 = vmatprep.subr.bf16.mxu0 %v14482_v44  ;;  %v8423_v41 = vld [vmem:[%s10791_s25 + $0x90] sm:$0xf]  ;;  %v3469_v1 = vrot.slane %v3467_v39, 4 }
 0x181   : > { %14513 = vst [vmem:[#allocation57_spill] sm:$0xff] %v12358_v50  ;;  %v12365_v63 = vadd.f32 %v2391_v33, %v1641_v47  ;;  %v9643_v10 = vpop.f32.mrb[63].mxu0  ;;  %v1645_v28 = vpop.f32.mrb[60].mxu1  ;;  %v3437_v33 = vsel %vm10823_vm3, %v12338_v51, %v12340_v60  ;;  %v12381_v47 = vrot.slane %v3462_v34, 5  ;;  %v12387_v38 = vsel %vm11239_vm6, %v8626_v2, %v4722_v25  ;;  %v10530_v14 = vld [vmem:[%s10791_s25 + $0x58] ss:$8 sps:$4 sm:$0xff]  }
 0x182   : > { %14515 = vst [vmem:[#allocation59_spill] sm:$0xff] %v12387_v38  ;;  %v12391_v22 = vsel %vm11239_vm6, %v8627_v42, %v4726_v8  ;;  %v1646_v7 = vadd.f32 %v1645_v28, %v11736_v16  ;;  %v9530_v62 = vpop.f32.mrb[61].mxu1  ;;  %v3472_v51 = vrot.slane %v3470_v15, 5  ;;  %v3460_v2 = vrot.slane %v3459_v17, 4  ;;  %v10685_v58 = vld [vmem:[%s10791_s25 + $0x7c] sm:$0x1] }
 0x183   : > { %14514 = vst [vmem:[#allocation58_spill] sm:$0xff] %v12365_v63  ;;  %14516 = vst [vmem:[#allocation60_spill] sm:$0xff] %v12391_v22  ;;  %9881 = vmatmul.mubr.bf16.gmra.mrb[168].mxu0 %v8509_v19  ;;  %v1648_v34 = vpop.f32.mrb[62].mxu1  ;;  %v3476_v30 = vshll.u32 %v10685_v58, 16  ;;  %v3483_v18 = vrot.slane %v3481_v56, 4  ;;  %v3486_v16 = vrot.slane %v3484_v24, 5  ;;  %v8510_v58 = vcombine.low %v3423_v27, %v3437_v33 }
 0x184   : > { %9884 = vmatprep.mubr.msk.bf16.mxu0 %vm10734_vm0, %v14482_v44  ;;  %v1649_v19 = vadd.f32 %v1648_v34, %v11746_v23  ;;  %v9531_v39 = vpop.f32.mrb[63].mxu1  ;;  %v3495_v15 = vshrl.u32 %v8421_v13, 16  ;;  %v3498_v25 = vshll.u32 %v8421_v13, 16  ;;  %v3509_v42 = vshrl.u32 %v8423_v41, 16  ;;  %v8470_v28 = vld [vmem:[%s10791_s25 + $0x14c] sm:$0x1] }
 0x185   : > { %v3512_v10 = vshll.u32 %v8423_v41, 16  ;;  %v8472_v62 = vld [vmem:[%s10791_s25 + $0x154] sm:$0x1]  ;;  %v3473_v56 = vor.u32 %v3472_v51, %v3469_v1  ;;  %v8578_v22 = vld [vmem:[%s10791_s25 + $0x148] sm:$0xe]  ;;  %v4730_v38 = vrot.slane %v8470_v28, 5  ;;  %v3451_v27 = vsel %vm10823_vm3, %v12371_v12, %v12373_v11 }
 0x186   : > { %v2396_v8 = vpop.f32.mrb[64].mxu0  ;;  %9769 = vmatmul.mubr.bf16.gmra.mrb[168].mxu1 %v10530_v14  ;;  %v8579_v24 = vld [vmem:[%s10791_s25 + $0x150] sm:$0xe]  ;;  %v10686_v13 = vld [vmem:[%s10791_s25 + $0x84] sm:$0x1]  ;;  %v8628_v39 = vrot.slane %v8578_v22, 9  ;;  %v3465_v33 = vsel %vm10823_vm3, %v3460_v2, %v12381_v47  ;;  %v3487_v14 = vor.u32 %v3486_v16, %v3483_v18 }
 0x187   : > { %v12403_v60 = vadd.f32 %v2396_v8, %v1646_v7  ;;  %v9646_v17 = vpop.f32.mrb[65].mxu0  ;;  %9772 = vmatprep.mubr.msk.bf16.mxu1 %vm10734_vm0, %v14482_v44  ;;  %v3490_v34 = vshll.u32 %v10686_v13, 16  ;;  %v8629_v41 = vrot.slane %v8579_v24, 9  ;;  %v4734_v63 = vrot.slane %v8472_v62, 5  ;;  %v10531_v51 = vld [vmem:[%s10791_s25 + $0x68] ss:$8 sps:$4 sm:$0xff]  }
 0x188   : > { %v2399_v23 = vpop.f32.mrb[66].mxu0  ;;  %v3497_v8 = vrot.slane %v3495_v15, 4  ;;  %v3500_v22 = vrot.slane %v3498_v25, 5  ;;  %v3511_v47 = vrot.slane %v3509_v42, 4  ;;  %v3514_v2 = vrot.slane %v3512_v10, 5 }
 0x189   : > { %v12410_v50 = vadd.f32 %v2399_v23, %v1649_v19  ;;  %v9647_v7 = vpop.f32.mrb[67].mxu0  ;;  %v1653_v1 = vpop.f32.mrb[64].mxu1  ;;  %v12422_v19 = vsel %vm11239_vm6, %v8628_v39, %v4730_v38  ;;  %v12426_v28 = vsel %vm11239_vm6, %v8629_v41, %v4734_v63  ;;  %v8425_v18 = vld [vmem:[%s10791_s25 + $0x98] sm:$0xf]  ;;  %v12434_v63 = vrot.slane %v3473_v56, 4 }
 0x18a   : > { %14517 = vst [vmem:[#allocation61_spill] sm:$0xff] %v12422_v19  ;;  %14518 = vst [vmem:[#allocation62_spill] sm:$0xff] %v12426_v28  ;;  %v1654_v12 = vadd.f32 %v1653_v1, %v11772_v3  ;;  %v9534_v11 = vpop.f32.mrb[65].mxu1  ;;  %v12436_v38 = vrot.slane %v3476_v30, 5  ;;  %v12438_v3 = vrot.slane %v3490_v34, 5  ;;  %v12441_v10 = vrot.slane %v3487_v14, 4 }
 0x18b   : > { %9885 = vmatmul.mubr.bf16.gmra.mrb[172].mxu0 %v8510_v58  ;;  %v1656_v15 = vpop.f32.mrb[66].mxu1  ;;  %v10687_v62 = vld [vmem:[%s10791_s25 + $0x8c] sm:$0x1]  ;;  %v10688_v58 = vld [vmem:[%s10791_s25 + $0x94] sm:$0x1]  ;;  %v8511_v39 = vcombine.low %v3451_v27, %v3465_v33  ;;  %v3523_v56 = vshrl.u32 %v8425_v18, 16  ;;  %v3515_v1 = vor.u32 %v3514_v2, %v3511_v47 }
 0x18c   : > { %9888 = vmatprep.mubr.msk.bf16.mxu0 %vm10734_vm0, %v14482_v44  ;;  %v1657_v25 = vadd.f32 %v1656_v15, %v11782_v26  ;;  %v9535_v42 = vpop.f32.mrb[67].mxu1  ;;  %v3504_v17 = vshll.u32 %v10687_v62, 16  ;;  %v3518_v24 = vshll.u32 %v10688_v58, 16  ;;  %v8427_v23 = vld [vmem:[%s10791_s25 + $0xa0] sm:$0xf]  ;;  %v3501_v26 = vor.u32 %v3500_v22, %v3497_v8 }
 0x18d   : > { %v8474_v41 = vld [vmem:[%s10791_s25 + $0x15c] sm:$0x1]  ;;  %v8476_v30 = vld [vmem:[%s10791_s25 + $0x164] sm:$0x1]  ;;  %v8580_v14 = vld [vmem:[%s10791_s25 + $0x158] sm:$0xe]  ;;  %v3479_v8 = vsel %vm10823_vm3, %v12434_v63, %v12436_v38 }
 0x18e   : > { %v2404_v13 = vpop.f32.mrb[68].mxu0  ;;  %9773 = vmatmul.mubr.bf16.gmra.mrb[172].mxu1 %v10531_v51  ;;  %v8581_v11 = vld [vmem:[%s10791_s25 + $0x160] sm:$0xe]  ;;  %v4738_v15 = vrot.slane %v8474_v41, 5  ;;  %v3526_v62 = vshll.u32 %v8425_v18, 16  ;;  %v8630_v58 = vrot.slane %v8580_v14, 9  ;;  %v3493_v18 = vsel %vm10823_vm3, %v12441_v10, %v12438_v3 }
 0x18f   : > { %v12448_v34 = vadd.f32 %v2404_v13, %v1654_v12  ;;  %v9650_v7 = vpop.f32.mrb[69].mxu0  ;;  %9776 = vmatprep.mubr.msk.bf16.mxu1 %vm10734_vm0, %v14482_v44  ;;  %v8631_v27 = vrot.slane %v8581_v11, 9  ;;  %v4742_v33 = vrot.slane %v8476_v30, 5  ;;  %v3537_v22 = vshrl.u32 %v8427_v23, 16  ;;  %v10532_v2 = vld [vmem:[%s10791_s25 + $0x78] ss:$8 sps:$4 sm:$0xff]  }
 0x190   : > { %v2407_v42 = vpop.f32.mrb[70].mxu0  ;;  %v3540_v12 = vshll.u32 %v8427_v23, 16  ;;  %v12465_v13 = vrot.slane %v3504_v17, 5  ;;  %v12476_v23 = vrot.slane %v3501_v26, 4  ;;  %v12478_v30 = vrot.slane %v3518_v24, 5 }
 0x191   : > { %v12454_v16 = vadd.f32 %v2407_v42, %v1657_v25  ;;  %v9651_v51 = vpop.f32.mrb[71].mxu0  ;;  %v1661_v47 = vpop.f32.mrb[68].mxu1  ;;  %v12469_v25 = vsel %vm11239_vm6, %v8630_v58, %v4738_v15  ;;  %v12473_v41 = vsel %vm11239_vm6, %v8631_v27, %v4742_v33  ;;  %v8429_v3 = vld [vmem:[%s10791_s25 + $0xa8] sm:$0xf]  ;;  %v12485_v7 = vrot.slane %v3515_v1, 4  ;;  %v10558_v27 = vld [vmem:[%s14403_s1 + $0x178] sm:$0xff]  }
 0x192   : > { %14519 = vst [vmem:[#allocation63_spill] sm:$0xff] %v12469_v25  ;;  %14520 = vst [vmem:[#allocation64_spill] sm:$0xff] %v12473_v41  ;;  %v1662_v63 = vadd.f32 %v1661_v47, %v11808_v49  ;;  %v9538_v38 = vpop.f32.mrb[69].mxu1  ;;  %v3525_v49 = vrot.slane %v3523_v56, 4  ;;  %v3528_v14 = vrot.slane %v3526_v62, 5  ;;  %v3539_v15 = vrot.slane %v3537_v22, 4  ;;  %9979 = vmatpush3.bf16.msra.mxu1 %v10558_v27 }
 0x193   : > { %9889 = vmatmul.mubr.bf16.gmra.mrb[176].mxu0 %v8511_v39  ;;  %v1664_v17 = vpop.f32.mrb[70].mxu1  ;;  %v10689_v39 = vld [vmem:[%s10791_s25 + $0x9c] sm:$0x1]  ;;  %v3542_v42 = vrot.slane %v3540_v12, 5  ;;  %v12490_v58 = vld [vmem:[%s10791_s25 + $0xb0] sm:$0xf]  ;;  %10196 = vmatprep.subr.bf16.mxu1 %v14482_v44 }
 0x194   : > { %9892 = vmatprep.mubr.msk.bf16.mxu0 %vm10734_vm0, %v14482_v44  ;;  %v3532_v11 = vshll.u32 %v10689_v39, 16  ;;  %v1665_v26 = vadd.f32 %v1664_v17, %v11816_v9  ;;  %v9539_v24 = vpop.f32.mrb[71].mxu1  ;;  %v10690_v33 = vld [vmem:[%s10791_s25 + $0xa4] sm:$0x1]  ;;  %v3551_v62 = vshrl.u32 %v8429_v3, 16  ;;  %v3554_v51 = vshll.u32 %v8429_v3, 16 }
 0x195   : > { %v3546_v56 = vshll.u32 %v10690_v33, 16  ;;  %v8478_v47 = vld [vmem:[%s10791_s25 + $0x16c] sm:$0x1]  ;;  %v8512_v17 = vcombine.low %v3479_v8, %v3493_v18  ;;  %v8582_v22 = vld [vmem:[%s10791_s25 + $0x168] sm:$0xe]  ;;  %v3529_v10 = vor.u32 %v3528_v14, %v3525_v49  ;;  %v3543_v18 = vor.u32 %v3542_v42, %v3539_v15 }
 0x196   : > { %v2412_v1 = vpop.f32.mrb[72].mxu0  ;;  %9777 = vmatmul.mubr.bf16.gmra.mrb[176].mxu1 %v10532_v2  ;;  %v8583_v12 = vld [vmem:[%s10791_s25 + $0x170] sm:$0xe]  ;;  %v4746_v39 = vrot.slane %v8478_v47, 5  ;;  %v8480_v41 = vld [vmem:[%s10791_s25 + $0x174] sm:$0x1] }
 0x197   : > { %v12497_v9 = vadd.f32 %v2412_v1, %v1662_v63  ;;  %v9654_v38 = vpop.f32.mrb[73].mxu0  ;;  %9780 = vmatprep.mubr.msk.bf16.mxu1 %vm10734_vm0, %v14482_v44  ;;  %v8632_v25 = vrot.slane %v8582_v22, 9  ;;  %v8633_v33 = vrot.slane %v8583_v12, 9  ;;  %v10560_v2 = vld [vmem:[%s14403_s1 + $0x1b8] sm:$0xff]   ;;  %v3565_v3 = vshrl.u32 %v12490_v58, 16 }
 0x198   : > { %v2415_v24 = vpop.f32.mrb[74].mxu0  ;;  %v4750_v1 = vrot.slane %v8480_v41, 5  ;;  %v3553_v49 = vrot.slane %v3551_v62, 4  ;;  %v3556_v14 = vrot.slane %v3554_v51, 5  ;;  %10095 = vmatpush3.bf16.msra.mxu0 %v10560_v2  ;;  %v3507_v41 = vsel %vm10823_vm3, %v12476_v23, %v12465_v13  ;;  %v10691_v2 = vld [vmem:[%s10791_s25 + $0xac] sm:$0x1] }
 0x199   : > { %v12507_v63 = vadd.f32 %v2415_v24, %v1665_v26  ;;  %v9655_v8 = vpop.f32.mrb[75].mxu0  ;;  %v1669_v47 = vpop.f32.mrb[72].mxu1  ;;  %v12513_v27 = vsel %vm11239_vm6, %v8632_v25, %v4746_v39  ;;  %v10535_v26 = vld [vmem:[%s10791_s25 + $0x88] ss:$8 sps:$4 sm:$0xff]   ;;  %v3568_v15 = vshll.u32 %v12490_v58, 16  ;;  %10312 = vmatprep.subr.bf16.mxu0 %v14482_v44  ;;  %v3530_v13 = vrot.slane %v3529_v10, 4 }
 0x19a   : > { %14521 = vst [vmem:[#allocation65_spill] sm:$0xff] %v12513_v27  ;;  %v1670_v38 = vadd.f32 %v1669_v47, %v11844_v46  ;;  %v9542_v22 = vpop.f32.mrb[73].mxu1  ;;  %v12524_v42 = vsel %vm11239_vm6, %v8633_v33, %v4750_v1  ;;  %v3521_v46 = vsel %vm10823_vm3, %v12485_v7, %v12478_v30  ;;  %v3534_v23 = vrot.slane %v3532_v11, 5  ;;  %v8433_v10 = vld [vmem:[%s10791_s25 + $0xb8] sm:$0xf] }
 0x19b   : > { %9893 = vmatmul.mubr.bf16.gmra.mrb[180].mxu0 %v8512_v17  ;;  %14522 = vst [vmem:[#allocation66_spill] sm:$0xff] %v12524_v42  ;;  %v1672_v25 = vpop.f32.mrb[74].mxu1  ;;  %v3544_v17 = vrot.slane %v3543_v18, 4  ;;  %v3548_v12 = vrot.slane %v3546_v56, 5  ;;  %v12536_v39 = vrot.slane %v3565_v3, 4  ;;  %v3557_v33 = vor.u32 %v3556_v14, %v3553_v49 }
 0x19c   : > { %9896 = vmatprep.mubr.msk.bf16.mxu0 %vm10734_vm0, %v14482_v44  ;;  %v1673_v62 = vadd.f32 %v1672_v25, %v11852_v59  ;;  %v9543_v51 = vpop.f32.mrb[75].mxu1  ;;  %v3560_v30 = vshll.u32 %v10691_v2, 16  ;;  %v8482_v7 = vld [vmem:[%s10791_s25 + $0x17c] sm:$0x1]  ;;  %v8513_v8 = vcombine.low %v3507_v41, %v3521_v46  ;;  %v3570_v1 = vrot.slane %v3568_v15, 5 }
 0x19d   : > { %v8584_v47 = vld [vmem:[%s10791_s25 + $0x178] sm:$0xe]  ;;  %v8585_v18 = vld [vmem:[%s10791_s25 + $0x180] sm:$0xe]  ;;  %v3535_v3 = vsel %vm10823_vm3, %v3530_v13, %v3534_v23  ;;  %v10692_v49 = vld [vmem:[%s10791_s25 + $0xb4] sm:$0x1] }
 0x19e   : > { %v2420_v24 = vpop.f32.mrb[76].mxu0  ;;  %9781 = vmatmul.mubr.bf16.gmra.mrb[180].mxu1 %v10535_v26  ;;  %v3574_v14 = vshll.u32 %v10692_v49, 16  ;;  %v8484_v22 = vld [vmem:[%s10791_s25 + $0x184] sm:$0x1]  ;;  %v8634_v26 = vrot.slane %v8584_v47, 9  ;;  %v3579_v15 = vshrl.u32 %v8433_v10, 16 }
 0x19f   : > { %v12541_v11 = vadd.f32 %v2420_v24, %v1670_v38  ;;  %v9658_v59 = vpop.f32.mrb[77].mxu0  ;;  %9784 = vmatprep.mubr.msk.bf16.mxu1 %vm10734_vm0, %v14482_v44  ;;  %v4754_v38 = vrot.slane %v8482_v7, 5  ;;  %v8435_v41 = vld [vmem:[%s10791_s25 + $0xc0] sm:$0xf]  ;;  %v8635_v46 = vrot.slane %v8585_v18, 9  ;;  %v4758_v24 = vrot.slane %v8484_v22, 5 }
 0x1a0   : > { %v2423_v56 = vpop.f32.mrb[78].mxu0  ;;  %v3549_v59 = vsel %vm10823_vm3, %v3544_v17, %v3548_v12  ;;  %v12556_v58 = vrot.slane %v3557_v33, 4  ;;  %v12558_v13 = vrot.slane %v3560_v30, 5  ;;  %v10536_v47 = vld [vmem:[%s10791_s25 + $0x98] ss:$8 sps:$4 sm:$0xff]   ;;  %v3571_v18 = vor.u32 %v3570_v1, %v12536_v39 }
 0x1a1   : > { %v12551_v25 = vadd.f32 %v2423_v56, %v1673_v62  ;;  %v9659_v51 = vpop.f32.mrb[79].mxu0  ;;  %v1677_v2 = vpop.f32.mrb[76].mxu1  ;;  %v12562_v23 = vsel %vm11239_vm6, %v8634_v26, %v4754_v38  ;;  %v3582_v56 = vshll.u32 %v8433_v10, 16  ;;  %v12569_v17 = vsel %vm11239_vm6, %v8635_v46, %v4758_v24  ;;  %v8437_v49 = vld [vmem:[%s10791_s25 + $0xc8] sm:$0xf] }
 0x1a2   : > { %14523 = vst [vmem:[#allocation67_spill] sm:$0xff] %v12562_v23  ;;  %v1678_v62 = vadd.f32 %v1677_v2, %v11882_v43  ;;  %v9546_v7 = vpop.f32.mrb[77].mxu1  ;;  %14524 = vst [vmem:[#allocation68_spill] sm:$0xff] %v12569_v17  ;;  %v12573_v33 = vrot.slane %v3574_v14, 5  ;;  %v3593_v43 = vshrl.u32 %v8435_v41, 16  ;;  %v3596_v30 = vshll.u32 %v8435_v41, 16 }
 0x1a3   : > { %9897 = vmatmul.mubr.bf16.gmra.mrb[184].mxu0 %v8513_v8  ;;  %v1680_v12 = vpop.f32.mrb[78].mxu1  ;;  %v3581_v1 = vrot.slane %v3579_v15, 4  ;;  %v8439_v22 = vld [vmem:[%s10791_s25 + $0xd0] sm:$0xf]  ;;  %v8586_v26 = vld [vmem:[%s10791_s25 + $0x188] sm:$0xe]  ;;  %v8514_v51 = vcombine.low %v3535_v3, %v3549_v59 }
 0x1a4   : > { %9900 = vmatprep.mubr.msk.bf16.mxu0 %vm10734_vm0, %v14482_v44  ;;  %v1681_v10 = vadd.f32 %v1680_v12, %v11889_v48  ;;  %v9547_v8 = vpop.f32.mrb[79].mxu1  ;;  %v8486_v46 = vld [vmem:[%s10791_s25 + $0x18c] sm:$0x1]  ;;  %v8587_v24 = vld [vmem:[%s10791_s25 + $0x190] sm:$0xe]  ;;  %v8636_v2 = vrot.slane %v8586_v26, 9 }
 0x1a5   : > { %v3584_v7 = vrot.slane %v3582_v56, 5  ;;  %v8488_v42 = vld [vmem:[%s10791_s25 + $0x194] sm:$0x1]  ;;  %v4762_v27 = vrot.slane %v8486_v46, 5  ;;  %v8637_v28 = vrot.slane %v8587_v24, 9  ;;  %v3572_v48 = vrot.slane %v3571_v18, 4 }
 0x1a6   : > { %v2428_v38 = vpop.f32.mrb[80].mxu0  ;;  %9785 = vmatmul.mubr.bf16.gmra.mrb[184].mxu1 %v10536_v47  ;;  %v3595_v15 = vrot.slane %v3593_v43, 4  ;;  %v3598_v12 = vrot.slane %v3596_v30, 5  ;;  %v4766_v3 = vrot.slane %v8488_v42, 5  ;;  %v3607_v47 = vshrl.u32 %v8437_v49, 16 }
 0x1a7   : > { %v12583_v14 = vadd.f32 %v2428_v38, %v1678_v62  ;;  %v9662_v41 = vpop.f32.mrb[81].mxu0  ;;  %9788 = vmatprep.mubr.msk.bf16.mxu1 %vm10734_vm0, %v14482_v44  ;;  %v3610_v62 = vshll.u32 %v8437_v49, 16  ;;  %v12592_v56 = vsel %vm11239_vm6, %v8636_v2, %v4762_v27  ;;  %v3621_v38 = vshrl.u32 %v8439_v22, 16  ;;  %v10537_v30 = vld [vmem:[%s10791_s25 + $0xa8] ss:$8 sps:$4 sm:$0xff]  }
 0x1a8   : > { %v2431_v39 = vpop.f32.mrb[82].mxu0  ;;  %14525 = vst [vmem:[#allocation69_spill] sm:$0xff] %v12592_v56  ;;  %v3624_v46 = vshll.u32 %v8439_v22, 16  ;;  %v12596_v18 = vsel %vm11239_vm6, %v8637_v28, %v4766_v3  ;;  %v3563_v49 = vsel %vm10823_vm3, %v12556_v58, %v12558_v13  ;;  %v3585_v27 = vor.u32 %v3584_v7, %v3581_v1  ;;  %v10693_v28 = vld [vmem:[%s10791_s25 + $0xbc] sm:$0x1] }
 0x1a9   : > { %v12588_v59 = vadd.f32 %v2431_v39, %v1681_v10  ;;  %v9663_v8 = vpop.f32.mrb[83].mxu0  ;;  %v1685_v26 = vpop.f32.mrb[80].mxu1  ;;  %14526 = vst [vmem:[#allocation70_spill] sm:$0xff] %v12596_v18  ;;  %v3588_v22 = vshll.u32 %v10693_v28, 16  ;;  %v10694_v24 = vld [vmem:[%s10791_s25 + $0xc4] sm:$0x1] }
 0x1aa   : > { %v1686_v42 = vadd.f32 %v1685_v26, %v11922_v35  ;;  %v9550_v43 = vpop.f32.mrb[81].mxu1  ;;  %v3577_v35 = vsel %vm10823_vm3, %v3572_v48, %v12573_v33  ;;  %v3602_v2 = vshll.u32 %v10694_v24, 16  ;;  %v3609_v1 = vrot.slane %v3607_v47, 4 }
 0x1ab   : > { %9901 = vmatmul.mubr.bf16.gmra.mrb[188].mxu0 %v8514_v51  ;;  %v1688_v10 = vpop.f32.mrb[82].mxu1  ;;  %v3599_v51 = vor.u32 %v3598_v12, %v3595_v15  ;;  %v3612_v41 = vrot.slane %v3610_v62, 5  ;;  %v3623_v3 = vrot.slane %v3621_v38, 4  ;;  %v3626_v8 = vrot.slane %v3624_v46, 5  ;;  %v8441_v15 = vld [vmem:[%s10791_s25 + $0xd8] sm:$0xf] }
 0x1ac   : > { %9904 = vmatprep.mubr.msk.bf16.mxu0 %vm10734_vm0, %v14482_v44  ;;  %v1689_v58 = vadd.f32 %v1688_v10, %v11926_v36  ;;  %v9551_v13 = vpop.f32.mrb[83].mxu1  ;;  %v8515_v48 = vcombine.low %v3563_v49, %v3577_v35  ;;  %v3586_v43 = vrot.slane %v3585_v27, 4  ;;  %v3590_v36 = vrot.slane %v3588_v22, 5  ;;  %v8443_v10 = vld [vmem:[%s10791_s25 + $0xe0] sm:$0xf] }
 0x1ad   : > { %v3600_v47 = vrot.slane %v3599_v51, 4  ;;  %v3604_v62 = vrot.slane %v3602_v2, 5  ;;  %v3627_v49 = vor.u32 %v3626_v8, %v3623_v3  ;;  %v10696_v35 = vld [vmem:[%s10791_s25 + $0xd4] sm:$0x1]  ;;  %v3635_v13 = vshrl.u32 %v8441_v15, 16 }
 0x1ae   : > { %v2436_v7 = vpop.f32.mrb[84].mxu0  ;;  %9789 = vmatmul.mubr.bf16.gmra.mrb[188].mxu1 %v10537_v30  ;;  %v3613_v30 = vor.u32 %v3612_v41, %v3609_v1  ;;  %v3630_v27 = vshll.u32 %v10696_v35, 16  ;;  %v10540_v22 = vld [vmem:[%s10791_s25 + $0xb8] ss:$8 sps:$4 sm:$0xff]   ;;  %v3649_v51 = vshrl.u32 %v8443_v10, 16  ;;  %v3652_v2 = vshll.u32 %v8443_v10, 16 }
 0x1af   : > { %v12614_v26 = vadd.f32 %v2436_v7, %v1686_v42  ;;  %v9666_v33 = vpop.f32.mrb[85].mxu0  ;;  %9792 = vmatprep.mubr.msk.bf16.mxu1 %vm10734_vm0, %v14482_v44  ;;  %v10695_v42 = vld [vmem:[%s10791_s25 + $0xcc] sm:$0x1]  ;;  %v3638_v7 = vshll.u32 %v8441_v15, 16  ;;  %v3605_v1 = vsel %vm10823_vm3, %v3600_v47, %v3604_v62 }
 0x1b0   : > { %v2439_v12 = vpop.f32.mrb[86].mxu0  ;;  %v3616_v28 = vshll.u32 %v10695_v42, 16  ;;  %v3614_v8 = vrot.slane %v3613_v30, 4  ;;  %v3632_v15 = vrot.slane %v3630_v27, 5  ;;  %v3654_v47 = vrot.slane %v3652_v2, 5 }
 0x1b1   : > { %v12620_v38 = vadd.f32 %v2439_v12, %v1689_v58  ;;  %v9667_v46 = vpop.f32.mrb[87].mxu0  ;;  %v1693_v24 = vpop.f32.mrb[84].mxu1  ;;  %v3591_v58 = vsel %vm10823_vm3, %v3586_v43, %v3590_v36  ;;  %v3637_v12 = vrot.slane %v3635_v13, 4  ;;  %v3640_v10 = vrot.slane %v3638_v7, 5  ;;  %v8445_v30 = vld [vmem:[%s10791_s25 + $0xe8] sm:$0xf] }
 0x1b2   : > { %v1694_v33 = vadd.f32 %v1693_v24, %v11972_v53  ;;  %v9554_v39 = vpop.f32.mrb[85].mxu1  ;;  %v3618_v53 = vrot.slane %v3616_v28, 5  ;;  %v8516_v43 = vcombine.low %v3591_v58, %v3605_v1  ;;  %v3651_v36 = vrot.slane %v3649_v51, 4  ;;  %v8447_v28 = vld [vmem:[%s10791_s25 + $0xf0] sm:$0xf] }
 0x1b3   : > { %9905 = vmatmul.mubr.bf16.gmra.mrb[192].mxu0 %v8515_v48  ;;  %v1696_v18 = vpop.f32.mrb[86].mxu1  ;;  %v3628_v48 = vrot.slane %v3627_v49, 4  ;;  %v3641_v27 = vor.u32 %v3640_v10, %v3637_v12  ;;  %v10698_v58 = vld [vmem:[%s10791_s25 + $0xe4] sm:$0x1] }
 0x1b4   : > { %9908 = vmatprep.mubr.msk.bf16.mxu0 %vm10734_vm0, %v14482_v44  ;;  %v1697_v41 = vadd.f32 %v1696_v18, %v11993_v57  ;;  %v9555_v3 = vpop.f32.mrb[87].mxu1  ;;  %v3619_v49 = vsel %vm10823_vm3, %v3614_v8, %v3618_v53  ;;  %v3655_v2 = vor.u32 %v3654_v47, %v3651_v36  ;;  %v3658_v1 = vshll.u32 %v10698_v58, 16 }
 0x1b5   : > { %v3633_v35 = vsel %vm10823_vm3, %v3628_v48, %v3632_v15  ;;  %v3663_v3 = vshrl.u32 %v8445_v30, 16  ;;  %v3666_v8 = vshll.u32 %v8445_v30, 16  ;;  %v3677_v53 = vshrl.u32 %v8447_v28, 16 }
 0x1b6   : > { %v2444_v39 = vpop.f32.mrb[88].mxu0  ;;  %9793 = vmatmul.mubr.bf16.gmra.mrb[192].mxu1 %v10540_v22  ;;  %v10697_v22 = vld [vmem:[%s10791_s25 + $0xdc] sm:$0x1]  ;;  %v8517_v12 = vcombine.low %v3619_v49, %v3633_v35  ;;  %v3642_v10 = vrot.slane %v3641_v27, 4 }
 0x1b7   : > { %v12633_v46 = vadd.f32 %v2444_v39, %v1694_v33  ;;  %v9670_v42 = vpop.f32.mrb[89].mxu0  ;;  %9796 = vmatprep.mubr.msk.bf16.mxu1 %vm10734_vm0, %v14482_v44  ;;  %v10541_v33 = vld [vmem:[%s10791_s25 + $0xc8] ss:$8 sps:$4 sm:$0xff]   ;;  %v3644_v51 = vshll.u32 %v10697_v22, 16  ;;  %v3680_v39 = vshll.u32 %v8447_v28, 16  ;;  %v3665_v30 = vrot.slane %v3663_v3, 4 }
 0x1b8   : > { %v2447_v57 = vpop.f32.mrb[90].mxu0  ;;  %v8449_v42 = vld [vmem:[%s10791_s25 + $0xf8] sm:$0xf]  ;;  %v3679_v28 = vrot.slane %v3677_v53, 4 }
 0x1b9   : > { %v12637_v18 = vadd.f32 %v2447_v57, %v1697_v41  ;;  %v9671_v62 = vpop.f32.mrb[91].mxu0  ;;  %v1701_v24 = vpop.f32.mrb[88].mxu1  ;;  %v3646_v47 = vrot.slane %v3644_v51, 5  ;;  %v3656_v57 = vrot.slane %v3655_v2, 4  ;;  %v3682_v22 = vrot.slane %v3680_v39, 5 }
 0x1ba   : > { %v1702_v13 = vadd.f32 %v1701_v24, %v12025_v32  ;;  %v9558_v7 = vpop.f32.mrb[89].mxu1  ;;  %v3660_v62 = vrot.slane %v3658_v1, 5  ;;  %v8451_v24 = vld [vmem:[%s10791_s25 + $0x100] sm:$0xf]  ;;  %v3691_v27 = vshrl.u32 %v8449_v42, 16 }
 0x1bb   : > { %9909 = vmatmul.mubr.bf16.gmra.mrb[196].mxu0 %v8516_v43  ;;  %v1704_v41 = vpop.f32.mrb[90].mxu1  ;;  %v3705_v51 = vshrl.u32 %v8451_v24, 16  ;;  %v3708_v2 = vshll.u32 %v8451_v24, 16  ;;  %v3647_v3 = vsel %vm10823_vm3, %v3642_v10, %v3646_v47 }
 0x1bc   : > { %9912 = vmatprep.mubr.msk.bf16.mxu0 %vm10734_vm0, %v14482_v44  ;;  %v1705_v32 = vadd.f32 %v1704_v41, %v12035_v37  ;;  %v9559_v48 = vpop.f32.mrb[91].mxu1  ;;  %v3668_v37 = vrot.slane %v3666_v8, 5  ;;  %v10542_v41 = vld [vmem:[%s10791_s25 + $0xd8] ss:$8 sps:$4 sm:$0xff]   ;;  %v3661_v8 = vsel %vm10823_vm3, %v3656_v57, %v3660_v62  ;;  %v3693_v24 = vrot.slane %v3691_v27, 4 }
 0x1bd   : > { %v3707_v47 = vrot.slane %v3705_v51, 4  ;;  %v3710_v57 = vrot.slane %v3708_v2, 5  ;;  %v10701_v2 = vld [vmem:[%s10791_s25 + $0xfc] sm:$0x1] }
 0x1be   : > { %v2452_v15 = vpop.f32.mrb[92].mxu0  ;;  %9797 = vmatmul.mubr.bf16.gmra.mrb[196].mxu1 %v10541_v33  ;;  %v3669_v39 = vor.u32 %v3668_v37, %v3665_v30  ;;  %v8453_v30 = vld [vmem:[%s10791_s25 + $0x108] sm:$0xf] }
 0x1bf   : > { %v12653_v43 = vadd.f32 %v2452_v15, %v1702_v13  ;;  %v9674_v36 = vpop.f32.mrb[93].mxu0  ;;  %9800 = vmatprep.mubr.msk.bf16.mxu1 %vm10734_vm0, %v14482_v44  ;;  %v3694_v13 = vshll.u32 %v8449_v42, 16  ;;  %v3683_v15 = vor.u32 %v3682_v22, %v3679_v28  ;;  %v10700_v42 = vld [vmem:[%s10791_s25 + $0xf4] sm:$0x1] }
 0x1c0   : > { %v2455_v7 = vpop.f32.mrb[94].mxu0 }
 0x1c1   : > { %v12658_v49 = vadd.f32 %v2455_v7, %v1705_v32  ;;  %v9675_v35 = vpop.f32.mrb[95].mxu0  ;;  %v1709_v33 = vpop.f32.mrb[92].mxu1  ;;  %v10699_v32 = vld [vmem:[%s10791_s25 + $0xec] sm:$0x1]  ;;  %v3696_v7 = vrot.slane %v3694_v13, 5  ;;  %v3684_v27 = vrot.slane %v3683_v15, 4 }
 0x1c2   : > { %v1710_v58 = vadd.f32 %v1709_v33, %v12081_v29  ;;  %v9562_v1 = vpop.f32.mrb[93].mxu1  ;;  %v3672_v48 = vshll.u32 %v10699_v32, 16  ;;  %v3686_v29 = vshll.u32 %v10700_v42, 16  ;;  %v8518_v35 = vcombine.low %v3647_v3, %v3661_v8 }
 0x1c3   : > { %9913 = vmatmul.mubr.bf16.gmra.mrb[200].mxu0 %v8517_v12  ;;  %v1712_v53 = vpop.f32.mrb[94].mxu1  ;;  %v3697_v51 = vor.u32 %v3696_v7, %v3693_v24  ;;  %v3700_v1 = vshll.u32 %v10701_v2, 16  ;;  %v3711_v8 = vor.u32 %v3710_v57, %v3707_v47  ;;  %v3719_v42 = vshrl.u32 %v8453_v30, 16 }
 0x1c4   : > { %9916 = vmatprep.mubr.msk.bf16.mxu0 %vm10734_vm0, %v14482_v44  ;;  %v1713_v36 = vadd.f32 %v1712_v53, %v12088_v40  ;;  %v9563_v12 = vpop.f32.mrb[95].mxu1  ;;  %v3670_v40 = vrot.slane %v3669_v39, 4  ;;  %v3674_v22 = vrot.slane %v3672_v48, 5  ;;  %v3688_v13 = vrot.slane %v3686_v29, 5  ;;  %v10545_v48 = vld [vmem:[%s10791_s25 + $0xe8] ss:$8 sps:$4 sm:$0xff]  }
 0x1c5   : > { %v3722_v12 = vshll.u32 %v8453_v30, 16  ;;  %v3712_v30 = vrot.slane %v3711_v8, 4 }
 0x1c6   : > { %v2460_v10 = vpop.f32.mrb[96].mxu0  ;;  %9801 = vmatmul.mubr.bf16.gmra.mrb[200].mxu1 %v10542_v41  ;;  %v8455_v41 = vld [vmem:[%s10791_s25 + $0x110] sm:$0xf]  ;;  %v3675_v29 = vsel %vm10823_vm3, %v3670_v40, %v3674_v22 }
 0x1c7   : > { %v9678_v62 = vpop.f32.mrb[97].mxu0  ;;  %v12672_v37 = vadd.f32 %v2460_v10, %v1710_v58  ;;  %9804 = vmatprep.mubr.msk.bf16.mxu1 %vm10734_vm0, %v14482_v44  ;;  %v10702_v58 = vld [vmem:[%s10791_s25 + $0x104] sm:$0x1]  ;;  %v3733_v24 = vshrl.u32 %v8455_v41, 16  ;;  %v3736_v7 = vshll.u32 %v8455_v41, 16  ;;  %v3724_v2 = vrot.slane %v3722_v12, 5 }
 0x1c8   : > { %v2463_v28 = vpop.f32.mrb[98].mxu0  ;;  %v3714_v32 = vshll.u32 %v10702_v58, 16  ;;  %v3702_v62 = vrot.slane %v3700_v1, 5  ;;  %v8459_v41 = vld [vmem:[%s10791_s25 + $0x120] sm:$0xf] }
 0x1c9   : > { %v9679_v33 = vpop.f32.mrb[99].mxu0  ;;  %v12678_v53 = vadd.f32 %v2463_v28, %v1713_v36  ;;  %v1717_v3 = vpop.f32.mrb[96].mxu1  ;;  %v3689_v36 = vsel %vm10823_vm3, %v3684_v27, %v3688_v13  ;;  %v3738_v13 = vrot.slane %v3736_v7, 5 }
 0x1ca   : > { %v1718_v10 = vadd.f32 %v1717_v3, %v12146_v5  ;;  %v9566_v39 = vpop.f32.mrb[97].mxu1  ;;  %v3698_v5 = vrot.slane %v3697_v51, 4  ;;  %v3716_v28 = vrot.slane %v3714_v32, 5  ;;  %v3721_v33 = vrot.slane %v3719_v42, 4  ;;  %v8457_v51 = vld [vmem:[%s10791_s25 + $0x118] sm:$0xf] }
 0x1cb   : > { %9917 = vmatmul.mubr.bf16.gmra.mrb[204].mxu0 %v8518_v35  ;;  %v1720_v15 = vpop.f32.mrb[98].mxu1  ;;  %v8519_v40 = vcombine.low %v3675_v29, %v3689_v36  ;;  %v3747_v36 = vshrl.u32 %v8457_v51, 16 }
 0x1cc   : > { %9920 = vmatprep.mubr.msk.bf16.mxu0 %vm10734_vm0, %v14482_v44  ;;  %v1721_v47 = vadd.f32 %v1720_v15, %v12155_v6  ;;  %v9567_v57 = vpop.f32.mrb[99].mxu1  ;;  %v3735_v6 = vrot.slane %v3733_v24, 4  ;;  %v3703_v32 = vsel %vm10823_vm3, %v3698_v5, %v3702_v62  ;;  %v3717_v42 = vsel %vm10823_vm3, %v3712_v30, %v3716_v28  ;;  %v10703_v15 = vld [vmem:[%s10791_s25 + $0x10c] sm:$0x1] }
 0x1cd   : > { %v3725_v12 = vor.u32 %v3724_v2, %v3721_v33  ;;  %v3728_v29 = vshll.u32 %v10703_v15, 16  ;;  %v3750_v24 = vshll.u32 %v8457_v51, 16  ;;  %v10704_v57 = vld [vmem:[%s10791_s25 + $0x114] sm:$0x1]  ;;  %v3761_v62 = vshrl.u32 %v8459_v41, 16 }
 0x1ce   : > { %v2468_v35 = vpop.f32.mrb[100].mxu0  ;;  %9805 = vmatmul.mubr.bf16.gmra.mrb[204].mxu1 %v10545_v48  ;;  %v10546_v48 = vld [vmem:[%s10791_s25 + $0xf8] ss:$8 sps:$4 sm:$0xff]   ;;  %v3742_v5 = vshll.u32 %v10704_v57, 16  ;;  %v8520_v33 = vcombine.low %v3703_v32, %v3717_v42  ;;  %v3749_v51 = vrot.slane %v3747_v36, 4 }
 0x1cf   : > { %v9682_v3 = vpop.f32.mrb[101].mxu0  ;;  %v12690_v22 = vadd.f32 %v2468_v35, %v1718_v10  ;;  %9808 = vmatprep.mubr.msk.bf16.mxu1 %vm10734_vm0, %v14482_v44  ;;  %v3764_v35 = vshll.u32 %v8459_v41, 16  ;;  %v3726_v2 = vrot.slane %v3725_v12, 4  ;;  %v3763_v41 = vrot.slane %v3761_v62, 4 }
 0x1d0   : > { %v2471_v27 = vpop.f32.mrb[102].mxu0  ;;  %v8461_v3 = vld [vmem:[%s10791_s25 + $0x128] sm:$0xf] }
 0x1d1   : > { %v9683_v1 = vpop.f32.mrb[103].mxu0  ;;  %v12696_v8 = vadd.f32 %v2471_v27, %v1721_v47  ;;  %v1725_v58 = vpop.f32.mrb[100].mxu1  ;;  %v3739_v47 = vor.u32 %v3738_v13, %v3735_v6  ;;  %v3730_v27 = vrot.slane %v3728_v29, 5  ;;  %v3766_v15 = vrot.slane %v3764_v35, 5 }
 0x1d2   : > { %v1726_v10 = vadd.f32 %v1725_v58, %v11621_v45  ;;  %v9570_v39 = vpop.f32.mrb[101].mxu1  ;;  %v3752_v1 = vrot.slane %v3750_v24, 5  ;;  %v8463_v58 = vld [vmem:[%s10791_s25 + $0x130] sm:$0xf]  ;;  %v3775_v42 = vshrl.u32 %v8461_v3, 16  ;;  %v3778_v12 = vshll.u32 %v8461_v3, 16 }
 0x1d3   : > { %9921 = vmatmul.mubr.bf16.gmra.mrb[208].mxu0 %v8519_v40  ;;  %v1728_v7 = vpop.f32.mrb[102].mxu1  ;;  %v3740_v13 = vrot.slane %v3739_v47, 4  ;;  %v3789_v36 = vshrl.u32 %v8463_v58, 16  ;;  %v14527_v24 = vld [vmem:[#allocation7_spill] sm:$0xff]  ;;  %v3731_v47 = vsel %vm10823_vm3, %v3726_v2, %v3730_v27  ;;  %v3767_v3 = vor.u32 %v3766_v15, %v3763_v41 }
 0x1d4   : > { %9924 = vmatprep.mubr.msk.bf16.mxu0 %vm10734_vm0, %v14482_v44  ;;  %v1729_v45 = vadd.f32 %v1728_v7, %v11636_v55  ;;  %v9571_v30 = vpop.f32.mrb[103].mxu1  ;;  %v3744_v55 = vrot.slane %v3742_v5, 5  ;;  %v3753_v5 = vor.u32 %v3752_v1, %v3749_v51  ;;  %v3780_v2 = vrot.slane %v3778_v12, 5 }
 0x1d5   : > { %v10547_v30 = vld [vmem:[%s10791_s25 + $0x108] ss:$8 sps:$4 sm:$0xff]   ;;  %v3791_v51 = vrot.slane %v3789_v36, 4 }
 0x1d6   : > { %v2476_v28 = vpop.f32.mrb[104].mxu0  ;;  %9809 = vmatmul.mubr.bf16.gmra.mrb[208].mxu1 %v10546_v48  ;;  %v3745_v35 = vsel %vm10823_vm3, %v3740_v13, %v3744_v55  ;;  %v3754_v13 = vrot.slane %v3753_v5, 4  ;;  %v8465_v55 = vld [vmem:[%s10791_s25 + $0x138] sm:$0xf] }
 0x1d7   : > { %v9686_v40 = vpop.f32.mrb[105].mxu0  ;;  %v12711_v39 = vadd.f32 %v2476_v28, %v1726_v10  ;;  %9812 = vmatprep.mubr.msk.bf16.mxu1 %vm10734_vm0, %v14482_v44  ;;  %v3792_v10 = vshll.u32 %v8463_v58, 16 }
 0x1d8   : > { %v2479_v6 = vpop.f32.mrb[106].mxu0  ;;  %v10706_v40 = vld [vmem:[%s10791_s25 + $0x124] sm:$0x1] }
 0x1d9   : > { %v9687_v32 = vpop.f32.mrb[107].mxu0  ;;  %v12715_v48 = vadd.f32 %v2479_v6, %v1729_v45  ;;  %v1733_v29 = vpop.f32.mrb[104].mxu1  ;;  %v10705_v45 = vld [vmem:[%s10791_s25 + $0x11c] sm:$0x1]  ;;  %v3770_v58 = vshll.u32 %v10706_v40, 16  ;;  %v14528_v6 = vld [vmem:[#allocation8_spill] sm:$0xff] }
 0x1da   : > { %v1734_v7 = vadd.f32 %v1733_v29, %v14527_v24  ;;  %v9574_v57 = vpop.f32.mrb[105].mxu1  ;;  %v3756_v28 = vshll.u32 %v10705_v45, 16  ;;  %v3777_v29 = vrot.slane %v3775_v42, 4  ;;  %v3794_v1 = vrot.slane %v3792_v10, 5  ;;  %v10707_v10 = vld [vmem:[%s10791_s25 + $0x12c] sm:$0x1] }
 0x1db   : > { %9925 = vmatmul.mubr.bf16.gmra.mrb[212].mxu0 %v8520_v33  ;;  %v1736_v62 = vpop.f32.mrb[106].mxu1  ;;  %v8521_v57 = vcombine.low %v3731_v47, %v3745_v35  ;;  %v3768_v42 = vrot.slane %v3767_v3, 4  ;;  %v3772_v12 = vrot.slane %v3770_v58, 5  ;;  %v10708_v35 = vld [vmem:[%s10791_s25 + $0x134] sm:$0x1] }
 0x1dc   : > { %9928 = vmatprep.mubr.msk.bf16.mxu0 %vm10734_vm0, %v14482_v44  ;;  %v1737_v32 = vadd.f32 %v1736_v62, %v14528_v6  ;;  %v9575_v33 = vpop.f32.mrb[107].mxu1  ;;  %v3758_v15 = vrot.slane %v3756_v28, 5  ;;  %v8467_v62 = vld [vmem:[%s10791_s25 + $0x140] sm:$0xf]  ;;  %v3781_v40 = vor.u32 %v3780_v2, %v3777_v29  ;;  %v3795_v5 = vor.u32 %v3794_v1, %v3791_v51  ;;  %v14530_v2 = vld [vmem:[#allocation12_spill] sm:$0xff] }
 0x1dd   : > { %v3803_v33 = vshrl.u32 %v8465_v55, 16  ;;  %v10550_v28 = vld [vmem:[%s10791_s25 + $0x118] ss:$8 sps:$4 sm:$0xff]   ;;  %v3817_v3 = vshrl.u32 %v8467_v62, 16  ;;  %v3820_v58 = vshll.u32 %v8467_v62, 16  ;;  %v3773_v29 = vsel %vm10823_vm3, %v3768_v42, %v3772_v12 }
 0x1de   : > { %v2484_v27 = vpop.f32.mrb[108].mxu0  ;;  %9813 = vmatmul.mubr.bf16.gmra.mrb[212].mxu1 %v10547_v30  ;;  %v3784_v30 = vshll.u32 %v10707_v10, 16 }
 0x1df   : > { %v9690_v24 = vpop.f32.mrb[109].mxu0  ;;  %v12729_v45 = vadd.f32 %v2484_v27, %v1734_v7  ;;  %9816 = vmatprep.mubr.msk.bf16.mxu1 %vm10734_vm0, %v14482_v44  ;;  %v3798_v7 = vshll.u32 %v10708_v35, 16  ;;  %v3806_v27 = vshll.u32 %v8465_v55, 16  ;;  %v3782_v55 = vrot.slane %v3781_v40, 4  ;;  %v8471_v40 = vld [vmem:[%s10791_s25 + $0x150] sm:$0xf] }
 0x1e0   : > { %v2487_v41 = vpop.f32.mrb[110].mxu0  ;;  %v14529_v24 = vld [vmem:[#allocation11_spill] sm:$0xff] }
 0x1e1   : > { %v9691_v36 = vpop.f32.mrb[111].mxu0  ;;  %v12735_v6 = vadd.f32 %v2487_v41, %v1737_v32  ;;  %v1741_v47 = vpop.f32.mrb[108].mxu1  ;;  %v3759_v32 = vsel %vm10823_vm3, %v3754_v13, %v3758_v15  ;;  %v3800_v62 = vrot.slane %v3798_v7, 5  ;;  %v3808_v10 = vrot.slane %v3806_v27, 5  ;;  %v8469_v15 = vld [vmem:[%s10791_s25 + $0x148] sm:$0xf] }
 0x1e2   : > { %v1742_v56 = vadd.f32 %v1741_v47, %v14529_v24  ;;  %v9578_v17 = vpop.f32.mrb[109].mxu1  ;;  %v3805_v36 = vrot.slane %v3803_v33, 4  ;;  %v8522_v35 = vcombine.low %v3759_v32, %v3773_v29  ;;  %v3819_v24 = vrot.slane %v3817_v3, 4  ;;  %v10551_v32 = vld [vmem:[%s10791_s25 + $0x128] ss:$8 sps:$4 sm:$0xff]  }
 0x1e3   : > { %9929 = vmatmul.mubr.bf16.gmra.mrb[216].mxu0 %v8521_v57  ;;  %v1744_v23 = vpop.f32.mrb[110].mxu1  ;;  %v3786_v17 = vrot.slane %v3784_v30, 5  ;;  %v3796_v57 = vrot.slane %v3795_v5, 4  ;;  %v3822_v13 = vrot.slane %v3820_v58, 5  ;;  %v3834_v27 = vshll.u32 %v8469_v15, 16 }
 0x1e4   : > { %9932 = vmatprep.mubr.msk.bf16.mxu0 %vm10734_vm0, %v14482_v44  ;;  %v1745_v51 = vadd.f32 %v1744_v23, %v14530_v2  ;;  %v9579_v1 = vpop.f32.mrb[111].mxu1  ;;  %v3809_v33 = vor.u32 %v3808_v10, %v3805_v36  ;;  %v10709_v29 = vld [vmem:[%s10791_s25 + $0x13c] sm:$0x1] }
 0x1e5   : > { %v3787_v12 = vsel %vm10823_vm3, %v3782_v55, %v3786_v17  ;;  %v3801_v7 = vsel %vm10823_vm3, %v3796_v57, %v3800_v62  ;;  %v3812_v2 = vshll.u32 %v10709_v29, 16  ;;  %v3823_v1 = vor.u32 %v3822_v13, %v3819_v24  ;;  %v14534_v57 = vld [vmem:[#allocation16_spill] sm:$0xff] }
 0x1e6   : > { %v2492_v41 = vpop.f32.mrb[112].mxu0  ;;  %9817 = vmatmul.mubr.bf16.gmra.mrb[216].mxu1 %v10550_v28  ;;  %v14533_v28 = vld [vmem:[#allocation15_spill] sm:$0xff] }
 0x1e7   : > { %v9694_v47 = vpop.f32.mrb[113].mxu0  ;;  %v12748_v19 = vadd.f32 %v2492_v41, %v1742_v56  ;;  %9820 = vmatprep.mubr.msk.bf16.mxu1 %vm10734_vm0, %v14482_v44  ;;  %v3831_v56 = vshrl.u32 %v8469_v15, 16  ;;  %v10710_v41 = vld [vmem:[%s10791_s25 + $0x144] sm:$0x1]  ;;  %v8523_v15 = vcombine.low %v3787_v12, %v3801_v7  ;;  %v3814_v13 = vrot.slane %v3812_v2, 5 }
 0x1e8   : > { %v2495_v23 = vpop.f32.mrb[114].mxu0  ;;  %v3826_v55 = vshll.u32 %v10710_v41, 16  ;;  %v3848_v47 = vshll.u32 %v8471_v40, 16  ;;  %v8473_v7 = vld [vmem:[%s10791_s25 + $0x158] sm:$0xf] }
 0x1e9   : > { %14531 = vst [vmem:[#allocation7_spill] sm:$0xff] %v12748_v19  ;;  %v9695_v42 = vpop.f32.mrb[115].mxu0  ;;  %v12755_v30 = vadd.f32 %v2495_v23, %v1745_v51  ;;  %v1749_v5 = vpop.f32.mrb[112].mxu1  ;;  %v3845_v51 = vshrl.u32 %v8471_v40, 16  ;;  %v3810_v23 = vrot.slane %v3809_v33, 4 }
 0x1ea   : > { %v1750_v3 = vadd.f32 %v1749_v5, %v14533_v28  ;;  %v9582_v58 = vpop.f32.mrb[113].mxu1  ;;  %v3836_v42 = vrot.slane %v3834_v27, 5  ;;  %v3824_v5 = vrot.slane %v3823_v1, 4  ;;  %v3828_v28 = vrot.slane %v3826_v55, 5  ;;  %v10711_v2 = vld [vmem:[%s10791_s25 + $0x14c] sm:$0x1] }
 0x1eb   : > { %14532 = vst [vmem:[#allocation8_spill] sm:$0xff] %v12755_v30  ;;  %9933 = vmatmul.mubr.bf16.gmra.mrb[220].mxu0 %v8522_v35  ;;  %v1752_v17 = vpop.f32.mrb[114].mxu1  ;;  %v3833_v35 = vrot.slane %v3831_v56, 4  ;;  %v3847_v29 = vrot.slane %v3845_v51, 4  ;;  %v3850_v12 = vrot.slane %v3848_v47, 5  ;;  %v3815_v51 = vsel %vm10823_vm3, %v3810_v23, %v3814_v13 }
 0x1ec   : > { %9936 = vmatprep.mubr.msk.bf16.mxu0 %vm10734_vm0, %v14482_v44  ;;  %v1753_v62 = vadd.f32 %v1752_v17, %v14534_v57  ;;  %v9583_v36 = vpop.f32.mrb[115].mxu1  ;;  %v8475_v56 = vld [vmem:[%s10791_s25 + $0x160] sm:$0xf]  ;;  %v3840_v17 = vshll.u32 %v10711_v2, 16  ;;  %v10712_v1 = vld [vmem:[%s10791_s25 + $0x154] sm:$0x1]  ;;  %v3829_v47 = vsel %vm10823_vm3, %v3824_v5, %v3828_v28 }
 0x1ed   : > { %v3837_v41 = vor.u32 %v3836_v42, %v3833_v35  ;;  %v3854_v55 = vshll.u32 %v10712_v1, 16  ;;  %v3851_v35 = vor.u32 %v3850_v12, %v3847_v29  ;;  %v3862_v42 = vshll.u32 %v8473_v7, 16 }
 0x1ee   : > { %v2500_v10 = vpop.f32.mrb[116].mxu0  ;;  %9821 = vmatmul.mubr.bf16.gmra.mrb[220].mxu1 %v10551_v32  ;;  %v3842_v23 = vrot.slane %v3840_v17, 5  ;;  %v8524_v28 = vcombine.low %v3815_v51, %v3829_v47 }
 0x1ef   : > { %v9698_v24 = vpop.f32.mrb[117].mxu0  ;;  %v12766_v58 = vadd.f32 %v2500_v10, %v1750_v3  ;;  %9824 = vmatprep.mubr.msk.bf16.mxu1 %vm10734_vm0, %v14482_v44  ;;  %v14537_v3 = vld [vmem:[#allocation19_spill] sm:$0xff]  ;;  %v10552_v10 = vld [vmem:[%s10791_s25 + $0x138] ss:$8 sps:$4 sm:$0xff]   ;;  %v3856_v13 = vrot.slane %v3854_v55, 5  ;;  %v3852_v12 = vrot.slane %v3851_v35, 4 }
 0x1f0   : > { %v2503_v40 = vpop.f32.mrb[118].mxu0  ;;  %v3859_v24 = vshrl.u32 %v8473_v7, 16  ;;  %v3864_v7 = vrot.slane %v3862_v42, 5  ;;  %v10713_v42 = vld [vmem:[%s10791_s25 + $0x15c] sm:$0x1] }
 0x1f1   : > { %14535 = vst [vmem:[#allocation11_spill] sm:$0xff] %v12766_v58  ;;  %v9699_v33 = vpop.f32.mrb[119].mxu0  ;;  %v12772_v27 = vadd.f32 %v2503_v40, %v1753_v62  ;;  %v1757_v32 = vpop.f32.mrb[116].mxu1  ;;  %v3873_v40 = vshrl.u32 %v8475_v56, 16  ;;  %v8479_v58 = vld [vmem:[%s10791_s25 + $0x170] sm:$0xf] }
 0x1f2   : > { %v1758_v57 = vadd.f32 %v1757_v32, %v14537_v3  ;;  %v9586_v36 = vpop.f32.mrb[117].mxu1  ;;  %v3876_v33 = vshll.u32 %v8475_v56, 16  ;;  %v14538_v32 = vld [vmem:[#allocation20_spill] sm:$0xff]  ;;  %v3838_v3 = vrot.slane %v3837_v41, 4 }
 0x1f3   : > { %14536 = vst [vmem:[#allocation12_spill] sm:$0xff] %v12772_v27  ;;  %9937 = vmatmul.mubr.bf16.gmra.mrb[224].mxu0 %v8523_v15  ;;  %v1760_v62 = vpop.f32.mrb[118].mxu1  ;;  %v3861_v36 = vrot.slane %v3859_v24, 4  ;;  %v8477_v27 = vld [vmem:[%s10791_s25 + $0x168] sm:$0xf]  ;;  %v3875_v56 = vrot.slane %v3873_v40, 4 }
 0x1f4   : > { %9940 = vmatprep.mubr.msk.bf16.mxu0 %vm10734_vm0, %v14482_v44  ;;  %v1761_v2 = vadd.f32 %v1760_v62, %v14538_v32  ;;  %v9587_v15 = vpop.f32.mrb[119].mxu1  ;;  %v3878_v41 = vrot.slane %v3876_v33, 5  ;;  %v3887_v51 = vshrl.u32 %v8477_v27, 16  ;;  %v3890_v47 = vshll.u32 %v8477_v27, 16  ;;  %v14541_v62 = vld [vmem:[#allocation23_spill] sm:$0xff] }
 0x1f5   : > { %v3901_v24 = vshrl.u32 %v8479_v58, 16  ;;  %v3843_v35 = vsel %vm10823_vm3, %v3838_v3, %v3842_v23  ;;  %v3868_v40 = vshll.u32 %v10713_v42, 16  ;;  %v3865_v27 = vor.u32 %v3864_v7, %v3861_v36 }
 0x1f6   : > { %v2508_v1 = vpop.f32.mrb[120].mxu0  ;;  %9825 = vmatmul.mubr.bf16.gmra.mrb[224].mxu1 %v10552_v10  ;;  %v3892_v3 = vrot.slane %v3890_v47, 5  ;;  %v8483_v47 = vld [vmem:[%s10791_s25 + $0x180] sm:$0xf] }
 0x1f7   : > { %v9702_v5 = vpop.f32.mrb[121].mxu0  ;;  %v12787_v30 = vadd.f32 %v2508_v1, %v1758_v57  ;;  %9828 = vmatprep.mubr.msk.bf16.mxu1 %vm10734_vm0, %v14482_v44  ;;  %v3904_v57 = vshll.u32 %v8479_v58, 16  ;;  %v10555_v1 = vld [vmem:[%s10791_s25 + $0x148] ss:$8 sps:$4 sm:$0xff]   ;;  %v10714_v58 = vld [vmem:[%s10791_s25 + $0x164] sm:$0x1] }
 0x1f8   : > { %v2511_v29 = vpop.f32.mrb[122].mxu0  ;;  %v3879_v5 = vor.u32 %v3878_v41, %v3875_v56  ;;  %v3903_v23 = vrot.slane %v3901_v24, 4  ;;  %v3870_v19 = vrot.slane %v3868_v40, 5  ;;  %v8481_v41 = vld [vmem:[%s10791_s25 + $0x178] sm:$0xf] }
 0x1f9   : > { %14539 = vst [vmem:[#allocation15_spill] sm:$0xff] %v12787_v30  ;;  %v9703_v17 = vpop.f32.mrb[123].mxu0  ;;  %v12791_v55 = vadd.f32 %v2511_v29, %v1761_v2  ;;  %v1765_v10 = vpop.f32.mrb[120].mxu1  ;;  %v3857_v2 = vsel %vm10823_vm3, %v3852_v12, %v3856_v13  ;;  %v3882_v29 = vshll.u32 %v10714_v58, 16  ;;  %v3906_v42 = vrot.slane %v3904_v57, 5 }
 0x1fa   : > { %v1766_v32 = vadd.f32 %v1765_v10, %v14541_v62  ;;  %v9590_v15 = vpop.f32.mrb[121].mxu1  ;;  %v14542_v17 = vld [vmem:[#allocation26_spill] sm:$0xff]  ;;  %v8525_v30 = vcombine.low %v3843_v35, %v3857_v2  ;;  %v3866_v12 = vrot.slane %v3865_v27, 4  ;;  %v3880_v7 = vrot.slane %v3879_v5, 4  ;;  %v14543_v2 = vld [vmem:[#allocation27_spill] sm:$0xff] }
 0x1fb   : > { %14540 = vst [vmem:[#allocation16_spill] sm:$0xff] %v12791_v55  ;;  %9941 = vmatmul.mubr.bf16.gmra.mrb[228].mxu0 %v8524_v28  ;;  %v1768_v33 = vpop.f32.mrb[122].mxu1  ;;  %v3889_v15 = vrot.slane %v3887_v51, 4  ;;  %v3884_v56 = vrot.slane %v3882_v29, 5  ;;  %v3907_v40 = vor.u32 %v3906_v42, %v3903_v23  ;;  %v3915_v27 = vshrl.u32 %v8481_v41, 16  ;;  %v14544_v23 = vld [vmem:[#allocation30_spill] sm:$0xff] }
 0x1fc   : > { %9944 = vmatprep.mubr.msk.bf16.mxu0 %vm10734_vm0, %v14482_v44  ;;  %v1769_v10 = vadd.f32 %v1768_v33, %v14542_v17  ;;  %v9591_v62 = vpop.f32.mrb[123].mxu1  ;;  %v3918_v5 = vshll.u32 %v8481_v41, 16 }
 0x1fd   : > { %v10556_v62 = vld [vmem:[%s10791_s25 + $0x158] ss:$8 sps:$4 sm:$0xff]  }
 0x1fe   : > { %v2516_v28 = vpop.f32.mrb[124].mxu0  ;;  %9829 = vmatmul.mubr.bf16.gmra.mrb[228].mxu1 %v10555_v1  ;;  %v10715_v1 = vld [vmem:[%s10791_s25 + $0x16c] sm:$0x1] }
 0x1ff   : > { %v9706_v55 = vpop.f32.mrb[125].mxu0  ;;  %v12804_v13 = vadd.f32 %v2516_v28, %v1766_v32  ;;  %9832 = vmatprep.mubr.msk.bf16.mxu1 %vm10734_vm0, %v14482_v44  ;;  %v3896_v35 = vshll.u32 %v10715_v1, 16  ;;  %v10716_v32 = vld [vmem:[%s10791_s25 + $0x174] sm:$0x1]  ;;  %v3885_v28 = vsel %vm10823_vm3, %v3880_v7, %v3884_v56 }
 0x200   : > { %v2519_v36 = vpop.f32.mrb[126].mxu0  ;;  %v3893_v55 = vor.u32 %v3892_v3, %v3889_v15  ;;  %v3910_v33 = vshll.u32 %v10716_v32, 16  ;;  %v3929_v15 = vshrl.u32 %v8483_v47, 16  ;;  %v3932_v3 = vshll.u32 %v8483_v47, 16 }
 0x201   : > { %v9707_v51 = vpop.f32.mrb[127].mxu0  ;;  %v12810_v24 = vadd.f32 %v2519_v36, %v1769_v10  ;;  %v1773_v57 = vpop.f32.mrb[124].mxu1  ;;  %v3871_v10 = vsel %vm10823_vm3, %v3866_v12, %v3870_v19  ;;  %v3898_v41 = vrot.slane %v3896_v35, 5  ;;  %v3917_v19 = vrot.slane %v3915_v27, 4  ;;  %v8487_v35 = vld [vmem:[%s10791_s25 + $0x190] sm:$0xf] }
 0x202   : > { %v1774_v58 = vadd.f32 %v1773_v57, %v14543_v2  ;;  %v9594_v17 = vpop.f32.mrb[125].mxu1  ;;  %v3908_v57 = vrot.slane %v3907_v40, 4  ;;  %v3912_v1 = vrot.slane %v3910_v33, 5  ;;  %v8526_v2 = vcombine.low %v3871_v10, %v3885_v28  ;;  %v10717_v27 = vld [vmem:[%s10791_s25 + $0x17c] sm:$0x1] }
 0x203   : > { %9945 = vmatmul.mubr.bf16.gmra.mrb[232].mxu0 %v8525_v30  ;;  %v1776_v29 = vpop.f32.mrb[126].mxu1  ;;  %v3894_v30 = vrot.slane %v3893_v55, 4  ;;  %v3920_v12 = vrot.slane %v3918_v5, 5  ;;  %v3931_v56 = vrot.slane %v3929_v15, 4  ;;  %v3934_v47 = vrot.slane %v3932_v3, 5  ;;  %v14546_v10 = vld [vmem:[#allocation33_spill] sm:$0xff] }
 0x204   : > { %9948 = vmatprep.mubr.msk.bf16.mxu0 %vm10734_vm0, %v14482_v44  ;;  %v1777_v42 = vadd.f32 %v1776_v29, %v14544_v23  ;;  %v9595_v36 = vpop.f32.mrb[127].mxu1  ;;  %v8485_v55 = vld [vmem:[%s10791_s25 + $0x188] sm:$0xf]  ;;  %v3924_v5 = vshll.u32 %v10717_v27, 16 }
 0x205   : > { %v10557_v15 = vld [vmem:[%s10791_s25 + $0x168] ss:$8 sps:$4 sm:$0xff]   ;;  %v3921_v3 = vor.u32 %v3920_v12, %v3917_v19  ;;  %v3943_v36 = vshrl.u32 %v8485_v55, 16 }
 0x206   : > { %v2524_v51 = vpop.f32.mrb[128].mxu0  ;;  %9833 = vmatmul.mubr.bf16.gmra.mrb[232].mxu1 %v10556_v62  ;;  %v3899_v62 = vsel %vm10823_vm3, %v3894_v30, %v3898_v41  ;;  %v3957_v41 = vshrl.u32 %v8487_v35, 16 }
 0x207   : > { %v9710_v32 = vpop.f32.mrb[129].mxu0  ;;  %v12823_v17 = vadd.f32 %v2524_v51, %v1774_v58  ;;  %9836 = vmatprep.mubr.msk.bf16.mxu1 %vm10734_vm0, %v14482_v44  ;;  %v3913_v58 = vsel %vm10823_vm3, %v3908_v57, %v3912_v1  ;;  %v3946_v51 = vshll.u32 %v8485_v55, 16  ;;  %v14547_v57 = vld [vmem:[#allocation34_spill] sm:$0xff]  ;;  %v3922_v19 = vrot.slane %v3921_v3, 4 }
 0x208   : > { %v2527_v7 = vpop.f32.mrb[130].mxu0  ;;  %v3935_v32 = vor.u32 %v3934_v47, %v3931_v56  ;;  %v3945_v12 = vrot.slane %v3943_v36, 4 }
 0x209   : > { %v9711_v29 = vpop.f32.mrb[131].mxu0  ;;  %v12829_v40 = vadd.f32 %v2527_v7, %v1777_v42  ;;  %v1781_v33 = vpop.f32.mrb[128].mxu1  ;;  %v10718_v7 = vld [vmem:[%s10791_s25 + $0x184] sm:$0x1]  ;;  %v3948_v55 = vrot.slane %v3946_v51, 5 }
 0x20a   : > { %v1782_v28 = vadd.f32 %v1781_v33, %v14546_v10  ;;  %v9598_v23 = vpop.f32.mrb[129].mxu1  ;;  %v3938_v30 = vshll.u32 %v10718_v7, 16  ;;  %v3960_v29 = vshll.u32 %v8487_v35, 16  ;;  %v8527_v33 = vcombine.low %v3899_v62, %v3913_v58  ;;  %v10559_v51 = vld [vmem:[%s10791_s25 + $0x178] ss:$8 sps:$4 sm:$0xff]  }
 0x20b   : > { %14545 = vst [vmem:[#allocation19_spill] sm:$0xff] %v12829_v40  ;;  %9949 = vmatmul.mubr.bf16.gmra.mrb[236].mxu0 %v8526_v2  ;;  %v1784_v42 = vpop.f32.mrb[130].mxu1  ;;  %v3926_v10 = vrot.slane %v3924_v5, 5  ;;  %v3936_v47 = vrot.slane %v3935_v32, 4 }
 0x20c   : > { %9952 = vmatprep.mubr.msk.bf16.mxu0 %vm10734_vm0, %v14482_v44  ;;  %v1785_v1 = vadd.f32 %v1784_v42, %v14547_v57  ;;  %v9599_v27 = vpop.f32.mrb[131].mxu1  ;;  %v3940_v35 = vrot.slane %v3938_v30, 5  ;;  %v3959_v42 = vrot.slane %v3957_v41, 4  ;;  %v3962_v7 = vrot.slane %v3960_v29, 5  ;;  %v10720_v29 = vld [vmem:[%s10791_s25 + $0x194] sm:$0x1] }
 0x20d   : > { %v3927_v32 = vsel %vm10823_vm3, %v3922_v19, %v3926_v10 }
 0x20e   : > { %v2532_v40 = vpop.f32.mrb[132].mxu0  ;;  %9837 = vmatmul.mubr.bf16.gmra.mrb[236].mxu1 %v10557_v15  ;;  %v14548_v15 = vld [vmem:[#allocation37_spill] sm:$0xff]  ;;  %v3941_v30 = vsel %vm10823_vm3, %v3936_v47, %v3940_v35  ;;  %v3963_v41 = vor.u32 %v3962_v7, %v3959_v42  ;;  %v8538_v35 = vld [vmem:[%s10791_s25 + $0x8] sm:$0xe]  ;;  %v8539_v7 = vld [vmem:[%s10791_s25 + $0x10] sm:$0xe] }
 0x20f   : > { %v9714_v2 = vpop.f32.mrb[133].mxu0  ;;  %v12842_v23 = vadd.f32 %v2532_v40, %v1782_v28  ;;  %9840 = vmatprep.mubr.msk.bf16.mxu1 %vm10734_vm0, %v14482_v44  ;;  %v3949_v40 = vor.u32 %v3948_v55, %v3945_v12  ;;  %v10719_v28 = vld [vmem:[%s10791_s25 + $0x18c] sm:$0x1] }
 0x210   : > { %v2535_v56 = vpop.f32.mrb[134].mxu0  ;;  %v3952_v57 = vshll.u32 %v10719_v28, 16  ;;  %v14549_v2 = vld [vmem:[#allocation38_spill] sm:$0xff]  ;;  %v3964_v19 = vrot.slane %v3963_v41, 4 }
 0x211   : > { %v9715_v62 = vpop.f32.mrb[135].mxu0  ;;  %v12846_v58 = vadd.f32 %v2535_v56, %v1785_v1  ;;  %v1789_v5 = vpop.f32.mrb[132].mxu1  ;;  %v3966_v1 = vshll.u32 %v10720_v29, 16 }
 0x212   : > { %v1790_v3 = vadd.f32 %v1789_v5, %v14548_v15  ;;  %v9602_v36 = vpop.f32.mrb[133].mxu1  ;;  %v8528_v62 = vcombine.low %v3927_v32, %v3941_v30  ;;  %v3950_v5 = vrot.slane %v3949_v40, 4  ;;  %v3954_v15 = vrot.slane %v3952_v57, 5  ;;  %v10561_v57 = vld [vmem:[%s10791_s25 + $0x188] ss:$8 sps:$4 sm:$0xff]  }
 0x213   : > { %9953 = vmatmul.mubr.bf16.gmra.mrb[240].mxu0 %v8527_v33  ;;  %v1792_v27 = vpop.f32.mrb[134].mxu1  ;;  %v3968_v47 = vrot.slane %v3966_v1, 5  ;;  %v8588_v30 = vrot.slane %v8538_v35, 9  ;;  %v10721_v1 = vld [vmem:[%s10791_s25 + $0xc] sm:$0x1] }
 0x214   : > { %9956 = vmatprep.mubr.msk.bf16.mxu0 %vm10734_vm0, %v14482_v44  ;;  %v1793_v33 = vadd.f32 %v1792_v27, %v14549_v2  ;;  %v9603_v12 = vpop.f32.mrb[135].mxu1  ;;  %v14550_v27 = vld [vmem:[#allocation41_spill] sm:$0xff]  ;;  %v4570_v2 = vrot.slane %v10721_v1, 5 }
 0x215   : > { %v3969_v41 = vsel %vm10823_vm3, %v3964_v19, %v3968_v47  ;;  %v10722_v12 = vld [vmem:[%s10791_s25 + $0x14] sm:$0x1] }
 0x216   : > { %v2540_v55 = vpop.f32.mrb[136].mxu0  ;;  %9841 = vmatmul.mubr.bf16.gmra.mrb[240].mxu1 %v10559_v51  ;;  %v4571_v19 = vsel %vm11239_vm6, %v8588_v30, %v4570_v2  ;;  %v10562_v30 = vld [vmem:[%s14403_s1 + $0x1c0] sm:$0xff]   ;;  %v10723_v2 = vld [vmem:[%s10791_s25 + $0x1c] sm:$0x1] }
 0x217   : > { %v9718_v56 = vpop.f32.mrb[137].mxu0  ;;  %v12859_v36 = vadd.f32 %v2540_v55, %v1790_v3  ;;  %9844 = vmatprep.mubr.msk.bf16.mxu1 %vm10734_vm0, %v14482_v44  ;;  %v3955_v3 = vsel %vm10823_vm3, %v3950_v5, %v3954_v15  ;;  %v4574_v55 = vrot.slane %v10722_v12, 5 }
 0x218   : > { %v2543_v10 = vpop.f32.mrb[138].mxu0  ;;  %v8529_v15 = vcombine.low %v3955_v3, %v3969_v41 }
 0x219   : > { %v9719_v42 = vpop.f32.mrb[139].mxu0  ;;  %v12865_v28 = vadd.f32 %v2543_v10, %v1793_v33  ;;  %v1797_v51 = vpop.f32.mrb[136].mxu1  ;;  %v8589_v33 = vrot.slane %v8539_v7, 9 }
 0x21a   : > { %v1798_v32 = vadd.f32 %v1797_v51, %v14550_v27  ;;  %v9606_v40 = vpop.f32.mrb[137].mxu1  ;;  %v8541_v51 = vld [vmem:[%s10791_s25 + $0x20] sm:$0xe] }
 0x21b   : > { %9957 = vmatmul.mubr.bf16.gmra.mrb[244].mxu0 %v8528_v62  ;;  %v1800_v29 = vpop.f32.mrb[138].mxu1  ;;  %v4575_v47 = vsel %vm11239_vm6, %v8589_v33, %v4574_v55  ;;  %v4578_v33 = vrot.slane %v10723_v2, 5  ;;  %v8591_v12 = vrot.slane %v8541_v51, 9  ;;  %v10724_v55 = vld [vmem:[%s10791_s25 + $0x24] sm:$0x1] }
 0x21c   : > { %9960 = vmatprep.mubr.msk.bf16.mxu0 %vm10734_vm0, %v14482_v44  ;;  %v1801_v56 = vadd.f32 %v1800_v29, %v12008_v4  ;;  %v9607_v62 = vpop.f32.mrb[139].mxu1  ;;  %v8540_v4 = vld [vmem:[%s10791_s25 + $0x18] sm:$0xe]  ;;  %v8654_v29 = vcombine.low %v4571_v19, %v4575_v47 }
 0x21d   : > { %v8590_v1 = vrot.slane %v8540_v4, 9  ;;  %v14552_v62 = vld [vmem:[#allocation45_spill] sm:$0xff] }
 0x21e   : > { %v2548_v10 = vpop.f32.mrb[140].mxu0  ;;  %9845 = vmatmul.mubr.bf16.gmra.mrb[244].mxu1 %v10561_v57  ;;  %v10563_v19 = vld [vmem:[%s10791_s25 + $0x10] ss:$8 sps:$4 sm:$0xff]  }
 0x21f   : > { %v9722_v5 = vpop.f32.mrb[141].mxu0  ;;  %v12878_v35 = vadd.f32 %v2548_v10, %v1798_v32  ;;  %9980 = vmatprep.mubr.msk.bf16.mxu1 %vm10734_vm0, %v14482_v44  ;;  %v14551_v32 = vld [vmem:[#allocation44_spill] sm:$0xff]  ;;  %v4579_v4 = vsel %vm11239_vm6, %v8590_v1, %v4578_v33  ;;  %v10569_v33 = vld [vmem:[%s14403_s1 + $0x208] sm:$0xff]  }
 0x220   : > { %v2551_v42 = vpop.f32.mrb[142].mxu0 }
 0x221   : > { %v9723_v7 = vpop.f32.mrb[143].mxu0  ;;  %v12888_v27 = vadd.f32 %v2551_v42, %v1801_v56  ;;  %v1805_v40 = vpop.f32.mrb[140].mxu1  ;;  %v4582_v56 = vrot.slane %v10724_v55, 5 }
 0x222   : > { %v1806_v57 = vadd.f32 %v1805_v40, %v14551_v32  ;;  %v9610_v3 = vpop.f32.mrb[141].mxu1  ;;  %v10564_v40 = vld [vmem:[%s14403_s1 + $0x200] sm:$0xff]  }
 0x223   : > { %9961 = vmatmul.mubr.bf16.gmra.mrb[248].mxu0 %v8529_v15  ;;  %v1808_v41 = vpop.f32.mrb[142].mxu1  ;;  %v4583_v51 = vsel %vm11239_vm6, %v8591_v12, %v4582_v56 }
 0x224   : > { %10096 = vmatprep.mubr.msk.bf16.mxu0 %vm10734_vm0, %v14482_v44  ;;  %v1809_v10 = vadd.f32 %v1808_v41, %v14552_v62  ;;  %v9611_v5 = vpop.f32.mrb[143].mxu1  ;;  %v8655_v1 = vcombine.low %v4579_v4, %v4583_v51 }
 0x226   : > { %v2556_v15 = vpop.f32.mrb[144].mxu0  ;;  %9981 = vmatmul.mubr.bf16.vlgmr.msra.gmra.mrb[248].mxu1 %v8654_v29 }
 0x227   : > { %v9726_v42 = vpop.f32.mrb[145].mxu0  ;;  %v12900_v47 = vadd.f32 %v2556_v15, %v1806_v57  ;;  %9984 = vmatprep.mubr.msk.bf16.mxu1 %vm10734_vm0, %v14482_v44  ;;  %10197 = vmatpush3.bf16.msra.mxu1 %v10562_v30  ;;  %v10568_v57 = vld [vmem:[%s14403_s1 + $0x1c8] sm:$0xff]  }
 0x228   : > { %v2559_v7 = vpop.f32.mrb[146].mxu0  ;;  %10198 = vmatprep.subr.bf16.mxu1 %v14482_v44 }
 0x229   : > { %v9727_v32 = vpop.f32.mrb[147].mxu0  ;;  %v12915_v3 = vadd.f32 %v2559_v7, %v1809_v10  ;;  %v1813_v29 = vpop.f32.mrb[144].mxu1  ;;  %v10565_v10 = vld [vmem:[%s10791_s25 + $0x20] ss:$8 sps:$4 sm:$0xff]  }
 0x22a   : > { %v1814_v41 = vadd.f32 %v1813_v29, %v12109_v61  ;;  %v9614_v30 = vpop.f32.mrb[145].mxu1  ;;  %v10573_v61 = vld [vmem:[%s14403_s1 + $0x1d0] sm:$0xff]  }
 0x22b   : > { %10097 = vmatmul.mubr.bf16.vlgmr.msra.gmra.mrb[252].mxu0 %v10563_v19  ;;  %v1816_v2 = vpop.f32.mrb[146].mxu1  ;;  %10199 = vmatpush3.bf16.msra.mxu1 %v10568_v57  ;;  %v10578_v19 = vld [vmem:[%s14403_s1 + $0x1d8] sm:$0xff]   ;;  %v14553_v29 = vld [vmem:[#allocation52_spill] sm:$0xff] }
 0x22c   : > { %10313 = vmatpush3.bf16.msra.mxu0 %v10564_v40  ;;  %10100 = vmatprep.mubr.msk.bf16.mxu0 %vm10734_vm0, %v14482_v44  ;;  %v1817_v12 = vadd.f32 %v1816_v2, %v12126_v21  ;;  %v9615_v55 = vpop.f32.mrb[147].mxu1  ;;  %v10574_v21 = vld [vmem:[%s14403_s1 + $0x210] sm:$0xff]   ;;  %v10579_v57 = vld [vmem:[%s14403_s1 + $0x218] sm:$0xff]   ;;  %v14554_v2 = vld [vmem:[#allocation3_spill] sm:$0xff] }
 0x22d   : > { %10314 = vmatprep.subr.bf16.mxu0 %v14482_v44  ;;  %10200 = vmatprep.subr.bf16.mxu1 %v14482_v44 }
 0x22e   : > { %v2564_v56 = vpop.f32.mrb[148].mxu0  ;;  %9985 = vmatmul.mubr.bf16.gmra.mrb[252].mxu1 %v8655_v1 }
 0x22f   : > { %v9730_v62 = vpop.f32.mrb[149].mxu0  ;;  %v12930_v5 = vadd.f32 %v2564_v56, %v1814_v41  ;;  %9988 = vmatprep.mubr.msk.bf16.mxu1 %vm10734_vm0, %v14482_v44  ;;  %10201 = vmatpush3.bf16.msra.mxu1 %v10573_v61  ;;  %v10566_v61 = vld [vmem:[%s10791_s25 + $0x30] ss:$8 sps:$4 sm:$0xff]  }
 0x230   : > { %v2567_v15 = vpop.f32.mrb[150].mxu0  ;;  %10315 = vmatpush3.bf16.msra.mxu0 %v10569_v33  ;;  %10202 = vmatprep.subr.bf16.mxu1 %v14482_v44  ;;  %v14555_v33 = vld [vmem:[#allocation4_spill] sm:$0xff] }
 0x231   : > { %v9731_v42 = vpop.f32.mrb[151].mxu0  ;;  %10316 = vmatprep.subr.bf16.mxu0 %v14482_v44  ;;  %v12941_v7 = vadd.f32 %v2567_v15, %v1817_v12  ;;  %v2921_v4 = vpop.f32.mrb[148].mxu1  ;;  %v14556_v12 = vcombine.low %v14554_v2, %v14555_v33  ;;  %v10567_v2 = vld [vmem:[%s10791_s25 + $0x40] ss:$8 sps:$4 sm:$0xff]  }
 0x232   : > { %v3120_v51 = vadd.f32 %v2921_v4, %v12226_v0  ;;  %v9750_v40 = vpop.f32.mrb[149].mxu1  ;;  %v10583_v0 = vld [vmem:[%s14403_s1 + $0x1e0] sm:$0xff]  }
 0x233   : > { %10101 = vmatmul.mubr.bf16.gmra.mrb[0].mxu0 %v10565_v10  ;;  %v2924_v32 = vpop.f32.mrb[150].mxu1  ;;  %10203 = vmatpush3.bf16.msra.mxu1 %v10578_v19  ;;  %v10584_v10 = vld [vmem:[%s14403_s1 + $0x220] sm:$0xff]  }
 0x234   : > { %10104 = vmatprep.mubr.msk.bf16.mxu0 %vm10734_vm0, %v14482_v44  ;;  %10317 = vmatpush3.bf16.msra.mxu0 %v10574_v21  ;;  %v3121_v41 = vadd.f32 %v2924_v32, %v14553_v29  ;;  %v9751_v30 = vpop.f32.mrb[151].mxu1  ;;  %v10588_v21 = vld [vmem:[%s14403_s1 + $0x1e8] sm:$0xff]  }
 0x235   : > { %10318 = vmatprep.subr.bf16.mxu0 %v14482_v44  ;;  %10204 = vmatprep.subr.bf16.mxu1 %v14482_v44  ;;  %v10589_v32 = vld [vmem:[%s14403_s1 + $0x228] sm:$0xff]   ;;  %v14558_v30 = vld [vmem:[#allocation6_spill] sm:$0xff] }
 0x236   : > { %v4169_v1 = vpop.f32.mrb[152].mxu0  ;;  %9989 = vmatmul.mubr.bf16.gmra.mrb[0].mxu1 %v14556_v12 }
 0x237   : > { %v9866_v55 = vpop.f32.mrb[153].mxu0  ;;  %v12960_v56 = vadd.f32 %v4169_v1, %v3120_v51  ;;  %9992 = vmatprep.mubr.msk.bf16.mxu1 %vm10734_vm0, %v14482_v44  ;;  %10205 = vmatpush3.bf16.msra.mxu1 %v10583_v0 }
 0x238   : > { %v4172_v62 = vpop.f32.mrb[154].mxu0  ;;  %10319 = vmatpush3.bf16.msra.mxu0 %v10579_v57  ;;  %10206 = vmatprep.subr.bf16.mxu1 %v14482_v44 }
 0x239   : > { %v9867_v15 = vpop.f32.mrb[155].mxu0  ;;  %10320 = vmatprep.subr.bf16.mxu0 %v14482_v44  ;;  %v12971_v42 = vadd.f32 %v4172_v62, %v3121_v41  ;;  %v2929_v19 = vpop.f32.mrb[152].mxu1  ;;  %v14560_v62 = vld [vmem:[#allocation57_spill] sm:$0xff] }
 0x23a   : > { %v3122_v4 = vadd.f32 %v2929_v19, %v12295_v52  ;;  %v9754_v51 = vpop.f32.mrb[153].mxu1  ;;  %v14557_v52 = vld [vmem:[#allocation5_spill] sm:$0xff]  ;;  %v14561_v19 = vld [vmem:[#allocation58_spill] sm:$0xff] }
 0x23b   : > { %10105 = vmatmul.mubr.bf16.gmra.mrb[4].mxu0 %v10566_v61  ;;  %v2932_v40 = vpop.f32.mrb[154].mxu1  ;;  %10207 = vmatpush3.bf16.msra.mxu1 %v10588_v21  ;;  %v14559_v0 = vcombine.low %v14557_v52, %v14558_v30 }
 0x23c   : > { %10108 = vmatprep.mubr.msk.bf16.mxu0 %vm10734_vm0, %v14482_v44  ;;  %10321 = vmatpush3.bf16.msra.mxu0 %v10584_v10  ;;  %v3123_v57 = vadd.f32 %v2932_v40, %v12303_v54  ;;  %v9755_v29 = vpop.f32.mrb[155].mxu1  ;;  %v10593_v40 = vld [vmem:[%s14403_s1 + $0x1f0] sm:$0xff]  }
 0x23d   : > { %10322 = vmatprep.subr.bf16.mxu0 %v14482_v44  ;;  %10208 = vmatprep.subr.bf16.mxu1 %v14482_v44  ;;  %v14562_v29 = vld [vmem:[#allocation9_spill] sm:$0xff] }
 0x23e   : > { %v4177_v41 = vpop.f32.mrb[156].mxu0  ;;  %9993 = vmatmul.mubr.bf16.gmra.mrb[4].mxu1 %v14559_v0  ;;  %v10570_v0 = vld [vmem:[%s10791_s25 + $0x50] ss:$8 sps:$4 sm:$0xff]  }
 0x23f   : > { %v9870_v1 = vpop.f32.mrb[157].mxu0  ;;  %v12987_v33 = vadd.f32 %v4177_v41, %v3122_v4  ;;  %9996 = vmatprep.mubr.msk.bf16.mxu1 %vm10734_vm0, %v14482_v44  ;;  %v14563_v41 = vld [vmem:[#allocation10_spill] sm:$0xff]  ;;  %10209 = vmatpush3.bf16.msra.mxu1 %v10593_v40  ;;  %v14565_v40 = vld [vmem:[#allocation13_spill] sm:$0xff] }
 0x240   : > { %v4180_v12 = vpop.f32.mrb[158].mxu0  ;;  %10323 = vmatpush3.bf16.msra.mxu0 %v10589_v32  ;;  %v10594_v32 = vld [vmem:[%s14403_s1 + $0x230] sm:$0xff]   ;;  %v14564_v52 = vcombine.low %v14562_v29, %v14563_v41  ;;  %10210 = vmatprep.subr.bf16.mxu1 %v14482_v44 }
 0x241   : > { %v9871_v54 = vpop.f32.mrb[159].mxu0  ;;  %10324 = vmatprep.subr.bf16.mxu0 %v14482_v44  ;;  %v12992_v55 = vadd.f32 %v4180_v12, %v3123_v57  ;;  %v2937_v61 = vpop.f32.mrb[156].mxu1 }
 0x242   : > { %v3124_v10 = vadd.f32 %v2937_v61, %v14560_v62  ;;  %v9758_v15 = vpop.f32.mrb[157].mxu1 }
 0x243   : > { %10109 = vmatmul.mubr.bf16.gmra.mrb[8].mxu0 %v10567_v2  ;;  %v2940_v21 = vpop.f32.mrb[158].mxu1 }
 0x244   : > { %10112 = vmatprep.mubr.msk.bf16.mxu0 %vm10734_vm0, %v14482_v44  ;;  %v3125_v4 = vadd.f32 %v2940_v21, %v14561_v19  ;;  %v9759_v51 = vpop.f32.mrb[159].mxu1  ;;  %10325 = vmatpush3.bf16.msra.mxu0 %v10594_v32  ;;  %v14566_v32 = vld [vmem:[#allocation14_spill] sm:$0xff] }
 0x245   : > { %10326 = vmatprep.subr.bf16.mxu0 %v14482_v44 }
 0x246   : > { %v4185_v57 = vpop.f32.mrb[160].mxu0  ;;  %9997 = vmatmul.mubr.bf16.gmra.mrb[8].mxu1 %v14564_v52 }
 0x247   : > { %v9874_v30 = vpop.f32.mrb[161].mxu0  ;;  %v13008_v1 = vadd.f32 %v4185_v57, %v3124_v10  ;;  %10000 = vmatprep.mubr.msk.bf16.mxu1 %vm10734_vm0, %v14482_v44  ;;  %v14567_v57 = vcombine.low %v14565_v40, %v14566_v32 }
 0x248   : > { %v4188_v2 = vpop.f32.mrb[162].mxu0 }
 0x249   : > { %v9875_v12 = vpop.f32.mrb[163].mxu0  ;;  %v13014_v54 = vadd.f32 %v4188_v2, %v3125_v4  ;;  %v2945_v61 = vpop.f32.mrb[160].mxu1  ;;  %v10571_v4 = vld [vmem:[%s10791_s25 + $0x60] ss:$8 sps:$4 sm:$0xff]  }
 0x24a   : > { %v3126_v62 = vadd.f32 %v2945_v61, %v12403_v60  ;;  %v9762_v15 = vpop.f32.mrb[161].mxu1 }
 0x24b   : > { %10113 = vmatmul.mubr.bf16.gmra.mrb[12].mxu0 %v10570_v0  ;;  %v2948_v10 = vpop.f32.mrb[162].mxu1 }
 0x24c   : > { %10116 = vmatprep.mubr.msk.bf16.mxu0 %vm10734_vm0, %v14482_v44  ;;  %v3127_v21 = vadd.f32 %v2948_v10, %v12410_v50  ;;  %v9763_v19 = vpop.f32.mrb[163].mxu1  ;;  %v14568_v10 = vld [vmem:[#allocation17_spill] sm:$0xff] }
 0x24d   : > { %v14569_v19 = vld [vmem:[#allocation18_spill] sm:$0xff] }
 0x24e   : > { %v4193_v51 = vpop.f32.mrb[164].mxu0  ;;  %10001 = vmatmul.mubr.bf16.gmra.mrb[12].mxu1 %v14567_v57 }
 0x24f   : > { %v9878_v29 = vpop.f32.mrb[165].mxu0  ;;  %v13024_v41 = vadd.f32 %v4193_v51, %v3126_v62  ;;  %10004 = vmatprep.mubr.msk.bf16.mxu1 %vm10734_vm0, %v14482_v44  ;;  %v14570_v51 = vcombine.low %v14568_v10, %v14569_v19  ;;  %v10600_v19 = vld [vmem:[%s14403_s1 + $0x238] sm:$0xff]  }
 0x250   : > { %v4196_v60 = vpop.f32.mrb[166].mxu0  ;;  %10327 = vmatpush3.bf16.msra.mxu0 %v10600_v19 }
 0x251   : > { %v9879_v52 = vpop.f32.mrb[167].mxu0  ;;  %v13028_v30 = vadd.f32 %v4196_v60, %v3127_v21  ;;  %v2953_v0 = vpop.f32.mrb[164].mxu1  ;;  %v10572_v21 = vld [vmem:[%s10791_s25 + $0x70] ss:$8 sps:$4 sm:$0xff]  }
 0x252   : > { %v3128_v50 = vadd.f32 %v2953_v0, %v12448_v34  ;;  %v9766_v2 = vpop.f32.mrb[165].mxu1 }
 0x253   : > { %10117 = vmatmul.mubr.bf16.gmra.mrb[16].mxu0 %v10571_v4  ;;  %v2956_v12 = vpop.f32.mrb[166].mxu1  ;;  %v10598_v2 = vld [vmem:[%s14403_s1 + $0x1f8] sm:$0xff]  }
 0x254   : > { %10120 = vmatprep.mubr.msk.bf16.mxu0 %vm10734_vm0, %v14482_v44  ;;  %v3129_v61 = vadd.f32 %v2956_v12, %v12454_v16  ;;  %v9767_v62 = vpop.f32.mrb[167].mxu1  ;;  %10211 = vmatpush3.bf16.msra.mxu1 %v10598_v2 }
 0x255   : > { %v14571_v62 = vld [vmem:[#allocation21_spill] sm:$0xff] }
 0x256   : > { %v4201_v15 = vpop.f32.mrb[168].mxu0  ;;  %10005 = vmatmul.mubr.bf16.gmra.mrb[16].mxu1 %v14570_v51 }
 0x257   : > { %v9882_v40 = vpop.f32.mrb[169].mxu0  ;;  %v13038_v32 = vadd.f32 %v4201_v15, %v3128_v50  ;;  %10008 = vmatprep.mubr.msk.bf16.mxu1 %vm10734_vm0, %v14482_v44 }
 0x258   : > { %v4204_v57 = vpop.f32.mrb[170].mxu0 }
 0x259   : > { %v9883_v34 = vpop.f32.mrb[171].mxu0  ;;  %v13042_v29 = vadd.f32 %v4204_v57, %v3129_v61  ;;  %v2961_v4 = vpop.f32.mrb[168].mxu1  ;;  %v14572_v61 = vld [vmem:[#allocation22_spill] sm:$0xff] }
 0x25a   : > { %v3130_v16 = vadd.f32 %v2961_v4, %v12497_v9  ;;  %v9770_v60 = vpop.f32.mrb[169].mxu1  ;;  %v14573_v15 = vcombine.low %v14571_v62, %v14572_v61  ;;  %v10575_v9 = vld [vmem:[%s10791_s25 + $0x80] ss:$8 sps:$4 sm:$0xff]   ;;  %v14575_v62 = vld [vmem:[#allocation25_spill] sm:$0xff] }
 0x25b   : > { %10121 = vmatmul.mubr.bf16.gmra.mrb[20].mxu0 %v10572_v21  ;;  %v2964_v52 = vpop.f32.mrb[170].mxu1 }
 0x25c   : > { %10124 = vmatprep.mubr.msk.bf16.mxu0 %vm10734_vm0, %v14482_v44  ;;  %v3131_v0 = vadd.f32 %v2964_v52, %v12507_v63  ;;  %v9771_v50 = vpop.f32.mrb[171].mxu1 }
 0x25e   : > { %v4209_v12 = vpop.f32.mrb[172].mxu0  ;;  %10009 = vmatmul.mubr.bf16.gmra.mrb[20].mxu1 %v14573_v15 }
 0x25f   : > { %v9886_v10 = vpop.f32.mrb[173].mxu0  ;;  %v13058_v51 = vadd.f32 %v4209_v12, %v3130_v16  ;;  %10012 = vmatprep.mubr.msk.bf16.mxu1 %vm10734_vm0, %v14482_v44  ;;  %v14574_v12 = vld [vmem:[#allocation24_spill] sm:$0xff] }
 0x260   : > { %v4212_v40 = vpop.f32.mrb[174].mxu0  ;;  %v14576_v2 = vcombine.low %v14574_v12, %v14575_v62 }
 0x261   : > { %v9887_v63 = vpop.f32.mrb[175].mxu0  ;;  %v13062_v21 = vadd.f32 %v4212_v40, %v3131_v0  ;;  %v2969_v57 = vpop.f32.mrb[172].mxu1  ;;  %v10576_v0 = vld [vmem:[%s10791_s25 + $0x90] ss:$8 sps:$4 sm:$0xff]  }
 0x262   : > { %v3132_v34 = vadd.f32 %v2969_v57, %v12541_v11  ;;  %v9774_v4 = vpop.f32.mrb[173].mxu1 }
 0x263   : > { %10125 = vmatmul.mubr.bf16.gmra.mrb[24].mxu0 %v10575_v9  ;;  %v2972_v60 = vpop.f32.mrb[174].mxu1 }
 0x264   : > { %10128 = vmatprep.mubr.msk.bf16.mxu0 %vm10734_vm0, %v14482_v44  ;;  %v3133_v16 = vadd.f32 %v2972_v60, %v12551_v25  ;;  %v9775_v52 = vpop.f32.mrb[175].mxu1  ;;  %v14577_v60 = vld [vmem:[#allocation28_spill] sm:$0xff] }
 0x265   : > { %v14578_v52 = vld [vmem:[#allocation29_spill] sm:$0xff] }
 0x266   : > { %v4217_v50 = vpop.f32.mrb[176].mxu0  ;;  %10013 = vmatmul.mubr.bf16.gmra.mrb[24].mxu1 %v14576_v2 }
 0x267   : > { %v9890_v61 = vpop.f32.mrb[177].mxu0  ;;  %v13072_v15 = vadd.f32 %v4217_v50, %v3132_v34  ;;  %10016 = vmatprep.mubr.msk.bf16.mxu1 %vm10734_vm0, %v14482_v44  ;;  %v14579_v50 = vcombine.low %v14577_v60, %v14578_v52 }
 0x268   : > { %v4220_v11 = vpop.f32.mrb[178].mxu0 }
 0x269   : > { %v9891_v10 = vpop.f32.mrb[179].mxu0  ;;  %v13076_v9 = vadd.f32 %v4220_v11, %v3133_v16  ;;  %v2977_v19 = vpop.f32.mrb[176].mxu1  ;;  %v10577_v16 = vld [vmem:[%s10791_s25 + $0xa0] ss:$8 sps:$4 sm:$0xff]  }
 0x26a   : > { %v3134_v25 = vadd.f32 %v2977_v19, %v12583_v14  ;;  %v9778_v40 = vpop.f32.mrb[177].mxu1 }
 0x26b   : > { %10129 = vmatmul.mubr.bf16.gmra.mrb[28].mxu0 %v10576_v0  ;;  %v2980_v63 = vpop.f32.mrb[178].mxu1 }
 0x26c   : > { %10132 = vmatprep.mubr.msk.bf16.mxu0 %vm10734_vm0, %v14482_v44  ;;  %v3135_v57 = vadd.f32 %v2980_v63, %v12588_v59  ;;  %v9779_v34 = vpop.f32.mrb[179].mxu1  ;;  %v14580_v63 = vld [vmem:[#allocation31_spill] sm:$0xff] }
 0x26d   : > { %v14581_v34 = vld [vmem:[#allocation32_spill] sm:$0xff] }
 0x26e   : > { %v4225_v4 = vpop.f32.mrb[180].mxu0  ;;  %10017 = vmatmul.mubr.bf16.gmra.mrb[28].mxu1 %v14579_v50 }
 0x26f   : > { %v9894_v12 = vpop.f32.mrb[181].mxu0  ;;  %v13086_v62 = vadd.f32 %v4225_v4, %v3134_v25  ;;  %10020 = vmatprep.mubr.msk.bf16.mxu1 %vm10734_vm0, %v14482_v44  ;;  %v14582_v4 = vcombine.low %v14580_v63, %v14581_v34 }
 0x270   : > { %v4228_v14 = vpop.f32.mrb[182].mxu0 }
 0x271   : > { %v9895_v2 = vpop.f32.mrb[183].mxu0  ;;  %v13090_v61 = vadd.f32 %v4228_v14, %v3135_v57  ;;  %v2985_v0 = vpop.f32.mrb[180].mxu1  ;;  %v10580_v57 = vld [vmem:[%s10791_s25 + $0xb0] ss:$8 sps:$4 sm:$0xff]  }
 0x272   : > { %v3136_v59 = vadd.f32 %v2985_v0, %v12614_v26  ;;  %v9782_v11 = vpop.f32.mrb[181].mxu1 }
 0x273   : > { %10133 = vmatmul.mubr.bf16.gmra.mrb[32].mxu0 %v10577_v16  ;;  %v2988_v10 = vpop.f32.mrb[182].mxu1 }
 0x274   : > { %10136 = vmatprep.mubr.msk.bf16.mxu0 %vm10734_vm0, %v14482_v44  ;;  %v3137_v19 = vadd.f32 %v2988_v10, %v12620_v38  ;;  %v9783_v25 = vpop.f32.mrb[183].mxu1  ;;  %v14583_v10 = vld [vmem:[#allocation35_spill] sm:$0xff] }
 0x275   : > { %v14584_v25 = vld [vmem:[#allocation36_spill] sm:$0xff] }
 0x276   : > { %v4233_v40 = vpop.f32.mrb[184].mxu0  ;;  %10021 = vmatmul.mubr.bf16.gmra.mrb[32].mxu1 %v14582_v4 }
 0x277   : > { %v9898_v60 = vpop.f32.mrb[185].mxu0  ;;  %v13100_v52 = vadd.f32 %v4233_v40, %v3136_v59  ;;  %10024 = vmatprep.mubr.msk.bf16.mxu1 %vm10734_vm0, %v14482_v44  ;;  %v14585_v40 = vcombine.low %v14583_v10, %v14584_v25 }
 0x278   : > { %v4236_v26 = vpop.f32.mrb[186].mxu0 }
 0x279   : > { %v9899_v50 = vpop.f32.mrb[187].mxu0  ;;  %v13104_v12 = vadd.f32 %v4236_v26, %v3137_v19  ;;  %v2993_v16 = vpop.f32.mrb[184].mxu1  ;;  %v10581_v19 = vld [vmem:[%s10791_s25 + $0xc0] ss:$8 sps:$4 sm:$0xff]  }
 0x27a   : > { %v3138_v38 = vadd.f32 %v2993_v16, %v12633_v46  ;;  %v9786_v14 = vpop.f32.mrb[185].mxu1 }
 0x27b   : > { %10137 = vmatmul.mubr.bf16.gmra.mrb[36].mxu0 %v10580_v57  ;;  %v2996_v2 = vpop.f32.mrb[186].mxu1 }
 0x27c   : > { %10140 = vmatprep.mubr.msk.bf16.mxu0 %vm10734_vm0, %v14482_v44  ;;  %v3139_v0 = vadd.f32 %v2996_v2, %v12637_v18  ;;  %v9787_v59 = vpop.f32.mrb[187].mxu1  ;;  %v14586_v2 = vld [vmem:[#allocation39_spill] sm:$0xff] }
 0x27d   : > { %v14587_v59 = vld [vmem:[#allocation40_spill] sm:$0xff] }
 0x27e   : > { %v4241_v11 = vpop.f32.mrb[188].mxu0  ;;  %10025 = vmatmul.mubr.bf16.gmra.mrb[36].mxu1 %v14585_v40 }
 0x27f   : > { %v9902_v63 = vpop.f32.mrb[189].mxu0  ;;  %v13114_v34 = vadd.f32 %v4241_v11, %v3138_v38  ;;  %10028 = vmatprep.mubr.msk.bf16.mxu1 %vm10734_vm0, %v14482_v44  ;;  %v14588_v11 = vcombine.low %v14586_v2, %v14587_v59  ;;  %v10585_v59 = vld [vmem:[%s10791_s25 + $0xe0] ss:$8 sps:$4 sm:$0xff]  }
 0x280   : > { %v4244_v46 = vpop.f32.mrb[190].mxu0 }
 0x281   : > { %v9903_v4 = vpop.f32.mrb[191].mxu0  ;;  %v13118_v60 = vadd.f32 %v4244_v46, %v3139_v0  ;;  %v3001_v57 = vpop.f32.mrb[188].mxu1  ;;  %v10582_v0 = vld [vmem:[%s10791_s25 + $0xd0] ss:$8 sps:$4 sm:$0xff]  }
 0x282   : > { %v3140_v18 = vadd.f32 %v3001_v57, %v12653_v43  ;;  %v9790_v26 = vpop.f32.mrb[189].mxu1 }
 0x283   : > { %10141 = vmatmul.mubr.bf16.gmra.mrb[40].mxu0 %v10581_v19  ;;  %v3004_v50 = vpop.f32.mrb[190].mxu1 }
 0x284   : > { %10144 = vmatprep.mubr.msk.bf16.mxu0 %vm10734_vm0, %v14482_v44  ;;  %v3141_v16 = vadd.f32 %v3004_v50, %v12658_v49  ;;  %v9791_v38 = vpop.f32.mrb[191].mxu1  ;;  %v14590_v50 = vld [vmem:[#allocation42_spill] sm:$0xff] }
 0x285   : > { %v14591_v38 = vld [vmem:[#allocation43_spill] sm:$0xff] }
 0x286   : > { %v4249_v14 = vpop.f32.mrb[192].mxu0  ;;  %10029 = vmatmul.mubr.bf16.gmra.mrb[40].mxu1 %v14588_v11 }
 0x287   : > { %v9906_v10 = vpop.f32.mrb[193].mxu0  ;;  %v13128_v25 = vadd.f32 %v4249_v14, %v3140_v18  ;;  %10032 = vmatprep.mubr.msk.bf16.mxu1 %vm10734_vm0, %v14482_v44  ;;  %v14592_v14 = vcombine.low %v14590_v50, %v14591_v38  ;;  %v10586_v38 = vld [vmem:[%s10791_s25 + $0xf0] ss:$8 sps:$4 sm:$0xff]  }
 0x288   : > { %v4252_v40 = vpop.f32.mrb[194].mxu0 }
 0x289   : > { %v9907_v43 = vpop.f32.mrb[195].mxu0  ;;  %v13132_v63 = vadd.f32 %v4252_v40, %v3141_v16  ;;  %v3009_v19 = vpop.f32.mrb[192].mxu1 }
 0x28a   : > { %v3142_v49 = vadd.f32 %v3009_v19, %v12672_v37  ;;  %v9794_v46 = vpop.f32.mrb[193].mxu1 }
 0x28b   : > { %14589 = vst [vmem:[#allocation20_spill] sm:$0xff] %v13132_v63  ;;  %10145 = vmatmul.mubr.bf16.gmra.mrb[44].mxu0 %v10582_v0  ;;  %v3012_v4 = vpop.f32.mrb[194].mxu1 }
 0x28c   : > { %10148 = vmatprep.mubr.msk.bf16.mxu0 %vm10734_vm0, %v14482_v44  ;;  %v3143_v57 = vadd.f32 %v3012_v4, %v12678_v53  ;;  %v9795_v18 = vpop.f32.mrb[195].mxu1  ;;  %v14595_v4 = vld [vmem:[#allocation46_spill] sm:$0xff] }
 0x28d   : > { %v14596_v18 = vld [vmem:[#allocation47_spill] sm:$0xff] }
 0x28e   : > { %v4257_v26 = vpop.f32.mrb[196].mxu0  ;;  %10033 = vmatmul.mubr.bf16.gmra.mrb[44].mxu1 %v14592_v14 }
 0x28f   : > { %v13141_v2 = vadd.f32 %v4257_v26, %v3142_v49  ;;  %v9910_v16 = vpop.f32.mrb[197].mxu0  ;;  %10036 = vmatprep.mubr.msk.bf16.mxu1 %vm10734_vm0, %v14482_v44  ;;  %v14597_v26 = vcombine.low %v14595_v4, %v14596_v18  ;;  %v10587_v18 = vld [vmem:[%s10791_s25 + $0x100] ss:$8 sps:$4 sm:$0xff]  }
 0x290   : > { %v4260_v11 = vpop.f32.mrb[198].mxu0 }
 0x291   : > { %14593 = vst [vmem:[#allocation23_spill] sm:$0xff] %v13141_v2  ;;  %v13146_v37 = vadd.f32 %v4260_v11, %v3143_v57  ;;  %v9911_v10 = vpop.f32.mrb[199].mxu0  ;;  %v3017_v0 = vpop.f32.mrb[196].mxu1 }
 0x292   : > { %v3144_v53 = vadd.f32 %v3017_v0, %v12690_v22  ;;  %v9798_v40 = vpop.f32.mrb[197].mxu1 }
 0x293   : > { %14594 = vst [vmem:[#allocation26_spill] sm:$0xff] %v13146_v37  ;;  %10149 = vmatmul.mubr.bf16.gmra.mrb[48].mxu0 %v10585_v59  ;;  %v3020_v43 = vpop.f32.mrb[198].mxu1  ;;  %v14653_v37 = vld [vmem:[#allocation70_spill] sm:$0xff] }
 0x294   : > { %10152 = vmatprep.mubr.msk.bf16.mxu0 %vm10734_vm0, %v14482_v44  ;;  %v3145_v19 = vadd.f32 %v3020_v43, %v12696_v8  ;;  %v9799_v49 = vpop.f32.mrb[199].mxu1  ;;  %v14600_v43 = vld [vmem:[#allocation48_spill] sm:$0xff] }
 0x295   : > { %v14601_v49 = vld [vmem:[#allocation49_spill] sm:$0xff] }
 0x296   : > { %v4265_v46 = vpop.f32.mrb[200].mxu0  ;;  %10037 = vmatmul.mubr.bf16.gmra.mrb[48].mxu1 %v14597_v26 }
 0x297   : > { %v13155_v57 = vadd.f32 %v4265_v46, %v3144_v53  ;;  %v9914_v50 = vpop.f32.mrb[201].mxu0  ;;  %10040 = vmatprep.mubr.msk.bf16.mxu1 %vm10734_vm0, %v14482_v44  ;;  %v14602_v46 = vcombine.low %v14600_v43, %v14601_v49  ;;  %v10590_v49 = vld [vmem:[%s10791_s25 + $0x110] ss:$8 sps:$4 sm:$0xff]  }
 0x298   : > { %v4268_v14 = vpop.f32.mrb[202].mxu0 }
 0x299   : > { %14598 = vst [vmem:[#allocation27_spill] sm:$0xff] %v13155_v57  ;;  %v13160_v22 = vadd.f32 %v4268_v14, %v3145_v19  ;;  %v9915_v16 = vpop.f32.mrb[203].mxu0  ;;  %v3025_v59 = vpop.f32.mrb[200].mxu1  ;;  %v14652_v57 = vld [vmem:[#allocation69_spill] sm:$0xff] }
 0x29a   : > { %v3146_v8 = vadd.f32 %v3025_v59, %v12711_v39  ;;  %v9802_v11 = vpop.f32.mrb[201].mxu1 }
 0x29b   : > { %14599 = vst [vmem:[#allocation30_spill] sm:$0xff] %v13160_v22  ;;  %10153 = vmatmul.mubr.bf16.gmra.mrb[52].mxu0 %v10586_v38  ;;  %v3028_v10 = vpop.f32.mrb[202].mxu1  ;;  %v8936_v22 = vld [vmem:[%s10791_s25 + $0x18] sm:$0xe] }
 0x29c   : > { %10156 = vmatprep.mubr.msk.bf16.mxu0 %vm10734_vm0, %v14482_v44  ;;  %v3147_v0 = vadd.f32 %v3028_v10, %v12715_v48  ;;  %v9803_v53 = vpop.f32.mrb[203].mxu1  ;;  %v14605_v10 = vld [vmem:[#allocation50_spill] sm:$0xff] }
 0x29d   : > { %v14606_v53 = vld [vmem:[#allocation51_spill] sm:$0xff] }
 0x29e   : > { %v4273_v40 = vpop.f32.mrb[204].mxu0  ;;  %10041 = vmatmul.mubr.bf16.gmra.mrb[52].mxu1 %v14602_v46 }
 0x29f   : > { %v13169_v19 = vadd.f32 %v4273_v40, %v3146_v8  ;;  %v9918_v4 = vpop.f32.mrb[205].mxu0  ;;  %10044 = vmatprep.mubr.msk.bf16.mxu1 %vm10734_vm0, %v14482_v44  ;;  %v14607_v40 = vcombine.low %v14605_v10, %v14606_v53  ;;  %v14613_v10 = vld [vmem:[#allocation54_spill] sm:$0xff] }
 0x2a0   : > { %v4276_v26 = vpop.f32.mrb[206].mxu0 }
 0x2a1   : > { %14603 = vst [vmem:[#allocation33_spill] sm:$0xff] %v13169_v19  ;;  %v13174_v39 = vadd.f32 %v4276_v26, %v3147_v0  ;;  %v9919_v50 = vpop.f32.mrb[207].mxu0  ;;  %v3033_v38 = vpop.f32.mrb[204].mxu1 }
 0x2a2   : > { %v3148_v48 = vadd.f32 %v3033_v38, %v12729_v45  ;;  %v9806_v14 = vpop.f32.mrb[205].mxu1 }
 0x2a3   : > { %14604 = vst [vmem:[#allocation34_spill] sm:$0xff] %v13174_v39  ;;  %10157 = vmatmul.mubr.bf16.gmra.mrb[56].mxu0 %v10587_v18  ;;  %v3036_v16 = vpop.f32.mrb[206].mxu1 }
 0x2a4   : > { %10160 = vmatprep.mubr.msk.bf16.mxu0 %vm10734_vm0, %v14482_v44  ;;  %v3149_v59 = vadd.f32 %v3036_v16, %v12735_v6  ;;  %v9807_v8 = vpop.f32.mrb[207].mxu1  ;;  %v14610_v6 = vld [vmem:[#allocation7_spill] sm:$0xff] }
 0x2a6   : > { %v4281_v11 = vpop.f32.mrb[208].mxu0  ;;  %10045 = vmatmul.mubr.bf16.gmra.mrb[56].mxu1 %v14607_v40 }
 0x2a7   : > { %v13183_v0 = vadd.f32 %v4281_v11, %v3148_v48  ;;  %v9922_v43 = vpop.f32.mrb[209].mxu0  ;;  %10048 = vmatprep.mubr.msk.bf16.mxu1 %vm10734_vm0, %v14482_v44  ;;  %v14611_v48 = vld [vmem:[#allocation8_spill] sm:$0xff]  ;;  %v14612_v11 = vld [vmem:[#allocation53_spill] sm:$0xff] }
 0x2a8   : > { %v4284_v46 = vpop.f32.mrb[210].mxu0  ;;  %v14614_v53 = vcombine.low %v14612_v11, %v14613_v10  ;;  %v10591_v43 = vld [vmem:[%s10791_s25 + $0x120] ss:$8 sps:$4 sm:$0xff]  }
 0x2a9   : > { %14608 = vst [vmem:[#allocation37_spill] sm:$0xff] %v13183_v0  ;;  %v13188_v45 = vadd.f32 %v4284_v46, %v3149_v59  ;;  %v9923_v4 = vpop.f32.mrb[211].mxu0  ;;  %v3041_v18 = vpop.f32.mrb[208].mxu1  ;;  %v14619_v10 = vld [vmem:[#allocation55_spill] sm:$0xff] }
 0x2aa   : > { %v3150_v26 = vadd.f32 %v3041_v18, %v14610_v6  ;;  %v9810_v50 = vpop.f32.mrb[209].mxu1  ;;  %v14617_v6 = vld [vmem:[#allocation11_spill] sm:$0xff] }
 0x2ab   : > { %14609 = vst [vmem:[#allocation38_spill] sm:$0xff] %v13188_v45  ;;  %10161 = vmatmul.mubr.bf16.gmra.mrb[60].mxu0 %v10590_v49  ;;  %v3044_v38 = vpop.f32.mrb[210].mxu1 }
 0x2ac   : > { %10164 = vmatprep.mubr.msk.bf16.mxu0 %vm10734_vm0, %v14482_v44  ;;  %v3151_v14 = vadd.f32 %v3044_v38, %v14611_v48  ;;  %v9811_v16 = vpop.f32.mrb[211].mxu1 }
 0x2ae   : > { %v4289_v8 = vpop.f32.mrb[212].mxu0  ;;  %10049 = vmatmul.mubr.bf16.gmra.mrb[60].mxu1 %v14614_v53  ;;  %v14620_v53 = vld [vmem:[#allocation56_spill] sm:$0xff] }
 0x2af   : > { %v13197_v59 = vadd.f32 %v4289_v8, %v3150_v26  ;;  %v9926_v40 = vpop.f32.mrb[213].mxu0  ;;  %10052 = vmatprep.mubr.msk.bf16.mxu1 %vm10734_vm0, %v14482_v44  ;;  %v14618_v26 = vld [vmem:[#allocation12_spill] sm:$0xff] }
 0x2b0   : > { %v4292_v46 = vpop.f32.mrb[214].mxu0  ;;  %v14621_v40 = vcombine.low %v14619_v10, %v14620_v53 }
 0x2b1   : > { %14615 = vst [vmem:[#allocation41_spill] sm:$0xff] %v13197_v59  ;;  %v13202_v49 = vadd.f32 %v4292_v46, %v3151_v14  ;;  %v9927_v4 = vpop.f32.mrb[215].mxu0  ;;  %v3049_v18 = vpop.f32.mrb[212].mxu1  ;;  %v13283_v59 = vld [vmem:[%s10791_s25 + $0x1c] sm:$0x1] }
 0x2b2   : > { %v3152_v50 = vadd.f32 %v3049_v18, %v14617_v6  ;;  %v9814_v38 = vpop.f32.mrb[213].mxu1  ;;  %v10592_v4 = vld [vmem:[%s10791_s25 + $0x130] ss:$8 sps:$4 sm:$0xff]  }
 0x2b3   : > { %14616 = vst [vmem:[#allocation44_spill] sm:$0xff] %v13202_v49  ;;  %10165 = vmatmul.mubr.bf16.gmra.mrb[64].mxu0 %v10591_v43  ;;  %v3052_v48 = vpop.f32.mrb[214].mxu1  ;;  %v14624_v38 = vld [vmem:[#allocation15_spill] sm:$0xff] }
 0x2b4   : > { %10168 = vmatprep.mubr.msk.bf16.mxu0 %vm10734_vm0, %v14482_v44  ;;  %v3153_v16 = vadd.f32 %v3052_v48, %v14618_v26  ;;  %v9815_v8 = vpop.f32.mrb[215].mxu1 }
 0x2b6   : > { %v4297_v11 = vpop.f32.mrb[216].mxu0  ;;  %10053 = vmatmul.mubr.bf16.gmra.mrb[64].mxu1 %v14621_v40  ;;  %v14626_v40 = vld [vmem:[#allocation59_spill] sm:$0xff] }
 0x2b7   : > { %v13211_v14 = vadd.f32 %v4297_v11, %v3152_v50  ;;  %v9930_v46 = vpop.f32.mrb[217].mxu0  ;;  %10056 = vmatprep.mubr.msk.bf16.mxu1 %vm10734_vm0, %v14482_v44  ;;  %v14625_v50 = vld [vmem:[#allocation16_spill] sm:$0xff] }
 0x2b8   : > { %v4300_v49 = vpop.f32.mrb[218].mxu0  ;;  %v14627_v46 = vld [vmem:[#allocation60_spill] sm:$0xff] }
 0x2b9   : > { %14622 = vst [vmem:[#allocation45_spill] sm:$0xff] %v13211_v14  ;;  %v13216_v43 = vadd.f32 %v4300_v49, %v3153_v16  ;;  %v9931_v18 = vpop.f32.mrb[219].mxu0  ;;  %v3057_v6 = vpop.f32.mrb[216].mxu1  ;;  %v14628_v14 = vcombine.low %v14626_v40, %v14627_v46  ;;  %v14632_v40 = vld [vmem:[#allocation62_spill] sm:$0xff] }
 0x2ba   : > { %v3154_v48 = vadd.f32 %v3057_v6, %v14624_v38  ;;  %v9818_v26 = vpop.f32.mrb[217].mxu1  ;;  %v10595_v18 = vld [vmem:[%s10791_s25 + $0x140] ss:$8 sps:$4 sm:$0xff]  }
 0x2bb   : > { %14623 = vst [vmem:[#allocation52_spill] sm:$0xff] %v13216_v43  ;;  %10169 = vmatmul.mubr.bf16.gmra.mrb[68].mxu0 %v10592_v4  ;;  %v3060_v8 = vpop.f32.mrb[218].mxu1 }
 0x2bc   : > { %10172 = vmatprep.mubr.msk.bf16.mxu0 %vm10734_vm0, %v14482_v44  ;;  %v3155_v11 = vadd.f32 %v3060_v8, %v14625_v50  ;;  %v9819_v10 = vpop.f32.mrb[219].mxu1 }
 0x2be   : > { %v4305_v53 = vpop.f32.mrb[220].mxu0  ;;  %10057 = vmatmul.mubr.bf16.gmra.mrb[68].mxu1 %v14628_v14 }
 0x2bf   : > { %v13225_v49 = vadd.f32 %v4305_v53, %v3154_v48  ;;  %v9934_v16 = vpop.f32.mrb[221].mxu0  ;;  %10060 = vmatprep.mubr.msk.bf16.mxu1 %vm10734_vm0, %v14482_v44  ;;  %v14631_v53 = vld [vmem:[#allocation61_spill] sm:$0xff] }
 0x2c0   : > { %v4308_v43 = vpop.f32.mrb[222].mxu0  ;;  %v14633_v46 = vcombine.low %v14631_v53, %v14632_v40  ;;  %v10596_v16 = vld [vmem:[%s10791_s25 + $0x150] ss:$8 sps:$4 sm:$0xff]   ;;  %v14637_v40 = vld [vmem:[#allocation63_spill] sm:$0xff] }
 0x2c1   : > { %14629 = vst [vmem:[#allocation3_spill] sm:$0xff] %v13225_v49  ;;  %v13230_v4 = vadd.f32 %v4308_v43, %v3155_v11  ;;  %v9935_v6 = vpop.f32.mrb[223].mxu0  ;;  %v3065_v38 = vpop.f32.mrb[220].mxu1 }
 0x2c2   : > { %v3156_v26 = vadd.f32 %v3065_v38, %v12804_v13  ;;  %v9822_v8 = vpop.f32.mrb[221].mxu1 }
 0x2c3   : > { %14630 = vst [vmem:[#allocation4_spill] sm:$0xff] %v13230_v4  ;;  %10173 = vmatmul.mubr.bf16.gmra.mrb[72].mxu0 %v10595_v18  ;;  %v3068_v50 = vpop.f32.mrb[222].mxu1 }
 0x2c4   : > { %10176 = vmatprep.mubr.msk.bf16.mxu0 %vm10734_vm0, %v14482_v44  ;;  %v3157_v14 = vadd.f32 %v3068_v50, %v12810_v24  ;;  %v9823_v48 = vpop.f32.mrb[223].mxu1 }
 0x2c6   : > { %v4313_v10 = vpop.f32.mrb[224].mxu0  ;;  %10061 = vmatmul.mubr.bf16.gmra.mrb[72].mxu1 %v14633_v46  ;;  %v14638_v46 = vld [vmem:[#allocation64_spill] sm:$0xff] }
 0x2c7   : > { %v13239_v43 = vadd.f32 %v4313_v10, %v3156_v26  ;;  %v9938_v11 = vpop.f32.mrb[225].mxu0  ;;  %10064 = vmatprep.mubr.msk.bf16.mxu1 %vm10734_vm0, %v14482_v44  ;;  %v14636_v26 = vld [vmem:[#allocation19_spill] sm:$0xff] }
 0x2c8   : > { %v4316_v6 = vpop.f32.mrb[226].mxu0 }
 0x2c9   : > { %14634 = vst [vmem:[#allocation5_spill] sm:$0xff] %v13239_v43  ;;  %v13244_v13 = vadd.f32 %v4316_v6, %v3157_v14  ;;  %v9939_v18 = vpop.f32.mrb[227].mxu0  ;;  %v3073_v38 = vpop.f32.mrb[224].mxu1  ;;  %v14639_v14 = vcombine.low %v14637_v40, %v14638_v46  ;;  %v10597_v6 = vld [vmem:[%s10791_s25 + $0x160] ss:$8 sps:$4 sm:$0xff]  }
 0x2ca   : > { %v3158_v24 = vadd.f32 %v3073_v38, %v12823_v17  ;;  %v9826_v8 = vpop.f32.mrb[225].mxu1  ;;  %v8788_v40 = vld [vmem:[%s10791_s25 + $0x18] sm:$0xf] }
 0x2cb   : > { %14635 = vst [vmem:[#allocation6_spill] sm:$0xff] %v13244_v13  ;;  %10177 = vmatmul.mubr.bf16.gmra.mrb[76].mxu0 %v10596_v16  ;;  %v3076_v50 = vpop.f32.mrb[226].mxu1  ;;  %v14642_v13 = vld [vmem:[#allocation65_spill] sm:$0xff] }
 0x2cc   : > { %10180 = vmatprep.mubr.msk.bf16.mxu0 %vm10734_vm0, %v14482_v44  ;;  %v3159_v48 = vadd.f32 %v3076_v50, %v14636_v26  ;;  %v9827_v10 = vpop.f32.mrb[227].mxu1  ;;  %v8786_v50 = vld [vmem:[%s10791_s25 + $0x10] sm:$0xf] }
 0x2cd   : > { %v10599_v43 = vld [vmem:[%s10791_s25 + $0x170] ss:$8 sps:$4 sm:$0xff]  }
 0x2ce   : > { %v4321_v53 = vpop.f32.mrb[228].mxu0  ;;  %10065 = vmatmul.mubr.bf16.gmra.mrb[76].mxu1 %v14639_v14 }
 0x2cf   : > { %v13253_v11 = vadd.f32 %v4321_v53, %v3158_v24  ;;  %v9942_v17 = vpop.f32.mrb[229].mxu0  ;;  %10068 = vmatprep.mubr.msk.bf16.mxu1 %vm10734_vm0, %v14482_v44  ;;  %v8790_v53 = vld [vmem:[%s10791_s25 + $0x20] sm:$0xf] }
 0x2d0   : > { %v4324_v18 = vpop.f32.mrb[230].mxu0  ;;  %v5866_v17 = vshrl.u32 %v8786_v50, 16  ;;  %v5894_v4 = vshrl.u32 %v8790_v53, 16  ;;  %v5897_v49 = vshll.u32 %v8790_v53, 16 }
 0x2d1   : > { %14640 = vst [vmem:[#allocation57_spill] sm:$0xff] %v13253_v11  ;;  %v13258_v16 = vadd.f32 %v4324_v18, %v3159_v48  ;;  %v9943_v38 = vpop.f32.mrb[231].mxu0  ;;  %v3081_v8 = vpop.f32.mrb[228].mxu1  ;;  %v5869_v48 = vshll.u32 %v8786_v50, 16  ;;  %v8792_v18 = vld [vmem:[%s10791_s25 + $0x28] sm:$0xf] }
 0x2d2   : > { %v3160_v26 = vadd.f32 %v3081_v8, %v12842_v23  ;;  %v9830_v10 = vpop.f32.mrb[229].mxu1  ;;  %v5883_v11 = vshll.u32 %v8788_v40, 16  ;;  %v14643_v23 = vld [vmem:[#allocation66_spill] sm:$0xff]  ;;  %v5908_v50 = vshrl.u32 %v8792_v18, 16  ;;  %v5896_v45 = vrot.slane %v5894_v4, 4 }
 0x2d3   : > { %14641 = vst [vmem:[#allocation58_spill] sm:$0xff] %v13258_v16  ;;  %10181 = vmatmul.mubr.bf16.gmra.mrb[80].mxu0 %v10597_v6  ;;  %v3084_v24 = vpop.f32.mrb[230].mxu1  ;;  %v5880_v16 = vshrl.u32 %v8788_v40, 16  ;;  %v14644_v8 = vcombine.low %v14642_v13, %v14643_v23  ;;  %v5868_v13 = vrot.slane %v5866_v17, 4  ;;  %v5871_v23 = vrot.slane %v5869_v48, 5 }
 0x2d4   : > { %10184 = vmatprep.mubr.msk.bf16.mxu0 %vm10734_vm0, %v14482_v44  ;;  %v3161_v46 = vadd.f32 %v3084_v24, %v12846_v58  ;;  %v9831_v14 = vpop.f32.mrb[231].mxu1  ;;  %v5911_v24 = vshll.u32 %v8792_v18, 16  ;;  %v5899_v18 = vrot.slane %v5897_v49, 5  ;;  %v13288_v17 = vld [vmem:[%s10791_s25 + $0x24] sm:$0x1]  ;;  %v5910_v48 = vrot.slane %v5908_v50, 4 }
 0x2d5   : > { %v14647_v49 = vld [vmem:[#allocation67_spill] sm:$0xff] }
 0x2d6   : > { %v4329_v38 = vpop.f32.mrb[232].mxu0  ;;  %10069 = vmatmul.mubr.bf16.gmra.mrb[80].mxu1 %v14644_v8  ;;  %v10601_v50 = vld [vmem:[%s10791_s25 + $0x180] ss:$8 sps:$4 sm:$0xff]  }
 0x2d7   : > { %v13271_v6 = vadd.f32 %v4329_v38, %v3160_v26  ;;  %v9946_v10 = vpop.f32.mrb[233].mxu0  ;;  %10072 = vmatprep.mubr.msk.bf16.mxu1 %vm10734_vm0, %v14482_v44  ;;  %v13279_v26 = vld [vmem:[%s10791_s25 + $0x14] sm:$0x1]  ;;  %v5882_v38 = vrot.slane %v5880_v16, 4 }
 0x2d8   : > { %v4332_v58 = vpop.f32.mrb[234].mxu0  ;;  %v5885_v10 = vrot.slane %v5883_v11, 5 }
 0x2d9   : > { %14645 = vst [vmem:[#allocation9_spill] sm:$0xff] %v13271_v6  ;;  %v13276_v14 = vadd.f32 %v4332_v58, %v3161_v46  ;;  %v9947_v40 = vpop.f32.mrb[235].mxu0  ;;  %v3089_v8 = vpop.f32.mrb[232].mxu1  ;;  %v5913_v58 = vrot.slane %v5911_v24, 5  ;;  %v5900_v24 = vor.u32 %v5899_v18, %v5896_v45  ;;  %v8796_v45 = vld [vmem:[%s10791_s25 + $0x38] sm:$0xf] }
 0x2da   : > { %v3162_v53 = vadd.f32 %v3089_v8, %v12859_v36  ;;  %v9834_v6 = vpop.f32.mrb[233].mxu1  ;;  %v5872_v40 = vor.u32 %v5871_v23, %v5868_v13  ;;  %v5875_v36 = vshll.u32 %v13279_v26, 16  ;;  %v5886_v4 = vor.u32 %v5885_v10, %v5882_v38  ;;  %v14648_v8 = vld [vmem:[#allocation68_spill] sm:$0xff] }
 0x2db   : > { %14646 = vst [vmem:[#allocation10_spill] sm:$0xff] %v13276_v14  ;;  %10185 = vmatmul.mubr.bf16.gmra.mrb[84].mxu0 %v10599_v43  ;;  %v3092_v46 = vpop.f32.mrb[234].mxu1  ;;  %v13293_v43 = vld [vmem:[%s10791_s25 + $0x2c] sm:$0x1]  ;;  %v14649_v14 = vcombine.low %v14647_v49, %v14648_v8  ;;  %v5903_v13 = vshll.u32 %v13288_v17, 16  ;;  %v5914_v38 = vor.u32 %v5913_v58, %v5910_v48  ;;  %v5901_v48 = vrot.slane %v5900_v24, 4 }
 0x2dc   : > { %10188 = vmatprep.mubr.msk.bf16.mxu0 %vm10734_vm0, %v14482_v44  ;;  %v3163_v11 = vadd.f32 %v3092_v46, %v12865_v28  ;;  %v9835_v16 = vpop.f32.mrb[235].mxu1  ;;  %v5889_v28 = vshll.u32 %v13283_v59, 16  ;;  %v5917_v10 = vshll.u32 %v13293_v43, 16  ;;  %v5877_v46 = vrot.slane %v5875_v36, 5  ;;  %v8935_v8 = vld [vmem:[%s10791_s25 + $0x10] sm:$0xe] }
 0x2dd   : > { %v8794_v16 = vld [vmem:[%s10791_s25 + $0x30] sm:$0xf]  ;;  %v5887_v49 = vrot.slane %v5886_v4, 4  ;;  %v5905_v58 = vrot.slane %v5903_v13, 5 }
 0x2de   : > { %v4337_v6 = vpop.f32.mrb[236].mxu0  ;;  %10073 = vmatmul.mubr.bf16.gmra.mrb[84].mxu1 %v14649_v14  ;;  %v5891_v19 = vrot.slane %v5889_v28, 5  ;;  %v5919_v36 = vrot.slane %v5917_v10, 5  ;;  %v10602_v24 = vld [vmem:[%s10791_s25 + $0x190] ss:$8 sps:$4 sm:$0xff]   ;;  %v8986_v10 = vrot.slane %v8936_v22, 9 }
 0x2df   : > { %v13298_v0 = vadd.f32 %v4337_v6, %v3162_v53  ;;  %v9950_v39 = vpop.f32.mrb[237].mxu0  ;;  %10076 = vmatprep.mubr.msk.bf16.mxu1 %vm10734_vm0, %v14482_v44 }
 0x2e0   : > { %v4340_v23 = vpop.f32.mrb[238].mxu0  ;;  %v5873_v39 = vrot.slane %v5872_v40, 4  ;;  %v5915_v40 = vrot.slane %v5914_v38, 4  ;;  %v7165_v38 = vrot.slane %v13279_v26, 5  ;;  %v8800_v26 = vld [vmem:[%s10791_s25 + $0x48] sm:$0xf] }
 0x2e1   : > { %14650 = vst [vmem:[#allocation13_spill] sm:$0xff] %v13298_v0  ;;  %v13306_v14 = vadd.f32 %v4340_v23, %v3163_v11  ;;  %v9951_v53 = vpop.f32.mrb[239].mxu0  ;;  %v3097_v6 = vpop.f32.mrb[236].mxu1  ;;  %v5922_v23 = vshrl.u32 %v8794_v16, 16 }
 0x2e2   : > { %v3164_v18 = vadd.f32 %v3097_v6, %v12878_v35  ;;  %v9838_v0 = vpop.f32.mrb[237].mxu1  ;;  %v5936_v35 = vshrl.u32 %v8796_v45, 16  ;;  %v5878_v13 = vsel %vm10823_vm3, %v5873_v39, %v5877_v46  ;;  %v8985_v6 = vrot.slane %v8935_v8, 9  ;;  %v13332_v46 = vld [vmem:[%s10791_s25 + $0x34] sm:$0x1] }
 0x2e3   : > { %14651 = vst [vmem:[#allocation14_spill] sm:$0xff] %v13306_v14  ;;  %10189 = vmatmul.mubr.bf16.gmra.mrb[88].mxu0 %v10601_v50  ;;  %v3100_v11 = vpop.f32.mrb[238].mxu1  ;;  %v5925_v14 = vshll.u32 %v8794_v16, 16  ;;  %v5939_v0 = vshll.u32 %v8796_v45, 16  ;;  %v8798_v50 = vld [vmem:[%s10791_s25 + $0x40] sm:$0xf]  ;;  %v5892_v45 = vsel %vm10823_vm3, %v5887_v49, %v5891_v19 }
 0x2e4   : > { %10192 = vmatprep.mubr.msk.bf16.mxu0 %vm10734_vm0, %v14482_v44  ;;  %v3165_v4 = vadd.f32 %v3100_v11, %v12888_v27  ;;  %v9839_v53 = vpop.f32.mrb[239].mxu1  ;;  %v14654_v27 = vcombine.low %v14652_v57, %v14653_v37  ;;  %v7169_v39 = vrot.slane %v13283_v59, 5  ;;  %v5920_v37 = vsel %vm10823_vm3, %v5915_v40, %v5919_v36  ;;  %v13340_v57 = vld [vmem:[%s10791_s25 + $0x3c] sm:$0x1] }
 0x2e5   : > { %v5906_v53 = vsel %vm10823_vm3, %v5901_v48, %v5905_v58  ;;  %v5924_v8 = vrot.slane %v5922_v23, 4  ;;  %v5950_v19 = vshrl.u32 %v8798_v50, 16  ;;  %v5953_v49 = vshll.u32 %v8798_v50, 16 }
 0x2e6   : > { %v4345_v28 = vpop.f32.mrb[240].mxu0  ;;  %10077 = vmatmul.mubr.bf16.gmra.mrb[88].mxu1 %v14654_v27  ;;  %v5927_v59 = vrot.slane %v5925_v14, 5  ;;  %v5938_v58 = vrot.slane %v5936_v35, 4  ;;  %v8937_v27 = vld [vmem:[%s10791_s25 + $0x20] sm:$0xe]  ;;  %v7166_v2 = vsel %vm11239_vm6, %v8985_v6, %v7165_v38  ;;  %v5964_v40 = vshrl.u32 %v8800_v26, 16 }
 0x2e7   : > { %v13324_v16 = vadd.f32 %v4345_v28, %v3164_v18  ;;  %v9954_v11 = vpop.f32.mrb[241].mxu0  ;;  %10212 = vmatprep.mubr.msk.bf16.mxu1 %vm10734_vm0, %v14482_v44  ;;  %v5941_v28 = vrot.slane %v5939_v0, 5  ;;  %v5967_v36 = vshll.u32 %v8800_v26, 16  ;;  %v5931_v14 = vshll.u32 %v13332_v46, 16  ;;  %v8938_v0 = vld [vmem:[%s10791_s25 + $0x28] sm:$0xe] }
 0x2e8   : > { %v4348_v22 = vpop.f32.mrb[242].mxu0  ;;  %v5945_v35 = vshll.u32 %v13340_v57, 16  ;;  %v8987_v6 = vrot.slane %v8937_v27, 9  ;;  %v7173_v26 = vrot.slane %v13288_v17, 5 }
 0x2e9   : > { %14655 = vst [vmem:[#allocation17_spill] sm:$0xff] %v13324_v16  ;;  %v13342_v18 = vadd.f32 %v4348_v22, %v3165_v4  ;;  %v9955_v48 = vpop.f32.mrb[243].mxu0  ;;  %v3105_v11 = vpop.f32.mrb[240].mxu1  ;;  %v8902_v16 = vcombine.low %v5878_v13, %v5892_v45  ;;  %v7170_v4 = vsel %vm11239_vm6, %v8986_v10, %v7169_v39  ;;  %v13355_v13 = vcombine.low %v5906_v53, %v5920_v37  ;;  %v13361_v22 = vld [vmem:[%s10791_s25 + $0x44] sm:$0x1] }
 0x2ea   : > { %v3166_v23 = vadd.f32 %v3105_v11, %v12900_v47  ;;  %v9842_v63 = vpop.f32.mrb[241].mxu1  ;;  %v5952_v47 = vrot.slane %v5950_v19, 4  ;;  %v5928_v45 = vor.u32 %v5927_v59, %v5924_v8  ;;  %v5942_v39 = vor.u32 %v5941_v28, %v5938_v58  ;;  %v13364_v48 = vld [vmem:[%s10791_s25 + $0x4c] sm:$0x1]  ;;  %v8804_v8 = vld [vmem:[%s10791_s25 + $0x58] sm:$0xf] }
 0x2eb   : > { %14656 = vst [vmem:[#allocation18_spill] sm:$0xff] %v13342_v18  ;;  %10193 = vmatmul.mubr.bf16.gmra.mrb[92].mxu0 %v10602_v24  ;;  %v3108_v50 = vpop.f32.mrb[242].mxu1  ;;  %v5955_v63 = vrot.slane %v5953_v49, 5  ;;  %v8802_v24 = vld [vmem:[%s10791_s25 + $0x50] sm:$0xf]  ;;  %v8988_v18 = vrot.slane %v8938_v0, 9  ;;  %v9051_v27 = vcombine.low %v7166_v2, %v7170_v4 }
 0x2ec   : > { %10328 = vmatprep.mubr.msk.bf16.mxu0 %vm10734_vm0, %v14482_v44  ;;  %v3167_v38 = vadd.f32 %v3108_v50, %v12915_v3  ;;  %v9843_v10 = vpop.f32.mrb[243].mxu1  ;;  %v7177_v53 = vrot.slane %v13293_v43, 5  ;;  %v5966_v37 = vrot.slane %v5964_v40, 4  ;;  %v5969_v19 = vrot.slane %v5967_v36, 5  ;;  %v8939_v4 = vld [vmem:[%s10791_s25 + $0x30] sm:$0xe] }
 0x2ed   : > { %v5978_v59 = vshrl.u32 %v8802_v24, 16  ;;  %v5981_v58 = vshll.u32 %v8802_v24, 16  ;;  %v5933_v28 = vrot.slane %v5931_v14, 5  ;;  %v5956_v50 = vor.u32 %v5955_v63, %v5952_v47 }
 0x2ee   : > { %v4353_v11 = vpop.f32.mrb[244].mxu0  ;;  %10213 = vmatmul.mubr.bf16.vlgmr.msra.gmra.mrb[92].mxu1 %v8902_v16  ;;  %v5959_v0 = vshll.u32 %v13361_v22, 16  ;;  %v5973_v43 = vshll.u32 %v13364_v48, 16  ;;  %v5929_v36 = vrot.slane %v5928_v45, 4  ;;  %v5947_v2 = vrot.slane %v5945_v35, 5 }
 0x2ef   : > { %v13367_v49 = vadd.f32 %v4353_v11, %v3166_v23  ;;  %v9958_v3 = vpop.f32.mrb[245].mxu0  ;;  %10216 = vmatprep.mubr.msk.bf16.mxu1 %vm10734_vm0, %v14482_v44  ;;  %v5943_v23 = vrot.slane %v5942_v39, 4  ;;  %v7174_v24 = vsel %vm11239_vm6, %v8987_v6, %v7173_v26  ;;  %v7178_v14 = vsel %vm11239_vm6, %v8988_v18, %v7177_v53 }
 0x2f0   : > { %v4356_v17 = vpop.f32.mrb[246].mxu0  ;;  %v5970_v47 = vor.u32 %v5969_v19, %v5966_v37  ;;  %v5992_v63 = vshrl.u32 %v8804_v8, 16  ;;  %v5980_v45 = vrot.slane %v5978_v59, 4  ;;  %v5983_v39 = vrot.slane %v5981_v58, 5  ;;  %v13398_v59 = vld [vmem:[%s10791_s25 + $0x54] sm:$0x1] }
 0x2f1   : > { %v13374_v16 = vadd.f32 %v4356_v17, %v3167_v38  ;;  %v9959_v40 = vpop.f32.mrb[247].mxu0  ;;  %v3113_v10 = vpop.f32.mrb[244].mxu1  ;;  %v8940_v38 = vld [vmem:[%s10791_s25 + $0x38] sm:$0xe]  ;;  %v5995_v35 = vshll.u32 %v8804_v8, 16  ;;  %v13385_v6 = vrot.slane %v5956_v50, 4  ;;  %v5934_v19 = vsel %vm10823_vm3, %v5929_v36, %v5933_v28 }
 0x2f2   : > { %v3168_v11 = vadd.f32 %v3113_v10, %v12930_v5  ;;  %v9846_v3 = vpop.f32.mrb[245].mxu1  ;;  %v13387_v18 = vrot.slane %v5959_v0, 5  ;;  %v13389_v26 = vrot.slane %v5973_v43, 5  ;;  %v8989_v5 = vrot.slane %v8939_v4, 9  ;;  %v8806_v58 = vld [vmem:[%s10791_s25 + $0x60] sm:$0xf] }
 0x2f3   : > { %10329 = vmatmul.mubr.bf16.vlgmr.msra.gmra.mrb[96].mxu0 %v9051_v27  ;;  %v3116_v17 = vpop.f32.mrb[246].mxu1  ;;  %v5948_v27 = vsel %vm10823_vm3, %v5943_v23, %v5947_v2  ;;  %v7181_v8 = vrot.slane %v13332_v46, 5  ;;  %v9052_v0 = vcombine.low %v7174_v24, %v7178_v14  ;;  %v5971_v43 = vrot.slane %v5970_v47, 4  ;;  %v13407_v36 = vld [vmem:[%s10791_s25 + $0x5c] sm:$0x1] }
 0x2f4   : > { %10332 = vmatprep.mubr.msk.bf16.mxu0 %vm10734_vm0, %v14482_v44  ;;  %v3169_v53 = vadd.f32 %v3116_v17, %v12941_v7  ;;  %v9847_v37 = vpop.f32.mrb[247].mxu1  ;;  %v8990_v40 = vrot.slane %v8940_v38, 9  ;;  %v7185_v4 = vrot.slane %v13340_v57, 5  ;;  %v8808_v7 = vld [vmem:[%s10791_s25 + $0x68] sm:$0xf]  ;;  %v5984_v23 = vor.u32 %v5983_v39, %v5980_v45 }
 0x2f5   : > { %v5994_v46 = vrot.slane %v5992_v63, 4  ;;  %v5997_v2 = vrot.slane %v5995_v35, 5  ;;  %v5987_v24 = vshll.u32 %v13398_v59, 16  ;;  %v6006_v14 = vshrl.u32 %v8806_v58, 16 }
 0x2f6   : > { %v4361_v50 = vpop.f32.mrb[248].mxu0  ;;  %10217 = vmatmul.mubr.bf16.gmra.mrb[96].mxu1 %v13355_v13  ;;  %v6009_v57 = vshll.u32 %v8806_v58, 16  ;;  %v8904_v13 = vcombine.low %v5934_v19, %v5948_v27  ;;  %v6020_v17 = vshrl.u32 %v8808_v7, 16  ;;  %v6023_v37 = vshll.u32 %v8808_v7, 16  ;;  %v13432_v7 = vld [vmem:[%s10791_s25 + $0x64] sm:$0x1] }
 0x2f7   : > { %v13404_v10 = vadd.f32 %v4361_v50, %v3168_v11  ;;  %v9962_v28 = vpop.f32.mrb[249].mxu0  ;;  %10220 = vmatprep.mubr.msk.bf16.mxu1 %vm10734_vm0, %v14482_v44  ;;  %v8941_v11 = vld [vmem:[%s10791_s25 + $0x40] sm:$0xe]  ;;  %v5962_v63 = vsel %vm10823_vm3, %v13385_v6, %v13387_v18  ;;  %v7182_v39 = vsel %vm11239_vm6, %v8989_v5, %v7181_v8  ;;  %v7186_v35 = vsel %vm11239_vm6, %v8990_v40, %v7185_v4  ;;  %v8942_v18 = vld [vmem:[%s10791_s25 + $0x48] sm:$0xe] }
 0x2f8   : > { %v4364_v3 = vpop.f32.mrb[250].mxu0  ;;  %v5976_v58 = vsel %vm10823_vm3, %v5971_v43, %v13389_v26  ;;  %v13428_v50 = vrot.slane %v5984_v23, 4  ;;  %v5998_v6 = vor.u32 %v5997_v2, %v5994_v46  ;;  %v13436_v8 = vrot.slane %v5987_v24, 5  ;;  %v13441_v43 = vld [vmem:[%s10791_s25 + $0x6c] sm:$0x1] }
 0x2f9   : > { %v13412_v47 = vadd.f32 %v4364_v3, %v3169_v53  ;;  %v9963_v38 = vpop.f32.mrb[251].mxu0  ;;  %v4967_v45 = vpop.f32.mrb[248].mxu1  ;;  %v6001_v53 = vshll.u32 %v13407_v36, 16  ;;  %v6008_v40 = vrot.slane %v6006_v14, 4  ;;  %v6011_v4 = vrot.slane %v6009_v57, 5 }
 0x2fa   : > { %v5166_v19 = vadd.f32 %v4967_v45, %v12960_v56  ;;  %v9982_v27 = vpop.f32.mrb[249].mxu1  ;;  %v8991_v56 = vrot.slane %v8941_v11, 9  ;;  %v7189_v26 = vrot.slane %v13361_v22, 5  ;;  %v6022_v23 = vrot.slane %v6020_v17, 4  ;;  %v8810_v22 = vld [vmem:[%s10791_s25 + $0x70] sm:$0xf] }
 0x2fb   : > { %10333 = vmatmul.mubr.bf16.gmra.mrb[100].mxu0 %v9052_v0  ;;  %v4970_v5 = vpop.f32.mrb[250].mxu1  ;;  %v6025_v46 = vrot.slane %v6023_v37, 5  ;;  %v8992_v3 = vrot.slane %v8942_v18, 9  ;;  %v7193_v24 = vrot.slane %v13364_v48, 5  ;;  %v6015_v38 = vshll.u32 %v13432_v7, 16 }
 0x2fc   : > { %10336 = vmatprep.mubr.msk.bf16.mxu0 %vm10734_vm0, %v14482_v44  ;;  %v5167_v0 = vadd.f32 %v4970_v5, %v12971_v42  ;;  %v9983_v28 = vpop.f32.mrb[251].mxu1  ;;  %v9053_v57 = vcombine.low %v7182_v39, %v7186_v35  ;;  %v5999_v11 = vrot.slane %v5998_v6, 4  ;;  %v6003_v45 = vrot.slane %v6001_v53, 5  ;;  %v8943_v48 = vld [vmem:[%s10791_s25 + $0x50] sm:$0xe] }
 0x2fd   : > { %v8905_v17 = vcombine.low %v5962_v63, %v5976_v58  ;;  %v6012_v37 = vor.u32 %v6011_v4, %v6008_v40  ;;  %v6029_v18 = vshll.u32 %v13441_v43, 16  ;;  %v8812_v5 = vld [vmem:[%s10791_s25 + $0x78] sm:$0xf]  ;;  %v5990_v39 = vsel %vm10823_vm3, %v13428_v50, %v13436_v8  ;;  %v13468_v50 = vld [vmem:[%s10791_s25 + $0x74] sm:$0x1] }
 0x2fe   : > { %v5516_v2 = vpop.f32.mrb[252].mxu0  ;;  %10221 = vmatmul.mubr.bf16.gmra.mrb[100].mxu1 %v8904_v13  ;;  %v7190_v35 = vsel %vm11239_vm6, %v8991_v56, %v7189_v26  ;;  %v6026_v53 = vor.u32 %v6025_v46, %v6022_v23  ;;  %v7194_v63 = vsel %vm11239_vm6, %v8992_v3, %v7193_v24  ;;  %v13463_v58 = vrot.slane %v6015_v38, 5  ;;  %v8944_v40 = vld [vmem:[%s10791_s25 + $0x58] sm:$0xe] }
 0x2ff   : > { %v13445_v14 = vadd.f32 %v5516_v2, %v5166_v19  ;;  %v10098_v42 = vpop.f32.mrb[253].mxu0  ;;  %10224 = vmatprep.mubr.msk.bf16.mxu1 %vm10734_vm0, %v14482_v44  ;;  %v6034_v4 = vshrl.u32 %v8810_v22, 16  ;;  %v6048_v8 = vshrl.u32 %v8812_v5, 16  ;;  %v6051_v56 = vshll.u32 %v8812_v5, 16 }
 0x300   : > { %v5519_v27 = vpop.f32.mrb[254].mxu0  ;;  %v8993_v42 = vrot.slane %v8943_v48, 9  ;;  %v6004_v23 = vsel %vm10823_vm3, %v5999_v11, %v6003_v45  ;;  %v6013_v46 = vrot.slane %v6012_v37, 4  ;;  %v6031_v3 = vrot.slane %v6029_v18, 5  ;;  %v8814_v45 = vld [vmem:[%s10791_s25 + $0x80] sm:$0xf] }
 0x301   : > { %v13453_v13 = vadd.f32 %v5519_v27, %v5167_v0  ;;  %v10099_v19 = vpop.f32.mrb[255].mxu0  ;;  %v4975_v6 = vpop.f32.mrb[252].mxu1  ;;  %v6037_v0 = vshll.u32 %v8810_v22, 16  ;;  %v7197_v24 = vrot.slane %v13398_v59, 5  ;;  %v6027_v22 = vrot.slane %v6026_v53, 4 }
 0x302   : > { %v5168_v28 = vadd.f32 %v4975_v6, %v12987_v33  ;;  %v9986_v2 = vpop.f32.mrb[253].mxu1  ;;  %v13476_v33 = vld [vmem:[%s10791_s25 + $0x7c] sm:$0x1]  ;;  %v8994_v27 = vrot.slane %v8944_v40, 9  ;;  %v7201_v48 = vrot.slane %v13407_v36, 5  ;;  %v9054_v19 = vcombine.low %v7190_v35, %v7194_v63 }
 0x303   : > { %10337 = vmatmul.mubr.bf16.gmra.mrb[104].mxu0 %v9053_v57  ;;  %v4978_v26 = vpop.f32.mrb[254].mxu1  ;;  %v6036_v6 = vrot.slane %v6034_v4, 4  ;;  %v6039_v2 = vrot.slane %v6037_v0, 5  ;;  %v6043_v11 = vshll.u32 %v13468_v50, 16  ;;  %v6050_v18 = vrot.slane %v6048_v8, 4 }
 0x304   : > { %10340 = vmatprep.mubr.msk.bf16.mxu0 %vm10734_vm0, %v14482_v44  ;;  %v5169_v38 = vadd.f32 %v4978_v26, %v12992_v55  ;;  %v9987_v57 = vpop.f32.mrb[255].mxu1  ;;  %v6053_v55 = vrot.slane %v6051_v56, 5  ;;  %v6057_v53 = vshll.u32 %v13476_v33, 16  ;;  %v8906_v36 = vcombine.low %v5990_v39, %v6004_v23  ;;  %v8945_v0 = vld [vmem:[%s10791_s25 + $0x60] sm:$0xe] }
 0x305   : > { %v7198_v4 = vsel %vm11239_vm6, %v8993_v42, %v7197_v24  ;;  %v6062_v8 = vshrl.u32 %v8814_v45, 16  ;;  %v6032_v26 = vsel %vm10823_vm3, %v6027_v22, %v6031_v3  ;;  %v7202_v39 = vsel %vm11239_vm6, %v8994_v27, %v7201_v48 }
 0x306   : > { %v5524_v5 = vpop.f32.mrb[0].mxu0  ;;  %10225 = vmatmul.mubr.bf16.gmra.mrb[104].mxu1 %v8905_v17  ;;  %v6018_v17 = vsel %vm10823_vm3, %v6013_v46, %v13463_v58  ;;  %v6040_v23 = vor.u32 %v6039_v2, %v6036_v6  ;;  %v6065_v57 = vshll.u32 %v8814_v45, 16  ;;  %v13502_v58 = vrot.slane %v6043_v11, 5 }
 0x307   : > { %v13482_v59 = vadd.f32 %v5524_v5, %v5168_v28  ;;  %v10102_v37 = vpop.f32.mrb[1].mxu0  ;;  %10228 = vmatprep.mubr.msk.bf16.mxu1 %vm10734_vm0, %v14482_v44  ;;  %v8816_v28 = vld [vmem:[%s10791_s25 + $0x88] sm:$0xf]  ;;  %v6054_v42 = vor.u32 %v6053_v55, %v6050_v18  ;;  %v13504_v46 = vrot.slane %v6057_v53, 5  ;;  %v8995_v3 = vrot.slane %v8945_v0, 9 }
 0x308   : > { %v5527_v40 = vpop.f32.mrb[2].mxu0  ;;  %v7205_v22 = vrot.slane %v13432_v7, 5  ;;  %v6076_v27 = vshrl.u32 %v8816_v28, 16  ;;  %v6079_v48 = vshll.u32 %v8816_v28, 16  ;;  %v7209_v2 = vrot.slane %v13441_v43, 5 }
 0x309   : > { %v13487_v35 = vadd.f32 %v5527_v40, %v5169_v38  ;;  %v10103_v63 = vpop.f32.mrb[3].mxu0  ;;  %v4983_v56 = vpop.f32.mrb[0].mxu1  ;;  %v8946_v38 = vld [vmem:[%s10791_s25 + $0x68] sm:$0xe]  ;;  %v6064_v11 = vrot.slane %v6062_v8, 4  ;;  %v6067_v53 = vrot.slane %v6065_v57, 5  ;;  %v9055_v0 = vcombine.low %v7198_v4, %v7202_v39 }
 0x30a   : > { %v5170_v5 = vadd.f32 %v4983_v56, %v13008_v1  ;;  %v9990_v37 = vpop.f32.mrb[1].mxu1  ;;  %v8996_v6 = vrot.slane %v8946_v38, 9  ;;  %v13512_v18 = vld [vmem:[%s10791_s25 + $0x84] sm:$0x1]  ;;  %v13515_v55 = vld [vmem:[%s10791_s25 + $0x8c] sm:$0x1]  ;;  %v8907_v63 = vcombine.low %v6018_v17, %v6032_v26  ;;  %v13525_v8 = vsel %vm11239_vm6, %v8995_v3, %v7205_v22 }
 0x30b   : > { %10341 = vmatmul.mubr.bf16.gmra.mrb[108].mxu0 %v9054_v19  ;;  %v4986_v24 = vpop.f32.mrb[2].mxu1  ;;  %v8947_v28 = vld [vmem:[%s10791_s25 + $0x70] sm:$0xe]  ;;  %v8948_v56 = vld [vmem:[%s10791_s25 + $0x78] sm:$0xe]  ;;  %v6055_v43 = vrot.slane %v6054_v42, 4  ;;  %v6068_v42 = vor.u32 %v6067_v53, %v6064_v11 }
 0x30c   : > { %10344 = vmatprep.mubr.msk.bf16.mxu0 %vm10734_vm0, %v14482_v44  ;;  %v5171_v1 = vadd.f32 %v4986_v24, %v13014_v54  ;;  %v9991_v19 = vpop.f32.mrb[3].mxu1  ;;  %v6041_v54 = vrot.slane %v6040_v23, 4  ;;  %v6078_v37 = vrot.slane %v6076_v27, 4  ;;  %v6081_v57 = vrot.slane %v6079_v48, 5 }
 0x30d   : > { %v7210_v4 = vsel %vm11239_vm6, %v8996_v6, %v7209_v2  ;;  %v6071_v26 = vshll.u32 %v13512_v18, 16  ;;  %v6085_v39 = vshll.u32 %v13515_v55, 16  ;;  %v8997_v24 = vrot.slane %v8947_v28, 9  ;;  %v8820_v19 = vld [vmem:[%s10791_s25 + $0x98] sm:$0xf] }
 0x30e   : > { %v5532_v45 = vpop.f32.mrb[4].mxu0  ;;  %10229 = vmatmul.mubr.bf16.gmra.mrb[108].mxu1 %v8906_v36  ;;  %v8818_v36 = vld [vmem:[%s10791_s25 + $0x90] sm:$0xf]  ;;  %v7213_v3 = vrot.slane %v13468_v50, 5  ;;  %v8998_v22 = vrot.slane %v8948_v56, 9  ;;  %v6046_v2 = vsel %vm10823_vm3, %v6041_v54, %v13502_v58  ;;  %v6082_v50 = vor.u32 %v6081_v57, %v6078_v37 }
 0x30f   : > { %v13517_v7 = vadd.f32 %v5532_v45, %v5170_v5  ;;  %v10106_v40 = vpop.f32.mrb[5].mxu0  ;;  %10232 = vmatprep.mubr.msk.bf16.mxu1 %vm10734_vm0, %v14482_v44  ;;  %v6090_v45 = vshrl.u32 %v8818_v36, 16  ;;  %v9056_v53 = vcombine.low %v13525_v8, %v7210_v4  ;;  %v13550_v28 = vrot.slane %v6085_v39, 5  ;;  %v13566_v57 = vld [vmem:[%s10791_s25 + $0x94] sm:$0x1] }
 0x310   : > { %v5535_v38 = vpop.f32.mrb[6].mxu0  ;;  %v6093_v40 = vshll.u32 %v8818_v36, 16  ;;  %v13556_v58 = vsel %vm11239_vm6, %v8997_v24, %v7213_v3  ;;  %v6107_v54 = vshll.u32 %v8820_v19, 16  ;;  %v13571_v39 = vld [vmem:[%s10791_s25 + $0x9c] sm:$0x1] }
 0x311   : > { %v13528_v5 = vadd.f32 %v5535_v38, %v5171_v1  ;;  %v10107_v17 = vpop.f32.mrb[7].mxu0  ;;  %v4991_v23 = vpop.f32.mrb[4].mxu1  ;;  %v7217_v1 = vrot.slane %v13476_v33, 5  ;;  %v13552_v38 = vrot.slane %v6068_v42, 4  ;;  %v6092_v36 = vrot.slane %v6090_v45, 4 }
 0x312   : > { %v5172_v27 = vadd.f32 %v4991_v23, %v13024_v41  ;;  %v9994_v48 = vpop.f32.mrb[5].mxu1  ;;  %v6060_v41 = vsel %vm10823_vm3, %v6055_v43, %v13504_v46  ;;  %v6104_v46 = vshrl.u32 %v8820_v19, 16  ;;  %v8822_v43 = vld [vmem:[%s10791_s25 + $0xa0] sm:$0xf]  ;;  %v6095_v17 = vrot.slane %v6093_v40, 5 }
 0x313   : > { %10345 = vmatmul.mubr.bf16.gmra.mrb[112].mxu0 %v9055_v0  ;;  %v4994_v6 = vpop.f32.mrb[6].mxu1  ;;  %v13548_v0 = vrot.slane %v6071_v26, 5  ;;  %v13563_v37 = vsel %vm11239_vm6, %v8998_v22, %v7217_v1  ;;  %v6083_v26 = vrot.slane %v6082_v50, 4  ;;  %v8908_v24 = vcombine.low %v6046_v2, %v6060_v41  ;;  %v8949_v3 = vld [vmem:[%s10791_s25 + $0x80] sm:$0xe] }
 0x314   : > { %10348 = vmatprep.mubr.msk.bf16.mxu0 %vm10734_vm0, %v14482_v44  ;;  %v5173_v33 = vadd.f32 %v4994_v6, %v13028_v30  ;;  %v9995_v11 = vpop.f32.mrb[7].mxu1  ;;  %v6118_v22 = vshrl.u32 %v8822_v43, 16  ;;  %v9057_v19 = vcombine.low %v13556_v58, %v13563_v37  ;;  %v6106_v45 = vrot.slane %v6104_v46, 4  ;;  %v8950_v6 = vld [vmem:[%s10791_s25 + $0x88] sm:$0xe] }
 0x315   : > { %v6074_v1 = vsel %vm10823_vm3, %v13552_v38, %v13548_v0  ;;  %v6109_v40 = vrot.slane %v6107_v54, 5  ;;  %v6096_v2 = vor.u32 %v6095_v17, %v6092_v36  ;;  %v13586_v41 = vld [vmem:[%s10791_s25 + $0xa4] sm:$0x1]  ;;  %v6088_v0 = vsel %vm10823_vm3, %v6083_v26, %v13550_v28 }
 0x316   : > { %v5540_v56 = vpop.f32.mrb[8].mxu0  ;;  %10233 = vmatmul.mubr.bf16.gmra.mrb[112].mxu1 %v8907_v63  ;;  %v8824_v63 = vld [vmem:[%s10791_s25 + $0xa8] sm:$0xf]  ;;  %v6099_v38 = vshll.u32 %v13566_v57, 16  ;;  %v8999_v58 = vrot.slane %v8949_v3, 9  ;;  %v7221_v54 = vrot.slane %v13512_v18, 5 }
 0x317   : > { %v13559_v30 = vadd.f32 %v5540_v56, %v5172_v27  ;;  %v10110_v8 = vpop.f32.mrb[9].mxu0  ;;  %10236 = vmatprep.mubr.msk.bf16.mxu1 %vm10734_vm0, %v14482_v44  ;;  %v6121_v27 = vshll.u32 %v8822_v43, 16  ;;  %v6132_v11 = vshrl.u32 %v8824_v63, 16  ;;  %v6135_v56 = vshll.u32 %v8824_v63, 16 }
 0x318   : > { %v5543_v4 = vpop.f32.mrb[10].mxu0  ;;  %v13598_v8 = vld [vmem:[%s10791_s25 + $0xac] sm:$0x1]  ;;  %v6120_v37 = vrot.slane %v6118_v22, 4  ;;  %v9000_v63 = vrot.slane %v8950_v6, 9  ;;  %v7225_v28 = vrot.slane %v13515_v55, 5 }
 0x319   : > { %v13574_v23 = vadd.f32 %v5543_v4, %v5173_v33  ;;  %v10111_v42 = vpop.f32.mrb[11].mxu0  ;;  %v4999_v48 = vpop.f32.mrb[8].mxu1  ;;  %v6123_v36 = vrot.slane %v6121_v27, 5  ;;  %v6110_v4 = vor.u32 %v6109_v40, %v6106_v45  ;;  %v6127_v26 = vshll.u32 %v13586_v41, 16 }
 0x31a   : > { %v5174_v50 = vadd.f32 %v4999_v48, %v13038_v32  ;;  %v9998_v33 = vpop.f32.mrb[9].mxu1  ;;  %v6113_v32 = vshll.u32 %v13571_v39, 16  ;;  %v8826_v42 = vld [vmem:[%s10791_s25 + $0xb0] sm:$0xf]  ;;  %v13605_v18 = vrot.slane %v6096_v2, 4  ;;  %v6134_v48 = vrot.slane %v6132_v11, 4 }
 0x31b   : > { %10349 = vmatmul.mubr.bf16.gmra.mrb[116].mxu0 %v9056_v53  ;;  %v5002_v43 = vpop.f32.mrb[10].mxu1  ;;  %v6137_v22 = vrot.slane %v6135_v56, 5  ;;  %v8909_v45 = vcombine.low %v6074_v1, %v6088_v0  ;;  %v6101_v40 = vrot.slane %v6099_v38, 5  ;;  %v6141_v6 = vshll.u32 %v13598_v8, 16  ;;  %v8828_v33 = vld [vmem:[%s10791_s25 + $0xb8] sm:$0xf] }
 0x31c   : > { %10352 = vmatprep.mubr.msk.bf16.mxu0 %vm10734_vm0, %v14482_v44  ;;  %v5175_v53 = vadd.f32 %v5002_v43, %v13042_v29  ;;  %v9999_v46 = vpop.f32.mrb[11].mxu1  ;;  %v6115_v55 = vrot.slane %v6113_v32, 5  ;;  %v7222_v43 = vsel %vm11239_vm6, %v8999_v58, %v7221_v54  ;;  %v6124_v2 = vor.u32 %v6123_v36, %v6120_v37  ;;  %v8952_v11 = vld [vmem:[%s10791_s25 + $0x98] sm:$0xe] }
 0x31d   : > { %v8951_v46 = vld [vmem:[%s10791_s25 + $0x90] sm:$0xe]  ;;  %v6146_v56 = vshrl.u32 %v8826_v42, 16  ;;  %v7226_v1 = vsel %vm11239_vm6, %v9000_v63, %v7225_v28  ;;  %v13619_v0 = vrot.slane %v6127_v26, 5  ;;  %v6149_v38 = vshll.u32 %v8826_v42, 16 }
 0x31e   : > { %v5548_v17 = vpop.f32.mrb[12].mxu0  ;;  %10237 = vmatmul.mubr.bf16.gmra.mrb[116].mxu1 %v8908_v24  ;;  %v6163_v58 = vshll.u32 %v8828_v33, 16  ;;  %v9001_v37 = vrot.slane %v8951_v46, 9  ;;  %v7229_v36 = vrot.slane %v13566_v57, 5  ;;  %v7233_v63 = vrot.slane %v13571_v39, 5 }
 0x31f   : > { %v13603_v3 = vadd.f32 %v5548_v17, %v5174_v50  ;;  %v10114_v29 = vpop.f32.mrb[13].mxu0  ;;  %10240 = vmatprep.mubr.msk.bf16.mxu1 %vm10734_vm0, %v14482_v44  ;;  %v13627_v26 = vrot.slane %v6124_v2, 4  ;;  %v13632_v42 = vld [vmem:[%s10791_s25 + $0xb4] sm:$0x1]  ;;  %v9058_v46 = vcombine.low %v7222_v43, %v7226_v1  ;;  %v13640_v39 = vld [vmem:[%s10791_s25 + $0xbc] sm:$0x1] }
 0x320   : > { %v5551_v27 = vpop.f32.mrb[14].mxu0  ;;  %v6111_v29 = vrot.slane %v6110_v4, 4  ;;  %v9002_v4 = vrot.slane %v8952_v11, 9  ;;  %v8830_v2 = vld [vmem:[%s10791_s25 + $0xc0] sm:$0xf] }
 0x321   : > { %v13611_v24 = vadd.f32 %v5551_v27, %v5175_v53  ;;  %v10115_v50 = vpop.f32.mrb[15].mxu0  ;;  %v5007_v17 = vpop.f32.mrb[12].mxu1  ;;  %v6138_v27 = vor.u32 %v6137_v22, %v6134_v48  ;;  %v6148_v48 = vrot.slane %v6146_v56, 4  ;;  %v8832_v1 = vld [vmem:[%s10791_s25 + $0xc8] sm:$0xf] }
 0x322   : > { %v5176_v32 = vadd.f32 %v5007_v17, %v13058_v51  ;;  %v10002_v53 = vpop.f32.mrb[13].mxu1  ;;  %v6160_v50 = vshrl.u32 %v8828_v33, 16  ;;  %v6102_v33 = vsel %vm10823_vm3, %v13605_v18, %v6101_v40  ;;  %v6116_v57 = vsel %vm10823_vm3, %v6111_v29, %v6115_v55 }
 0x323   : > { %10353 = vmatmul.mubr.bf16.gmra.mrb[120].mxu0 %v9057_v19  ;;  %v5010_v54 = vpop.f32.mrb[14].mxu1  ;;  %v13629_v19 = vrot.slane %v6141_v6, 5  ;;  %v6139_v17 = vrot.slane %v6138_v27, 4  ;;  %v6165_v53 = vrot.slane %v6163_v58, 5  ;;  %v7230_v18 = vsel %vm11239_vm6, %v9001_v37, %v7229_v36 }
 0x324   : > { %10356 = vmatprep.mubr.msk.bf16.mxu0 %vm10734_vm0, %v14482_v44  ;;  %v5177_v51 = vadd.f32 %v5010_v54, %v13062_v21  ;;  %v10003_v28 = vpop.f32.mrb[15].mxu1  ;;  %v6151_v21 = vrot.slane %v6149_v38, 5  ;;  %v6162_v56 = vrot.slane %v6160_v50, 4  ;;  %v7234_v40 = vsel %vm11239_vm6, %v9002_v4, %v7233_v63 }
 0x325   : > { %v6155_v55 = vshll.u32 %v13632_v42, 16  ;;  %v6169_v29 = vshll.u32 %v13640_v39, 16  ;;  %v6174_v38 = vshrl.u32 %v8830_v2, 16  ;;  %v8910_v50 = vcombine.low %v6102_v33, %v6116_v57  ;;  %v8953_v28 = vld [vmem:[%s10791_s25 + $0xa0] sm:$0xe] }
 0x326   : > { %v5556_v22 = vpop.f32.mrb[16].mxu0  ;;  %10241 = vmatmul.mubr.bf16.gmra.mrb[120].mxu1 %v8909_v45  ;;  %v6152_v58 = vor.u32 %v6151_v21, %v6148_v48  ;;  %v6130_v4 = vsel %vm10823_vm3, %v13627_v26, %v13619_v0  ;;  %v6144_v63 = vsel %vm10823_vm3, %v6139_v17, %v13629_v19  ;;  %v13671_v33 = vld [vmem:[%s10791_s25 + $0xc4] sm:$0x1]  ;;  %v6188_v57 = vshrl.u32 %v8832_v1, 16  ;;  %v13677_v19 = vld [vmem:[%s10791_s25 + $0xcc] sm:$0x1] }
 0x327   : > { %v13643_v6 = vadd.f32 %v5556_v22, %v5176_v32  ;;  %v10118_v11 = vpop.f32.mrb[17].mxu0  ;;  %10244 = vmatprep.mubr.msk.bf16.mxu1 %vm10734_vm0, %v14482_v44  ;;  %v6177_v32 = vshll.u32 %v8830_v2, 16  ;;  %v8954_v22 = vld [vmem:[%s10791_s25 + $0xa8] sm:$0xe]  ;;  %v13668_v48 = vrot.slane %v6155_v55, 5  ;;  %v13674_v21 = vrot.slane %v6169_v29, 5 }
 0x328   : > { %v5559_v54 = vpop.f32.mrb[18].mxu0  ;;  %v6176_v11 = vrot.slane %v6174_v38, 4  ;;  %v7241_v29 = vrot.slane %v13598_v8, 5 }
 0x329   : > { %v13652_v45 = vadd.f32 %v5559_v54, %v5177_v51  ;;  %v10119_v43 = vpop.f32.mrb[19].mxu0  ;;  %v5015_v27 = vpop.f32.mrb[16].mxu1  ;;  %v6166_v51 = vor.u32 %v6165_v53, %v6162_v56  ;;  %v6179_v17 = vrot.slane %v6177_v32, 5  ;;  %v13679_v53 = vrot.slane %v6152_v58, 4 }
 0x32a   : > { %v5178_v37 = vadd.f32 %v5015_v27, %v13072_v15  ;;  %v10006_v36 = vpop.f32.mrb[17].mxu1  ;;  %v9059_v15 = vcombine.low %v7230_v18, %v7234_v40  ;;  %v9003_v54 = vrot.slane %v8953_v28, 9  ;;  %v7237_v18 = vrot.slane %v13586_v41, 5 }
 0x32b   : > { %10357 = vmatmul.mubr.bf16.gmra.mrb[124].mxu0 %v9058_v46  ;;  %v5018_v2 = vpop.f32.mrb[18].mxu1  ;;  %v6191_v46 = vshll.u32 %v8832_v1, 16  ;;  %v9004_v40 = vrot.slane %v8954_v22, 9  ;;  %v6183_v1 = vshll.u32 %v13671_v33, 16  ;;  %v6190_v32 = vrot.slane %v6188_v57, 4 }
 0x32c   : > { %10360 = vmatprep.mubr.msk.bf16.mxu0 %vm10734_vm0, %v14482_v44  ;;  %v5179_v0 = vadd.f32 %v5018_v2, %v13076_v9  ;;  %v10007_v26 = vpop.f32.mrb[19].mxu1  ;;  %v6167_v9 = vrot.slane %v6166_v51, 4  ;;  %v6197_v41 = vshll.u32 %v13677_v19, 16  ;;  %v6180_v36 = vor.u32 %v6179_v17, %v6176_v11  ;;  %v8955_v2 = vld [vmem:[%s10791_s25 + $0xb0] sm:$0xe] }
 0x32d   : > { %v6193_v27 = vrot.slane %v6191_v46, 5  ;;  %v8911_v28 = vcombine.low %v6130_v4, %v6144_v63  ;;  %v6158_v8 = vsel %vm10823_vm3, %v13679_v53, %v13668_v48  ;;  %v7238_v22 = vsel %vm11239_vm6, %v9003_v54, %v7237_v18  ;;  %v8956_v57 = vld [vmem:[%s10791_s25 + $0xb8] sm:$0xe] }
 0x32e   : > { %v5564_v56 = vpop.f32.mrb[20].mxu0  ;;  %10245 = vmatmul.mubr.bf16.gmra.mrb[124].mxu1 %v8910_v50  ;;  %v8834_v50 = vld [vmem:[%s10791_s25 + $0xd0] sm:$0xf]  ;;  %v8836_v11 = vld [vmem:[%s10791_s25 + $0xd8] sm:$0xf]  ;;  %v6172_v48 = vsel %vm10823_vm3, %v6167_v9, %v13674_v21  ;;  %v13711_v53 = vrot.slane %v6197_v41, 5 }
 0x32f   : > { %v13682_v55 = vadd.f32 %v5564_v56, %v5178_v37  ;;  %v10122_v43 = vpop.f32.mrb[21].mxu0  ;;  %10248 = vmatprep.mubr.msk.bf16.mxu1 %vm10734_vm0, %v14482_v44  ;;  %v6202_v17 = vshrl.u32 %v8834_v50, 16  ;;  %v6205_v4 = vshll.u32 %v8834_v50, 16  ;;  %v13709_v56 = vrot.slane %v6183_v1, 5  ;;  %v8838_v9 = vld [vmem:[%s10791_s25 + $0xe0] sm:$0xf] }
 0x330   : > { %v5567_v38 = vpop.f32.mrb[22].mxu0  ;;  %v13714_v18 = vrot.slane %v6180_v36, 4  ;;  %v7245_v43 = vrot.slane %v13632_v42, 5  ;;  %v9006_v50 = vrot.slane %v8956_v57, 9  ;;  %v6219_v21 = vshll.u32 %v8836_v11, 16 }
 0x331   : > { %v13690_v58 = vadd.f32 %v5567_v38, %v5179_v0  ;;  %v10123_v37 = vpop.f32.mrb[23].mxu0  ;;  %v5023_v51 = vpop.f32.mrb[20].mxu1  ;;  %v7242_v0 = vsel %vm11239_vm6, %v9004_v40, %v7241_v29  ;;  %v9005_v40 = vrot.slane %v8955_v2, 9  ;;  %v6207_v41 = vrot.slane %v6205_v4, 5 }
 0x332   : > { %v5180_v46 = vadd.f32 %v5023_v51, %v13086_v62  ;;  %v10010_v26 = vpop.f32.mrb[21].mxu1  ;;  %v6194_v62 = vor.u32 %v6193_v27, %v6190_v32  ;;  %v9060_v38 = vcombine.low %v7238_v22, %v7242_v0  ;;  %v6216_v37 = vshrl.u32 %v8836_v11, 16  ;;  %v13724_v51 = vld [vmem:[%s10791_s25 + $0xd4] sm:$0x1]  ;;  %v13727_v22 = vld [vmem:[%s10791_s25 + $0xdc] sm:$0x1] }
 0x333   : > { %10361 = vmatmul.mubr.bf16.gmra.mrb[128].mxu0 %v9059_v15  ;;  %v5026_v63 = vpop.f32.mrb[22].mxu1  ;;  %v6204_v27 = vrot.slane %v6202_v17, 4  ;;  %v8912_v57 = vcombine.low %v6158_v8, %v6172_v48  ;;  %v6230_v26 = vshrl.u32 %v8838_v9, 16  ;;  %v6186_v11 = vsel %vm10823_vm3, %v13714_v18, %v13709_v56 }
 0x334   : > { %10364 = vmatprep.mubr.msk.bf16.mxu0 %vm10734_vm0, %v14482_v44  ;;  %v5181_v15 = vadd.f32 %v5026_v63, %v13090_v61  ;;  %v10011_v54 = vpop.f32.mrb[23].mxu1  ;;  %v7249_v61 = vrot.slane %v13640_v39, 5  ;;  %v6195_v42 = vrot.slane %v6194_v62, 4  ;;  %v6233_v39 = vshll.u32 %v8838_v9, 16  ;;  %v8957_v62 = vld [vmem:[%s10791_s25 + $0xc0] sm:$0xe] }
 0x335   : > { %v7246_v17 = vsel %vm11239_vm6, %v9005_v40, %v7245_v43  ;;  %v6218_v4 = vrot.slane %v6216_v37, 4  ;;  %v6221_v63 = vrot.slane %v6219_v21, 5  ;;  %v6208_v54 = vor.u32 %v6207_v41, %v6204_v27  ;;  %v8958_v9 = vld [vmem:[%s10791_s25 + $0xc8] sm:$0xe]  ;;  %v13752_v37 = vld [vmem:[%s10791_s25 + $0xe4] sm:$0x1] }
 0x336   : > { %v5572_v29 = vpop.f32.mrb[24].mxu0  ;;  %10249 = vmatmul.mubr.bf16.gmra.mrb[128].mxu1 %v8911_v28  ;;  %v7250_v48 = vsel %vm11239_vm6, %v9006_v50, %v7249_v61  ;;  %v6200_v56 = vsel %vm10823_vm3, %v6195_v42, %v13711_v53  ;;  %v9007_v50 = vrot.slane %v8957_v62, 9  ;;  %v6232_v21 = vrot.slane %v6230_v26, 4  ;;  %v8842_v42 = vld [vmem:[%s10791_s25 + $0xf0] sm:$0xf] }
 0x337   : > { %v13718_v1 = vadd.f32 %v5572_v29, %v5180_v46  ;;  %v10126_v32 = vpop.f32.mrb[25].mxu0  ;;  %10252 = vmatprep.mubr.msk.bf16.mxu1 %vm10734_vm0, %v14482_v44  ;;  %v8840_v46 = vld [vmem:[%s10791_s25 + $0xe8] sm:$0xf]  ;;  %v6211_v29 = vshll.u32 %v13724_v51, 16  ;;  %v6235_v61 = vrot.slane %v6233_v39, 5  ;;  %v6222_v41 = vor.u32 %v6221_v63, %v6218_v4 }
 0x338   : > { %v5575_v36 = vpop.f32.mrb[26].mxu0  ;;  %v6244_v18 = vshrl.u32 %v8840_v46, 16  ;;  %v6247_v40 = vshll.u32 %v8840_v46, 16  ;;  %v7257_v53 = vrot.slane %v13677_v19, 5  ;;  %v13759_v62 = vrot.slane %v6208_v54, 4 }
 0x339   : > { %v13729_v2 = vadd.f32 %v5575_v36, %v5181_v15  ;;  %v10127_v28 = vpop.f32.mrb[27].mxu0  ;;  %v5031_v0 = vpop.f32.mrb[24].mxu1  ;;  %v7253_v36 = vrot.slane %v13671_v33, 5  ;;  %v13764_v26 = vld [vmem:[%s10791_s25 + $0xec] sm:$0x1]  ;;  %v8913_v33 = vcombine.low %v6186_v11, %v6200_v56  ;;  %v6239_v19 = vshll.u32 %v13752_v37, 16 }
 0x33a   : > { %v5182_v15 = vadd.f32 %v5031_v0, %v13100_v52  ;;  %v10014_v8 = vpop.f32.mrb[25].mxu1  ;;  %v6225_v52 = vshll.u32 %v13727_v22, 16  ;;  %v9008_v28 = vrot.slane %v8958_v9, 9  ;;  %v9061_v0 = vcombine.low %v7246_v17, %v7250_v48  ;;  %v8844_v63 = vld [vmem:[%s10791_s25 + $0xf8] sm:$0xf] }
 0x33b   : > { %10365 = vmatmul.mubr.bf16.gmra.mrb[132].mxu0 %v9060_v38  ;;  %v5034_v32 = vpop.f32.mrb[26].mxu1  ;;  %v13761_v8 = vrot.slane %v6211_v29, 5  ;;  %v6249_v4 = vrot.slane %v6247_v40, 5  ;;  %v6236_v54 = vor.u32 %v6235_v61, %v6232_v21  ;;  %v8959_v29 = vld [vmem:[%s10791_s25 + $0xd0] sm:$0xe]  ;;  %v6258_v9 = vshrl.u32 %v8842_v42, 16 }
 0x33c   : > { %10368 = vmatprep.mubr.msk.bf16.mxu0 %vm10734_vm0, %v14482_v44  ;;  %v5183_v43 = vadd.f32 %v5034_v32, %v13104_v12  ;;  %v10015_v38 = vpop.f32.mrb[27].mxu1  ;;  %v6227_v48 = vrot.slane %v6225_v52, 5  ;;  %v7258_v11 = vsel %vm11239_vm6, %v9008_v28, %v7257_v53  ;;  %v8960_v56 = vld [vmem:[%s10791_s25 + $0xd8] sm:$0xe]  ;;  %v6253_v52 = vshll.u32 %v13764_v26, 16 }
 0x33d   : > { %v6223_v38 = vrot.slane %v6222_v41, 4  ;;  %v6275_v21 = vshll.u32 %v8844_v63, 16  ;;  %v7261_v28 = vrot.slane %v13724_v51, 5  ;;  %v13798_v51 = vld [vmem:[%s10791_s25 + $0xfc] sm:$0x1] }
 0x33e   : > { %v5580_v27 = vpop.f32.mrb[28].mxu0  ;;  %10253 = vmatmul.mubr.bf16.gmra.mrb[132].mxu1 %v8912_v57  ;;  %v6246_v57 = vrot.slane %v6244_v18, 4 }
 0x33f   : > { %v13757_v46 = vadd.f32 %v5580_v27, %v5182_v15  ;;  %v10130_v12 = vpop.f32.mrb[29].mxu0  ;;  %10256 = vmatprep.mubr.msk.bf16.mxu1 %vm10734_vm0, %v14482_v44  ;;  %v7254_v27 = vsel %vm11239_vm6, %v9007_v50, %v7253_v36  ;;  %v13782_v50 = vrot.slane %v6239_v19, 5  ;;  %v9009_v36 = vrot.slane %v8959_v29, 9 }
 0x340   : > { %v5583_v39 = vpop.f32.mrb[30].mxu0  ;;  %v6261_v12 = vshll.u32 %v8842_v42, 16  ;;  %v6250_v41 = vor.u32 %v6249_v4, %v6246_v57  ;;  %v13786_v42 = vrot.slane %v6236_v54, 4  ;;  %v6214_v19 = vsel %vm10823_vm3, %v13759_v62, %v13761_v8  ;;  %v8846_v54 = vld [vmem:[%s10791_s25 + $0x100] sm:$0xf] }
 0x341   : > { %v13770_v15 = vadd.f32 %v5583_v39, %v5183_v43  ;;  %v10131_v17 = vpop.f32.mrb[31].mxu0  ;;  %v5039_v32 = vpop.f32.mrb[28].mxu1  ;;  %v6272_v43 = vshrl.u32 %v8844_v63, 16  ;;  %v13789_v39 = vld [vmem:[%s10791_s25 + $0xf4] sm:$0x1]  ;;  %v6260_v63 = vrot.slane %v6258_v9, 4  ;;  %v6228_v57 = vsel %vm10823_vm3, %v6223_v38, %v6227_v48 }
 0x342   : > { %v5184_v18 = vadd.f32 %v5039_v32, %v13114_v34  ;;  %v10018_v40 = vpop.f32.mrb[29].mxu1  ;;  %v9062_v4 = vcombine.low %v7254_v27, %v7258_v11  ;;  %v7265_v9 = vrot.slane %v13727_v22, 5  ;;  %v6251_v62 = vrot.slane %v6250_v41, 4  ;;  %v8848_v11 = vld [vmem:[%s10791_s25 + $0x108] sm:$0xf] }
 0x343   : > { %10369 = vmatmul.mubr.bf16.gmra.mrb[136].mxu0 %v9061_v0  ;;  %v5042_v61 = vpop.f32.mrb[30].mxu1  ;;  %v9010_v0 = vrot.slane %v8960_v56, 9  ;;  %v6274_v56 = vrot.slane %v6272_v43, 4  ;;  %v6277_v40 = vrot.slane %v6275_v21, 5  ;;  %v6255_v8 = vrot.slane %v6253_v52, 5 }
 0x344   : > { %10372 = vmatprep.mubr.msk.bf16.mxu0 %vm10734_vm0, %v14482_v44  ;;  %v5185_v34 = vadd.f32 %v5042_v61, %v13118_v60  ;;  %v10019_v53 = vpop.f32.mrb[31].mxu1  ;;  %v6263_v60 = vrot.slane %v6261_v12, 5  ;;  %v6267_v48 = vshll.u32 %v13789_v39, 16  ;;  %v6286_v12 = vshrl.u32 %v8846_v54, 16 }
 0x345   : > { %v8914_v43 = vcombine.low %v6214_v19, %v6228_v57  ;;  %v7262_v21 = vsel %vm11239_vm6, %v9009_v36, %v7261_v28  ;;  %v8962_v28 = vld [vmem:[%s10791_s25 + $0xe8] sm:$0xe]  ;;  %v6303_v57 = vshll.u32 %v8848_v11, 16 }
 0x346   : > { %v5588_v17 = vpop.f32.mrb[32].mxu0  ;;  %10257 = vmatmul.mubr.bf16.gmra.mrb[136].mxu1 %v8913_v33  ;;  %v6281_v33 = vshll.u32 %v13798_v51, 16  ;;  %v6264_v53 = vor.u32 %v6263_v60, %v6260_v63  ;;  %v13825_v36 = vrot.slane %v6267_v48, 5  ;;  %v6300_v63 = vshrl.u32 %v8848_v11, 16 }
 0x347   : > { %v13801_v29 = vadd.f32 %v5588_v17, %v5184_v18  ;;  %v10134_v32 = vpop.f32.mrb[33].mxu0  ;;  %10260 = vmatprep.mubr.msk.bf16.mxu1 %vm10734_vm0, %v14482_v44  ;;  %v6289_v18 = vshll.u32 %v8846_v54, 16  ;;  %v7266_v17 = vsel %vm11239_vm6, %v9010_v0, %v7265_v9  ;;  %v6278_v54 = vor.u32 %v6277_v40, %v6274_v56  ;;  %v8850_v56 = vld [vmem:[%s10791_s25 + $0x110] sm:$0xf] }
 0x348   : > { %v5591_v61 = vpop.f32.mrb[34].mxu0  ;;  %v8961_v32 = vld [vmem:[%s10791_s25 + $0xe0] sm:$0xe]  ;;  %v13829_v60 = vrot.slane %v6281_v33, 5  ;;  %v6288_v0 = vrot.slane %v6286_v12, 4  ;;  %v7273_v33 = vrot.slane %v13764_v26, 5 }
 0x349   : > { %v13807_v38 = vadd.f32 %v5591_v61, %v5185_v34  ;;  %v10135_v27 = vpop.f32.mrb[35].mxu0  ;;  %v5047_v22 = vpop.f32.mrb[32].mxu1  ;;  %v6242_v34 = vsel %vm10823_vm3, %v13786_v42, %v13782_v50  ;;  %v14658_v50 = vld [vmem:[#allocation20_spill] sm:$0xff]  ;;  %v6291_v9 = vrot.slane %v6289_v18, 5  ;;  %v9063_v61 = vcombine.low %v7262_v21, %v7266_v17  ;;  %v13840_v12 = vld [vmem:[%s10791_s25 + $0x10c] sm:$0x1] }
 0x34a   : > { %v5186_v52 = vadd.f32 %v5047_v22, %v13128_v25  ;;  %v10022_v41 = vpop.f32.mrb[33].mxu1  ;;  %v6256_v25 = vsel %vm10823_vm3, %v6251_v62, %v6255_v8  ;;  %v6265_v27 = vrot.slane %v6264_v53, 4  ;;  %v9011_v22 = vrot.slane %v8961_v32, 9  ;;  %v13834_v8 = vld [vmem:[%s10791_s25 + $0x104] sm:$0x1] }
 0x34b   : > { %14657 = vst [vmem:[#allocation21_spill] sm:$0xff] %v13807_v38  ;;  %10373 = vmatmul.mubr.bf16.gmra.mrb[140].mxu0 %v9062_v4  ;;  %v5050_v19 = vpop.f32.mrb[34].mxu1  ;;  %v7269_v62 = vrot.slane %v13752_v37, 5  ;;  %v6279_v41 = vrot.slane %v6278_v54, 4  ;;  %v6302_v21 = vrot.slane %v6300_v63, 4  ;;  %v6305_v53 = vrot.slane %v6303_v57, 5 }
 0x34c   : > { %10376 = vmatprep.mubr.msk.bf16.mxu0 %vm10734_vm0, %v14482_v44  ;;  %v5187_v42 = vadd.f32 %v5050_v19, %v14658_v50  ;;  %v10023_v4 = vpop.f32.mrb[35].mxu1  ;;  %v9012_v19 = vrot.slane %v8962_v28, 9  ;;  %v6314_v37 = vshrl.u32 %v8850_v56, 16  ;;  %v6317_v17 = vshll.u32 %v8850_v56, 16  ;;  %v8963_v56 = vld [vmem:[%s10791_s25 + $0xf0] sm:$0xe] }
 0x34d   : > { %v6292_v32 = vor.u32 %v6291_v9, %v6288_v0  ;;  %v6295_v54 = vshll.u32 %v13834_v8, 16  ;;  %v8915_v26 = vcombine.low %v6242_v34, %v6256_v25  ;;  %v6270_v50 = vsel %vm10823_vm3, %v6265_v27, %v13825_v36  ;;  %v8852_v4 = vld [vmem:[%s10791_s25 + $0x118] sm:$0xf] }
 0x34e   : > { %v5596_v40 = vpop.f32.mrb[36].mxu0  ;;  %10261 = vmatmul.mubr.bf16.gmra.mrb[140].mxu1 %v8914_v43  ;;  %v7274_v0 = vsel %vm11239_vm6, %v9012_v19, %v7273_v33  ;;  %v6309_v9 = vshll.u32 %v13840_v12, 16  ;;  %v6284_v34 = vsel %vm10823_vm3, %v6279_v41, %v13829_v60  ;;  %v6306_v25 = vor.u32 %v6305_v53, %v6302_v21  ;;  %v8964_v36 = vld [vmem:[%s10791_s25 + $0xf8] sm:$0xe]  ;;  %v13871_v60 = vld [vmem:[%s10791_s25 + $0x114] sm:$0x1] }
 0x34f   : > { %v13836_v48 = vadd.f32 %v5596_v40, %v5186_v52  ;;  %v10138_v11 = vpop.f32.mrb[37].mxu0  ;;  %10264 = vmatprep.mubr.msk.bf16.mxu1 %vm10734_vm0, %v14482_v44  ;;  %v14661_v40 = vld [vmem:[#allocation23_spill] sm:$0xff]  ;;  %v6319_v27 = vrot.slane %v6317_v17, 5  ;;  %v13865_v19 = vrot.slane %v6292_v32, 4  ;;  %v13867_v33 = vrot.slane %v6295_v54, 5 }
 0x350   : > { %v5599_v18 = vpop.f32.mrb[38].mxu0  ;;  %v6331_v41 = vshll.u32 %v8852_v4, 16  ;;  %v9014_v17 = vrot.slane %v8964_v36, 9  ;;  %v7281_v32 = vrot.slane %v13798_v51, 5  ;;  %v8854_v54 = vld [vmem:[%s10791_s25 + $0x120] sm:$0xf] }
 0x351   : > { %14659 = vst [vmem:[#allocation22_spill] sm:$0xff] %v13836_v48  ;;  %v13844_v43 = vadd.f32 %v5599_v18, %v5187_v42  ;;  %v10139_v52 = vpop.f32.mrb[39].mxu0  ;;  %v5055_v28 = vpop.f32.mrb[36].mxu1  ;;  %v7270_v42 = vsel %vm11239_vm6, %v9011_v22, %v7269_v62  ;;  %v14662_v22 = vld [vmem:[#allocation26_spill] sm:$0xff]  ;;  %v6298_v51 = vsel %vm10823_vm3, %v13865_v19, %v13867_v33 }
 0x352   : > { %v5188_v63 = vadd.f32 %v5055_v28, %v14661_v40  ;;  %v10026_v57 = vpop.f32.mrb[37].mxu1  ;;  %v6328_v52 = vshrl.u32 %v8852_v4, 16  ;;  %v9064_v40 = vcombine.low %v7270_v42, %v7274_v0  ;;  %v6307_v42 = vrot.slane %v6306_v25, 4  ;;  %v13880_v0 = vld [vmem:[%s10791_s25 + $0x11c] sm:$0x1] }
 0x353   : > { %14660 = vst [vmem:[#allocation24_spill] sm:$0xff] %v13844_v43  ;;  %10377 = vmatmul.mubr.bf16.gmra.mrb[144].mxu0 %v9063_v61  ;;  %v5058_v11 = vpop.f32.mrb[38].mxu1  ;;  %v6316_v61 = vrot.slane %v6314_v37, 4  ;;  %v9013_v57 = vrot.slane %v8963_v56, 9  ;;  %v7277_v43 = vrot.slane %v13789_v39, 5  ;;  %v6311_v37 = vrot.slane %v6309_v9, 5 }
 0x354   : > { %10380 = vmatprep.mubr.msk.bf16.mxu0 %vm10734_vm0, %v14482_v44  ;;  %v5189_v62 = vadd.f32 %v5058_v11, %v14662_v22  ;;  %v10027_v18 = vpop.f32.mrb[39].mxu1  ;;  %v8916_v39 = vcombine.low %v6270_v50, %v6284_v34  ;;  %v6323_v9 = vshll.u32 %v13871_v60, 16  ;;  %v6330_v36 = vrot.slane %v6328_v52, 4  ;;  %v8965_v22 = vld [vmem:[%s10791_s25 + $0x100] sm:$0xe] }
 0x355   : > { %v6320_v4 = vor.u32 %v6319_v27, %v6316_v61  ;;  %v7278_v50 = vsel %vm11239_vm6, %v9013_v57, %v7277_v43  ;;  %v6333_v34 = vrot.slane %v6331_v41, 5  ;;  %v8966_v25 = vld [vmem:[%s10791_s25 + $0x108] sm:$0xe]  ;;  %v6342_v61 = vshrl.u32 %v8854_v54, 16 }
 0x356   : > { %v5604_v28 = vpop.f32.mrb[40].mxu0  ;;  %10265 = vmatmul.mubr.bf16.gmra.mrb[144].mxu1 %v8915_v26  ;;  %v8856_v26 = vld [vmem:[%s10791_s25 + $0x128] sm:$0xf]  ;;  %v6345_v27 = vshll.u32 %v8854_v54, 16  ;;  %v7282_v19 = vsel %vm11239_vm6, %v9014_v17, %v7281_v32  ;;  %v6312_v43 = vsel %vm10823_vm3, %v6307_v42, %v6311_v37  ;;  %v6337_v41 = vshll.u32 %v13880_v0, 16 }
 0x357   : > { %v13873_v21 = vadd.f32 %v5604_v28, %v5188_v63  ;;  %v10142_v53 = vpop.f32.mrb[41].mxu0  ;;  %10268 = vmatprep.mubr.msk.bf16.mxu1 %vm10734_vm0, %v14482_v44  ;;  %v6356_v33 = vshrl.u32 %v8856_v26, 16  ;;  %v13901_v57 = vrot.slane %v6320_v4, 4  ;;  %v9015_v54 = vrot.slane %v8965_v22, 9 }
 0x358   : > { %v5607_v11 = vpop.f32.mrb[42].mxu0  ;;  %v9016_v17 = vrot.slane %v8966_v25, 9  ;;  %v7289_v32 = vrot.slane %v13840_v12, 5  ;;  %v6334_v37 = vor.u32 %v6333_v34, %v6330_v36  ;;  %v6344_v42 = vrot.slane %v6342_v61, 4  ;;  %v13917_v12 = vld [vmem:[%s10791_s25 + $0x12c] sm:$0x1] }
 0x359   : > { %14663 = vst [vmem:[#allocation25_spill] sm:$0xff] %v13873_v21  ;;  %v13883_v63 = vadd.f32 %v5607_v11, %v5189_v62  ;;  %v10143_v56 = vpop.f32.mrb[43].mxu0  ;;  %v5063_v18 = vpop.f32.mrb[40].mxu1  ;;  %v14665_v62 = vld [vmem:[#allocation27_spill] sm:$0xff]  ;;  %v6359_v11 = vshll.u32 %v8856_v26, 16  ;;  %v6347_v4 = vrot.slane %v6345_v27, 5  ;;  %v8917_v61 = vcombine.low %v6298_v51, %v6312_v43 }
 0x35a   : > { %v5190_v28 = vadd.f32 %v5063_v18, %v14665_v62  ;;  %v10030_v53 = vpop.f32.mrb[41].mxu1  ;;  %v14666_v56 = vld [vmem:[#allocation30_spill] sm:$0xff]  ;;  %v7285_v62 = vrot.slane %v13834_v8, 5  ;;  %v6358_v8 = vrot.slane %v6356_v33, 4  ;;  %v8858_v36 = vld [vmem:[%s10791_s25 + $0x130] sm:$0xf]  ;;  %v7290_v27 = vsel %vm11239_vm6, %v9016_v17, %v7289_v32 }
 0x35b   : > { %14664 = vst [vmem:[#allocation28_spill] sm:$0xff] %v13883_v63  ;;  %10381 = vmatmul.mubr.bf16.gmra.mrb[148].mxu0 %v9064_v40  ;;  %v5066_v52 = vpop.f32.mrb[42].mxu1  ;;  %v13908_v26 = vld [vmem:[%s10791_s25 + $0x124] sm:$0x1]  ;;  %v13910_v63 = vrot.slane %v6323_v9, 5  ;;  %v6361_v25 = vrot.slane %v6359_v11, 5 }
 0x35c   : > { %10384 = vmatprep.mubr.msk.bf16.mxu0 %vm10734_vm0, %v14482_v44  ;;  %v5191_v18 = vadd.f32 %v5066_v52, %v14666_v56  ;;  %v10031_v40 = vpop.f32.mrb[43].mxu1  ;;  %v9065_v56 = vcombine.low %v7278_v50, %v7282_v19  ;;  %v6351_v9 = vshll.u32 %v13908_v26, 16  ;;  %v7286_v50 = vsel %vm11239_vm6, %v9015_v54, %v7285_v62  ;;  %v8968_v62 = vld [vmem:[%s10791_s25 + $0x118] sm:$0xe] }
 0x35d   : > { %v6326_v33 = vsel %vm10823_vm3, %v13901_v57, %v13910_v63  ;;  %v6335_v11 = vrot.slane %v6334_v37, 4  ;;  %v6362_v43 = vor.u32 %v6361_v25, %v6358_v8  ;;  %v6365_v54 = vshll.u32 %v13917_v12, 16  ;;  %v14670_v37 = vld [vmem:[#allocation34_spill] sm:$0xff] }
 0x35e   : > { %v5612_v53 = vpop.f32.mrb[44].mxu0  ;;  %10269 = vmatmul.mubr.bf16.gmra.mrb[148].mxu1 %v8916_v39  ;;  %v6370_v17 = vshrl.u32 %v8858_v36, 16  ;;  %v13938_v63 = vrot.slane %v6351_v9, 5  ;;  %v7297_v9 = vrot.slane %v13880_v0, 5  ;;  %v7301_v48 = vrot.slane %v13908_v26, 5 }
 0x35f   : > { %v13912_v22 = vadd.f32 %v5612_v53, %v5190_v28  ;;  %v10146_v52 = vpop.f32.mrb[45].mxu0  ;;  %10272 = vmatprep.mubr.msk.bf16.mxu1 %vm10734_vm0, %v14482_v44  ;;  %v8967_v28 = vld [vmem:[%s10791_s25 + $0x110] sm:$0xe]  ;;  %v6339_v53 = vrot.slane %v6337_v41, 5  ;;  %v6373_v41 = vshll.u32 %v8858_v36, 16 }
 0x360   : > { %v5615_v40 = vpop.f32.mrb[46].mxu0  ;;  %v8860_v52 = vld [vmem:[%s10791_s25 + $0x138] sm:$0xf]  ;;  %v9017_v57 = vrot.slane %v8967_v28, 9  ;;  %v6367_v28 = vrot.slane %v6365_v54, 5 }
 0x361   : > { %14667 = vst [vmem:[#allocation29_spill] sm:$0xff] %v13912_v22  ;;  %v13921_v34 = vadd.f32 %v5615_v40, %v5191_v18  ;;  %v10147_v39 = vpop.f32.mrb[47].mxu0  ;;  %v5071_v19 = vpop.f32.mrb[44].mxu1  ;;  %v6348_v18 = vor.u32 %v6347_v4, %v6344_v42  ;;  %v14669_v40 = vld [vmem:[#allocation33_spill] sm:$0xff]  ;;  %v6384_v8 = vshrl.u32 %v8860_v52, 16  ;;  %v6387_v25 = vshll.u32 %v8860_v52, 16 }
 0x362   : > { %v5192_v39 = vadd.f32 %v5071_v19, %v14669_v40  ;;  %v10034_v51 = vpop.f32.mrb[45].mxu1  ;;  %v6340_v40 = vsel %vm10823_vm3, %v6335_v11, %v6339_v53  ;;  %v9018_v22 = vrot.slane %v8968_v62, 9  ;;  %v6372_v52 = vrot.slane %v6370_v17, 4  ;;  %v8862_v53 = vld [vmem:[%s10791_s25 + $0x140] sm:$0xf] }
 0x363   : > { %14668 = vst [vmem:[#allocation31_spill] sm:$0xff] %v13921_v34  ;;  %10385 = vmatmul.mubr.bf16.gmra.mrb[152].mxu0 %v9065_v56  ;;  %v5074_v32 = vpop.f32.mrb[46].mxu1  ;;  %v9066_v34 = vcombine.low %v7286_v50, %v7290_v27  ;;  %v7293_v56 = vrot.slane %v13871_v60, 5  ;;  %v6349_v51 = vrot.slane %v6348_v18, 4  ;;  %v13946_v50 = vld [vmem:[%s10791_s25 + $0x134] sm:$0x1]  ;;  %v8918_v17 = vcombine.low %v6326_v33, %v6340_v40 }
 0x364   : > { %10388 = vmatprep.mubr.msk.bf16.mxu0 %vm10734_vm0, %v14482_v44  ;;  %v5193_v42 = vadd.f32 %v5074_v32, %v14670_v37  ;;  %v10035_v4 = vpop.f32.mrb[47].mxu1  ;;  %v6363_v60 = vrot.slane %v6362_v43, 4  ;;  %v6375_v11 = vrot.slane %v6373_v41, 5  ;;  %v8864_v18 = vld [vmem:[%s10791_s25 + $0x148] sm:$0xf]  ;;  %v6389_v43 = vrot.slane %v6387_v25, 5 }
 0x365   : > { %v13957_v37 = vld [vmem:[%s10791_s25 + $0x13c] sm:$0x1]  ;;  %v6354_v4 = vsel %vm10823_vm3, %v6349_v51, %v13938_v63  ;;  %v7294_v41 = vsel %vm11239_vm6, %v9017_v57, %v7293_v56  ;;  %v6398_v25 = vshrl.u32 %v8862_v53, 16  ;;  %v6412_v33 = vshrl.u32 %v8864_v18, 16  ;;  %v14674_v51 = vld [vmem:[#allocation38_spill] sm:$0xff] }
 0x366   : > { %v5620_v19 = vpop.f32.mrb[48].mxu0  ;;  %10273 = vmatmul.mubr.bf16.gmra.mrb[152].mxu1 %v8917_v61  ;;  %v6379_v61 = vshll.u32 %v13946_v50, 16  ;;  %v6368_v63 = vsel %vm10823_vm3, %v6363_v60, %v6367_v28  ;;  %v6376_v57 = vor.u32 %v6375_v11, %v6372_v52  ;;  %v6415_v56 = vshll.u32 %v8864_v18, 16  ;;  %v13982_v28 = vld [vmem:[%s10791_s25 + $0x144] sm:$0x1] }
 0x367   : > { %v13948_v36 = vadd.f32 %v5620_v19, %v5192_v39  ;;  %v10150_v27 = vpop.f32.mrb[49].mxu0  ;;  %10276 = vmatprep.mubr.msk.bf16.mxu1 %vm10734_vm0, %v14482_v44  ;;  %v6386_v39 = vrot.slane %v6384_v8, 4  ;;  %v8969_v19 = vld [vmem:[%s10791_s25 + $0x120] sm:$0xe]  ;;  %v8970_v8 = vld [vmem:[%s10791_s25 + $0x128] sm:$0xe]  ;;  %v8919_v26 = vcombine.low %v6354_v4, %v6368_v63 }
 0x368   : > { %v5623_v32 = vpop.f32.mrb[50].mxu0  ;;  %v14673_v27 = vld [vmem:[#allocation37_spill] sm:$0xff]  ;;  %v9020_v38 = vrot.slane %v8970_v8, 9  ;;  %v7305_v60 = vrot.slane %v13917_v12, 5  ;;  %v13987_v18 = vld [vmem:[%s10791_s25 + $0x14c] sm:$0x1] }
 0x369   : > { %14671 = vst [vmem:[#allocation32_spill] sm:$0xff] %v13948_v36  ;;  %v13954_v62 = vadd.f32 %v5623_v32, %v5193_v42  ;;  %v10151_v0 = vpop.f32.mrb[51].mxu0  ;;  %v5079_v54 = vpop.f32.mrb[48].mxu1  ;;  %v7298_v42 = vsel %vm11239_vm6, %v9018_v22, %v7297_v9  ;;  %v6393_v22 = vshll.u32 %v13957_v37, 16  ;;  %v8868_v12 = vld [vmem:[%s10791_s25 + $0x158] sm:$0xf] }
 0x36a   : > { %v5194_v32 = vadd.f32 %v5079_v54, %v14673_v27  ;;  %v10038_v0 = vpop.f32.mrb[49].mxu1  ;;  %v13976_v54 = vrot.slane %v6379_v61, 5  ;;  %v9019_v27 = vrot.slane %v8969_v19, 9  ;;  %v9067_v21 = vcombine.low %v7294_v41, %v7298_v42 }
 0x36b   : > { %14672 = vst [vmem:[#allocation35_spill] sm:$0xff] %v13954_v62  ;;  %10389 = vmatmul.mubr.bf16.gmra.mrb[156].mxu0 %v9066_v34  ;;  %v6401_v62 = vshll.u32 %v8862_v53, 16  ;;  %v5082_v40 = vpop.f32.mrb[50].mxu1  ;;  %v6390_v53 = vor.u32 %v6389_v43, %v6386_v39  ;;  %v8866_v0 = vld [vmem:[%s10791_s25 + $0x150] sm:$0xf]  ;;  %v6400_v61 = vrot.slane %v6398_v25, 4 }
 0x36c   : > { %10392 = vmatprep.mubr.msk.bf16.mxu0 %vm10734_vm0, %v14482_v44  ;;  %v5195_v34 = vadd.f32 %v5082_v40, %v14674_v51  ;;  %v10039_v9 = vpop.f32.mrb[51].mxu1  ;;  %v6414_v43 = vrot.slane %v6412_v33, 4  ;;  %v6417_v41 = vrot.slane %v6415_v56, 5  ;;  %v6426_v42 = vshrl.u32 %v8866_v0, 16  ;;  %v8972_v56 = vld [vmem:[%s10791_s25 + $0x138] sm:$0xe] }
 0x36d   : > { %v6403_v39 = vrot.slane %v6401_v62, 5  ;;  %v6429_v8 = vshll.u32 %v8866_v0, 16  ;;  %v6391_v40 = vrot.slane %v6390_v53, 4  ;;  %v6395_v51 = vrot.slane %v6393_v22, 5  ;;  %v8971_v9 = vld [vmem:[%s10791_s25 + $0x130] sm:$0xe] }
 0x36e   : > { %v5628_v36 = vpop.f32.mrb[52].mxu0  ;;  %10277 = vmatmul.mubr.bf16.gmra.mrb[156].mxu1 %v8918_v17  ;;  %v7302_v62 = vsel %vm11239_vm6, %v9019_v27, %v7301_v48  ;;  %v7306_v33 = vsel %vm11239_vm6, %v9020_v38, %v7305_v60  ;;  %v6407_v4 = vshll.u32 %v13982_v28, 16  ;;  %v6421_v63 = vshll.u32 %v13987_v18, 16  ;;  %v14677_v0 = vld [vmem:[#allocation41_spill] sm:$0xff] }
 0x36f   : > { %v13984_v52 = vadd.f32 %v5628_v36, %v5194_v32  ;;  %v10154_v11 = vpop.f32.mrb[53].mxu0  ;;  %10280 = vmatprep.mubr.msk.bf16.mxu1 %vm10734_vm0, %v14482_v44  ;;  %v6377_v32 = vrot.slane %v6376_v57, 4  ;;  %v6404_v57 = vor.u32 %v6403_v39, %v6400_v61  ;;  %v6440_v53 = vshrl.u32 %v8868_v12, 16 }
 0x370   : > { %v5631_v19 = vpop.f32.mrb[54].mxu0  ;;  %v6443_v22 = vshll.u32 %v8868_v12, 16  ;;  %v6418_v48 = vor.u32 %v6417_v41, %v6414_v43  ;;  %v9021_v27 = vrot.slane %v8971_v9, 9  ;;  %v6428_v38 = vrot.slane %v6426_v42, 4  ;;  %v14014_v43 = vld [vmem:[%s10791_s25 + $0x154] sm:$0x1] }
 0x371   : > { %14675 = vst [vmem:[#allocation36_spill] sm:$0xff] %v13984_v52  ;;  %v13992_v17 = vadd.f32 %v5631_v19, %v5195_v34  ;;  %v10155_v36 = vpop.f32.mrb[55].mxu0  ;;  %v5087_v25 = vpop.f32.mrb[52].mxu1  ;;  %v6431_v60 = vrot.slane %v6429_v8, 5  ;;  %v6382_v39 = vsel %vm10823_vm3, %v6377_v32, %v13976_v54  ;;  %v9068_v12 = vcombine.low %v7302_v62, %v7306_v33 }
 0x372   : > { %v5196_v34 = vadd.f32 %v5087_v25, %v14677_v0  ;;  %v10042_v11 = vpop.f32.mrb[53].mxu1  ;;  %v14678_v36 = vld [vmem:[#allocation44_spill] sm:$0xff]  ;;  %v7309_v25 = vrot.slane %v13946_v50, 5  ;;  %v9022_v0 = vrot.slane %v8972_v56, 9  ;;  %v6405_v42 = vrot.slane %v6404_v57, 4 }
 0x373   : > { %14676 = vst [vmem:[#allocation39_spill] sm:$0xff] %v13992_v17  ;;  %10393 = vmatmul.mubr.bf16.gmra.mrb[160].mxu0 %v9067_v21  ;;  %v5090_v19 = vpop.f32.mrb[54].mxu1  ;;  %v7313_v21 = vrot.slane %v13957_v37, 5  ;;  %v14011_v11 = vrot.slane %v6407_v4, 5  ;;  %v14019_v50 = vld [vmem:[%s10791_s25 + $0x15c] sm:$0x1]  ;;  %v6396_v54 = vsel %vm10823_vm3, %v6391_v40, %v6395_v51 }
 0x374   : > { %10396 = vmatprep.mubr.msk.bf16.mxu0 %vm10734_vm0, %v14482_v44  ;;  %v5197_v17 = vadd.f32 %v5090_v19, %v14678_v36  ;;  %v10043_v52 = vpop.f32.mrb[55].mxu1  ;;  %v6442_v8 = vrot.slane %v6440_v53, 4  ;;  %v6445_v37 = vrot.slane %v6443_v22, 5  ;;  %v6419_v32 = vrot.slane %v6418_v48, 4  ;;  %v8870_v57 = vld [vmem:[%s10791_s25 + $0x160] sm:$0xf] }
 0x375   : > { %v6423_v62 = vrot.slane %v6421_v63, 5  ;;  %v7310_v56 = vsel %vm11239_vm6, %v9021_v27, %v7309_v25  ;;  %v6435_v22 = vshll.u32 %v14014_v43, 16  ;;  %v6449_v40 = vshll.u32 %v14019_v50, 16  ;;  %v8872_v51 = vld [vmem:[%s10791_s25 + $0x168] sm:$0xf]  ;;  %v14680_v63 = vld [vmem:[#allocation45_spill] sm:$0xff] }
 0x376   : > { %v5636_v61 = vpop.f32.mrb[56].mxu0  ;;  %10281 = vmatmul.mubr.bf16.gmra.mrb[160].mxu1 %v8919_v26  ;;  %v6432_v26 = vor.u32 %v6431_v60, %v6428_v38  ;;  %v6410_v27 = vsel %vm10823_vm3, %v6405_v42, %v14011_v11  ;;  %v6446_v38 = vor.u32 %v6445_v37, %v6442_v8  ;;  %v8973_v60 = vld [vmem:[%s10791_s25 + $0x140] sm:$0xe]  ;;  %v6468_v11 = vshrl.u32 %v8872_v51, 16 }
 0x377   : > { %v14016_v41 = vadd.f32 %v5636_v61, %v5196_v34  ;;  %v10158_v52 = vpop.f32.mrb[57].mxu0  ;;  %10284 = vmatprep.mubr.msk.bf16.mxu1 %vm10734_vm0, %v14482_v44  ;;  %v7314_v34 = vsel %vm11239_vm6, %v9022_v0, %v7313_v21  ;;  %v6424_v25 = vsel %vm10823_vm3, %v6419_v32, %v6423_v62  ;;  %v8974_v61 = vld [vmem:[%s10791_s25 + $0x148] sm:$0xe]  ;;  %v6471_v42 = vshll.u32 %v8872_v51, 16 }
 0x378   : > { %v5639_v9 = vpop.f32.mrb[58].mxu0  ;;  %v9069_v0 = vcombine.low %v7310_v56, %v7314_v34  ;;  %v14044_v21 = vrot.slane %v6432_v26, 4  ;;  %v6454_v52 = vshrl.u32 %v8870_v57, 16  ;;  %v14048_v37 = vrot.slane %v6435_v22, 5  ;;  %v14059_v22 = vld [vmem:[%s10791_s25 + $0x164] sm:$0x1] }
 0x379   : > { %v14025_v33 = vadd.f32 %v5639_v9, %v5197_v17  ;;  %v10159_v4 = vpop.f32.mrb[59].mxu0  ;;  %v5095_v53 = vpop.f32.mrb[56].mxu1  ;;  %v8920_v17 = vcombine.low %v6382_v39, %v6396_v54  ;;  %v14681_v39 = vld [vmem:[#allocation52_spill] sm:$0xff]  ;;  %v6457_v54 = vshll.u32 %v8870_v57, 16  ;;  %v7317_v32 = vrot.slane %v13982_v28, 5 }
 0x37a   : > { %v5198_v19 = vadd.f32 %v5095_v53, %v14680_v63  ;;  %v10046_v48 = vpop.f32.mrb[57].mxu1  ;;  %v14050_v4 = vrot.slane %v6449_v40, 5  ;;  %v9023_v53 = vrot.slane %v8973_v60, 9  ;;  %v6447_v56 = vrot.slane %v6446_v38, 4  ;;  %v8874_v63 = vld [vmem:[%s10791_s25 + $0x170] sm:$0xf] }
 0x37b   : > { %14679 = vst [vmem:[#allocation40_spill] sm:$0xff] %v14025_v33  ;;  %10397 = vmatmul.mubr.bf16.gmra.mrb[164].mxu0 %v9068_v12  ;;  %v5098_v36 = vpop.f32.mrb[58].mxu1  ;;  %v9024_v34 = vrot.slane %v8974_v61, 9  ;;  %v7321_v57 = vrot.slane %v13987_v18, 5  ;;  %v6456_v40 = vrot.slane %v6454_v52, 4  ;;  %v6459_v48 = vrot.slane %v6457_v54, 5 }
 0x37c   : > { %10400 = vmatprep.mubr.msk.bf16.mxu0 %vm10734_vm0, %v14482_v44  ;;  %v5199_v12 = vadd.f32 %v5098_v36, %v14681_v39  ;;  %v10047_v9 = vpop.f32.mrb[59].mxu1  ;;  %v6473_v38 = vrot.slane %v6471_v42, 5  ;;  %v8876_v60 = vld [vmem:[%s10791_s25 + $0x178] sm:$0xf]  ;;  %v8921_v18 = vcombine.low %v6410_v27, %v6424_v25  ;;  %v6438_v61 = vsel %vm10823_vm3, %v14044_v21, %v14048_v37  ;;  %v14072_v52 = vld [vmem:[%s10791_s25 + $0x16c] sm:$0x1] }
 0x37d   : > { %v7318_v39 = vsel %vm11239_vm6, %v9023_v53, %v7317_v32  ;;  %v14684_v9 = vld [vmem:[#allocation3_spill] sm:$0xff]  ;;  %v7322_v54 = vsel %vm11239_vm6, %v9024_v34, %v7321_v57  ;;  %v6482_v27 = vshrl.u32 %v8874_v63, 16  ;;  %v6485_v25 = vshll.u32 %v8874_v63, 16 }
 0x37e   : > { %v5644_v8 = vpop.f32.mrb[60].mxu0  ;;  %10285 = vmatmul.mubr.bf16.gmra.mrb[164].mxu1 %v8920_v17  ;;  %v6470_v17 = vrot.slane %v6468_v11, 4  ;;  %v8976_v11 = vld [vmem:[%s10791_s25 + $0x158] sm:$0xe]  ;;  %v6452_v21 = vsel %vm10823_vm3, %v6447_v56, %v14050_v4  ;;  %v6463_v37 = vshll.u32 %v14059_v22, 16  ;;  %v6496_v53 = vshrl.u32 %v8876_v60, 16 }
 0x37f   : > { %v14053_v62 = vadd.f32 %v5644_v8, %v5198_v19  ;;  %v10162_v26 = vpop.f32.mrb[61].mxu0  ;;  %10288 = vmatprep.mubr.msk.bf16.mxu1 %vm10734_vm0, %v14482_v44  ;;  %v6499_v32 = vshll.u32 %v8876_v60, 16  ;;  %v6460_v34 = vor.u32 %v6459_v48, %v6456_v40  ;;  %v6477_v63 = vshll.u32 %v14072_v52, 16 }
 0x380   : > { %v5647_v51 = vpop.f32.mrb[62].mxu0  ;;  %v6474_v57 = vor.u32 %v6473_v38, %v6470_v17  ;;  %v7329_v4 = vrot.slane %v14019_v50, 5  ;;  %v6484_v40 = vrot.slane %v6482_v27, 4  ;;  %v6487_v48 = vrot.slane %v6485_v25, 5  ;;  %v14099_v38 = vld [vmem:[%s10791_s25 + $0x17c] sm:$0x1] }
 0x381   : > { %14682 = vst [vmem:[#allocation42_spill] sm:$0xff] %v14053_v62  ;;  %v14062_v28 = vadd.f32 %v5647_v51, %v5199_v12  ;;  %v10163_v19 = vpop.f32.mrb[63].mxu0  ;;  %v5103_v36 = vpop.f32.mrb[60].mxu1  ;;  %v8975_v12 = vld [vmem:[%s10791_s25 + $0x150] sm:$0xe]  ;;  %v6498_v50 = vrot.slane %v6496_v53, 4 }
 0x382   : > { %v5200_v8 = vadd.f32 %v5103_v36, %v14684_v9  ;;  %v10050_v26 = vpop.f32.mrb[61].mxu1  ;;  %v9025_v9 = vrot.slane %v8975_v12, 9  ;;  %v8878_v27 = vld [vmem:[%s10791_s25 + $0x180] sm:$0xf]  ;;  %v14688_v53 = vld [vmem:[#allocation5_spill] sm:$0xff] }
 0x383   : > { %14683 = vst [vmem:[#allocation43_spill] sm:$0xff] %v14062_v28  ;;  %10401 = vmatmul.mubr.bf16.gmra.mrb[168].mxu0 %v9069_v0  ;;  %v5106_v42 = vpop.f32.mrb[62].mxu1  ;;  %v14685_v0 = vld [vmem:[#allocation4_spill] sm:$0xff]  ;;  %v7325_v26 = vrot.slane %v14014_v43, 5  ;;  %v9026_v28 = vrot.slane %v8976_v11, 9  ;;  %v14096_v43 = vrot.slane %v6463_v37, 5  ;;  %v8922_v11 = vcombine.low %v6438_v61, %v6452_v21 }
 0x384   : > { %10404 = vmatprep.mubr.msk.bf16.mxu0 %vm10734_vm0, %v14482_v44  ;;  %v5201_v51 = vadd.f32 %v5106_v42, %v14685_v0  ;;  %v10051_v19 = vpop.f32.mrb[63].mxu1  ;;  %v9070_v42 = vcombine.low %v7318_v39, %v7322_v54  ;;  %v14092_v0 = vld [vmem:[%s10791_s25 + $0x174] sm:$0x1]  ;;  %v6461_v39 = vrot.slane %v6460_v34, 4  ;;  %v8977_v54 = vld [vmem:[%s10791_s25 + $0x160] sm:$0xe] }
 0x385   : > { %v6475_v19 = vrot.slane %v6474_v57, 4  ;;  %v7330_v37 = vsel %vm11239_vm6, %v9026_v28, %v7329_v4  ;;  %v6491_v61 = vshll.u32 %v14092_v0, 16  ;;  %v6505_v21 = vshll.u32 %v14099_v38, 16  ;;  %v8880_v34 = vld [vmem:[%s10791_s25 + $0x188] sm:$0xf] }
 0x386   : > { %v5652_v36 = vpop.f32.mrb[64].mxu0  ;;  %10289 = vmatmul.mubr.bf16.gmra.mrb[168].mxu1 %v8921_v18  ;;  %v6501_v18 = vrot.slane %v6499_v32, 5  ;;  %v6510_v28 = vshrl.u32 %v8878_v27, 16  ;;  %v6527_v62 = vshll.u32 %v8880_v34, 16 }
 0x387   : > { %v14089_v56 = vadd.f32 %v5652_v36, %v5200_v8  ;;  %v10166_v60 = vpop.f32.mrb[65].mxu0  ;;  %10292 = vmatprep.mubr.msk.bf16.mxu1 %vm10734_vm0, %v14482_v44  ;;  %v6479_v36 = vrot.slane %v6477_v63, 5  ;;  %v9027_v63 = vrot.slane %v8977_v54, 9 }
 0x388   : > { %v5655_v17 = vpop.f32.mrb[66].mxu0  ;;  %v7326_v60 = vsel %vm11239_vm6, %v9025_v9, %v7325_v26  ;;  %v6502_v57 = vor.u32 %v6501_v18, %v6498_v50  ;;  %v7333_v9 = vrot.slane %v14059_v22, 5  ;;  %v14689_v26 = vld [vmem:[#allocation6_spill] sm:$0xff] }
 0x389   : > { %14686 = vst [vmem:[#allocation46_spill] sm:$0xff] %v14089_v56  ;;  %v14101_v12 = vadd.f32 %v5655_v17, %v5201_v51  ;;  %v10167_v8 = vpop.f32.mrb[67].mxu0  ;;  %v5111_v25 = vpop.f32.mrb[64].mxu1  ;;  %v8978_v56 = vld [vmem:[%s10791_s25 + $0x168] sm:$0xe]  ;;  %v6488_v17 = vor.u32 %v6487_v48, %v6484_v40  ;;  %v6513_v40 = vshll.u32 %v8878_v27, 16  ;;  %v9071_v18 = vcombine.low %v7326_v60, %v7330_v37 }
 0x38a   : > { %v5202_v32 = vadd.f32 %v5111_v25, %v14688_v53  ;;  %v10054_v51 = vpop.f32.mrb[65].mxu1  ;;  %v9028_v53 = vrot.slane %v8978_v56, 9  ;;  %v6512_v27 = vrot.slane %v6510_v28, 4  ;;  %v7334_v60 = vsel %vm11239_vm6, %v9027_v63, %v7333_v9  ;;  %v14692_v28 = vld [vmem:[#allocation57_spill] sm:$0xff] }
 0x38b   : > { %14687 = vst [vmem:[#allocation47_spill] sm:$0xff] %v14101_v12  ;;  %10405 = vmatmul.mubr.bf16.gmra.mrb[172].mxu0 %v9070_v42  ;;  %v5114_v8 = vpop.f32.mrb[66].mxu1  ;;  %v7337_v42 = vrot.slane %v14072_v52, 5  ;;  %v6466_v51 = vsel %vm10823_vm3, %v6461_v39, %v14096_v43  ;;  %v6524_v12 = vshrl.u32 %v8880_v34, 16  ;;  %v6489_v54 = vrot.slane %v6488_v17, 4 }
 0x38c   : > { %10408 = vmatprep.mubr.msk.bf16.mxu0 %vm10734_vm0, %v14482_v44  ;;  %v5203_v4 = vadd.f32 %v5114_v8, %v14689_v26  ;;  %v10055_v25 = vpop.f32.mrb[67].mxu1  ;;  %v6493_v8 = vrot.slane %v6491_v61, 5  ;;  %v6480_v52 = vsel %vm10823_vm3, %v6475_v19, %v6479_v36  ;;  %v6503_v43 = vrot.slane %v6502_v57, 4  ;;  %v14135_v17 = vld [vmem:[%s10791_s25 + $0x184] sm:$0x1] }
 0x38d   : > { %v6507_v39 = vrot.slane %v6505_v21, 5  ;;  %v7338_v37 = vsel %vm11239_vm6, %v9028_v53, %v7337_v42  ;;  %v14138_v61 = vld [vmem:[%s10791_s25 + $0x18c] sm:$0x1]  ;;  %v6515_v34 = vrot.slane %v6513_v40, 5  ;;  %v6526_v36 = vrot.slane %v6524_v12, 4 }
 0x38e   : > { %v5660_v48 = vpop.f32.mrb[68].mxu0  ;;  %10293 = vmatmul.mubr.bf16.gmra.mrb[172].mxu1 %v8922_v11  ;;  %v6529_v21 = vrot.slane %v6527_v62, 5  ;;  %v8979_v57 = vld [vmem:[%s10791_s25 + $0x170] sm:$0xe]  ;;  %v8923_v25 = vcombine.low %v6466_v51, %v6480_v52  ;;  %v6494_v63 = vsel %vm10823_vm3, %v6489_v54, %v6493_v8  ;;  %v8980_v9 = vld [vmem:[%s10791_s25 + $0x178] sm:$0xe]  ;;  %v9072_v40 = vcombine.low %v7334_v60, %v7338_v37 }
 0x38f   : > { %v14122_v50 = vadd.f32 %v5660_v48, %v5202_v32  ;;  %v10170_v22 = vpop.f32.mrb[69].mxu0  ;;  %10296 = vmatprep.mubr.msk.bf16.mxu1 %vm10734_vm0, %v14482_v44  ;;  %v8882_v53 = vld [vmem:[%s10791_s25 + $0x190] sm:$0xf]  ;;  %v6508_v12 = vsel %vm10823_vm3, %v6503_v43, %v6507_v39  ;;  %v6519_v62 = vshll.u32 %v14135_v17, 16  ;;  %v6533_v48 = vshll.u32 %v14138_v61, 16  ;;  %v14693_v51 = vld [vmem:[#allocation58_spill] sm:$0xff] }
 0x390   : > { %v5663_v56 = vpop.f32.mrb[70].mxu0  ;;  %v8884_v22 = vld [vmem:[%s10791_s25 + $0x198] sm:$0xf]  ;;  %v6516_v52 = vor.u32 %v6515_v34, %v6512_v27  ;;  %v9029_v54 = vrot.slane %v8979_v57, 9  ;;  %v7341_v8 = vrot.slane %v14092_v0, 5  ;;  %v7345_v60 = vrot.slane %v14099_v38, 5 }
 0x391   : > { %14690 = vst [vmem:[#allocation48_spill] sm:$0xff] %v14122_v50  ;;  %v14128_v11 = vadd.f32 %v5663_v56, %v5203_v4  ;;  %v10171_v32 = vpop.f32.mrb[71].mxu0  ;;  %v5119_v19 = vpop.f32.mrb[68].mxu1  ;;  %v6552_v37 = vshrl.u32 %v8884_v22, 16  ;;  %v6555_v50 = vshll.u32 %v8884_v22, 16  ;;  %v8924_v27 = vcombine.low %v6494_v63, %v6508_v12 }
 0x392   : > { %v5204_v26 = vadd.f32 %v5119_v19, %v14692_v28  ;;  %v10058_v4 = vpop.f32.mrb[69].mxu1  ;;  %v6530_v19 = vor.u32 %v6529_v21, %v6526_v36  ;;  %v9030_v28 = vrot.slane %v8980_v9, 9  ;;  %v6517_v36 = vrot.slane %v6516_v52, 4 }
 0x393   : > { %14691 = vst [vmem:[#allocation49_spill] sm:$0xff] %v14128_v11  ;;  %10409 = vmatmul.mubr.bf16.gmra.mrb[176].mxu0 %v9071_v18  ;;  %v5122_v42 = vpop.f32.mrb[70].mxu1  ;;  %v6538_v4 = vshrl.u32 %v8882_v53, 16  ;;  %v6541_v11 = vshll.u32 %v8882_v53, 16  ;;  %v6521_v21 = vrot.slane %v6519_v62, 5  ;;  %v6535_v57 = vrot.slane %v6533_v48, 5 }
 0x394   : > { %10412 = vmatprep.mubr.msk.bf16.mxu0 %vm10734_vm0, %v14482_v44  ;;  %v5205_v18 = vadd.f32 %v5122_v42, %v14693_v51  ;;  %v10059_v56 = vpop.f32.mrb[71].mxu1  ;;  %v7342_v38 = vsel %vm11239_vm6, %v9029_v54, %v7341_v8  ;;  %v14694_v42 = vld [vmem:[#allocation9_spill] sm:$0xff]  ;;  %v6554_v12 = vrot.slane %v6552_v37, 4  ;;  %v6557_v62 = vrot.slane %v6555_v50, 5  ;;  %v14170_v48 = vld [vmem:[%s10791_s25 + $0x194] sm:$0x1] }
 0x395   : > { %v6540_v9 = vrot.slane %v6538_v4, 4  ;;  %v6543_v53 = vrot.slane %v6541_v11, 5  ;;  %v14695_v56 = vld [vmem:[#allocation10_spill] sm:$0xff]  ;;  %v8982_v8 = vld [vmem:[%s10791_s25 + $0x188] sm:$0xe] }
 0x396   : > { %v5668_v32 = vpop.f32.mrb[72].mxu0  ;;  %10297 = vmatmul.mubr.bf16.gmra.mrb[176].mxu1 %v8923_v25  ;;  %v6531_v25 = vrot.slane %v6530_v19, 4  ;;  %v8981_v54 = vld [vmem:[%s10791_s25 + $0x180] sm:$0xe]  ;;  %v6558_v37 = vor.u32 %v6557_v62, %v6554_v12 }
 0x397   : > { %v14155_v43 = vadd.f32 %v5668_v32, %v5204_v26  ;;  %v10174_v39 = vpop.f32.mrb[73].mxu0  ;;  %10300 = vmatprep.mubr.msk.bf16.mxu1 %vm10734_vm0, %v14482_v44 }
 0x398   : > { %v5671_v33 = vpop.f32.mrb[74].mxu0  ;;  %v6536_v50 = vsel %vm10823_vm3, %v6531_v25, %v6535_v57  ;;  %v7353_v57 = vrot.slane %v14138_v61, 5  ;;  %v6559_v62 = vrot.slane %v6558_v37, 4 }
 0x399   : > { %v14160_v34 = vadd.f32 %v5671_v33, %v5205_v18  ;;  %v10175_v0 = vpop.f32.mrb[75].mxu0  ;;  %v5127_v26 = vpop.f32.mrb[72].mxu1  ;;  %v7346_v33 = vsel %vm11239_vm6, %v9030_v28, %v7345_v60  ;;  %v14173_v18 = vld [vmem:[%s10791_s25 + $0x19c] sm:$0x1]  ;;  %v6544_v28 = vor.u32 %v6543_v53, %v6540_v9  ;;  %v6547_v60 = vshll.u32 %v14170_v48, 16 }
 0x39a   : > { %v5206_v22 = vadd.f32 %v5127_v26, %v14694_v42  ;;  %v10062_v63 = vpop.f32.mrb[73].mxu1  ;;  %v9073_v19 = vcombine.low %v7342_v38, %v7346_v33  ;;  %v6561_v0 = vshll.u32 %v14173_v18, 16  ;;  %v9031_v42 = vrot.slane %v8981_v54, 9 }
 0x39b   : > { %10413 = vmatmul.mubr.bf16.gmra.mrb[180].mxu0 %v9072_v40  ;;  %v5130_v51 = vpop.f32.mrb[74].mxu1  ;;  %v6522_v40 = vsel %vm10823_vm3, %v6517_v36, %v6521_v21  ;;  %v7349_v36 = vrot.slane %v14135_v17, 5  ;;  %v9032_v21 = vrot.slane %v8982_v8, 9  ;;  %v6545_v53 = vrot.slane %v6544_v28, 4  ;;  %v8983_v8 = vld [vmem:[%s10791_s25 + $0x190] sm:$0xe] }
 0x39c   : > { %10416 = vmatprep.mubr.msk.bf16.mxu0 %vm10734_vm0, %v14482_v44  ;;  %v5207_v52 = vadd.f32 %v5130_v51, %v14695_v56  ;;  %v10063_v11 = vpop.f32.mrb[75].mxu1  ;;  %v8925_v9 = vcombine.low %v6522_v40, %v6536_v50  ;;  %v6549_v12 = vrot.slane %v6547_v60, 5  ;;  %v6563_v51 = vrot.slane %v6561_v0, 5 }
 0x39d   : > { %v7350_v17 = vsel %vm11239_vm6, %v9031_v42, %v7349_v36  ;;  %v7354_v61 = vsel %vm11239_vm6, %v9032_v21, %v7353_v57  ;;  %v9033_v0 = vrot.slane %v8983_v8, 9  ;;  %v7361_v36 = vrot.slane %v14173_v18, 5  ;;  %v14699_v18 = vld [vmem:[#allocation18_spill] sm:$0xff] }
 0x39e   : > { %v5676_v32 = vpop.f32.mrb[76].mxu0  ;;  %10301 = vmatmul.mubr.bf16.gmra.mrb[180].mxu1 %v8924_v27  ;;  %v6550_v28 = vsel %vm10823_vm3, %v6545_v53, %v6549_v12  ;;  %v9074_v60 = vcombine.low %v7350_v17, %v7354_v61 }
 0x39f   : > { %v14182_v4 = vadd.f32 %v5676_v32, %v5206_v22  ;;  %v10178_v39 = vpop.f32.mrb[77].mxu0  ;;  %10304 = vmatprep.mubr.msk.bf16.mxu1 %vm10734_vm0, %v14482_v44  ;;  %v14696_v22 = vld [vmem:[#allocation13_spill] sm:$0xff] }
 0x3a0   : > { %v5679_v26 = vpop.f32.mrb[78].mxu0  ;;  %v8984_v32 = vld [vmem:[%s10791_s25 + $0x198] sm:$0xe]  ;;  %v6564_v39 = vsel %vm10823_vm3, %v6559_v62, %v6563_v51 }
 0x3a1   : > { %v14190_v25 = vadd.f32 %v5679_v26, %v5207_v52  ;;  %v10179_v27 = vpop.f32.mrb[79].mxu0  ;;  %v5135_v38 = vpop.f32.mrb[76].mxu1  ;;  %v14697_v52 = vld [vmem:[#allocation14_spill] sm:$0xff]  ;;  %v7357_v26 = vrot.slane %v14170_v48, 5  ;;  %v9034_v42 = vrot.slane %v8984_v32, 9  ;;  %v8926_v31 = vcombine.low %v6550_v28, %v6564_v39 }
 0x3a2   : > { %v5208_v63 = vadd.f32 %v5135_v38, %v14696_v22  ;;  %v10066_v33 = vpop.f32.mrb[77].mxu1  ;;  %v14698_v38 = vld [vmem:[#allocation17_spill] sm:$0xff] }
 0x3a3   : > { %10417 = vmatmul.mubr.bf16.gmra.mrb[184].mxu0 %v9073_v19  ;;  %v5138_v56 = vpop.f32.mrb[78].mxu1  ;;  %v7362_v48 = vsel %vm11239_vm6, %v9034_v42, %v7361_v36 }
 0x3a4   : > { %10420 = vmatprep.mubr.msk.bf16.mxu0 %vm10734_vm0, %v14482_v44  ;;  %v5209_v11 = vadd.f32 %v5138_v56, %v14697_v52  ;;  %v10067_v54 = vpop.f32.mrb[79].mxu1 }
 0x3a6   : > { %v5684_v40 = vpop.f32.mrb[80].mxu0  ;;  %10305 = vmatmul.mubr.bf16.gmra.mrb[184].mxu1 %v8925_v9 }
 0x3a7   : > { %v14202_v50 = vadd.f32 %v5684_v40, %v5208_v63  ;;  %v10182_v19 = vpop.f32.mrb[81].mxu0  ;;  %10308 = vmatprep.mubr.msk.bf16.mxu1 %vm10734_vm0, %v14482_v44  ;;  %v7358_v63 = vsel %vm11239_vm6, %v9033_v0, %v7357_v26 }
 0x3a8   : > { %v5687_v37 = vpop.f32.mrb[82].mxu0  ;;  %v9075_v17 = vcombine.low %v7358_v63, %v7362_v48 }
 0x3a9   : > { %v14212_v21 = vadd.f32 %v5687_v37, %v5209_v11  ;;  %v10183_v57 = vpop.f32.mrb[83].mxu0  ;;  %v5143_v27 = vpop.f32.mrb[80].mxu1 }
 0x3aa   : > { %v5210_v9 = vadd.f32 %v5143_v27, %v14698_v38  ;;  %v10070_v53 = vpop.f32.mrb[81].mxu1 }
 0x3ab   : > { %10421 = vmatmul.mubr.bf16.gmra.mrb[188].mxu0 %v9074_v60  ;;  %v5146_v22 = vpop.f32.mrb[82].mxu1 }
 0x3ac   : > { %10424 = vmatprep.mubr.msk.bf16.mxu0 %vm10734_vm0, %v14482_v44  ;;  %v5211_v33 = vadd.f32 %v5146_v22, %v14699_v18  ;;  %v10071_v12 = vpop.f32.mrb[83].mxu1 }
 0x3ae   : > { %v5692_v62 = vpop.f32.mrb[84].mxu0  ;;  %10309 = vmatmul.mubr.bf16.gmra.mrb[188].mxu1 %v8926_v31 }
 0x3af   : > { %v14222_v51 = vadd.f32 %v5692_v62, %v5210_v9  ;;  %v10186_v56 = vpop.f32.mrb[85].mxu0 }
 0x3b0   : > { %v5695_v61 = vpop.f32.mrb[86].mxu0 }
 0x3b1   : > { %v14224_v52 = vadd.f32 %v5695_v61, %v5211_v33  ;;  %v10187_v11 = vpop.f32.mrb[87].mxu0  ;;  %v5151_v44 = vpop.f32.mrb[84].mxu1 }
 0x3b2   : > { %v5212_v54 = vadd.f32 %v5151_v44, %v13367_v49  ;;  %v10074_v8 = vpop.f32.mrb[85].mxu1 }
 0x3b3   : > { %10425 = vmatmul.mubr.bf16.gmra.mrb[192].mxu0 %v9075_v17  ;;  %v5154_v20 = vpop.f32.mrb[86].mxu1 }
 0x3b4   : > { %v5213_v32 = vadd.f32 %v5154_v20, %v13374_v16  ;;  %v10075_v40 = vpop.f32.mrb[87].mxu1 }
 0x3b6   : > { %v5700_v19 = vpop.f32.mrb[88].mxu0 }
 0x3b7   : > { %v14228_v28 = vadd.f32 %v5700_v19, %v5212_v54  ;;  %v10190_v39 = vpop.f32.mrb[89].mxu0 }
 0x3b8   : > { %v5703_v60 = vpop.f32.mrb[90].mxu0 }
 0x3b9   : > { %v14230_v37 = vadd.f32 %v5703_v60, %v5213_v32  ;;  %v10191_v0 = vpop.f32.mrb[91].mxu0  ;;  %v5159_v26 = vpop.f32.mrb[88].mxu1 }
 0x3ba   : > { %v5214_v42 = vadd.f32 %v5159_v26, %v13404_v10  ;;  %v10078_v36 = vpop.f32.mrb[89].mxu1 }
 0x3bb   : > { %v5162_v57 = vpop.f32.mrb[90].mxu1 }
 0x3bc   : > { %v5215_v49 = vadd.f32 %v5162_v57, %v13412_v47  ;;  %v10079_v27 = vpop.f32.mrb[91].mxu1  ;;  %v14243_v47 = vld [vmem:[%s14404_s2] ss:$0 sm:$0xff] }
 0x3be   : > { %v5708_v38 = vpop.f32.mrb[92].mxu0 }
 0x3bf   : > { %v14234_v9 = vadd.f32 %v5708_v38, %v5214_v42  ;;  %v10194_v16 = vpop.f32.mrb[93].mxu0 }
 0x3c0   : > { %v5711_v53 = vpop.f32.mrb[94].mxu0 }
 0x3c1   : > { %v14236_v31 = vadd.f32 %v5711_v53, %v5215_v49  ;;  %v10195_v22 = vpop.f32.mrb[95].mxu0  ;;  %v6764_v63 = vpop.f32.mrb[92].mxu1 }
 0x3c2   : > { %v6963_v48 = vadd.f32 %v6764_v63, %v13445_v14  ;;  %v10214_v18 = vpop.f32.mrb[93].mxu1 }
 0x3c3   : > { %v6767_v33 = vpop.f32.mrb[94].mxu1 }
 0x3c4   : > { %v6964_v10 = vadd.f32 %v6767_v33, %v13453_v13  ;;  %v10215_v12 = vpop.f32.mrb[95].mxu1 }
 0x3c6   : > { %v7562_v62 = vpop.f32.mrb[96].mxu0 }
 0x3c7   : > { %v7761_v56 = vadd.f32 %v7562_v62, %v6963_v48  ;;  %v10330_v17 = vpop.f32.mrb[97].mxu0 }
 0x3c8   : > { %v7565_v61 = vpop.f32.mrb[98].mxu0 }
 0x3c9   : > { %v7818_v11 = vadd.f32 %v14243_v47, %v7761_v56  ;;  %v7762_v44 = vadd.f32 %v7565_v61, %v6964_v10  ;;  %v10331_v54 = vpop.f32.mrb[99].mxu0  ;;  %v6772_v8 = vpop.f32.mrb[96].mxu1 }
 0x3ca   : > { %v6965_v14 = vadd.f32 %v6772_v8, %v13482_v59  ;;  %v10218_v20 = vpop.f32.mrb[97].mxu1 }
 0x3cb   : > { %v7819_v13 = vadd.f32 %v14243_v47, %v7762_v44  ;;  %v6775_v32 = vpop.f32.mrb[98].mxu1  ;;  %v7868_v40 = vmax.f32 %v7818_v11, 0.0 }
 0x3cc   : > { %v6966_v19 = vadd.f32 %v6775_v32, %v13487_v35  ;;  %v10219_v60 = vpop.f32.mrb[99].mxu1 }
 0x3cd   : > { %v7869_v39 = vmax.f32 %v7819_v13, 0.0 }
 0x3ce   : > { %v7570_v0 = vpop.f32.mrb[100].mxu0 }
 0x3cf   : > { %v7918_v26 = vmax.f32 %v7868_v40, %v7869_v39  ;;  %v7763_v42 = vadd.f32 %v7570_v0, %v6965_v14  ;;  %v10334_v36 = vpop.f32.mrb[101].mxu0 }
 0x3d0   : > { %v7573_v57 = vpop.f32.mrb[102].mxu0 }
 0x3d1   : > { %7944 = vst.msk [vmem:[#allocation2] sm:$0xff] %vm7943_vm7, %v7918_v26  ;;  %v7820_v49 = vadd.f32 %v14243_v47, %v7763_v42  ;;  %v7764_v59 = vadd.f32 %v7573_v57, %v6966_v19  ;;  %v10335_v27 = vpop.f32.mrb[103].mxu0  ;;  %v6780_v38 = vpop.f32.mrb[100].mxu1 }
 0x3d2   : > { %v6967_v16 = vadd.f32 %v6780_v38, %v13517_v7  ;;  %v10222_v53 = vpop.f32.mrb[101].mxu1 }
 0x3d3   : > { %v7821_v35 = vadd.f32 %v14243_v47, %v7764_v59  ;;  %v6783_v22 = vpop.f32.mrb[102].mxu1  ;;  %v7870_v63 = vmax.f32 %v7820_v49, 0.0 }
 0x3d4   : > { %v6968_v48 = vadd.f32 %v6783_v22, %v13528_v5  ;;  %v10223_v33 = vpop.f32.mrb[103].mxu1 }
 0x3d5   : > { %v7871_v18 = vmax.f32 %v7821_v35, 0.0 }
 0x3d6   : > { %v7578_v10 = vpop.f32.mrb[104].mxu0 }
 0x3d7   : > { %v7919_v12 = vmax.f32 %v7870_v63, %v7871_v18  ;;  %v7765_v62 = vadd.f32 %v7578_v10, %v6967_v16  ;;  %v10338_v56 = vpop.f32.mrb[105].mxu0 }
 0x3d8   : > { %v7581_v17 = vpop.f32.mrb[106].mxu0 }
 0x3d9   : > { %7945 = vst.msk [vmem:[#allocation2 + $0x8] sm:$0xff] %vm7943_vm7, %v7919_v12  ;;  %v7822_v61 = vadd.f32 %v14243_v47, %v7765_v62  ;;  %v7766_v7 = vadd.f32 %v7581_v17, %v6968_v48  ;;  %v10339_v11 = vpop.f32.mrb[107].mxu0  ;;  %v6788_v44 = vpop.f32.mrb[104].mxu1 }
 0x3da   : > { %v6969_v54 = vadd.f32 %v6788_v44, %v13559_v30  ;;  %v10226_v8 = vpop.f32.mrb[105].mxu1 }
 0x3db   : > { %v7823_v5 = vadd.f32 %v14243_v47, %v7766_v7  ;;  %v6791_v14 = vpop.f32.mrb[106].mxu1  ;;  %v7872_v20 = vmax.f32 %v7822_v61, 0.0 }
 0x3dc   : > { %v6970_v13 = vadd.f32 %v6791_v14, %v13574_v23  ;;  %v10227_v40 = vpop.f32.mrb[107].mxu1 }
 0x3dd   : > { %v7873_v32 = vmax.f32 %v7823_v5, 0.0 }
 0x3de   : > { %v7586_v19 = vpop.f32.mrb[108].mxu0 }
 0x3df   : > { %v7920_v39 = vmax.f32 %v7872_v20, %v7873_v32  ;;  %v7767_v60 = vadd.f32 %v7586_v19, %v6969_v54  ;;  %v10342_v0 = vpop.f32.mrb[109].mxu0 }
 0x3e0   : > { %v7969_v30 = vld [vmem:[#allocation2] ss:$2 sm:$0xff]  ;;  %v7995_v26 = vld [vmem:[#allocation2 + $0x1] ss:$2 sm:$0xff]  ;;  %v7589_v42 = vpop.f32.mrb[110].mxu0 }
 0x3e1   : > { %v8020_v36 = vmax.f32 %v7969_v30, %v7995_v26  ;;  %7946 = vst.msk [vmem:[#allocation2 + $0x10] sm:$0xff] %vm7943_vm7, %v7920_v39  ;;  %v7824_v23 = vadd.f32 %v14243_v47, %v7767_v60  ;;  %v7768_v57 = vadd.f32 %v7589_v42, %v6970_v13  ;;  %v10343_v49 = vpop.f32.mrb[111].mxu0  ;;  %v6796_v59 = vpop.f32.mrb[108].mxu1 }
 0x3e2   : > { %v6971_v27 = vadd.f32 %v6796_v59, %v13603_v3  ;;  %v10230_v38 = vpop.f32.mrb[109].mxu1 }
 0x3e3   : > { %8033 = vst.msk [vmem:[%s14263_s21] sm:$0xff] %vm7943_vm7, %v8020_v36  ;;  %v7825_v16 = vadd.f32 %v14243_v47, %v7768_v57  ;;  %v6799_v53 = vpop.f32.mrb[110].mxu1  ;;  %v7874_v35 = vmax.f32 %v7824_v23, 0.0 }
 0x3e4   : > { %v6972_v22 = vadd.f32 %v6799_v53, %v13611_v24  ;;  %v10231_v48 = vpop.f32.mrb[111].mxu1 }
 0x3e5   : > { %v7875_v63 = vmax.f32 %v7825_v16, 0.0 }
 0x3e6   : > { %v7594_v18 = vpop.f32.mrb[112].mxu0 }
 0x3e7   : > { %v7921_v33 = vmax.f32 %v7874_v35, %v7875_v63  ;;  %v7769_v10 = vadd.f32 %v7594_v18, %v6971_v27  ;;  %v10346_v12 = vpop.f32.mrb[113].mxu0 }
 0x3e8   : > { %v7597_v62 = vpop.f32.mrb[114].mxu0 }
 0x3e9   : > { %7947 = vst.msk [vmem:[#allocation2 + $0x18] sm:$0xff] %vm7943_vm7, %v7921_v33  ;;  %v7826_v56 = vadd.f32 %v14243_v47, %v7769_v10  ;;  %v7770_v17 = vadd.f32 %v7597_v62, %v6972_v22  ;;  %v10347_v3 = vpop.f32.mrb[115].mxu0  ;;  %v6804_v61 = vpop.f32.mrb[112].mxu1 }
 0x3ea   : > { %v6973_v7 = vadd.f32 %v6804_v61, %v13643_v6  ;;  %v10234_v11 = vpop.f32.mrb[113].mxu1 }
 0x3eb   : > { %v7827_v44 = vadd.f32 %v14243_v47, %v7770_v17  ;;  %v6807_v24 = vpop.f32.mrb[114].mxu1  ;;  %v7876_v54 = vmax.f32 %v7826_v56, 0.0 }
 0x3ec   : > { %v6974_v8 = vadd.f32 %v6807_v24, %v13652_v45  ;;  %v10235_v14 = vpop.f32.mrb[115].mxu1 }
 0x3ed   : > { %v7877_v5 = vmax.f32 %v7827_v44, 0.0 }
 0x3ee   : > { %v7602_v20 = vpop.f32.mrb[116].mxu0 }
 0x3ef   : > { %v7922_v13 = vmax.f32 %v7876_v54, %v7877_v5  ;;  %v7771_v32 = vadd.f32 %v7602_v20, %v6973_v7  ;;  %v10350_v40 = vpop.f32.mrb[117].mxu0 }
 0x3f0   : > { %v7971_v19 = vld [vmem:[#allocation2 + $0x10] ss:$2 sm:$0xff]  ;;  %v7997_v39 = vld [vmem:[#allocation2 + $0x11] ss:$2 sm:$0xff]  ;;  %v7605_v60 = vpop.f32.mrb[118].mxu0 }
 0x3f1   : > { %v8021_v0 = vmax.f32 %v7971_v19, %v7997_v39  ;;  %7948 = vst.msk [vmem:[#allocation2 + $0x20] sm:$0xff] %vm7943_vm7, %v7922_v13  ;;  %v7828_v6 = vadd.f32 %v14243_v47, %v7771_v32  ;;  %v7772_v30 = vadd.f32 %v7605_v60, %v6974_v8  ;;  %v10351_v26 = vpop.f32.mrb[119].mxu0  ;;  %v6812_v42 = vpop.f32.mrb[116].mxu1 }
 0x3f2   : > { %v6975_v45 = vadd.f32 %v6812_v42, %v13682_v55  ;;  %v10238_v36 = vpop.f32.mrb[117].mxu1 }
 0x3f3   : > { %8034 = vst.msk [vmem:[%s14263_s21 + $0x8] sm:$0xff] %vm7943_vm7, %v8021_v0  ;;  %v7829_v23 = vadd.f32 %v14243_v47, %v7772_v30  ;;  %v6815_v57 = vpop.f32.mrb[118].mxu1  ;;  %v7878_v49 = vmax.f32 %v7828_v6, 0.0 }
 0x3f4   : > { %v6976_v59 = vadd.f32 %v6815_v57, %v13690_v58  ;;  %v10239_v38 = vpop.f32.mrb[119].mxu1 }
 0x3f5   : > { %v7879_v27 = vmax.f32 %v7829_v23, 0.0 }
 0x3f6   : > { %v7610_v16 = vpop.f32.mrb[120].mxu0 }
 0x3f7   : > { %v7923_v53 = vmax.f32 %v7878_v49, %v7879_v27  ;;  %v7773_v35 = vadd.f32 %v7610_v16, %v6975_v45  ;;  %v10354_v22 = vpop.f32.mrb[121].mxu0 }
 0x3f8   : > { %v7613_v63 = vpop.f32.mrb[122].mxu0 }
 0x3f9   : > { %7949 = vst.msk [vmem:[#allocation2 + $0x28] sm:$0xff] %vm7943_vm7, %v7923_v53  ;;  %v7830_v48 = vadd.f32 %v14243_v47, %v7773_v35  ;;  %v7774_v18 = vadd.f32 %v7613_v63, %v6976_v59  ;;  %v10355_v55 = vpop.f32.mrb[123].mxu0  ;;  %v6820_v33 = vpop.f32.mrb[120].mxu1  ;;  %v14700_v35 = vld [vmem:[#allocation21_spill] sm:$0xff] }
 0x3fa   : > { %v6977_v10 = vadd.f32 %v6820_v33, %v13718_v1  ;;  %v10242_v12 = vpop.f32.mrb[121].mxu1 }
 0x3fb   : > { %v7831_v62 = vadd.f32 %v14243_v47, %v7774_v18  ;;  %v6823_v58 = vpop.f32.mrb[122].mxu1  ;;  %v7880_v56 = vmax.f32 %v7830_v48, 0.0 }
 0x3fc   : > { %v6978_v17 = vadd.f32 %v6823_v58, %v13729_v2  ;;  %v10243_v61 = vpop.f32.mrb[123].mxu1 }
 0x3fd   : > { %v7881_v3 = vmax.f32 %v7831_v62, 0.0 }
 0x3fe   : > { %v7618_v7 = vpop.f32.mrb[124].mxu0 }
 0x3ff   : > { %v7924_v11 = vmax.f32 %v7880_v56, %v7881_v3  ;;  %v7775_v44 = vadd.f32 %v7618_v7, %v6977_v10  ;;  %v10358_v24 = vpop.f32.mrb[125].mxu0  ;;  %v14701_v7 = vld [vmem:[#allocation22_spill] sm:$0xff] }
 0x400   : > { %v7973_v54 = vld [vmem:[#allocation2 + $0x20] ss:$2 sm:$0xff]  ;;  %v7999_v8 = vld [vmem:[#allocation2 + $0x21] ss:$2 sm:$0xff]  ;;  %v7621_v5 = vpop.f32.mrb[126].mxu0 }
 0x401   : > { %v8022_v14 = vmax.f32 %v7973_v54, %v7999_v8  ;;  %7950 = vst.msk [vmem:[#allocation2 + $0x30] sm:$0xff] %vm7943_vm7, %v7924_v11  ;;  %v7832_v1 = vadd.f32 %v14243_v47, %v7775_v44  ;;  %v7776_v20 = vadd.f32 %v7621_v5, %v6978_v17  ;;  %v10359_v13 = vpop.f32.mrb[127].mxu0  ;;  %v6828_v32 = vpop.f32.mrb[124].mxu1  ;;  %v14702_v5 = vld [vmem:[#allocation24_spill] sm:$0xff] }
 0x402   : > { %v6979_v2 = vadd.f32 %v6828_v32, %v13757_v46  ;;  %v10246_v40 = vpop.f32.mrb[125].mxu1 }
 0x403   : > { %8035 = vst.msk [vmem:[%s14263_s21 + $0x10] sm:$0xff] %vm7943_vm7, %v8022_v14  ;;  %v7833_v19 = vadd.f32 %v14243_v47, %v7776_v20  ;;  %v6831_v39 = vpop.f32.mrb[126].mxu1  ;;  %v7882_v60 = vmax.f32 %v7832_v1, 0.0 }
 0x404   : > { %v6980_v0 = vadd.f32 %v6831_v39, %v13770_v15  ;;  %v10247_v30 = vpop.f32.mrb[127].mxu1 }
 0x405   : > { %v7883_v6 = vmax.f32 %v7833_v19, 0.0  ;;  %v14703_v30 = vld [vmem:[#allocation25_spill] sm:$0xff] }
 0x406   : > { %v7626_v26 = vpop.f32.mrb[128].mxu0 }
 0x407   : > { %v7925_v42 = vmax.f32 %v7882_v60, %v7883_v6  ;;  %v7777_v45 = vadd.f32 %v7626_v26, %v6979_v2  ;;  %v10362_v36 = vpop.f32.mrb[129].mxu0 }
 0x408   : > { %v7629_v23 = vpop.f32.mrb[130].mxu0 }
 0x409   : > { %7951 = vst.msk [vmem:[#allocation2 + $0x38] sm:$0xff] %vm7943_vm7, %v7925_v42  ;;  %v7834_v57 = vadd.f32 %v14243_v47, %v7777_v45  ;;  %v7778_v49 = vadd.f32 %v7629_v23, %v6980_v0  ;;  %v10363_v46 = vpop.f32.mrb[131].mxu0  ;;  %v6836_v59 = vpop.f32.mrb[128].mxu1 }
 0x40a   : > { %v6981_v27 = vadd.f32 %v6836_v59, %v13801_v29  ;;  %v10250_v38 = vpop.f32.mrb[129].mxu1 }
 0x40b   : > { %v7835_v16 = vadd.f32 %v14243_v47, %v7778_v49  ;;  %v6839_v15 = vpop.f32.mrb[130].mxu1  ;;  %v7884_v53 = vmax.f32 %v7834_v57, 0.0  ;;  %v14704_v57 = vld [vmem:[#allocation28_spill] sm:$0xff] }
 0x40c   : > { %v6982_v22 = vadd.f32 %v6839_v15, %v14700_v35  ;;  %v10251_v48 = vpop.f32.mrb[131].mxu1 }
 0x40d   : > { %v7885_v63 = vmax.f32 %v7835_v16, 0.0 }
 0x40e   : > { %v7634_v18 = vpop.f32.mrb[132].mxu0 }
 0x40f   : > { %v7926_v55 = vmax.f32 %v7884_v53, %v7885_v63  ;;  %v7779_v33 = vadd.f32 %v7634_v18, %v6981_v27  ;;  %v10366_v10 = vpop.f32.mrb[133].mxu0 }
 0x410   : > { %v7975_v12 = vld [vmem:[#allocation2 + $0x30] ss:$2 sm:$0xff]  ;;  %v8001_v62 = vld [vmem:[#allocation2 + $0x31] ss:$2 sm:$0xff]  ;;  %v7637_v58 = vpop.f32.mrb[134].mxu0 }
 0x411   : > { %v8023_v56 = vmax.f32 %v7975_v12, %v8001_v62  ;;  %7952 = vst.msk [vmem:[#allocation2 + $0x40] sm:$0xff] %vm7943_vm7, %v7926_v55  ;;  %v7836_v29 = vadd.f32 %v14243_v47, %v7779_v33  ;;  %v7780_v17 = vadd.f32 %v7637_v58, %v6982_v22  ;;  %v10367_v3 = vpop.f32.mrb[135].mxu0  ;;  %v6844_v61 = vpop.f32.mrb[132].mxu1  ;;  %v14705_v10 = vld [vmem:[#allocation29_spill] sm:$0xff] }
 0x412   : > { %v6983_v11 = vadd.f32 %v6844_v61, %v14701_v7  ;;  %v10254_v44 = vpop.f32.mrb[133].mxu1 }
 0x413   : > { %8036 = vst.msk [vmem:[%s14263_s21 + $0x18] sm:$0xff] %vm7943_vm7, %v8023_v56  ;;  %v7837_v24 = vadd.f32 %v14243_v47, %v7780_v17  ;;  %v6847_v54 = vpop.f32.mrb[134].mxu1  ;;  %v7886_v8 = vmax.f32 %v7836_v29, 0.0  ;;  %v14706_v17 = vld [vmem:[#allocation31_spill] sm:$0xff] }
 0x414   : > { %v6984_v14 = vadd.f32 %v6847_v54, %v14702_v5  ;;  %v10255_v20 = vpop.f32.mrb[135].mxu1 }
 0x415   : > { %v7887_v1 = vmax.f32 %v7837_v24, 0.0 }
 0x416   : > { %v7642_v13 = vpop.f32.mrb[136].mxu0 }
 0x417   : > { %v7927_v32 = vmax.f32 %v7886_v8, %v7887_v1  ;;  %v7781_v2 = vadd.f32 %v7642_v13, %v6983_v11  ;;  %v10370_v40 = vpop.f32.mrb[137].mxu0  ;;  %v14707_v13 = vld [vmem:[#allocation32_spill] sm:$0xff] }
 0x418   : > { %v7645_v19 = vpop.f32.mrb[138].mxu0 }
 0x419   : > { %7953 = vst.msk [vmem:[#allocation2 + $0x48] sm:$0xff] %vm7943_vm7, %v7927_v32  ;;  %v7838_v39 = vadd.f32 %v14243_v47, %v7781_v2  ;;  %v7782_v60 = vadd.f32 %v7645_v19, %v6984_v14  ;;  %v10371_v0 = vpop.f32.mrb[139].mxu0  ;;  %v6852_v6 = vpop.f32.mrb[136].mxu1 }
 0x41a   : > { %v6985_v26 = vadd.f32 %v6852_v6, %v14703_v30  ;;  %v10258_v42 = vpop.f32.mrb[137].mxu1 }
 0x41b   : > { %v7839_v45 = vadd.f32 %v14243_v47, %v7782_v60  ;;  %v6855_v36 = vpop.f32.mrb[138].mxu1  ;;  %v7888_v23 = vmax.f32 %v7838_v39, 0.0  ;;  %v14708_v60 = vld [vmem:[#allocation35_spill] sm:$0xff] }
 0x41c   : > { %v6986_v49 = vadd.f32 %v6855_v36, %v14704_v57  ;;  %v10259_v59 = vpop.f32.mrb[139].mxu1 }
 0x41d   : > { %v7889_v46 = vmax.f32 %v7839_v45, 0.0 }
 0x41e   : > { %v7650_v27 = vpop.f32.mrb[140].mxu0 }
 0x41f   : > { %v7928_v38 = vmax.f32 %v7888_v23, %v7889_v46  ;;  %v7783_v16 = vadd.f32 %v7650_v27, %v6985_v26  ;;  %v10374_v15 = vpop.f32.mrb[141].mxu0 }
 0x420   : > { %v7977_v53 = vld [vmem:[#allocation2 + $0x40] ss:$2 sm:$0xff]  ;;  %v8003_v35 = vld [vmem:[#allocation2 + $0x41] ss:$2 sm:$0xff]  ;;  %v7653_v22 = vpop.f32.mrb[142].mxu0  ;;  %v14709_v15 = vld [vmem:[#allocation36_spill] sm:$0xff] }
 0x421   : > { %v8024_v63 = vmax.f32 %v7977_v53, %v8003_v35  ;;  %7954 = vst.msk [vmem:[#allocation2 + $0x50] sm:$0xff] %vm7943_vm7, %v7928_v38  ;;  %v7840_v48 = vadd.f32 %v14243_v47, %v7783_v16  ;;  %v7784_v18 = vadd.f32 %v7653_v22, %v6986_v49  ;;  %v10375_v55 = vpop.f32.mrb[143].mxu0  ;;  %v6860_v33 = vpop.f32.mrb[140].mxu1 }
 0x422   : > { %v6987_v12 = vadd.f32 %v6860_v33, %v14705_v10  ;;  %v10262_v62 = vpop.f32.mrb[141].mxu1 }
 0x423   : > { %8037 = vst.msk [vmem:[%s14263_s21 + $0x20] sm:$0xff] %vm7943_vm7, %v8024_v63  ;;  %v7841_v58 = vadd.f32 %v14243_v47, %v7784_v18  ;;  %v6863_v56 = vpop.f32.mrb[142].mxu1  ;;  %v7890_v29 = vmax.f32 %v7840_v48, 0.0  ;;  %v14710_v18 = vld [vmem:[#allocation39_spill] sm:$0xff] }
 0x424   : > { %v6988_v3 = vadd.f32 %v6863_v56, %v14706_v17  ;;  %v10263_v7 = vpop.f32.mrb[143].mxu1 }
 0x425   : > { %v7891_v61 = vmax.f32 %v7841_v58, 0.0 }
 0x426   : > { %v7658_v11 = vpop.f32.mrb[144].mxu0 }
 0x427   : > { %v7929_v44 = vmax.f32 %v7890_v29, %v7891_v61  ;;  %v7785_v24 = vadd.f32 %v7658_v11, %v6987_v12  ;;  %v10378_v54 = vpop.f32.mrb[145].mxu0 }
 0x428   : > { %v7661_v8 = vpop.f32.mrb[146].mxu0 }
 0x429   : > { %7955 = vst.msk [vmem:[#allocation2 + $0x58] sm:$0xff] %vm7943_vm7, %v7929_v44  ;;  %v7842_v5 = vadd.f32 %v14243_v47, %v7785_v24  ;;  %v7786_v14 = vadd.f32 %v7661_v8, %v6988_v3  ;;  %v10379_v1 = vpop.f32.mrb[147].mxu0  ;;  %v6868_v20 = vpop.f32.mrb[144].mxu1 }
 0x42a   : > { %v6989_v32 = vadd.f32 %v6868_v20, %v14707_v13  ;;  %v10266_v2 = vpop.f32.mrb[145].mxu1 }
 0x42b   : > { %v7843_v40 = vadd.f32 %v14243_v47, %v7786_v14  ;;  %v6871_v19 = vpop.f32.mrb[146].mxu1  ;;  %v7892_v39 = vmax.f32 %v7842_v5, 0.0  ;;  %v14711_v5 = vld [vmem:[#allocation40_spill] sm:$0xff] }
 0x42c   : > { %v6990_v0 = vadd.f32 %v6871_v19, %v14708_v60  ;;  %v10267_v30 = vpop.f32.mrb[147].mxu1 }
 0x42d   : > { %v7893_v6 = vmax.f32 %v7843_v40, 0.0 }
 0x42e   : > { %v7666_v26 = vpop.f32.mrb[148].mxu0 }
 0x42f   : > { %v7930_v42 = vmax.f32 %v7892_v39, %v7893_v6  ;;  %v7787_v45 = vadd.f32 %v7666_v26, %v6989_v32  ;;  %v10382_v36 = vpop.f32.mrb[149].mxu0 }
 0x430   : > { %v7979_v23 = vld [vmem:[#allocation2 + $0x50] ss:$2 sm:$0xff]  ;;  %v8005_v57 = vld [vmem:[#allocation2 + $0x51] ss:$2 sm:$0xff]  ;;  %v7669_v49 = vpop.f32.mrb[150].mxu0 }
 0x431   : > { %v8025_v46 = vmax.f32 %v7979_v23, %v8005_v57  ;;  %7956 = vst.msk [vmem:[#allocation2 + $0x60] sm:$0xff] %vm7943_vm7, %v7930_v42  ;;  %v7844_v59 = vadd.f32 %v14243_v47, %v7787_v45  ;;  %v7788_v27 = vadd.f32 %v7669_v49, %v6990_v0  ;;  %v10383_v38 = vpop.f32.mrb[151].mxu0  ;;  %v6876_v16 = vpop.f32.mrb[148].mxu1  ;;  %v14712_v42 = vld [vmem:[#allocation42_spill] sm:$0xff] }
 0x432   : > { %v6991_v53 = vadd.f32 %v6876_v16, %v14709_v15  ;;  %v10270_v35 = vpop.f32.mrb[149].mxu1 }
 0x433   : > { %8038 = vst.msk [vmem:[%s14263_s21 + $0x28] sm:$0xff] %vm7943_vm7, %v8025_v46  ;;  %v7845_v22 = vadd.f32 %v14243_v47, %v7788_v27  ;;  %v6879_v63 = vpop.f32.mrb[150].mxu1  ;;  %v7894_v48 = vmax.f32 %v7844_v59, 0.0  ;;  %v14713_v46 = vld [vmem:[#allocation43_spill] sm:$0xff] }
 0x434   : > { %v6992_v55 = vadd.f32 %v6879_v63, %v14710_v18  ;;  %v10271_v10 = vpop.f32.mrb[151].mxu1 }
 0x435   : > { %v7895_v33 = vmax.f32 %v7845_v22, 0.0 }
 0x436   : > { %v7674_v12 = vpop.f32.mrb[152].mxu0 }
 0x437   : > { %v7931_v62 = vmax.f32 %v7894_v48, %v7895_v33  ;;  %v7789_v58 = vadd.f32 %v7674_v12, %v6991_v53  ;;  %v10386_v56 = vpop.f32.mrb[153].mxu0  ;;  %v14714_v33 = vld [vmem:[#allocation46_spill] sm:$0xff] }
 0x438   : > { %v7677_v29 = vpop.f32.mrb[154].mxu0 }
 0x439   : > { %7957 = vst.msk [vmem:[#allocation2 + $0x68] sm:$0xff] %vm7943_vm7, %v7931_v62  ;;  %v7846_v17 = vadd.f32 %v14243_v47, %v7789_v58  ;;  %v7790_v3 = vadd.f32 %v7677_v29, %v6992_v55  ;;  %v10387_v61 = vpop.f32.mrb[155].mxu0  ;;  %v6884_v7 = vpop.f32.mrb[152].mxu1  ;;  %v14715_v29 = vld [vmem:[#allocation47_spill] sm:$0xff] }
 0x43a   : > { %v6993_v11 = vadd.f32 %v6884_v7, %v14016_v41  ;;  %v10274_v44 = vpop.f32.mrb[153].mxu1 }
 0x43b   : > { %v7847_v24 = vadd.f32 %v14243_v47, %v7790_v3  ;;  %v6887_v54 = vpop.f32.mrb[154].mxu1  ;;  %v7896_v8 = vmax.f32 %v7846_v17, 0.0 }
 0x43c   : > { %v6994_v14 = vadd.f32 %v6887_v54, %v14711_v5  ;;  %v10275_v20 = vpop.f32.mrb[155].mxu1 }
 0x43d   : > { %v7897_v1 = vmax.f32 %v7847_v24, 0.0 }
 0x43e   : > { %v7682_v13 = vpop.f32.mrb[156].mxu0 }
 0x43f   : > { %v7932_v32 = vmax.f32 %v7896_v8, %v7897_v1  ;;  %v7791_v2 = vadd.f32 %v7682_v13, %v6993_v11  ;;  %v10390_v40 = vpop.f32.mrb[157].mxu0 }
 0x440   : > { %v7981_v19 = vld [vmem:[#allocation2 + $0x60] ss:$2 sm:$0xff]  ;;  %v8007_v39 = vld [vmem:[#allocation2 + $0x61] ss:$2 sm:$0xff]  ;;  %v7685_v60 = vpop.f32.mrb[158].mxu0 }
 0x441   : > { %v8026_v0 = vmax.f32 %v7981_v19, %v8007_v39  ;;  %7958 = vst.msk [vmem:[#allocation2 + $0x70] sm:$0xff] %vm7943_vm7, %v7932_v32  ;;  %v7848_v41 = vadd.f32 %v14243_v47, %v7791_v2  ;;  %v7792_v6 = vadd.f32 %v7685_v60, %v6994_v14  ;;  %v10391_v30 = vpop.f32.mrb[159].mxu0  ;;  %v6892_v26 = vpop.f32.mrb[156].mxu1  ;;  %v14716_v2 = vld [vmem:[#allocation48_spill] sm:$0xff] }
 0x442   : > { %v6995_v45 = vadd.f32 %v6892_v26, %v14712_v42  ;;  %v10278_v36 = vpop.f32.mrb[157].mxu1 }
 0x443   : > { %8039 = vst.msk [vmem:[%s14263_s21 + $0x30] sm:$0xff] %vm7943_vm7, %v8026_v0  ;;  %v7849_v23 = vadd.f32 %v14243_v47, %v7792_v6  ;;  %v6895_v57 = vpop.f32.mrb[158].mxu1  ;;  %v7898_v49 = vmax.f32 %v7848_v41, 0.0  ;;  %v14717_v41 = vld [vmem:[#allocation49_spill] sm:$0xff] }
 0x444   : > { %v6996_v59 = vadd.f32 %v6895_v57, %v14713_v46  ;;  %v10279_v38 = vpop.f32.mrb[159].mxu1 }
 0x445   : > { %v7899_v27 = vmax.f32 %v7849_v23, 0.0 }
 0x446   : > { %v7690_v16 = vpop.f32.mrb[160].mxu0 }
 0x447   : > { %v7933_v15 = vmax.f32 %v7898_v49, %v7899_v27  ;;  %v7793_v53 = vadd.f32 %v7690_v16, %v6995_v45  ;;  %v10394_v35 = vpop.f32.mrb[161].mxu0 }
 0x448   : > { %v7693_v22 = vpop.f32.mrb[162].mxu0 }
 0x449   : > { %7959 = vst.msk [vmem:[#allocation2 + $0x78] sm:$0xff] %vm7943_vm7, %v7933_v15  ;;  %v7850_v63 = vadd.f32 %v14243_v47, %v7793_v53  ;;  %v7794_v48 = vadd.f32 %v7693_v22, %v6996_v59  ;;  %v10395_v18 = vpop.f32.mrb[163].mxu0  ;;  %v6900_v55 = vpop.f32.mrb[160].mxu1 }
 0x44a   : > { %v6997_v10 = vadd.f32 %v6900_v55, %v14714_v33  ;;  %v10282_v12 = vpop.f32.mrb[161].mxu1 }
 0x44b   : > { %v7851_v62 = vadd.f32 %v14243_v47, %v7794_v48  ;;  %v6903_v58 = vpop.f32.mrb[162].mxu1  ;;  %v7900_v56 = vmax.f32 %v7850_v63, 0.0 }
 0x44c   : > { %v6998_v17 = vadd.f32 %v6903_v58, %v14715_v29  ;;  %v10283_v61 = vpop.f32.mrb[163].mxu1 }
 0x44d   : > { %v7901_v3 = vmax.f32 %v7851_v62, 0.0 }
 0x44e   : > { %v7698_v7 = vpop.f32.mrb[164].mxu0 }
 0x44f   : > { %v7934_v11 = vmax.f32 %v7900_v56, %v7901_v3  ;;  %v7795_v44 = vadd.f32 %v7698_v7, %v6997_v10  ;;  %v10398_v24 = vpop.f32.mrb[165].mxu0 }
 0x450   : > { %v7983_v54 = vld [vmem:[#allocation2 + $0x70] ss:$2 sm:$0xff]  ;;  %v8009_v8 = vld [vmem:[#allocation2 + $0x71] ss:$2 sm:$0xff]  ;;  %v7701_v5 = vpop.f32.mrb[166].mxu0 }
 0x451   : > { %v8027_v14 = vmax.f32 %v7983_v54, %v8009_v8  ;;  %7960 = vst.msk [vmem:[#allocation2 + $0x80] sm:$0xff] %vm7943_vm7, %v7934_v11  ;;  %v7852_v1 = vadd.f32 %v14243_v47, %v7795_v44  ;;  %v7796_v20 = vadd.f32 %v7701_v5, %v6998_v17  ;;  %v10399_v13 = vpop.f32.mrb[167].mxu0  ;;  %v6908_v32 = vpop.f32.mrb[164].mxu1 }
 0x452   : > { %v6999_v40 = vadd.f32 %v6908_v32, %v14716_v2  ;;  %v10286_v19 = vpop.f32.mrb[165].mxu1 }
 0x453   : > { %8040 = vst.msk [vmem:[%s14263_s21 + $0x38] sm:$0xff] %vm7943_vm7, %v8027_v14  ;;  %v7853_v39 = vadd.f32 %v14243_v47, %v7796_v20  ;;  %v6911_v60 = vpop.f32.mrb[166].mxu1  ;;  %v7902_v0 = vmax.f32 %v7852_v1, 0.0 }
 0x454   : > { %v7000_v6 = vadd.f32 %v6911_v60, %v14717_v41  ;;  %v10287_v26 = vpop.f32.mrb[167].mxu1 }
 0x455   : > { %v7903_v30 = vmax.f32 %v7853_v39, 0.0 }
 0x456   : > { %v7706_v42 = vpop.f32.mrb[168].mxu0 }
 0x457   : > { %v7935_v45 = vmax.f32 %v7902_v0, %v7903_v30  ;;  %v7797_v36 = vadd.f32 %v7706_v42, %v6999_v40  ;;  %v10402_v23 = vpop.f32.mrb[169].mxu0 }
 0x458   : > { %v7709_v57 = vpop.f32.mrb[170].mxu0 }
 0x459   : > { %7961 = vst.msk [vmem:[#allocation2 + $0x88] sm:$0xff] %vm7943_vm7, %v7935_v45  ;;  %v7854_v49 = vadd.f32 %v14243_v47, %v7797_v36  ;;  %v7798_v46 = vadd.f32 %v7709_v57, %v7000_v6  ;;  %v10403_v59 = vpop.f32.mrb[171].mxu0  ;;  %v6916_v27 = vpop.f32.mrb[168].mxu1 }
 0x45a   : > { %v7001_v38 = vadd.f32 %v6916_v27, %v14155_v43  ;;  %v10290_v16 = vpop.f32.mrb[169].mxu1 }
 0x45b   : > { %v7855_v15 = vadd.f32 %v14243_v47, %v7798_v46  ;;  %v6919_v53 = vpop.f32.mrb[170].mxu1  ;;  %v7904_v35 = vmax.f32 %v7854_v49, 0.0 }
 0x45c   : > { %v7002_v22 = vadd.f32 %v6919_v53, %v14160_v34  ;;  %v10291_v48 = vpop.f32.mrb[171].mxu1 }
 0x45d   : > { %v7905_v63 = vmax.f32 %v7855_v15, 0.0 }
 0x45e   : > { %v7714_v18 = vpop.f32.mrb[172].mxu0 }
 0x45f   : > { %v7936_v55 = vmax.f32 %v7904_v35, %v7905_v63  ;;  %v7799_v33 = vadd.f32 %v7714_v18, %v7001_v38  ;;  %v10406_v10 = vpop.f32.mrb[173].mxu0 }
 0x460   : > { %v7985_v12 = vld [vmem:[#allocation2 + $0x80] ss:$2 sm:$0xff]  ;;  %v8011_v62 = vld [vmem:[#allocation2 + $0x81] ss:$2 sm:$0xff]  ;;  %v7717_v58 = vpop.f32.mrb[174].mxu0 }
 0x461   : > { %v8028_v56 = vmax.f32 %v7985_v12, %v8011_v62  ;;  %7962 = vst.msk [vmem:[#allocation2 + $0x90] sm:$0xff] %vm7943_vm7, %v7936_v55  ;;  %v7856_v43 = vadd.f32 %v14243_v47, %v7799_v33  ;;  %v7800_v29 = vadd.f32 %v7717_v58, %v7002_v22  ;;  %v10407_v17 = vpop.f32.mrb[175].mxu0  ;;  %v6924_v3 = vpop.f32.mrb[172].mxu1 }
 0x462   : > { %v7003_v34 = vadd.f32 %v6924_v3, %v14182_v4  ;;  %v10294_v61 = vpop.f32.mrb[173].mxu1 }
 0x463   : > { %8041 = vst.msk [vmem:[%s14263_s21 + $0x40] sm:$0xff] %vm7943_vm7, %v8028_v56  ;;  %v7857_v7 = vadd.f32 %v14243_v47, %v7800_v29  ;;  %v6927_v11 = vpop.f32.mrb[174].mxu1  ;;  %v7906_v44 = vmax.f32 %v7856_v43, 0.0 }
 0x464   : > { %v7004_v24 = vadd.f32 %v6927_v11, %v14190_v25  ;;  %v10295_v8 = vpop.f32.mrb[175].mxu1 }
 0x465   : > { %v7907_v54 = vmax.f32 %v7857_v7, 0.0 }
 0x466   : > { %v7722_v5 = vpop.f32.mrb[176].mxu0 }
 0x467   : > { %v7937_v14 = vmax.f32 %v7906_v44, %v7907_v54  ;;  %v7801_v1 = vadd.f32 %v7722_v5, %v7003_v34  ;;  %v10410_v20 = vpop.f32.mrb[177].mxu0 }
 0x468   : > { %v7725_v13 = vpop.f32.mrb[178].mxu0 }
 0x469   : > { %7963 = vst.msk [vmem:[#allocation2 + $0x98] sm:$0xff] %vm7943_vm7, %v7937_v14  ;;  %v7858_v32 = vadd.f32 %v14243_v47, %v7801_v1  ;;  %v7802_v2 = vadd.f32 %v7725_v13, %v7004_v24  ;;  %v10411_v4 = vpop.f32.mrb[179].mxu0  ;;  %v6932_v40 = vpop.f32.mrb[176].mxu1 }
 0x46a   : > { %v7005_v19 = vadd.f32 %v6932_v40, %v14202_v50  ;;  %v10298_v39 = vpop.f32.mrb[177].mxu1 }
 0x46b   : > { %v7859_v60 = vadd.f32 %v14243_v47, %v7802_v2  ;;  %v6935_v25 = vpop.f32.mrb[178].mxu1  ;;  %v7908_v0 = vmax.f32 %v7858_v32, 0.0 }
 0x46c   : > { %v7006_v41 = vadd.f32 %v6935_v25, %v14212_v21  ;;  %v10299_v30 = vpop.f32.mrb[179].mxu1 }
 0x46d   : > { %v7909_v6 = vmax.f32 %v7859_v60, 0.0 }
 0x46e   : > { %v7730_v26 = vpop.f32.mrb[180].mxu0 }
 0x46f   : > { %v7938_v42 = vmax.f32 %v7908_v0, %v7909_v6  ;;  %v7803_v45 = vadd.f32 %v7730_v26, %v7005_v19  ;;  %v10414_v36 = vpop.f32.mrb[181].mxu0 }
 0x470   : > { %v7987_v23 = vld [vmem:[#allocation2 + $0x90] ss:$2 sm:$0xff]  ;;  %v8013_v57 = vld [vmem:[#allocation2 + $0x91] ss:$2 sm:$0xff]  ;;  %v7733_v49 = vpop.f32.mrb[182].mxu0 }
 0x471   : > { %v8029_v46 = vmax.f32 %v7987_v23, %v8013_v57  ;;  %7964 = vst.msk [vmem:[#allocation2 + $0xa0] sm:$0xff] %vm7943_vm7, %v7938_v42  ;;  %v7860_v50 = vadd.f32 %v14243_v47, %v7803_v45  ;;  %v7804_v59 = vadd.f32 %v7733_v49, %v7006_v41  ;;  %v10415_v27 = vpop.f32.mrb[183].mxu0  ;;  %v6940_v38 = vpop.f32.mrb[180].mxu1 }
 0x472   : > { %v7007_v21 = vadd.f32 %v6940_v38, %v14222_v51  ;;  %v10302_v16 = vpop.f32.mrb[181].mxu1 }
 0x473   : > { %8042 = vst.msk [vmem:[%s14263_s21 + $0x48] sm:$0xff] %vm7943_vm7, %v8029_v46  ;;  %v7861_v15 = vadd.f32 %v14243_v47, %v7804_v59  ;;  %v6943_v53 = vpop.f32.mrb[182].mxu1  ;;  %v7910_v35 = vmax.f32 %v7860_v50, 0.0 }
 0x474   : > { %v7008_v22 = vadd.f32 %v6943_v53, %v14224_v52  ;;  %v10303_v48 = vpop.f32.mrb[183].mxu1 }
 0x475   : > { %v7911_v63 = vmax.f32 %v7861_v15, 0.0 }
 0x476   : > { %v7738_v18 = vpop.f32.mrb[184].mxu0 }
 0x477   : > { %v7939_v55 = vmax.f32 %v7910_v35, %v7911_v63  ;;  %v7805_v33 = vadd.f32 %v7738_v18, %v7007_v21  ;;  %v10418_v10 = vpop.f32.mrb[185].mxu0 }
 0x478   : > { %v7741_v12 = vpop.f32.mrb[186].mxu0 }
 0x479   : > { %7965 = vst.msk [vmem:[#allocation2 + $0xa8] sm:$0xff] %vm7943_vm7, %v7939_v55  ;;  %v7862_v62 = vadd.f32 %v14243_v47, %v7805_v33  ;;  %v7806_v58 = vadd.f32 %v7741_v12, %v7008_v22  ;;  %v10419_v51 = vpop.f32.mrb[187].mxu0  ;;  %v6948_v56 = vpop.f32.mrb[184].mxu1 }
 0x47a   : > { %v7009_v43 = vadd.f32 %v6948_v56, %v14228_v28  ;;  %v10306_v29 = vpop.f32.mrb[185].mxu1 }
 0x47b   : > { %v7863_v17 = vadd.f32 %v14243_v47, %v7806_v58  ;;  %v6951_v52 = vpop.f32.mrb[186].mxu1  ;;  %v7912_v3 = vmax.f32 %v7862_v62, 0.0 }
 0x47c   : > { %v7010_v34 = vadd.f32 %v6951_v52, %v14230_v37  ;;  %v10307_v7 = vpop.f32.mrb[187].mxu1 }
 0x47d   : > { %v7913_v61 = vmax.f32 %v7863_v17, 0.0 }
 0x47e   : > { %v7746_v11 = vpop.f32.mrb[188].mxu0 }
 0x47f   : > { %v7940_v44 = vmax.f32 %v7912_v3, %v7913_v61  ;;  %v7807_v24 = vadd.f32 %v7746_v11, %v7009_v43  ;;  %v10422_v54 = vpop.f32.mrb[189].mxu0 }
 0x480   : > { %v7989_v8 = vld [vmem:[#allocation2 + $0xa0] ss:$2 sm:$0xff]  ;;  %v8015_v5 = vld [vmem:[#allocation2 + $0xa1] ss:$2 sm:$0xff]  ;;  %v7749_v14 = vpop.f32.mrb[190].mxu0 }
 0x481   : > { %v8030_v1 = vmax.f32 %v7989_v8, %v8015_v5  ;;  %7966 = vst.msk [vmem:[#allocation2 + $0xb0] sm:$0xff] %vm7943_vm7, %v7940_v44  ;;  %v7864_v28 = vadd.f32 %v14243_v47, %v7807_v24  ;;  %v7808_v20 = vadd.f32 %v7749_v14, %v7010_v34  ;;  %v10423_v13 = vpop.f32.mrb[191].mxu0  ;;  %v6956_v32 = vpop.f32.mrb[188].mxu1 }
 0x482   : > { %v7011_v37 = vadd.f32 %v6956_v32, %v14234_v9  ;;  %v10310_v2 = vpop.f32.mrb[189].mxu1 }
 0x483   : > { %8043 = vst.msk [vmem:[%s14263_s21 + $0x50] sm:$0xff] %vm7943_vm7, %v8030_v1  ;;  %v7865_v4 = vadd.f32 %v14243_v47, %v7808_v20  ;;  %v6959_v40 = vpop.f32.mrb[190].mxu1  ;;  %v7914_v19 = vmax.f32 %v7864_v28, 0.0 }
 0x484   : > { %v7012_v39 = vadd.f32 %v6959_v40, %v14236_v31  ;;  %v10311_v25 = vpop.f32.mrb[191].mxu1 }
 0x485   : > { %v7915_v60 = vmax.f32 %v7865_v4, 0.0 }
 0x486   : > { %v7754_v0 = vpop.f32.mrb[192].mxu0 }
 0x487   : > { %v7941_v41 = vmax.f32 %v7914_v19, %v7915_v60  ;;  %v7809_v6 = vadd.f32 %v7754_v0, %v7011_v37  ;;  %v10426_v30 = vpop.f32.mrb[193].mxu0 }
 0x488   : > { %v7757_v26 = vpop.f32.mrb[194].mxu0 }
 0x489   : > { %7967 = vst.msk [vmem:[#allocation2 + $0xb8] sm:$0xff] %vm7943_vm7, %v7941_v41  ;;  %v7866_v42 = vadd.f32 %v14243_v47, %v7809_v6  ;;  %v7810_v9 = vadd.f32 %v7757_v26, %v7012_v39  ;;  %v10427_v45 = vpop.f32.mrb[195].mxu0 }
 0x48b   : > { %v7867_v36 = vadd.f32 %v14243_v47, %v7810_v9  ;;  %v7916_v23 = vmax.f32 %v7866_v42, 0.0 }
 0x48d   : > { %v7917_v57 = vmax.f32 %v7867_v36, 0.0 }
 0x48f   : > { %v7942_v31 = vmax.f32 %v7916_v23, %v7917_v57 }
 0x490   : > { %v7991_v49 = vld [vmem:[#allocation2 + $0xb0] ss:$2 sm:$0xff]  ;;  %v8017_v46 = vld [vmem:[#allocation2 + $0xb1] ss:$2 sm:$0xff] }
 0x491   : > { %v8031_v50 = vmax.f32 %v7991_v49, %v8017_v46  ;;  %7968 = vst.msk [vmem:[#allocation2 + $0xc0] sm:$0xff] %vm7943_vm7, %v7942_v31 }
 0x493   : > { %8044 = vst.msk [vmem:[%s14263_s21 + $0x58] sm:$0xff] %vm7943_vm7, %v8031_v50 }
 0x498   : > { %v7993_v59 = vld [vmem:[#allocation2 + $0xc0] ss:$2 sm:$0xf]  ;;  %v8019_v27 = vld [vmem:[#allocation2 + $0xc1] ss:$2 sm:$0xf] }
 0x499   : > { %v8032_v38 = vmax.f32 %v7993_v59, %v8019_v27 }
 0x49b   : > { %8046 = vst.msk [vmem:[%s14263_s21 + $0x60] sm:$0xf] %vm8045_vm8, %v8032_v38 }
 0x49c PF: > { %s13_s12 = sadd.s32 1, %s10731_s12  }
 0x49d   : > { %p10_p4 = scmp.ge.s32.totalorder %s13_s12, 4  }
 0x49f   :  { %12 = sbr.rel (!%p10_p4) target bundleno = 1 (0x1), region = 97 }

</bundles_post_ra>
